<compile_context>
chip_gen: v6e
topology: v6e:2x2x1
jax: 0.10.0
libtpu: 0.0.40
codegen_flags: <defaults>
</compile_context>

<pallas_src>
import numpy as np
import jax
import jax.numpy as jnp
from jax.experimental import pallas as pl
from jax.experimental.pallas import tpu as pltpu


LANE = 128          # lane-dense padded channel width
SUBLANE = 8         # f32 sublane tile
NUM_CLASSES = 10


# --------------------------------------------------------------------------- #
# Fused Pallas kernel: conv1 -> conv2 -> vertex-sum -> fc
# --------------------------------------------------------------------------- #
def _make_fused_kernel(row_shifts, V, Bp):
    """row_shifts[k] = (offset_k * Bp) % (V*Bp) -- static, all multiples of 8."""
    VBp = V * Bp
    K = len(row_shifts)

    def kernel(xg1_ref, w1_ref, b1_ref, w2_ref, b2_ref, wf_ref, bf_ref,
               mask_ref, o_ref, y1d_ref):
        # xg1_ref : [VBp,128] bf16  layer-1 gathered operand (packed in wrapper)
        # w1_ref  : [128,128] bf16  [K*C0,C1] weights replicated into K lane
        #                           blocks ("spread"); b1_ref [1,128] f32
        # w2_ref  : [128,128] bf16  [K*C1,C2] collapsed weights; b2_ref [1,128]
        # wf_ref  : [128,128] bf16  fc weights; bf_ref [1,128] f32
        # mask_ref: [8,128]   f32   0/1 lane masks of blocks [k*C1,(k+1)*C1)
        # o_ref   : [Bp,128]  f32   lane-dense logits (sliced outside)
        # y1d_ref : VMEM [2*VBp,128] f32  layer-1 output, vertex-duplicated

        # ---- SphereConv 1: per-neighbour K-loop collapsed into ONE MXU matmul.
        y1 = jnp.dot(xg1_ref[...], w1_ref[...],
                     preferred_element_type=jnp.float32) + b1_ref[...]

        # Duplicate so every wrap-around ring shift is one contiguous,
        # (8,128)-aligned slice; both halves written from the in-register value.
        y1d_ref[pl.ds(0, VBp), :] = y1
        y1d_ref[pl.ds(VBp, VBp), :] = y1

        # ---- Pack the layer-2 gathered operand in-kernel: y1 is already
        # replicated in every lane block, so lane block k of the packed operand
        # is (ring-shift t_k of y1) AND (lane mask k) -> pure VPU mul/add,
        # no XLU rotates, no masked stores, every slice sublane-aligned.
        xg2 = y1d_ref[pl.ds(row_shifts[0], VBp), :] * mask_ref[pl.ds(0, 1), :]
        for k in range(1, K):
            xg2 = xg2 + (y1d_ref[pl.ds(row_shifts[k], VBp), :]
                         * mask_ref[pl.ds(k, 1), :])

        # ---- SphereConv 2: ONE MXU matmul (single f32->bf16 cast of operand).
        y2 = jnp.dot(xg2.astype(jnp.bfloat16), w2_ref[...],
                     preferred_element_type=jnp.float32) + b2_ref[...]

        # ---- torch.sum(x, dim=0): per-batch vertex reduction.  The trailing
        # (Bp,128) block is exactly one vreg tile, so this is pure vreg adds.
        s = jnp.sum(y2.reshape(V, Bp, LANE), axis=0)

        # ---- fc: Linear(dim_out, 10); full 128-lane unmasked store.
        o_ref[...] = jnp.dot(s.astype(jnp.bfloat16), wf_ref[...],
                             preferred_element_type=jnp.float32) + bf_ref[...]

    return kernel


# --------------------------------------------------------------------------- #
# One-time parameter packing (hoisted out of the per-call path)
# --------------------------------------------------------------------------- #
def pack_params(params, num_classes=NUM_CLASSES):
    (w1, b1), (w2, b2) = params["conv"]
    wf, bf = params["fc"]
    K, C0, C1 = w1.shape
    C2 = w2.shape[-1]
    assert K * C0 <= LANE and K * C1 <= LANE
    assert max(C1, C2, num_classes) <= LANE

    # Layer-1 weights reshaped [K*C0, C1] and replicated ("spread") into all K
    # lane blocks so y1 leaves the MXU already positioned for layer-2 packing.
    w1_flat = w1.reshape(K * C0, C1)
    w1_spread = jnp.zeros((LANE, LANE), jnp.float32)
    b1_spread = jnp.zeros((1, LANE), jnp.float32)
    for k in range(K):
        w1_spread = w1_spread.at[:K * C0, k * C1:(k + 1) * C1].set(w1_flat)
        b1_spread = b1_spread.at[:, k * C1:(k + 1) * C1].set(b1.reshape(1, C1))

    # Layer-2 weights collapsed to a single [K*C1, C2] matmul operand.
    w2_flat = jnp.zeros((LANE, LANE), jnp.float32)
    w2_flat = w2_flat.at[:K * C1, :C2].set(w2.reshape(K * C1, C2))
    b2_p = jnp.zeros((1, LANE), jnp.float32).at[:, :C2].set(b2.reshape(1, C2))

    wf_p = jnp.zeros((LANE, LANE), jnp.float32).at[:C2, :num_classes].set(wf)
    bf_p = jnp.zeros((1, LANE), jnp.float32).at[:, :num_classes].set(
        bf.reshape(1, num_classes))

    # 0/1 lane masks selecting block [k*C1, (k+1)*C1) for in-kernel packing.
    lanes = jnp.arange(LANE)
    mask = jnp.stack(
        [((lanes >= k * C1) & (lanes < (k + 1) * C1)).astype(jnp.float32)
         for k in range(K)], axis=0)
    mask = jnp.pad(mask, ((0, (-K) % SUBLANE), (0, 0)))

    return dict(w1=w1_spread.astype(jnp.bfloat16), b1=b1_spread,
                w2=w2_flat.astype(jnp.bfloat16), b2=b2_p,
                wf=wf_p.astype(jnp.bfloat16), bf=bf_p,
                mask=mask, K=K, C0=C0, C1=C1, C2=C2)


# --------------------------------------------------------------------------- #
# Wrapper (layout plumbing + pallas_call)
# --------------------------------------------------------------------------- #
def sphere_gauge_cnn_forward(x, offsets, packed, num_classes=NUM_CLASSES):
    """x: [V, B, C0] f32 -> logits [B, num_classes] f32, one fused kernel."""
    V, B, C0 = x.shape
    K = packed["K"]
    assert C0 == packed["C0"] and K == len(offsets)

    # Pad batch to a sublane multiple: every ring shift (off*Bp) becomes a
    # multiple of 8, so all in-kernel pl.ds row slices are (8,128)-aligned.
    Bp = max(SUBLANE, ((B + SUBLANE - 1) // SUBLANE) * SUBLANE)
    VBp = V * Bp
    x_p = jnp.pad(x, ((0, 0), (0, Bp - B), (0, 0)))

    # Pack the layer-1 gathered operand in the wrapper: lane block k holds the
    # neighbour-k (vertex ring shift) copy of the input channels.
    blocks = [jnp.roll(x_p, -off, axis=0) for off in offsets]
    xg1 = jnp.concatenate(blocks, axis=-1).reshape(VBp, K * C0)
    xg1 = jnp.pad(xg1, ((0, 0), (0, LANE - K * C0))).astype(jnp.bfloat16)

    # TODO(synk): real IcosahedronGrid geodesic neighbourhoods + gauge-transport
    # basis (KernelPrecomputation) are not replicated (source unavailable); the
    # synthetic fixed-offset ring lets the gather be static row shifts. Arbitrary
    # neighbour tables would need a scalar-prefetch-driven in-kernel gather.
    row_shifts = tuple(int((off * Bp) % VBp) for off in offsets)
    kernel = _make_fused_kernel(row_shifts, V, Bp)

    out = pl.pallas_call(
        kernel,
        out_shape=jax.ShapeDtypeStruct((Bp, LANE), jnp.float32),
        in_specs=[
            pl.BlockSpec((VBp, LANE), lambda: (0, 0)),       # xg1
            pl.BlockSpec((LANE, LANE), lambda: (0, 0)),      # w1 (spread)
            pl.BlockSpec((1, LANE), lambda: (0, 0)),         # b1
            pl.BlockSpec((LANE, LANE), lambda: (0, 0)),      # w2 (collapsed)
            pl.BlockSpec((1, LANE), lambda: (0, 0)),         # b2
            pl.BlockSpec((LANE, LANE), lambda: (0, 0)),      # wf
            pl.BlockSpec((1, LANE), lambda: (0, 0)),         # bf
            pl.BlockSpec((SUBLANE, LANE), lambda: (0, 0)),   # lane masks
        ],
        out_specs=pl.BlockSpec((Bp, LANE), lambda: (0, 0)),
        scratch_shapes=[
            pltpu.VMEM((2 * VBp, LANE), jnp.float32),        # y1, duplicated
        ],
        compiler_params=pltpu.CompilerParams(vmem_limit_bytes=32 * 1024 * 1024),
        # TODO(synk): when V*B grows to many thousands of rows, add a
        # ("parallel",) grid over row tiles (halo rows handled via the
        # duplicated scratch / index_map offsets) so v7x's two TensorCores are
        # used, and size tiles against its 64 MiB (not 128 MiB) VMEM.
    )(xg1, packed["w1"], packed["b1"], packed["w2"], packed["b2"],
      packed["wf"], packed["bf"], packed["mask"])
    return out[:B, :num_classes]


# --------------------------------------------------------------------------- #
# Synthetic parameters / neighbour structure + plain-JAX reference
# --------------------------------------------------------------------------- #
def make_neighbor_indices(V, offsets):
    # TODO(synk): synthetic 1-ring (self + 6 fixed-offset neighbours) stands in
    # for grid.geodesicNeighbor(3.6/n).
    v = np.arange(V)[:, None]
    off = np.asarray(offsets)[None, :]
    return jnp.asarray((v + off) % V, dtype=jnp.int32)


def init_params(key, rep, K, num_classes=NUM_CLASSES):
    conv_params = []
    for d in range(len(rep) - 1):
        key, k1, k2 = jax.random.split(key, 3)
        fan_in = K * rep[d]
        w = jax.random.normal(k1, (K, rep[d], rep[d + 1]), jnp.float32) / np.sqrt(fan_in)
        b = 0.01 * jax.random.normal(k2, (rep[d + 1],), jnp.float32)
        conv_params.append((w, b))
    key, k1, k2 = jax.random.split(key, 3)
    wf = jax.random.normal(k1, (rep[-1], num_classes), jnp.float32) / np.sqrt(rep[-1])
    bf = 0.01 * jax.random.normal(k2, (num_classes,), jnp.float32)
    return {"conv": conv_params, "fc": (wf, bf)}


def reference_forward(x, nbr_idx, params):
    # TODO(synk): SphereConv source unavailable; modelled as neighbour gather +
    # per-neighbour channel mixing + bias (no nonlinearity shown in forward).
    for (w, b) in params["conv"]:
        V, B, Cin = x.shape
        Kk, _, Cout = w.shape
        xg = x[nbr_idx]                                         # [V, K, B, Cin]
        xg = jnp.transpose(xg, (0, 2, 1, 3)).reshape(V * B, Kk * Cin)
        x = (xg @ w.reshape(Kk * Cin, Cout) + b).reshape(V, B, Cout)
    wf, bf = params["fc"]
    return jnp.sum(x, axis=0) @ wf + bf


# --------------------------------------------------------------------------- #
if __name__ == "__main__":
    n = 4
    V = 10 * n * n + 2          # 162 vertices of the subdivided icosahedron
    rep = (4, 16, 32)           # rep dims per layer -> depth = 2 SphereConvs
    K = 7                       # self + 6 geodesic neighbours
    B = 2                       # batch
    offsets = (0, 1, -1, 7, -7, 13, -13)

    key = jax.random.PRNGKey(0)
    key, kx, kp = jax.random.split(key, 3)
    x = jax.random.normal(kx, (V, B, rep[0]), jnp.float32)
    params = init_params(kp, rep, K)

    # Weight padding / reshaping / bf16 casts done ONCE, outside the call path.
    packed = pack_params(params)

    fwd = jax.jit(lambda xx: sphere_gauge_cnn_forward(xx, offsets, packed))
    out = jax.block_until_ready(fwd(x))
    assert out.shape == (B, NUM_CLASSES) and out.dtype == jnp.float32

    # Correctness vs plain-JAX f32 reference (loose tol: bf16 MXU operands).
    nbr_idx = make_neighbor_indices(V, offsets)
    ref = reference_forward(x, nbr_idx, params)
    err = float(jnp.max(jnp.abs(out - ref)) / (jnp.max(jnp.abs(ref)) + 1e-6))
    assert err < 5e-2, f"mismatch vs reference: rel-max-err={err:.4f}"
    print("KERNEL_OK")
</pallas_src>

<mosaic_0001>
module attributes {stable_mosaic.version = 11 : i64} {
  func.func @kernel(%arg0: memref<1296x128xbf16, #tpu.memory_space<vmem>>, %arg1: memref<128x128xbf16, #tpu.memory_space<vmem>>, %arg2: memref<1x128xf32, #tpu.memory_space<vmem>>, %arg3: memref<128x128xbf16, #tpu.memory_space<vmem>>, %arg4: memref<1x128xf32, #tpu.memory_space<vmem>>, %arg5: memref<128x128xbf16, #tpu.memory_space<vmem>>, %arg6: memref<1x128xf32, #tpu.memory_space<vmem>>, %arg7: memref<8x128xf32, #tpu.memory_space<vmem>>, %arg8: memref<8x128xf32, #tpu.memory_space<vmem>>, %arg9: memref<2592x128xf32, #tpu.memory_space<vmem>>) attributes {dimension_semantics = [], scalar_prefetch = 0 : i64, scratch_operands = 1 : i64, tpu.core_type = #tpu.core_type<tc>} {
    %c0 = arith.constant 0 : index
    %c0_0 = arith.constant 0 : index
    %0 = vector.load %arg0[%c0, %c0_0] : memref<1296x128xbf16, #tpu.memory_space<vmem>>, vector<1296x128xbf16>
    %c0_1 = arith.constant 0 : index
    %c0_2 = arith.constant 0 : index
    %1 = vector.load %arg1[%c0_1, %c0_2] : memref<128x128xbf16, #tpu.memory_space<vmem>>, vector<128x128xbf16>
    %cst = arith.constant dense<0.000000e+00> : vector<1296x128xf32>
    %2 = tpu.matmul %0, %1, %cst {dimension_numbers = #tpu.dot_dimension_numbers<[1], [0], [0], [1], [0, 0, 1, 1], [], []>} : vector<1296x128xbf16>, vector<128x128xbf16>, vector<1296x128xf32> -> vector<1296x128xf32>
    %c0_3 = arith.constant 0 : index
    %c0_4 = arith.constant 0 : index
    %3 = vector.load %arg2[%c0_3, %c0_4] : memref<1x128xf32, #tpu.memory_space<vmem>>, vector<1x128xf32>
    %4 = vector.broadcast %3 : vector<1x128xf32> to vector<1296x128xf32>
    %5 = arith.addf %2, %4 : vector<1296x128xf32>
    %c0_5 = arith.constant 0 : index
    %c0_6 = arith.constant 0 : index
    %6 = vector.load %arg9[%c0_5, %c0_6] : memref<2592x128xf32, #tpu.memory_space<vmem>>, vector<1296x128xf32>
    tpu.vector_store %arg9[%c0_5, %c0_6], %5 {strides = array<i32>} : memref<2592x128xf32, #tpu.memory_space<vmem>>, vector<1296x128xf32>,
    %c1296 = arith.constant 1296 : index
    %c0_7 = arith.constant 0 : index
    %7 = vector.load %arg9[%c1296, %c0_7] : memref<2592x128xf32, #tpu.memory_space<vmem>>, vector<1296x128xf32>
    tpu.vector_store %arg9[%c1296, %c0_7], %5 {strides = array<i32>} : memref<2592x128xf32, #tpu.memory_space<vmem>>, vector<1296x128xf32>,
    %c0_8 = arith.constant 0 : index
    %c0_9 = arith.constant 0 : index
    %8 = vector.load %arg9[%c0_8, %c0_9] : memref<2592x128xf32, #tpu.memory_space<vmem>>, vector<1296x128xf32>
    %c0_10 = arith.constant 0 : index
    %c0_11 = arith.constant 0 : index
    %9 = vector.load %arg7[%c0_10, %c0_11] : memref<8x128xf32, #tpu.memory_space<vmem>>, vector<1x128xf32>
    %10 = vector.broadcast %9 : vector<1x128xf32> to vector<1296x128xf32>
    %11 = arith.mulf %8, %10 : vector<1296x128xf32>
    %c8 = arith.constant 8 : index
    %c0_12 = arith.constant 0 : index
    %12 = vector.load %arg9[%c8, %c0_12] : memref<2592x128xf32, #tpu.memory_space<vmem>>, vector<1296x128xf32>
    %c1 = arith.constant 1 : index
    %c0_13 = arith.constant 0 : index
    %13 = vector.load %arg7[%c1, %c0_13] : memref<8x128xf32, #tpu.memory_space<vmem>>, vector<1x128xf32>
    %14 = vector.broadcast %13 : vector<1x128xf32> to vector<1296x128xf32>
    %15 = arith.mulf %12, %14 : vector<1296x128xf32>
    %16 = arith.addf %11, %15 : vector<1296x128xf32>
    %c1288 = arith.constant 1288 : index
    %c0_14 = arith.constant 0 : index
    %17 = vector.load %arg9[%c1288, %c0_14] : memref<2592x128xf32, #tpu.memory_space<vmem>>, vector<1296x128xf32>
    %c2 = arith.constant 2 : index
    %c0_15 = arith.constant 0 : index
    %18 = vector.load %arg7[%c2, %c0_15] : memref<8x128xf32, #tpu.memory_space<vmem>>, vector<1x128xf32>
    %19 = vector.broadcast %18 : vector<1x128xf32> to vector<1296x128xf32>
    %20 = arith.mulf %17, %19 : vector<1296x128xf32>
    %21 = arith.addf %16, %20 : vector<1296x128xf32>
    %c56 = arith.constant 56 : index
    %c0_16 = arith.constant 0 : index
    %22 = vector.load %arg9[%c56, %c0_16] : memref<2592x128xf32, #tpu.memory_space<vmem>>, vector<1296x128xf32>
    %c3 = arith.constant 3 : index
    %c0_17 = arith.constant 0 : index
    %23 = vector.load %arg7[%c3, %c0_17] : memref<8x128xf32, #tpu.memory_space<vmem>>, vector<1x128xf32>
    %24 = vector.broadcast %23 : vector<1x128xf32> to vector<1296x128xf32>
    %25 = arith.mulf %22, %24 : vector<1296x128xf32>
    %26 = arith.addf %21, %25 : vector<1296x128xf32>
    %c1240 = arith.constant 1240 : index
    %c0_18 = arith.constant 0 : index
    %27 = vector.load %arg9[%c1240, %c0_18] : memref<2592x128xf32, #tpu.memory_space<vmem>>, vector<1296x128xf32>
    %c4 = arith.constant 4 : index
    %c0_19 = arith.constant 0 : index
    %28 = vector.load %arg7[%c4, %c0_19] : memref<8x128xf32, #tpu.memory_space<vmem>>, vector<1x128xf32>
    %29 = vector.broadcast %28 : vector<1x128xf32> to vector<1296x128xf32>
    %30 = arith.mulf %27, %29 : vector<1296x128xf32>
    %31 = arith.addf %26, %30 : vector<1296x128xf32>
    %c104 = arith.constant 104 : index
    %c0_20 = arith.constant 0 : index
    %32 = vector.load %arg9[%c104, %c0_20] : memref<2592x128xf32, #tpu.memory_space<vmem>>, vector<1296x128xf32>
    %c5 = arith.constant 5 : index
    %c0_21 = arith.constant 0 : index
    %33 = vector.load %arg7[%c5, %c0_21] : memref<8x128xf32, #tpu.memory_space<vmem>>, vector<1x128xf32>
    %34 = vector.broadcast %33 : vector<1x128xf32> to vector<1296x128xf32>
    %35 = arith.mulf %32, %34 : vector<1296x128xf32>
    %36 = arith.addf %31, %35 : vector<1296x128xf32>
    %c1192 = arith.constant 1192 : index
    %c0_22 = arith.constant 0 : index
    %37 = vector.load %arg9[%c1192, %c0_22] : memref<2592x128xf32, #tpu.memory_space<vmem>>, vector<1296x128xf32>
    %c6 = arith.constant 6 : index
    %c0_23 = arith.constant 0 : index
    %38 = vector.load %arg7[%c6, %c0_23] : memref<8x128xf32, #tpu.memory_space<vmem>>, vector<1x128xf32>
    %39 = vector.broadcast %38 : vector<1x128xf32> to vector<1296x128xf32>
    %40 = arith.mulf %37, %39 : vector<1296x128xf32>
    %41 = arith.addf %36, %40 : vector<1296x128xf32>
    %42 = arith.truncf %41 : vector<1296x128xf32> to vector<1296x128xbf16>
    %c0_24 = arith.constant 0 : index
    %c0_25 = arith.constant 0 : index
    %43 = vector.load %arg3[%c0_24, %c0_25] : memref<128x128xbf16, #tpu.memory_space<vmem>>, vector<128x128xbf16>
    %cst_26 = arith.constant dense<0.000000e+00> : vector<1296x128xf32>
    %44 = tpu.matmul %42, %43, %cst_26 {dimension_numbers = #tpu.dot_dimension_numbers<[1], [0], [0], [1], [0, 0, 1, 1], [], []>} : vector<1296x128xbf16>, vector<128x128xbf16>, vector<1296x128xf32> -> vector<1296x128xf32>
    %c0_27 = arith.constant 0 : index
    %c0_28 = arith.constant 0 : index
    %45 = vector.load %arg4[%c0_27, %c0_28] : memref<1x128xf32, #tpu.memory_space<vmem>>, vector<1x128xf32>
    %46 = vector.broadcast %45 : vector<1x128xf32> to vector<1296x128xf32>
    %47 = arith.addf %44, %46 : vector<1296x128xf32>
    %48 = vector.shape_cast %47 : vector<1296x128xf32> to vector<162x8x128xf32>
    %cst_29 = arith.constant dense<0.000000e+00> : vector<8x128xf32>
    %49 = vector.multi_reduction <add>, %48, %cst_29 [0] : vector<162x8x128xf32> to vector<8x128xf32>
    %50 = arith.truncf %49 : vector<8x128xf32> to vector<8x128xbf16>
    %c0_30 = arith.constant 0 : index
    %c0_31 = arith.constant 0 : index
    %51 = vector.load %arg5[%c0_30, %c0_31] : memref<128x128xbf16, #tpu.memory_space<vmem>>, vector<128x128xbf16>
    %cst_32 = arith.constant dense<0.000000e+00> : vector<8x128xf32>
    %52 = tpu.matmul %50, %51, %cst_32 {dimension_numbers = #tpu.dot_dimension_numbers<[1], [0], [0], [1], [0, 0, 1, 1], [], []>} : vector<8x128xbf16>, vector<128x128xbf16>, vector<8x128xf32> -> vector<8x128xf32>
    %c0_33 = arith.constant 0 : index
    %c0_34 = arith.constant 0 : index
    %53 = vector.load %arg6[%c0_33, %c0_34] : memref<1x128xf32, #tpu.memory_space<vmem>>, vector<1x128xf32>
    %54 = vector.broadcast %53 : vector<1x128xf32> to vector<8x128xf32>
    %55 = arith.addf %52, %54 : vector<8x128xf32>
    %c0_35 = arith.constant 0 : index
    %c0_36 = arith.constant 0 : index
    %56 = vector.load %arg8[%c0_35, %c0_36] : memref<8x128xf32, #tpu.memory_space<vmem>>, vector<8x128xf32>
    tpu.vector_store %arg8[%c0_35, %c0_36], %55 {strides = array<i32>} : memref<8x128xf32, #tpu.memory_space<vmem>>, vector<8x128xf32>,
    return
  }
}

</mosaic_0001>

<bundles_post_ra>
// kernel: _lambda_.1
= control target key start
LH: loop header
LB: loop body
LE: loop exit
PB: predicated region body
PF: predicated region fallthrough
CT: control target
= control target key end

     0   :  { %v12252_v0 = vmov 0.0   ;;  %vm6479_vm0 = vmmov 0   ;;  %s12243_s1 = inlined_call_operand.vmem [shape: bf16[128,128], index: 1, kind: input, shape index: {}]   ;;  %s12244_s0 = inlined_call_operand.vmem [shape: bf16[1296,128], index: 0, kind: input, shape index: {}]   ;;  %s12245_s2 = inlined_call_operand.vmem [shape: f32[1,128], index: 2, kind: input, shape index: {}]   ;;  %s12246_s7 = inlined_call_operand.vmem [shape: f32[8,128], index: 7, kind: input, shape index: {}]   ;;  %s12247_s3 = inlined_call_operand.vmem [shape: bf16[128,128], index: 3, kind: input, shape index: {}]   ;;  %s12248_s5 = inlined_call_operand.vmem [shape: bf16[128,128], index: 5, kind: input, shape index: {}]   ;;  %s12249_s4 = inlined_call_operand.vmem [shape: f32[1,128], index: 4, kind: input, shape index: {}]   ;;  %s12250_s6 = inlined_call_operand.vmem [shape: f32[1,128], index: 6, kind: input, shape index: {}]   ;;  %s12251_s8 = inlined_call_operand.vmem [shape: f32[8,128], index: 8, kind: output, shape index: {}]  }
   0x1   :  { %5631 = vmatprep.subr.bf16.mxu0 %v12252_v0  ;;  %v6333_v1 = vld [vmem:[%s12243_s1 + $0x38] sm:$0xff]   ;;  %5647 = vmatprep.mubr.msk.bf16.mxu0 %vm6479_vm0, %v12252_v0  ;;  %v6334_v2 = vld [vmem:[%s12243_s1 + $0x30] sm:$0xff]   ;;  %v6335_v3 = vld [vmem:[%s12243_s1 + $0x28] sm:$0xff]  }
   0x2   :  { %5971 = vmatprep.subr.bf16.mxu1 %v12252_v0  ;;  %5987 = vmatprep.mubr.msk.bf16.mxu1 %vm6479_vm0, %v12252_v0  ;;  %v6336_v4 = vld [vmem:[%s12243_s1 + $0x20] sm:$0xff]   ;;  %v6337_v5 = vld [vmem:[%s12243_s1 + $0x18] sm:$0xff]   ;;  %v6338_v6 = vld [vmem:[%s12243_s1 + $0x10] sm:$0xff]  }
   0x3   :  { %5632 = vmatpush3.bf16.msra.mxu0 %v6333_v1  ;;  %v6339_v7 = vld [vmem:[%s12243_s1 + $0x8] sm:$0xff]   ;;  %v6340_v8 = vld [vmem:[%s12243_s1] sm:$0xff]   ;;  %v6343_v11 = vld [vmem:[%s12244_s0 + $0x10] sm:$0xff]  }
   0x4   :  { %5633 = vmatprep.subr.bf16.mxu0 %v12252_v0  ;;  %v6341_v9 = vld [vmem:[%s12244_s0] sm:$0xff]   ;;  %v6342_v10 = vld [vmem:[%s12244_s0 + $0x8] sm:$0xff]   ;;  %v6344_v12 = vld [vmem:[%s12244_s0 + $0x18] sm:$0xff]  }
   0x5   :  { %v6345_v13 = vld [vmem:[%s12244_s0 + $0x20] sm:$0xff]   ;;  %v6346_v14 = vld [vmem:[%s12244_s0 + $0x28] sm:$0xff]   ;;  %v6347_v15 = vld [vmem:[%s12244_s0 + $0x30] sm:$0xff]  }
   0x6   :  { %v6348_v16 = vld [vmem:[%s12244_s0 + $0x38] sm:$0xff]   ;;  %v6349_v17 = vld [vmem:[%s12244_s0 + $0x40] sm:$0xff]   ;;  %v6350_v18 = vld [vmem:[%s12244_s0 + $0x48] sm:$0xff]  }
   0x7   :  { %5634 = vmatpush3.bf16.msra.mxu0 %v6334_v2  ;;  %v6351_v19 = vld [vmem:[%s12244_s0 + $0x50] sm:$0xff]   ;;  %v6352_v20 = vld [vmem:[%s12244_s0 + $0x58] sm:$0xff]   ;;  %v6353_v21 = vld [vmem:[%s12244_s0 + $0x60] sm:$0xff]  }
   0x8   :  { %5635 = vmatprep.subr.bf16.mxu0 %v12252_v0  ;;  %v6354_v22 = vld [vmem:[%s12244_s0 + $0x68] sm:$0xff]   ;;  %v6355_v23 = vld [vmem:[%s12244_s0 + $0x70] sm:$0xff]   ;;  %v6356_v24 = vld [vmem:[%s12244_s0 + $0x78] sm:$0xff]  }
   0x9   :  { %v6357_v25 = vld [vmem:[%s12244_s0 + $0x80] sm:$0xff]   ;;  %v6358_v26 = vld [vmem:[%s12244_s0 + $0x88] sm:$0xff]   ;;  %v6359_v27 = vld [vmem:[%s12244_s0 + $0x90] sm:$0xff]  }
   0xa   :  { %v6360_v28 = vld [vmem:[%s12244_s0 + $0x98] sm:$0xff]   ;;  %v6361_v29 = vld [vmem:[%s12244_s0 + $0xa0] sm:$0xff]   ;;  %v6362_v30 = vld [vmem:[%s12244_s0 + $0xa8] sm:$0xff]  }
   0xb   :  { %5636 = vmatpush3.bf16.msra.mxu0 %v6335_v3  ;;  %v6363_v31 = vld [vmem:[%s12244_s0 + $0xb0] sm:$0xff]   ;;  %v6364_v32 = vld [vmem:[%s12244_s0 + $0xb8] sm:$0xff]   ;;  %v6365_v33 = vld [vmem:[%s12244_s0 + $0xc0] sm:$0xff]  }
   0xc   :  { %5637 = vmatprep.subr.bf16.mxu0 %v12252_v0  ;;  %v6689_v34 = vld [vmem:[%s12245_s2] ss:$0 sm:$0xff]  ;;  %v6366_v39 = vld [vmem:[%s12244_s0 + $0xc8] sm:$0xff]   ;;  %v6710_v43 = vld [vmem:[%s12246_s7 + $0x1] ss:$0 sm:$0xff] }
   0xd   :  { %v6702_v40 = vld [vmem:[%s12246_s7] ss:$0 sm:$0xff]  ;;  %v6726_v50 = vld [vmem:[%s12246_s7 + $0x2] ss:$0 sm:$0xff]  ;;  %v6367_v54 = vld [vmem:[%s12244_s0 + $0xd0] sm:$0xff]  }
   0xf   :  { %5638 = vmatpush3.bf16.msra.mxu0 %v6336_v4 }
  0x10   :  { %5639 = vmatprep.subr.bf16.mxu0 %v12252_v0 }
  0x13   :  { %5640 = vmatpush3.bf16.msra.mxu0 %v6337_v5 }
  0x14   :  { %5641 = vmatprep.subr.bf16.mxu0 %v12252_v0 }
  0x17   :  { %5642 = vmatpush3.bf16.msra.mxu0 %v6338_v6 }
  0x18   :  { %5643 = vmatprep.subr.bf16.mxu0 %v12252_v0 }
  0x1b   :  { %5644 = vmatpush3.bf16.msra.mxu0 %v6339_v7 }
  0x1c   :  { %5645 = vmatprep.subr.bf16.mxu0 %v12252_v0 }
  0x1f   :  { %5646 = vmatpush3.bf16.msra.mxu0 %v6340_v8  ;;  %v6368_v8 = vld [vmem:[%s12244_s0 + $0xd8] sm:$0xff]  }
  0x20   :  { %6311 = vmatprep.subr.bf16.mxu0 %v12252_v0 }
  0x22   :  { %5648 = vmatmul.mubr.bf16.vlgmr.msra.gmra.mxu0 %v6341_v9 }
  0x23   :  { %5651 = vmatprep.mubr.msk.bf16.mxu0 %vm6479_vm0, %v12252_v0 }
  0x2a   :  { %5652 = vmatmul.mubr.bf16.gmra.mxu0 %v6342_v10 }
  0x2b   :  { %5655 = vmatprep.mubr.msk.bf16.mxu0 %vm6479_vm0, %v12252_v0 }
  0x32   :  { %5656 = vmatmul.mubr.bf16.gmra.mxu0 %v6343_v11 }
  0x33   :  { %5659 = vmatprep.mubr.msk.bf16.mxu0 %vm6479_vm0, %v12252_v0 }
  0x3a   :  { %5660 = vmatmul.mubr.bf16.gmra.mxu0 %v6344_v12 }
  0x3b   :  { %5663 = vmatprep.mubr.msk.bf16.mxu0 %vm6479_vm0, %v12252_v0 }
  0x42   :  { %5664 = vmatmul.mubr.bf16.gmra.mxu0 %v6345_v13 }
  0x43   :  { %5667 = vmatprep.mubr.msk.bf16.mxu0 %vm6479_vm0, %v12252_v0 }
  0x4a   :  { %5668 = vmatmul.mubr.bf16.gmra.mxu0 %v6346_v14 }
  0x4b   :  { %5671 = vmatprep.mubr.msk.bf16.mxu0 %vm6479_vm0, %v12252_v0 }
  0x52   :  { %5672 = vmatmul.mubr.bf16.gmra.mxu0 %v6347_v15 }
  0x53   :  { %5675 = vmatprep.mubr.msk.bf16.mxu0 %vm6479_vm0, %v12252_v0 }
  0x5a   :  { %5676 = vmatmul.mubr.bf16.gmra.mxu0 %v6348_v16 }
  0x5b   :  { %5679 = vmatprep.mubr.msk.bf16.mxu0 %vm6479_vm0, %v12252_v0 }
  0x62   :  { %5680 = vmatmul.mubr.bf16.gmra.mxu0 %v6349_v17 }
  0x63   :  { %5683 = vmatprep.mubr.msk.bf16.mxu0 %vm6479_vm0, %v12252_v0 }
  0x6a   :  { %5684 = vmatmul.mubr.bf16.gmra.mxu0 %v6350_v18 }
  0x6b   :  { %5687 = vmatprep.mubr.msk.bf16.mxu0 %vm6479_vm0, %v12252_v0 }
  0x72   :  { %5688 = vmatmul.mubr.bf16.gmra.mxu0 %v6351_v19 }
  0x73   :  { %5691 = vmatprep.mubr.msk.bf16.mxu0 %vm6479_vm0, %v12252_v0 }
  0x7a   :  { %5692 = vmatmul.mubr.bf16.gmra.mxu0 %v6352_v20 }
  0x7b   :  { %5695 = vmatprep.mubr.msk.bf16.mxu0 %vm6479_vm0, %v12252_v0 }
  0x82   :  { %5696 = vmatmul.mubr.bf16.gmra.mxu0 %v6353_v21 }
  0x83   :  { %5699 = vmatprep.mubr.msk.bf16.mxu0 %vm6479_vm0, %v12252_v0 }
  0x8a   :  { %5700 = vmatmul.mubr.bf16.gmra.mxu0 %v6354_v22 }
  0x8b   :  { %5703 = vmatprep.mubr.msk.bf16.mxu0 %vm6479_vm0, %v12252_v0 }
  0x92   :  { %5704 = vmatmul.mubr.bf16.gmra.mxu0 %v6355_v23 }
  0x93   :  { %5707 = vmatprep.mubr.msk.bf16.mxu0 %vm6479_vm0, %v12252_v0 }
  0x9a   :  { %5708 = vmatmul.mubr.bf16.gmra.mxu0 %v6356_v24 }
  0x9b   :  { %5711 = vmatprep.mubr.msk.bf16.mxu0 %vm6479_vm0, %v12252_v0 }
  0xa2   :  { %5712 = vmatmul.mubr.bf16.gmra.mxu0 %v6357_v25  ;;  %v6369_v25 = vld [vmem:[%s12244_s0 + $0xe0] sm:$0xff]  }
  0xa3   :  { %5715 = vmatprep.mubr.msk.bf16.mxu0 %vm6479_vm0, %v12252_v0 }
  0xaa   :  { %5716 = vmatmul.mubr.bf16.gmra.mxu0 %v6358_v26 }
  0xab   :  { %5719 = vmatprep.mubr.msk.bf16.mxu0 %vm6479_vm0, %v12252_v0 }
  0xb2   :  { %5720 = vmatmul.mubr.bf16.gmra.mxu0 %v6359_v27 }
  0xb3   :  { %5723 = vmatprep.mubr.msk.bf16.mxu0 %vm6479_vm0, %v12252_v0 }
  0xba   :  { %5724 = vmatmul.mubr.bf16.gmra.mxu0 %v6360_v28 }
  0xbb   :  { %5727 = vmatprep.mubr.msk.bf16.mxu0 %vm6479_vm0, %v12252_v0 }
  0xc2   :  { %5728 = vmatmul.mubr.bf16.gmra.mxu0 %v6361_v29 }
  0xc3   :  { %5731 = vmatprep.mubr.msk.bf16.mxu0 %vm6479_vm0, %v12252_v0 }
  0xca   :  { %5732 = vmatmul.mubr.bf16.gmra.mxu0 %v6362_v30 }
  0xcb   :  { %5735 = vmatprep.mubr.msk.bf16.mxu0 %vm6479_vm0, %v12252_v0 }
  0xd2   :  { %5736 = vmatmul.mubr.bf16.gmra.mxu0 %v6363_v31 }
  0xd3   :  { %5739 = vmatprep.mubr.msk.bf16.mxu0 %vm6479_vm0, %v12252_v0 }
  0xda   :  { %5740 = vmatmul.mubr.bf16.gmra.mxu0 %v6364_v32 }
  0xdb   :  { %5743 = vmatprep.mubr.msk.bf16.mxu0 %vm6479_vm0, %v12252_v0 }
  0xe2   :  { %v783_v35 = vpop.f32.mrf.mxu0  ;;  %5744 = vmatmul.mubr.bf16.gmra.mxu0 %v6365_v33 }
  0xe3   :  { %5747 = vmatprep.mubr.msk.bf16.mxu0 %vm6479_vm0, %v12252_v0  ;;  %v6694_v37 = vadd.f32 %v6689_v34, %v783_v35 }
  0xe4   :  { %v5649_v36 = vpop.f32.mrf.mxu0 }
  0xe5   :  { %12443 = vst [vmem:[#allocation3_spill] sm:$0xff] %v6694_v37  ;;  %v1921_v44 = vmul.f32 %v6702_v40, %v6694_v37  ;;  %v2579_v57 = vmul.f32 %v6726_v50, %v6694_v37 }
  0xe6   :  { %v786_v38 = vpop.f32.mrf.mxu0 }
  0xe7   :  { %v6705_v41 = vadd.f32 %v6689_v34, %v786_v38 }
  0xe8   :  { %v5650_v42 = vpop.f32.mrf.mxu0 }
  0xe9   :  { %12444 = vst [vmem:[#allocation4_spill] sm:$0xff] %v6705_v41  ;;  %v2089_v45 = vmul.f32 %v6710_v43, %v6705_v41  ;;  %v1922_v51 = vmul.f32 %v6702_v40, %v6705_v41  ;;  %v2580_v2 = vmul.f32 %v6726_v50, %v6705_v41  ;;  %v6802_v42 = vld [vmem:[%s12246_s7 + $0x3] ss:$0 sm:$0xff] }
  0xea   :  { %v791_v46 = vpop.f32.mrf.mxu0  ;;  %5748 = vmatmul.mubr.bf16.gmra.mxu0 %v6366_v39 }
  0xeb   :  { %v6717_v47 = vadd.f32 %v6689_v34, %v791_v46  ;;  %5751 = vmatprep.mubr.msk.bf16.mxu0 %vm6479_vm0, %v12252_v0  ;;  %v6721_v48 = vadd.f32 %v2089_v45, %v1921_v44 }
  0xec   :  { %v5653_v49 = vpop.f32.mrf.mxu0 }
  0xed   :  { %12445 = vst [vmem:[#allocation5_spill] sm:$0xff] %v6717_v47  ;;  %12446 = vst [vmem:[#allocation6_spill] sm:$0xff] %v6721_v48  ;;  %v2090_v52 = vmul.f32 %v6710_v43, %v6717_v47  ;;  %v1923_v60 = vmul.f32 %v6702_v40, %v6717_v47  ;;  %v2581_v11 = vmul.f32 %v6726_v50, %v6717_v47 }
  0xee   :  { %v794_v53 = vpop.f32.mrf.mxu0 }
  0xef   :  { %v6736_v55 = vadd.f32 %v6689_v34, %v794_v53  ;;  %v2252_v56 = vadd.f32 %v2090_v52, %v1922_v51  ;;  %v6370_v52 = vld [vmem:[%s12244_s0 + $0xe8] sm:$0xff]  }
  0xf0   :  { %v5654_v58 = vpop.f32.mrf.mxu0 }
  0xf1   :  { %12447 = vst [vmem:[#allocation7_spill] sm:$0xff] %v6736_v55  ;;  %v2741_v59 = vadd.f32 %v2579_v57, %v2252_v56  ;;  %v2091_v61 = vmul.f32 %v6710_v43, %v6736_v55  ;;  %v1924_v4 = vmul.f32 %v6702_v40, %v6736_v55  ;;  %v2582_v19 = vmul.f32 %v6726_v50, %v6736_v55 }
  0xf2   :  { %v799_v62 = vpop.f32.mrf.mxu0  ;;  %5752 = vmatmul.mubr.bf16.gmra.mxu0 %v6367_v54 }
  0xf3   :  { %v6745_v63 = vadd.f32 %v6689_v34, %v799_v62  ;;  %5755 = vmatprep.mubr.msk.bf16.mxu0 %vm6479_vm0, %v12252_v0  ;;  %v2253_v1 = vadd.f32 %v2091_v61, %v1923_v60 }
  0xf4   :  { %v5657_v3 = vpop.f32.mrf.mxu0 }
  0xf5   :  { %12448 = vst [vmem:[#allocation8_spill] sm:$0xff] %v6745_v63  ;;  %v2092_v5 = vmul.f32 %v6710_v43, %v6745_v63  ;;  %v2742_v6 = vadd.f32 %v2580_v2, %v2253_v1  ;;  %v1925_v14 = vmul.f32 %v6702_v40, %v6745_v63  ;;  %v2583_v28 = vmul.f32 %v6726_v50, %v6745_v63 }
  0xf6   :  { %v802_v7 = vpop.f32.mrf.mxu0 }
  0xf7   :  { %v6759_v9 = vadd.f32 %v6689_v34, %v802_v7  ;;  %v2254_v10 = vadd.f32 %v2092_v5, %v1924_v4 }
  0xf8   :  { %v5658_v12 = vpop.f32.mrf.mxu0 }
  0xf9   :  { %12449 = vst [vmem:[#allocation9_spill] sm:$0xff] %v6759_v9  ;;  %v2743_v13 = vadd.f32 %v2581_v11, %v2254_v10  ;;  %v2093_v15 = vmul.f32 %v6710_v43, %v6759_v9  ;;  %v1926_v21 = vmul.f32 %v6702_v40, %v6759_v9  ;;  %v2584_v38 = vmul.f32 %v6726_v50, %v6759_v9 }
  0xfa   :  { %v807_v16 = vpop.f32.mrf.mxu0  ;;  %5756 = vmatmul.mubr.bf16.gmra.mxu0 %v6368_v8 }
  0xfb   :  { %v6768_v17 = vadd.f32 %v6689_v34, %v807_v16  ;;  %5759 = vmatprep.mubr.msk.bf16.mxu0 %vm6479_vm0, %v12252_v0  ;;  %v2255_v18 = vadd.f32 %v2093_v15, %v1925_v14 }
  0xfc   :  { %v5661_v20 = vpop.f32.mrf.mxu0 }
  0xfd   :  { %12450 = vst [vmem:[#allocation10_spill] sm:$0xff] %v6768_v17  ;;  %v2094_v22 = vmul.f32 %v6710_v43, %v6768_v17  ;;  %v2744_v23 = vadd.f32 %v2582_v19, %v2255_v18  ;;  %v1927_v31 = vmul.f32 %v6702_v40, %v6768_v17  ;;  %v2585_v57 = vmul.f32 %v6726_v50, %v6768_v17 }
  0xfe   :  { %v810_v24 = vpop.f32.mrf.mxu0 }
  0xff   :  { %v6782_v26 = vadd.f32 %v6689_v34, %v810_v24  ;;  %v2256_v27 = vadd.f32 %v2094_v22, %v1926_v21 }
 0x100   :  { %v5662_v29 = vpop.f32.mrf.mxu0 }
 0x101   :  { %12451 = vst [vmem:[#allocation11_spill] sm:$0xff] %v6782_v26  ;;  %v6786_v30 = vadd.f32 %v2583_v28, %v2256_v27  ;;  %v2095_v32 = vmul.f32 %v6710_v43, %v6782_v26  ;;  %v1928_v45 = vmul.f32 %v6702_v40, %v6782_v26  ;;  %v2586_v5 = vmul.f32 %v6726_v50, %v6782_v26 }
 0x102   :  { %v815_v33 = vpop.f32.mrf.mxu0  ;;  %5760 = vmatmul.mubr.bf16.gmra.mxu0 %v6369_v25 }
 0x103   :  { %v6793_v35 = vadd.f32 %v6689_v34, %v815_v33  ;;  %5763 = vmatprep.mubr.msk.bf16.mxu0 %vm6479_vm0, %v12252_v0  ;;  %v2257_v36 = vadd.f32 %v2095_v32, %v1927_v31 }
 0x104   :  { %v5665_v39 = vpop.f32.mrf.mxu0 }
 0x105   :  { %12452 = vst [vmem:[#allocation12_spill] sm:$0xff] %v6793_v35  ;;  %v2908_v44 = vmul.f32 %v6802_v42, %v6793_v35  ;;  %v2096_v46 = vmul.f32 %v6710_v43, %v6793_v35  ;;  %v6810_v49 = vadd.f32 %v2584_v38, %v2257_v36  ;;  %v1929_v62 = vmul.f32 %v6702_v40, %v6793_v35 }
 0x106   :  { %v818_v51 = vpop.f32.mrf.mxu0  ;;  %v2587_v19 = vmul.f32 %v6726_v50, %v6793_v35 }
 0x107   :  { %v6816_v53 = vadd.f32 %v6689_v34, %v818_v51  ;;  %v6818_v54 = vadd.f32 %v2908_v44, %v2741_v59  ;;  %v2258_v56 = vadd.f32 %v2096_v46, %v1928_v45 }
 0x108   :  { %v5666_v58 = vpop.f32.mrf.mxu0 }
 0x109   :  { %12453 = vst [vmem:[#allocation13_spill] sm:$0xff] %v6816_v53  ;;  %12454 = vst [vmem:[#allocation14_spill] sm:$0xff] %v6818_v54  ;;  %v2909_v60 = vmul.f32 %v6802_v42, %v6816_v53  ;;  %v6824_v61 = vadd.f32 %v2585_v57, %v2258_v56  ;;  %v2097_v1 = vmul.f32 %v6710_v43, %v6816_v53 }
 0x10a   :  { %v823_v2 = vpop.f32.mrf.mxu0  ;;  %5764 = vmatmul.mubr.bf16.gmra.mxu0 %v6370_v52  ;;  %v1930_v10 = vmul.f32 %v6702_v40, %v6816_v53  ;;  %v2588_v31 = vmul.f32 %v6726_v50, %v6816_v53 }
 0x10b   :  { %v6831_v59 = vadd.f32 %v6689_v34, %v823_v2  ;;  %5767 = vmatprep.mubr.msk.bf16.mxu0 %vm6479_vm0, %v12252_v0  ;;  %v6835_v3 = vadd.f32 %v2909_v60, %v2742_v6  ;;  %v2259_v4 = vadd.f32 %v2097_v1, %v1929_v62  ;;  %v6371_v6 = vld [vmem:[%s12244_s0 + $0xf0] sm:$0xff]   ;;  %v6909_v2 = vld [vmem:[%s12246_s7 + $0x4] ss:$0 sm:$0xff] }
 0x10c   :  { %v5669_v7 = vpop.f32.mrf.mxu0 }
 0x10d   :  { %12455 = vst [vmem:[#allocation15_spill] sm:$0xff] %v6831_v59  ;;  %12456 = vst [vmem:[#allocation16_spill] sm:$0xff] %v6835_v3  ;;  %v2910_v8 = vmul.f32 %v6802_v42, %v6831_v59  ;;  %v2098_v11 = vmul.f32 %v6710_v43, %v6831_v59  ;;  %v6845_v12 = vadd.f32 %v2586_v5, %v2259_v4 }
 0x10e   :  { %v826_v14 = vpop.f32.mrf.mxu0  ;;  %v1931_v24 = vmul.f32 %v6702_v40, %v6831_v59  ;;  %v2589_v52 = vmul.f32 %v6726_v50, %v6831_v59 }
 0x10f   :  { %v6851_v15 = vadd.f32 %v6689_v34, %v826_v14  ;;  %v6853_v16 = vadd.f32 %v2910_v8, %v2743_v13  ;;  %v2260_v18 = vadd.f32 %v2098_v11, %v1930_v10 }
 0x110   :  { %v5670_v20 = vpop.f32.mrf.mxu0 }
 0x111   :  { %12457 = vst [vmem:[#allocation17_spill] sm:$0xff] %v6851_v15  ;;  %12458 = vst [vmem:[#allocation18_spill] sm:$0xff] %v6853_v16  ;;  %v2911_v21 = vmul.f32 %v6802_v42, %v6851_v15  ;;  %v6859_v22 = vadd.f32 %v2587_v19, %v2260_v18  ;;  %v2099_v25 = vmul.f32 %v6710_v43, %v6851_v15 }
 0x112   :  { %v831_v27 = vpop.f32.mrf.mxu0  ;;  %5768 = vmatmul.mubr.bf16.gmra.mxu0 %v6371_v6  ;;  %v1932_v36 = vmul.f32 %v6702_v40, %v6851_v15  ;;  %v2590_v8 = vmul.f32 %v6726_v50, %v6851_v15  ;;  %v3243_v18 = vmul.f32 %v6909_v2, %v6694_v37 }
 0x113   :  { %v6866_v13 = vadd.f32 %v6689_v34, %v831_v27  ;;  %5771 = vmatprep.mubr.msk.bf16.mxu0 %vm6479_vm0, %v12252_v0  ;;  %v6870_v28 = vadd.f32 %v2911_v21, %v2744_v23  ;;  %v2261_v29 = vadd.f32 %v2099_v25, %v1931_v24  ;;  %v6372_v23 = vld [vmem:[%s12244_s0 + $0xf8] sm:$0xff]  }
 0x114   :  { %v5673_v32 = vpop.f32.mrf.mxu0 }
 0x115   :  { %12459 = vst [vmem:[#allocation19_spill] sm:$0xff] %v6866_v13  ;;  %12460 = vst [vmem:[#allocation20_spill] sm:$0xff] %v6870_v28  ;;  %v2912_v33 = vmul.f32 %v6802_v42, %v6866_v13  ;;  %v2100_v38 = vmul.f32 %v6710_v43, %v6866_v13  ;;  %v6880_v39 = vadd.f32 %v2588_v31, %v2261_v29 }
 0x116   :  { %v834_v44 = vpop.f32.mrf.mxu0  ;;  %v1933_v62 = vmul.f32 %v6702_v40, %v6866_v13  ;;  %v2591_v25 = vmul.f32 %v6726_v50, %v6866_v13 }
 0x117   :  { %v6886_v45 = vadd.f32 %v6689_v34, %v834_v44  ;;  %v6889_v46 = vadd.f32 %v2912_v33, %v6786_v30  ;;  %v2262_v51 = vadd.f32 %v2100_v38, %v1932_v36 }
 0x118   :  { %v5674_v56 = vpop.f32.mrf.mxu0 }
 0x119   :  { %12461 = vst [vmem:[#allocation21_spill] sm:$0xff] %v6886_v45  ;;  %12462 = vst [vmem:[#allocation22_spill] sm:$0xff] %v6889_v46  ;;  %v2913_v57 = vmul.f32 %v6802_v42, %v6886_v45  ;;  %v6895_v58 = vadd.f32 %v2589_v52, %v2262_v51  ;;  %v2101_v1 = vmul.f32 %v6710_v43, %v6886_v45 }
 0x11a   :  { %v839_v60 = vpop.f32.mrf.mxu0  ;;  %5772 = vmatmul.mubr.bf16.gmra.mxu0 %v6372_v23  ;;  %v1934_v11 = vmul.f32 %v6702_v40, %v6886_v45  ;;  %v3244_v23 = vmul.f32 %v6909_v2, %v6705_v41  ;;  %v2592_v56 = vmul.f32 %v6726_v50, %v6886_v45 }
 0x11b   :  { %v6902_v30 = vadd.f32 %v6689_v34, %v839_v60  ;;  %5775 = vmatprep.mubr.msk.bf16.mxu0 %vm6479_vm0, %v12252_v0  ;;  %v6912_v4 = vadd.f32 %v2913_v57, %v6810_v49  ;;  %v2263_v7 = vadd.f32 %v2101_v1, %v1933_v62  ;;  %v6373_v49 = vld [vmem:[%s12244_s0 + $0x100] sm:$0xff]  }
 0x11c   :  { %v5677_v5 = vpop.f32.mrf.mxu0 }
 0x11d   :  { %12463 = vst [vmem:[#allocation23_spill] sm:$0xff] %v6902_v30  ;;  %12464 = vst [vmem:[#allocation24_spill] sm:$0xff] %v6912_v4  ;;  %v2914_v10 = vmul.f32 %v6802_v42, %v6902_v30  ;;  %v2102_v14 = vmul.f32 %v6710_v43, %v6902_v30  ;;  %v6927_v19 = vadd.f32 %v2590_v8, %v2263_v7  ;;  %v6374_v5 = vld [vmem:[%s12244_s0 + $0x108] sm:$0xff]  }
 0x11e   :  { %v842_v6 = vpop.f32.mrf.mxu0  ;;  %v1935_v36 = vmul.f32 %v6702_v40, %v6902_v30  ;;  %v3245_v7 = vmul.f32 %v6909_v2, %v6717_v47 }
 0x11f   :  { %v6930_v20 = vadd.f32 %v6689_v34, %v842_v6  ;;  %v3076_v21 = vadd.f32 %v2914_v10, %v6824_v61  ;;  %v2264_v24 = vadd.f32 %v2102_v14, %v1934_v11  ;;  %v2593_v6 = vmul.f32 %v6726_v50, %v6902_v30 }
 0x120   :  { %v5678_v27 = vpop.f32.mrf.mxu0 }
 0x121   :  { %12465 = vst [vmem:[#allocation25_spill] sm:$0xff] %v6930_v20  ;;  %v6935_v29 = vadd.f32 %v3243_v18, %v3076_v21  ;;  %v2915_v31 = vmul.f32 %v6802_v42, %v6930_v20  ;;  %v6939_v32 = vadd.f32 %v2591_v25, %v2264_v24  ;;  %v2103_v61 = vmul.f32 %v6710_v43, %v6930_v20 }
 0x122   :  { %v847_v33 = vpop.f32.mrf.mxu0  ;;  %5776 = vmatmul.mubr.bf16.gmra.mxu0 %v6373_v49  ;;  %v1936_v62 = vmul.f32 %v6702_v40, %v6930_v20 }
 0x123   :  { %v6946_v38 = vadd.f32 %v6689_v34, %v847_v33  ;;  %5779 = vmatprep.mubr.msk.bf16.mxu0 %vm6479_vm0, %v12252_v0  ;;  %v3077_v44 = vadd.f32 %v2915_v31, %v6845_v12  ;;  %v2265_v52 = vadd.f32 %v2103_v61, %v1935_v36  ;;  %v3246_v36 = vmul.f32 %v6909_v2, %v6736_v55 }
 0x124   :  { %v5681_v51 = vpop.f32.mrf.mxu0 }
 0x125   :  { %12466 = vst [vmem:[#allocation26_spill] sm:$0xff] %v6946_v38  ;;  %v2916_v57 = vmul.f32 %v6802_v42, %v6946_v38  ;;  %v6957_v60 = vadd.f32 %v3244_v23, %v3077_v44  ;;  %v2104_v1 = vmul.f32 %v6710_v43, %v6946_v38  ;;  %v6968_v8 = vadd.f32 %v2592_v56, %v2265_v52 }
 0x126   :  { %v850_v12 = vpop.f32.mrf.mxu0  ;;  %v1937_v27 = vmul.f32 %v6702_v40, %v6946_v38  ;;  %v2594_v23 = vmul.f32 %v6726_v50, %v6930_v20 }
 0x127   :  { %v6971_v10 = vadd.f32 %v6689_v34, %v850_v12  ;;  %v3078_v11 = vadd.f32 %v2916_v57, %v6859_v22  ;;  %v2266_v14 = vadd.f32 %v2104_v1, %v1936_v62  ;;  %v6375_v62 = vld [vmem:[%s12244_s0 + $0x110] sm:$0xff]   ;;  %v3247_v1 = vmul.f32 %v6909_v2, %v6745_v63 }
 0x128   :  { %v5682_v49 = vpop.f32.mrf.mxu0 }
 0x129   :  { %12467 = vst [vmem:[#allocation27_spill] sm:$0xff] %v6971_v10  ;;  %v6976_v18 = vadd.f32 %v3245_v7, %v3078_v11  ;;  %v2917_v21 = vmul.f32 %v6802_v42, %v6971_v10  ;;  %v6980_v24 = vadd.f32 %v2593_v6, %v2266_v14  ;;  %v2105_v22 = vmul.f32 %v6710_v43, %v6971_v10 }
 0x12a   :  { %v855_v25 = vpop.f32.mrf.mxu0  ;;  %5780 = vmatmul.mubr.bf16.gmra.mxu0 %v6374_v5  ;;  %v1938_v56 = vmul.f32 %v6702_v40, %v6971_v10  ;;  %v2595_v14 = vmul.f32 %v6726_v50, %v6946_v38 }
 0x12b   :  { %v6987_v31 = vadd.f32 %v6689_v34, %v855_v25  ;;  %5783 = vmatprep.mubr.msk.bf16.mxu0 %vm6479_vm0, %v12252_v0  ;;  %v3079_v33 = vadd.f32 %v2917_v21, %v6880_v39  ;;  %v2267_v44 = vadd.f32 %v2105_v22, %v1937_v27 }
 0x12c   :  { %v5685_v61 = vpop.f32.mrf.mxu0 }
 0x12d   :  { %12468 = vst [vmem:[#allocation28_spill] sm:$0xff] %v6987_v31  ;;  %v2918_v51 = vmul.f32 %v6802_v42, %v6987_v31  ;;  %v6998_v52 = vadd.f32 %v3246_v36, %v3079_v33  ;;  %v2106_v57 = vmul.f32 %v6710_v43, %v6987_v31  ;;  %v7009_v12 = vadd.f32 %v2594_v23, %v2267_v44  ;;  %v7038_v23 = vld [vmem:[%s12246_s7 + $0x5] ss:$0 sm:$0xff] }
 0x12e   :  { %v858_v39 = vpop.f32.mrf.mxu0  ;;  %v1939_v22 = vmul.f32 %v6702_v40, %v6987_v31  ;;  %v3248_v61 = vmul.f32 %v6909_v2, %v6759_v9 }
 0x12f   :  { %v7012_v5 = vadd.f32 %v6689_v34, %v858_v39  ;;  %v3080_v7 = vadd.f32 %v2918_v51, %v6895_v58  ;;  %v2268_v11 = vadd.f32 %v2106_v57, %v1938_v56  ;;  %v2596_v57 = vmul.f32 %v6726_v50, %v6971_v10 }
 0x130   :  { %v5686_v6 = vpop.f32.mrf.mxu0 }
 0x131   :  { %12469 = vst [vmem:[#allocation29_spill] sm:$0xff] %v7012_v5  ;;  %v7017_v49 = vadd.f32 %v3247_v1, %v3080_v7  ;;  %v2919_v21 = vmul.f32 %v6802_v42, %v7012_v5  ;;  %v7021_v25 = vadd.f32 %v2595_v14, %v2268_v11  ;;  %v2107_v58 = vmul.f32 %v6710_v43, %v7012_v5  ;;  %v6376_v11 = vld [vmem:[%s12244_s0 + $0x118] sm:$0xff]  }
 0x132   :  { %v863_v27 = vpop.f32.mrf.mxu0  ;;  %5784 = vmatmul.mubr.bf16.gmra.mxu0 %v6375_v62  ;;  %v1940_v51 = vmul.f32 %v6702_v40, %v7012_v5  ;;  %v3249_v14 = vmul.f32 %v6909_v2, %v6768_v17  ;;  %v2597_v6 = vmul.f32 %v6726_v50, %v6987_v31 }
 0x133   :  { %v7028_v33 = vadd.f32 %v6689_v34, %v863_v27  ;;  %5787 = vmatprep.mubr.msk.bf16.mxu0 %vm6479_vm0, %v12252_v0  ;;  %v3081_v36 = vadd.f32 %v2919_v21, %v6927_v19  ;;  %v2269_v56 = vadd.f32 %v2107_v58, %v1939_v22 }
 0x134   :  { %v5689_v44 = vpop.f32.mrf.mxu0 }
 0x135   :  { %v3572_v39 = vmul.f32 %v7038_v23, %v7028_v33  ;;  %v2920_v19 = vmul.f32 %v6802_v42, %v7028_v33  ;;  %v7048_v62 = vadd.f32 %v3248_v61, %v3081_v36  ;;  %v2108_v1 = vmul.f32 %v6710_v43, %v7028_v33 }
 0x136   :  { %v866_v7 = vpop.f32.mrf.mxu0  ;;  %v7059_v21 = vadd.f32 %v2596_v57, %v2269_v56 }
 0x137   :  { %v7062_v27 = vadd.f32 %v6689_v34, %v866_v7  ;;  %v7065_v22 = vadd.f32 %v3572_v39, %v6935_v29  ;;  %v3082_v58 = vadd.f32 %v2920_v19, %v6939_v32  ;;  %v2270_v36 = vadd.f32 %v2108_v1, %v1940_v51 }
 0x138   :  { %v5690_v61 = vpop.f32.mrf.mxu0  ;;  %v1941_v29 = vmul.f32 %v6702_v40, %v7028_v33  ;;  %v12471_v39 = vmov 0.0   ;;  %v3250_v7 = vmul.f32 %v6909_v2, %v6782_v26 }
 0x139   :  { %12470 = vst [vmem:[#allocation30_spill] sm:$0xff] %v7065_v22  ;;  %v3573_v44 = vmul.f32 %v7038_v23, %v7062_v27  ;;  %v7070_v0 = vadd.f32 %v3249_v14, %v3082_v58  ;;  %v2921_v4 = vmul.f32 %v6802_v42, %v7062_v27  ;;  %v7074_v56 = vadd.f32 %v2597_v6, %v2270_v36 }
 0x13a   :  { %v871_v57 = vpop.f32.mrf.mxu0  ;;  %5788 = vmatmul.mubr.bf16.gmra.mxu0 %v6376_v11  ;;  %v2109_v32 = vmul.f32 %v6710_v43, %v7062_v27  ;;  %v1942_v14 = vmul.f32 %v6702_v40, %v7062_v27  ;;  %v2598_v58 = vmul.f32 %v6726_v50, %v7012_v5 }
 0x13b   :  { %v7081_v51 = vadd.f32 %v6689_v34, %v871_v57  ;;  %5791 = vmatprep.mubr.msk.bf16.mxu0 %vm6479_vm0, %v12471_v39  ;;  %v7086_v19 = vadd.f32 %v3573_v44, %v6957_v60  ;;  %v3083_v1 = vadd.f32 %v2921_v4, %v6968_v8  ;;  %v6377_v44 = vld [vmem:[%s12244_s0 + $0x120] sm:$0xff]   ;;  %v3251_v57 = vmul.f32 %v6909_v2, %v6793_v35 }
 0x13c   :  { %v5693_v11 = vpop.f32.mrf.mxu0  ;;  %v2271_v6 = vadd.f32 %v2109_v32, %v1941_v29  ;;  %v2599_v29 = vmul.f32 %v6726_v50, %v7028_v33 }
 0x13d   :  { %12472 = vst [vmem:[#allocation31_spill] sm:$0xff] %v7086_v19  ;;  %v3574_v36 = vmul.f32 %v7038_v23, %v7081_v51  ;;  %v2922_v60 = vmul.f32 %v6802_v42, %v7081_v51  ;;  %v7099_v61 = vadd.f32 %v3250_v7, %v3083_v1  ;;  %v2110_v4 = vmul.f32 %v6710_v43, %v7081_v51 }
 0x13e   :  { %v874_v8 = vpop.f32.mrf.mxu0  ;;  %v7110_v32 = vadd.f32 %v2598_v58, %v2271_v6 }
 0x13f   :  { %v7113_v11 = vadd.f32 %v6689_v34, %v874_v8  ;;  %v7116_v1 = vadd.f32 %v3574_v36, %v6976_v18  ;;  %v3084_v7 = vadd.f32 %v2922_v60, %v6980_v24  ;;  %v2272_v48 = vadd.f32 %v2110_v4, %v1942_v14 }
 0x140   :  { %v5694_v46 = vpop.f32.mrf.mxu0  ;;  %v1943_v18 = vmul.f32 %v6702_v40, %v7081_v51  ;;  %v3252_v36 = vmul.f32 %v6909_v2, %v6816_v53 }
 0x141   :  { %12473 = vst [vmem:[#allocation32_spill] sm:$0xff] %v7113_v11  ;;  %12474 = vst [vmem:[#allocation33_spill] sm:$0xff] %v7116_v1  ;;  %v3575_v28 = vmul.f32 %v7038_v23, %v7113_v11  ;;  %v7121_v16 = vadd.f32 %v3251_v57, %v3084_v7  ;;  %v2923_v19 = vmul.f32 %v6802_v42, %v7113_v11 }
 0x142   :  { %v7125_v6 = vadd.f32 %v2599_v29, %v2272_v48  ;;  %v879_v58 = vpop.f32.mrf.mxu0  ;;  %5792 = vmatmul.mubr.bf16.gmra.mxu0 %v6377_v44  ;;  %v2111_v24 = vmul.f32 %v6710_v43, %v7113_v11  ;;  %v1944_v4 = vmul.f32 %v6702_v40, %v7113_v11  ;;  %v2600_v44 = vmul.f32 %v6726_v50, %v7062_v27  ;;  %v6378_v29 = vld [vmem:[%s12244_s0 + $0x128] sm:$0xff]  }
 0x143   :  { %v7132_v46 = vadd.f32 %v6689_v34, %v879_v58  ;;  %5795 = vmatprep.mubr.msk.bf16.mxu0 %vm6479_vm0, %v12471_v39  ;;  %v7137_v14 = vadd.f32 %v3575_v28, %v6998_v52  ;;  %v3085_v48 = vadd.f32 %v2923_v19, %v7009_v12  ;;  %v3253_v7 = vmul.f32 %v6909_v2, %v6831_v59 }
 0x144   :  { %v5697_v60 = vpop.f32.mrf.mxu0  ;;  %v2273_v8 = vadd.f32 %v2111_v24, %v1943_v18  ;;  %v2601_v58 = vmul.f32 %v6726_v50, %v7081_v51 }
 0x145   :  { %12475 = vst [vmem:[#allocation34_spill] sm:$0xff] %v7137_v14  ;;  %v3576_v57 = vmul.f32 %v7038_v23, %v7132_v46  ;;  %v2924_v28 = vmul.f32 %v6802_v42, %v7132_v46  ;;  %v7150_v52 = vadd.f32 %v3252_v36, %v3085_v48  ;;  %v2112_v12 = vmul.f32 %v6710_v43, %v7132_v46 }
 0x146   :  { %v882_v19 = vpop.f32.mrf.mxu0  ;;  %v7161_v18 = vadd.f32 %v2600_v44, %v2273_v8  ;;  %v2603_v54 = vmul.f32 %v6726_v50, %v7132_v46 }
 0x147   :  { %v7164_v24 = vadd.f32 %v6689_v34, %v882_v19  ;;  %v7167_v48 = vadd.f32 %v3576_v57, %v7017_v49  ;;  %v3086_v36 = vadd.f32 %v2924_v28, %v7021_v25  ;;  %v2274_v60 = vadd.f32 %v2112_v12, %v1944_v4  ;;  %v7190_v4 = vld [vmem:[%s12246_s7 + $0x6] ss:$0 sm:$0xff] }
 0x148   :  { %v5698_v14 = vpop.f32.mrf.mxu0  ;;  %v1945_v49 = vmul.f32 %v6702_v40, %v7132_v46  ;;  %v3254_v12 = vmul.f32 %v6909_v2, %v6851_v15 }
 0x149   :  { %12476 = vst [vmem:[#allocation35_spill] sm:$0xff] %v7164_v24  ;;  %12477 = vst [vmem:[#allocation36_spill] sm:$0xff] %v7167_v48  ;;  %v3577_v1 = vmul.f32 %v7038_v23, %v7164_v24  ;;  %v7172_v3 = vadd.f32 %v3253_v7, %v3086_v36  ;;  %v2925_v22 = vmul.f32 %v6802_v42, %v7164_v24 }
 0x14a   :  { %v7176_v8 = vadd.f32 %v2601_v58, %v2274_v60  ;;  %v887_v44 = vpop.f32.mrf.mxu0  ;;  %5796 = vmatmul.mubr.bf16.gmra.mxu0 %v6378_v29  ;;  %v2113_v25 = vmul.f32 %v6710_v43, %v7164_v24  ;;  %v1946_v29 = vmul.f32 %v6702_v40, %v7164_v24  ;;  %v2602_v58 = vmul.f32 %v6726_v50, %v7113_v11  ;;  %v6379_v60 = vld [vmem:[%s12244_s0 + $0x130] sm:$0xff]  }
 0x14b   :  { %v7183_v14 = vadd.f32 %v6689_v34, %v887_v44  ;;  %5799 = vmatprep.mubr.msk.bf16.mxu0 %vm6479_vm0, %v12471_v39  ;;  %v7193_v57 = vadd.f32 %v3577_v1, %v7048_v62  ;;  %v3087_v28 = vadd.f32 %v2925_v22, %v7059_v21  ;;  %v3907_v44 = vmul.f32 %v7190_v4, %v6694_v37 }
 0x14c   :  { %v5701_v19 = vpop.f32.mrf.mxu0  ;;  %v2275_v7 = vadd.f32 %v2113_v25, %v1945_v49  ;;  %v3255_v49 = vmul.f32 %v6909_v2, %v6866_v13 }
 0x14d   :  { %12478 = vst [vmem:[#allocation37_spill] sm:$0xff] %v7193_v57  ;;  %v3578_v36 = vmul.f32 %v7038_v23, %v7183_v14  ;;  %v2926_v62 = vmul.f32 %v6802_v42, %v7183_v14  ;;  %v7206_v1 = vadd.f32 %v3254_v12, %v3087_v28  ;;  %v2114_v21 = vmul.f32 %v6710_v43, %v7183_v14 }
 0x14e   :  { %v890_v22 = vpop.f32.mrf.mxu0  ;;  %v7217_v25 = vadd.f32 %v2602_v58, %v2275_v7 }
 0x14f   :  { %v7220_v19 = vadd.f32 %v6689_v34, %v890_v22  ;;  %v3740_v28 = vadd.f32 %v3578_v36, %v7070_v0  ;;  %v3088_v12 = vadd.f32 %v2926_v62, %v7074_v56  ;;  %v2276_v57 = vadd.f32 %v2114_v21, %v1946_v29 }
 0x150   :  { %v5702_v48 = vpop.f32.mrf.mxu0  ;;  %v3908_v0 = vmul.f32 %v7190_v4, %v6705_v41 }
 0x151   :  { %v7226_v11 = vadd.f32 %v3907_v44, %v3740_v28  ;;  %v3579_v37 = vmul.f32 %v7038_v23, %v7220_v19  ;;  %v7230_v13 = vadd.f32 %v3255_v49, %v3088_v12  ;;  %v2927_v7 = vmul.f32 %v6802_v42, %v7220_v19 }
 0x152   :  { %v895_v58 = vpop.f32.mrf.mxu0  ;;  %5800 = vmatmul.mubr.bf16.gmra.mxu0 %v6379_v60  ;;  %v7236_v56 = vadd.f32 %v2603_v54, %v2276_v57  ;;  %v1947_v48 = vmul.f32 %v6702_v40, %v7183_v14  ;;  %v2115_v29 = vmul.f32 %v6710_v43, %v7220_v19  ;;  %v3256_v54 = vmul.f32 %v6909_v2, %v6886_v45 }
 0x153   :  { %12479 = vst [vmem:[#allocation38_spill] sm:$0xff] %v7226_v11  ;;  %v7243_v36 = vadd.f32 %v6689_v34, %v895_v58  ;;  %5803 = vmatprep.mubr.msk.bf16.mxu0 %vm6479_vm0, %v12471_v39  ;;  %v3741_v62 = vadd.f32 %v3579_v37, %v7099_v61  ;;  %v3089_v21 = vadd.f32 %v2927_v7, %v7110_v32  ;;  %v6380_v61 = vld [vmem:[%s12244_s0 + $0x138] sm:$0xff]  }
 0x154   :  { %v5705_v57 = vpop.f32.mrf.mxu0  ;;  %v2277_v22 = vadd.f32 %v2115_v29, %v1947_v48  ;;  %v2604_v60 = vmul.f32 %v6726_v50, %v7164_v24  ;;  %v3909_v32 = vmul.f32 %v7190_v4, %v6717_v47  ;;  %v1948_v7 = vmul.f32 %v6702_v40, %v7220_v19 }
 0x155   :  { %v3580_v44 = vmul.f32 %v7038_v23, %v7243_v36  ;;  %v7255_v49 = vadd.f32 %v3908_v0, %v3741_v62  ;;  %v2928_v28 = vmul.f32 %v6802_v42, %v7243_v36  ;;  %v7259_v12 = vadd.f32 %v3256_v54, %v3089_v21 }
 0x156   :  { %v898_v37 = vpop.f32.mrf.mxu0  ;;  %v2116_v58 = vmul.f32 %v6710_v43, %v7243_v36  ;;  %v7270_v0 = vadd.f32 %v2604_v60, %v2277_v22  ;;  %v3257_v21 = vmul.f32 %v6909_v2, %v6902_v30  ;;  %v3910_v57 = vmul.f32 %v7190_v4, %v6736_v55 }
 0x157   :  { %12480 = vst [vmem:[#allocation39_spill] sm:$0xff] %v7255_v49  ;;  %v7273_v48 = vadd.f32 %v6689_v34, %v898_v37  ;;  %v3742_v29 = vadd.f32 %v3580_v44, %v7121_v16  ;;  %v3090_v62 = vadd.f32 %v2928_v28, %v7125_v6  ;;  %v2605_v47 = vmul.f32 %v6726_v50, %v7183_v14 }
 0x158   :  { %v5706_v54 = vpop.f32.mrf.mxu0  ;;  %v2278_v11 = vadd.f32 %v2116_v58, %v1948_v7  ;;  %v3258_v44 = vmul.f32 %v6909_v2, %v6930_v20  ;;  %v1949_v7 = vmul.f32 %v6702_v40, %v7243_v36 }
 0x159   :  { %v7283_v22 = vadd.f32 %v3909_v32, %v3742_v29  ;;  %v3581_v60 = vmul.f32 %v7038_v23, %v7273_v48  ;;  %v7287_v37 = vadd.f32 %v3257_v21, %v3090_v62  ;;  %v2929_v16 = vmul.f32 %v6802_v42, %v7273_v48 }
 0x15a   :  { %v903_v6 = vpop.f32.mrf.mxu0  ;;  %5804 = vmatmul.mubr.bf16.gmra.mxu0 %v6380_v61  ;;  %v7293_v28 = vadd.f32 %v2605_v47, %v2278_v11  ;;  %v2117_v32 = vmul.f32 %v6710_v43, %v7273_v48  ;;  %v2606_v21 = vmul.f32 %v6726_v50, %v7220_v19 }
 0x15b   :  { %12481 = vst [vmem:[#allocation40_spill] sm:$0xff] %v7283_v22  ;;  %v7300_v58 = vadd.f32 %v6689_v34, %v903_v6  ;;  %5807 = vmatprep.mubr.msk.bf16.mxu0 %vm6479_vm0, %v12471_v39  ;;  %v3743_v29 = vadd.f32 %v3581_v60, %v7150_v52  ;;  %v3091_v47 = vadd.f32 %v2929_v16, %v7161_v18  ;;  %v6381_v52 = vld [vmem:[%s12244_s0 + $0x140] sm:$0xff]  }
 0x15c   :  { %v5709_v11 = vpop.f32.mrf.mxu0  ;;  %v2279_v62 = vadd.f32 %v2117_v32, %v1949_v7  ;;  %v3911_v18 = vmul.f32 %v7190_v4, %v6745_v63  ;;  %v1950_v60 = vmul.f32 %v6702_v40, %v7273_v48  ;;  %v2607_v22 = vmul.f32 %v6726_v50, %v7243_v36 }
 0x15d   :  { %v3582_v54 = vmul.f32 %v7038_v23, %v7300_v58  ;;  %v7312_v6 = vadd.f32 %v3910_v57, %v3743_v29  ;;  %v2930_v55 = vmul.f32 %v6802_v42, %v7300_v58  ;;  %v7316_v41 = vadd.f32 %v3258_v44, %v3091_v47 }
 0x15e   :  { %v906_v61 = vpop.f32.mrf.mxu0  ;;  %v2118_v57 = vmul.f32 %v6710_v43, %v7300_v58  ;;  %v7327_v16 = vadd.f32 %v2606_v21, %v2279_v62  ;;  %v3259_v29 = vmul.f32 %v6909_v2, %v6946_v38  ;;  %v3912_v11 = vmul.f32 %v7190_v4, %v6759_v9 }
 0x15f   :  { %12482 = vst [vmem:[#allocation41_spill] sm:$0xff] %v7312_v6  ;;  %v7330_v7 = vadd.f32 %v6689_v34, %v906_v61  ;;  %v3744_v44 = vadd.f32 %v3582_v54, %v7172_v3  ;;  %v3092_v32 = vadd.f32 %v2930_v55, %v7176_v8  ;;  %v3260_v8 = vmul.f32 %v6909_v2, %v6971_v10 }
 0x160   :  { %v5710_v47 = vpop.f32.mrf.mxu0  ;;  %v2280_v49 = vadd.f32 %v2118_v57, %v1950_v60  ;;  %v1951_v60 = vmul.f32 %v6702_v40, %v7300_v58 }
 0x161   :  { %v7340_v62 = vadd.f32 %v3911_v18, %v3744_v44  ;;  %v3583_v61 = vmul.f32 %v7038_v23, %v7330_v7  ;;  %v7344_v21 = vadd.f32 %v3259_v29, %v3092_v32  ;;  %v2931_v55 = vmul.f32 %v6802_v42, %v7330_v7 }
 0x162   :  { %v911_v3 = vpop.f32.mrf.mxu0  ;;  %5808 = vmatmul.mubr.bf16.gmra.mxu0 %v6381_v52  ;;  %v7350_v54 = vadd.f32 %v2607_v22, %v2280_v49  ;;  %v2119_v18 = vmul.f32 %v6710_v43, %v7330_v7  ;;  %v2608_v29 = vmul.f32 %v6726_v50, %v7273_v48 }
 0x163   :  { %12483 = vst [vmem:[#allocation42_spill] sm:$0xff] %v7340_v62  ;;  %v7357_v57 = vadd.f32 %v6689_v34, %v911_v3  ;;  %5811 = vmatprep.mubr.msk.bf16.mxu0 %vm6479_vm0, %v12471_v39  ;;  %v3745_v44 = vadd.f32 %v3583_v61, %v7206_v1  ;;  %v3093_v49 = vadd.f32 %v2931_v55, %v7217_v25  ;;  %v6382_v1 = vld [vmem:[%s12244_s0 + $0x148] sm:$0xff]  }
 0x164   :  { %v5713_v22 = vpop.f32.mrf.mxu0  ;;  %v2281_v32 = vadd.f32 %v2119_v18, %v1951_v60  ;;  %v3913_v25 = vmul.f32 %v7190_v4, %v6768_v17  ;;  %v1952_v61 = vmul.f32 %v6702_v40, %v7330_v7  ;;  %v2609_v62 = vmul.f32 %v6726_v50, %v7300_v58 }
 0x165   :  { %v3584_v47 = vmul.f32 %v7038_v23, %v7357_v57  ;;  %v7369_v3 = vadd.f32 %v3912_v11, %v3745_v44  ;;  %v2932_v9 = vmul.f32 %v6802_v42, %v7357_v57  ;;  %v7373_v63 = vadd.f32 %v3260_v8, %v3093_v49 }
 0x166   :  { %v914_v52 = vpop.f32.mrf.mxu0  ;;  %v2120_v11 = vmul.f32 %v6710_v43, %v7357_v57  ;;  %v7384_v55 = vadd.f32 %v2608_v29, %v2281_v32  ;;  %v3261_v44 = vmul.f32 %v6909_v2, %v6987_v31  ;;  %v3914_v22 = vmul.f32 %v7190_v4, %v6782_v26 }
 0x167   :  { %12484 = vst [vmem:[#allocation43_spill] sm:$0xff] %v7369_v3  ;;  %v7387_v60 = vadd.f32 %v6689_v34, %v914_v52  ;;  %v3746_v8 = vadd.f32 %v3584_v47, %v7230_v13  ;;  %v3094_v18 = vadd.f32 %v2932_v9, %v7236_v56  ;;  %v3262_v56 = vmul.f32 %v6909_v2, %v7012_v5 }
 0x168   :  { %v5714_v49 = vpop.f32.mrf.mxu0  ;;  %v2282_v6 = vadd.f32 %v2120_v11, %v1952_v61  ;;  %v1953_v61 = vmul.f32 %v6702_v40, %v7357_v57 }
 0x169   :  { %v7397_v32 = vadd.f32 %v3913_v25, %v3746_v8  ;;  %v3585_v52 = vmul.f32 %v7038_v23, %v7387_v60  ;;  %v7401_v29 = vadd.f32 %v3261_v44, %v3094_v18  ;;  %v2933_v9 = vmul.f32 %v6802_v42, %v7387_v60 }
 0x16a   :  { %v919_v13 = vpop.f32.mrf.mxu0  ;;  %5812 = vmatmul.mubr.bf16.gmra.mxu0 %v6382_v1  ;;  %v7407_v47 = vadd.f32 %v2609_v62, %v2282_v6  ;;  %v2121_v25 = vmul.f32 %v6710_v43, %v7387_v60  ;;  %v2610_v44 = vmul.f32 %v6726_v50, %v7330_v7 }
 0x16b   :  { %12485 = vst [vmem:[#allocation44_spill] sm:$0xff] %v7397_v32  ;;  %v7414_v11 = vadd.f32 %v6689_v34, %v919_v13  ;;  %5815 = vmatprep.mubr.msk.bf16.mxu0 %vm6479_vm0, %v12471_v39  ;;  %v3747_v8 = vadd.f32 %v3585_v52, %v7259_v12  ;;  %v3095_v6 = vadd.f32 %v2933_v9, %v7270_v0  ;;  %v6383_v12 = vld [vmem:[%s12244_s0 + $0x150] sm:$0xff]  }
 0x16c   :  { %v5717_v62 = vpop.f32.mrf.mxu0  ;;  %v2283_v18 = vadd.f32 %v2121_v25, %v1953_v61  ;;  %v3915_v0 = vmul.f32 %v7190_v4, %v6793_v35  ;;  %v1954_v52 = vmul.f32 %v6702_v40, %v7387_v60  ;;  %v2611_v32 = vmul.f32 %v6726_v50, %v7357_v57 }
 0x16d   :  { %v3586_v49 = vmul.f32 %v7038_v23, %v7414_v11  ;;  %v7426_v13 = vadd.f32 %v3914_v22, %v3747_v8  ;;  %v2934_v26 = vmul.f32 %v6802_v42, %v7414_v11  ;;  %v7430_v17 = vadd.f32 %v3262_v56, %v3095_v6 }
 0x16e   :  { %v922_v1 = vpop.f32.mrf.mxu0  ;;  %v2122_v22 = vmul.f32 %v6710_v43, %v7414_v11  ;;  %v7441_v9 = vadd.f32 %v2610_v44, %v2283_v18  ;;  %v3263_v8 = vmul.f32 %v6909_v2, %v7028_v33  ;;  %v3916_v62 = vmul.f32 %v7190_v4, %v6816_v53 }
 0x16f   :  { %12486 = vst [vmem:[#allocation45_spill] sm:$0xff] %v7426_v13  ;;  %v7444_v61 = vadd.f32 %v6689_v34, %v922_v1  ;;  %v3748_v56 = vadd.f32 %v3586_v49, %v7287_v37  ;;  %v3096_v25 = vadd.f32 %v2934_v26, %v7293_v28  ;;  %v3264_v28 = vmul.f32 %v6909_v2, %v7062_v27 }
 0x170   :  { %v5718_v6 = vpop.f32.mrf.mxu0  ;;  %v2284_v3 = vadd.f32 %v2122_v22, %v1954_v52  ;;  %v1955_v52 = vmul.f32 %v6702_v40, %v7414_v11 }
 0x171   :  { %12487 = vst [vmem:[#allocation46_spill] sm:$0xff] %v7444_v61  ;;  %v7454_v18 = vadd.f32 %v3915_v0, %v3748_v56  ;;  %v3587_v1 = vmul.f32 %v7038_v23, %v7444_v61  ;;  %v7458_v44 = vadd.f32 %v3263_v8, %v3096_v25  ;;  %v2935_v26 = vmul.f32 %v6802_v42, %v7444_v61 }
 0x172   :  { %v927_v37 = vpop.f32.mrf.mxu0  ;;  %5816 = vmatmul.mubr.bf16.gmra.mxu0 %v6383_v12  ;;  %v7464_v49 = vadd.f32 %v2611_v32, %v2284_v3  ;;  %v2123_v0 = vmul.f32 %v6710_v43, %v7444_v61  ;;  %v2612_v8 = vmul.f32 %v6726_v50, %v7387_v60 }
 0x173   :  { %12488 = vst [vmem:[#allocation47_spill] sm:$0xff] %v7454_v18  ;;  %v7471_v22 = vadd.f32 %v6689_v34, %v927_v37  ;;  %5819 = vmatprep.mubr.msk.bf16.mxu0 %vm6479_vm0, %v12471_v39  ;;  %v3749_v56 = vadd.f32 %v3587_v1, %v7316_v41  ;;  %v3097_v3 = vadd.f32 %v2935_v26, %v7327_v16  ;;  %v6384_v41 = vld [vmem:[%s12244_s0 + $0x158] sm:$0xff]   ;;  %v7554_v18 = vld [vmem:[%s12246_s7 + $0x2] ss:$0 sm:$0xff] }
 0x174   :  { %v5721_v32 = vpop.f32.mrf.mxu0  ;;  %v2285_v25 = vadd.f32 %v2123_v0, %v1955_v52  ;;  %v3917_v16 = vmul.f32 %v7190_v4, %v6831_v59  ;;  %v1956_v1 = vmul.f32 %v6702_v40, %v7444_v61  ;;  %v3265_v40 = vmul.f32 %v6909_v2, %v7081_v51 }
 0x175   :  { %v3588_v6 = vmul.f32 %v7038_v23, %v7471_v22  ;;  %v7483_v34 = vadd.f32 %v3916_v62, %v3749_v56  ;;  %v2936_v37 = vmul.f32 %v6802_v42, %v7471_v22  ;;  %v7487_v53 = vadd.f32 %v3264_v28, %v3097_v3  ;;  %v7503_v28 = vld [vmem:[%s12245_s2] ss:$0 sm:$0xff] }
 0x176   :  { %v930_v12 = vpop.f32.mrf.mxu0  ;;  %v2124_v62 = vmul.f32 %v6710_v43, %v7471_v22  ;;  %v7498_v26 = vadd.f32 %v2612_v8, %v2285_v25  ;;  %v3918_v43 = vmul.f32 %v7190_v4, %v6851_v15  ;;  %v2613_v25 = vmul.f32 %v6726_v50, %v7414_v11  ;;  %v7531_v50 = vld [vmem:[%s12246_s7] ss:$0 sm:$0xff] }
 0x177   :  { %12489 = vst [vmem:[#allocation48_spill] sm:$0xff] %v7483_v34  ;;  %v7506_v52 = vadd.f32 %v7503_v28, %v930_v12  ;;  %v3750_v0 = vadd.f32 %v3588_v6, %v7344_v21  ;;  %v3098_v56 = vadd.f32 %v2936_v37, %v7350_v54  ;;  %v12492_v6 = vld [vmem:[#allocation32_spill] sm:$0xff]  ;;  %v3267_v34 = vmul.f32 %v6909_v2, %v7132_v46 }
 0x178   :  { %v5722_v3 = vpop.f32.mrf.mxu0  ;;  %v2286_v32 = vadd.f32 %v2124_v62, %v1956_v1  ;;  %v3266_v37 = vmul.f32 %v6909_v2, %v12492_v6  ;;  %v7538_v1 = vld [vmem:[%s12246_s7 + $0x1] ss:$0 sm:$0xff] }
 0x179   :  { %12490 = vst [vmem:[#allocation49_spill] sm:$0xff] %v7506_v52  ;;  %v7516_v8 = vadd.f32 %v3917_v16, %v3750_v0  ;;  %v3589_v12 = vmul.f32 %v7038_v23, %v7506_v52  ;;  %v7520_v13 = vadd.f32 %v3265_v40, %v3098_v56  ;;  %v2937_v21 = vmul.f32 %v6802_v42, %v7506_v52 }
 0x17a   :  { %v935_v54 = vpop.f32.mrf.mxu0  ;;  %5820 = vmatmul.mubr.bf16.gmra.mxu0 %v6384_v41  ;;  %v7526_v3 = vadd.f32 %v2613_v25, %v2286_v32  ;;  %v1957_v16 = vmul.f32 %v7531_v50, %v7471_v22  ;;  %v2125_v41 = vmul.f32 %v7538_v1, %v7506_v52 }
 0x17b   :  { %12491 = vst [vmem:[#allocation50_spill] sm:$0xff] %v7516_v8  ;;  %v7543_v62 = vadd.f32 %v7503_v28, %v935_v54  ;;  %5823 = vmatprep.mubr.msk.bf16.mxu0 %vm6479_vm0, %v12471_v39  ;;  %v3751_v56 = vadd.f32 %v3589_v12, %v7373_v63  ;;  %v3099_v40 = vadd.f32 %v2937_v21, %v7384_v55  ;;  %v6385_v21 = vld [vmem:[%s12244_s0 + $0x160] sm:$0xff]  }
 0x17c   :  { %v5725_v32 = vpop.f32.mrf.mxu0  ;;  %v2287_v25 = vadd.f32 %v2125_v41, %v1957_v16  ;;  %v2614_v54 = vmul.f32 %v7554_v18, %v7444_v61  ;;  %v12494_v16 = vld [vmem:[#allocation19_spill] sm:$0xff]  ;;  %v2615_v61 = vmul.f32 %v7554_v18, %v7471_v22 }
 0x17d   :  { %v3590_v15 = vmul.f32 %v7038_v23, %v7543_v62  ;;  %v7560_v59 = vadd.f32 %v3918_v43, %v3751_v56  ;;  %v2938_v63 = vmul.f32 %v6802_v42, %v7543_v62  ;;  %v7564_v12 = vadd.f32 %v3266_v37, %v3099_v40 }
 0x17e   :  { %v938_v55 = vpop.f32.mrf.mxu0  ;;  %v3919_v41 = vmul.f32 %v7190_v4, %v12494_v16  ;;  %v1958_v32 = vmul.f32 %v7531_v50, %v7506_v52  ;;  %v2126_v43 = vmul.f32 %v7538_v1, %v7543_v62  ;;  %v7575_v56 = vadd.f32 %v2614_v54, %v2287_v25 }
 0x17f   :  { %12493 = vst [vmem:[#allocation32_spill] sm:$0xff] %v7560_v59  ;;  %v7578_v0 = vadd.f32 %v7503_v28, %v938_v55  ;;  %v3752_v37 = vadd.f32 %v3590_v15, %v7401_v29  ;;  %v3100_v40 = vadd.f32 %v2938_v63, %v7407_v47  ;;  %v3920_v16 = vmul.f32 %v7190_v4, %v6886_v45 }
 0x180   :  { %v5726_v8 = vpop.f32.mrf.mxu0  ;;  %v2288_v35 = vadd.f32 %v2126_v43, %v1958_v32  ;;  %v3268_v47 = vmul.f32 %v6909_v2, %v7164_v24  ;;  %v1959_v63 = vmul.f32 %v7531_v50, %v7543_v62  ;;  %v2617_v59 = vmul.f32 %v7554_v18, %v7543_v62 }
 0x181   :  { %v7588_v25 = vadd.f32 %v3919_v41, %v3752_v37  ;;  %v3591_v54 = vmul.f32 %v7038_v23, %v7578_v0  ;;  %v7592_v55 = vadd.f32 %v3267_v34, %v3100_v40  ;;  %v2939_v15 = vmul.f32 %v6802_v42, %v7578_v0 }
 0x182   :  { %v943_v29 = vpop.f32.mrf.mxu0  ;;  %5824 = vmatmul.mubr.bf16.gmra.mxu0 %v6385_v21  ;;  %v7598_v8 = vadd.f32 %v2615_v61, %v2288_v35  ;;  %v2127_v41 = vmul.f32 %v7538_v1, %v7578_v0  ;;  %v2616_v37 = vmul.f32 %v7554_v18, %v7506_v52 }
 0x183   :  { %12495 = vst [vmem:[#allocation51_spill] sm:$0xff] %v7588_v25  ;;  %v7605_v32 = vadd.f32 %v7503_v28, %v943_v29  ;;  %5827 = vmatprep.mubr.msk.bf16.mxu0 %vm6479_vm0, %v12471_v39  ;;  %v3753_v21 = vadd.f32 %v3591_v54, %v7430_v17  ;;  %v3101_v35 = vadd.f32 %v2939_v15, %v7441_v9  ;;  %v6386_v17 = vld [vmem:[%s12244_s0 + $0x168] sm:$0xff]  }
 0x184   :  { %v5729_v61 = vpop.f32.mrf.mxu0  ;;  %v2289_v43 = vadd.f32 %v2127_v41, %v1959_v63  ;;  %v3921_v9 = vmul.f32 %v7190_v4, %v6902_v30  ;;  %v1960_v54 = vmul.f32 %v7531_v50, %v7578_v0  ;;  %v3269_v41 = vmul.f32 %v6909_v2, %v7183_v14 }
 0x185   :  { %v3592_v40 = vmul.f32 %v7038_v23, %v7605_v32  ;;  %v7617_v29 = vadd.f32 %v3920_v16, %v3753_v21  ;;  %v2940_v45 = vmul.f32 %v6802_v42, %v7605_v32  ;;  %v7621_v24 = vadd.f32 %v3268_v47, %v3101_v35 }
 0x186   :  { %v946_v34 = vpop.f32.mrf.mxu0  ;;  %v2128_v16 = vmul.f32 %v7538_v1, %v7605_v32  ;;  %v7632_v15 = vadd.f32 %v2616_v37, %v2289_v43  ;;  %v3922_v35 = vmul.f32 %v7190_v4, %v6930_v20 }
 0x187   :  { %12496 = vst [vmem:[#allocation52_spill] sm:$0xff] %v7617_v29  ;;  %v7635_v42 = vadd.f32 %v7503_v28, %v946_v34  ;;  %v3754_v47 = vadd.f32 %v3592_v40, %v7458_v44  ;;  %v3102_v63 = vadd.f32 %v2940_v45, %v7464_v49  ;;  %v7654_v45 = vld [vmem:[%s12246_s7 + $0x3] ss:$0 sm:$0xff]  ;;  %v3270_v40 = vmul.f32 %v6909_v2, %v7220_v19 }
 0x188   :  { %v5730_v21 = vpop.f32.mrf.mxu0  ;;  %v2290_v61 = vadd.f32 %v2128_v16, %v1960_v54  ;;  %v1961_v54 = vmul.f32 %v7531_v50, %v7605_v32 }
 0x189   :  { %v7645_v43 = vadd.f32 %v3921_v9, %v3754_v47  ;;  %v3593_v34 = vmul.f32 %v7038_v23, %v7635_v42  ;;  %v7649_v37 = vadd.f32 %v3269_v41, %v3102_v63  ;;  %v2941_v44 = vmul.f32 %v7654_v45, %v7635_v42 }
 0x18a   :  { %v951_v49 = vpop.f32.mrf.mxu0  ;;  %5828 = vmatmul.mubr.bf16.gmra.mxu0 %v6386_v17  ;;  %v7660_v9 = vadd.f32 %v2617_v59, %v2290_v61  ;;  %v2129_v16 = vmul.f32 %v7538_v1, %v7635_v42  ;;  %v2618_v61 = vmul.f32 %v7554_v18, %v7578_v0 }
 0x18b   :  { %12497 = vst [vmem:[#allocation53_spill] sm:$0xff] %v7645_v43  ;;  %v7667_v47 = vadd.f32 %v7503_v28, %v951_v49  ;;  %5831 = vmatprep.mubr.msk.bf16.mxu0 %vm6479_vm0, %v12471_v39  ;;  %v3755_v63 = vadd.f32 %v3593_v34, %v7487_v53  ;;  %v3103_v59 = vadd.f32 %v2941_v44, %v7498_v26  ;;  %v6387_v53 = vld [vmem:[%s12244_s0 + $0x170] sm:$0xff]  }
 0x18c   :  { %v5733_v41 = vpop.f32.mrf.mxu0  ;;  %v2291_v21 = vadd.f32 %v2129_v16, %v1961_v54  ;;  %v3923_v26 = vmul.f32 %v7190_v4, %v6946_v38  ;;  %v1962_v34 = vmul.f32 %v7531_v50, %v7635_v42  ;;  %v2619_v43 = vmul.f32 %v7554_v18, %v7605_v32 }
 0x18d   :  { %v3594_v25 = vmul.f32 %v7038_v23, %v7667_v47  ;;  %v7679_v49 = vadd.f32 %v3922_v35, %v3755_v63  ;;  %v2942_v20 = vmul.f32 %v7654_v45, %v7667_v47  ;;  %v7683_v30 = vadd.f32 %v3270_v40, %v3103_v59 }
 0x18e   :  { %v954_v17 = vpop.f32.mrf.mxu0  ;;  %v2130_v35 = vmul.f32 %v7538_v1, %v7667_v47  ;;  %v7694_v44 = vadd.f32 %v2618_v61, %v2291_v21  ;;  %v3271_v63 = vmul.f32 %v6909_v2, %v7243_v36  ;;  %v3924_v41 = vmul.f32 %v7190_v4, %v6971_v10 }
 0x18f   :  { %12498 = vst [vmem:[#allocation54_spill] sm:$0xff] %v7679_v49  ;;  %v7697_v54 = vadd.f32 %v7503_v28, %v954_v17  ;;  %v3756_v40 = vadd.f32 %v3594_v25, %v7520_v13  ;;  %v3104_v16 = vadd.f32 %v2942_v20, %v7526_v3  ;;  %v3272_v3 = vmul.f32 %v6909_v2, %v7273_v48 }
 0x190   :  { %v5734_v59 = vpop.f32.mrf.mxu0  ;;  %v2292_v29 = vadd.f32 %v2130_v35, %v1962_v34  ;;  %v1963_v34 = vmul.f32 %v7531_v50, %v7667_v47 }
 0x191   :  { %v7707_v21 = vadd.f32 %v3923_v26, %v3756_v40  ;;  %v3595_v17 = vmul.f32 %v7038_v23, %v7697_v54  ;;  %v7711_v61 = vadd.f32 %v3271_v63, %v3104_v16  ;;  %v2943_v20 = vmul.f32 %v7654_v45, %v7697_v54 }
 0x192   :  { %v959_v13 = vpop.f32.mrf.mxu0  ;;  %5832 = vmatmul.mubr.bf16.gmra.mxu0 %v6387_v53  ;;  %v7717_v25 = vadd.f32 %v2619_v43, %v2292_v29  ;;  %v2131_v26 = vmul.f32 %v7538_v1, %v7697_v54  ;;  %v2620_v16 = vmul.f32 %v7554_v18, %v7635_v42 }
 0x193   :  { %12499 = vst [vmem:[#allocation55_spill] sm:$0xff] %v7707_v21  ;;  %v7724_v35 = vadd.f32 %v7503_v28, %v959_v13  ;;  %5835 = vmatprep.mubr.msk.bf16.mxu0 %vm6479_vm0, %v12471_v39  ;;  %v3757_v40 = vadd.f32 %v3595_v17, %v7564_v12  ;;  %v3105_v2 = vadd.f32 %v2943_v20, %v7575_v56  ;;  %v6388_v12 = vld [vmem:[%s12244_s0 + $0x178] sm:$0xff]  }
 0x194   :  { %v5737_v29 = vpop.f32.mrf.mxu0  ;;  %v2293_v43 = vadd.f32 %v2131_v26, %v1963_v34  ;;  %v3925_v56 = vmul.f32 %v7190_v4, %v6987_v31  ;;  %v1964_v17 = vmul.f32 %v7531_v50, %v7697_v54 }
 0x195   :  { %v3596_v63 = vmul.f32 %v7038_v23, %v7724_v35  ;;  %v7736_v59 = vadd.f32 %v3924_v41, %v3757_v40  ;;  %v2944_v13 = vmul.f32 %v7654_v45, %v7724_v35  ;;  %v7740_v10 = vadd.f32 %v3272_v3, %v3105_v2  ;;  %v7761_v40 = vld [vmem:[%s12246_s7 + $0x4] ss:$0 sm:$0xff] }
 0x196   :  { %v962_v53 = vpop.f32.mrf.mxu0  ;;  %v2132_v41 = vmul.f32 %v7538_v1, %v7724_v35  ;;  %v7751_v20 = vadd.f32 %v2620_v16, %v2293_v43  ;;  %v3273_v2 = vmul.f32 %v7761_v40, %v7300_v58  ;;  %v3926_v43 = vmul.f32 %v7190_v4, %v7012_v5 }
 0x197   :  { %12500 = vst [vmem:[#allocation56_spill] sm:$0xff] %v7736_v59  ;;  %v7754_v34 = vadd.f32 %v7503_v28, %v962_v53  ;;  %v3758_v3 = vadd.f32 %v3596_v63, %v7592_v55  ;;  %v3106_v26 = vadd.f32 %v2944_v13, %v7598_v8  ;;  %v2621_v53 = vmul.f32 %v7554_v18, %v7667_v47 }
 0x198   :  { %v5738_v29 = vpop.f32.mrf.mxu0  ;;  %v2294_v16 = vadd.f32 %v2132_v41, %v1964_v17  ;;  %v1965_v17 = vmul.f32 %v7531_v50, %v7724_v35  ;;  %v2623_v59 = vmul.f32 %v7554_v18, %v7724_v35 }
 0x199   :  { %v7769_v49 = vadd.f32 %v3925_v56, %v3758_v3  ;;  %v3597_v55 = vmul.f32 %v7038_v23, %v7754_v34  ;;  %v7773_v8 = vadd.f32 %v3273_v2, %v3106_v26  ;;  %v2945_v63 = vmul.f32 %v7654_v45, %v7754_v34 }
 0x19a   :  { %v967_v13 = vpop.f32.mrf.mxu0  ;;  %5836 = vmatmul.mubr.bf16.gmra.mxu0 %v6388_v12  ;;  %v3274_v29 = vmul.f32 %v7761_v40, %v7330_v7  ;;  %v7779_v21 = vadd.f32 %v2621_v53, %v2294_v16  ;;  %v2133_v56 = vmul.f32 %v7538_v1, %v7754_v34  ;;  %v2622_v53 = vmul.f32 %v7554_v18, %v7697_v54 }
 0x19b   :  { %12501 = vst [vmem:[#allocation57_spill] sm:$0xff] %v7769_v49  ;;  %v7786_v41 = vadd.f32 %v7503_v28, %v967_v13  ;;  %5839 = vmatprep.mubr.msk.bf16.mxu0 %vm6479_vm0, %v12471_v39  ;;  %v3759_v3 = vadd.f32 %v3597_v55, %v7621_v24  ;;  %v3107_v26 = vadd.f32 %v2945_v63, %v7632_v15  ;;  %v6389_v24 = vld [vmem:[%s12244_s0 + $0x180] sm:$0xff]  }
 0x19c   :  { %v5741_v2 = vpop.f32.mrf.mxu0  ;;  %v2295_v16 = vadd.f32 %v2133_v56, %v1965_v17  ;;  %v3927_v15 = vmul.f32 %v7190_v4, %v7028_v33  ;;  %v1966_v55 = vmul.f32 %v7531_v50, %v7754_v34  ;;  %v3928_v33 = vmul.f32 %v7190_v4, %v7062_v27 }
 0x19d   :  { %v3598_v5 = vmul.f32 %v7038_v23, %v7786_v41  ;;  %v7798_v13 = vadd.f32 %v3926_v43, %v3759_v3  ;;  %v2946_v31 = vmul.f32 %v7654_v45, %v7786_v41  ;;  %v7802_v38 = vadd.f32 %v3274_v29, %v3107_v26 }
 0x19e   :  { %v970_v12 = vpop.f32.mrf.mxu0  ;;  %v2134_v43 = vmul.f32 %v7538_v1, %v7786_v41  ;;  %v7813_v63 = vadd.f32 %v2622_v53, %v2295_v16  ;;  %v3275_v3 = vmul.f32 %v7761_v40, %v7357_v57 }
 0x19f   :  { %12502 = vst [vmem:[#allocation58_spill] sm:$0xff] %v7798_v13  ;;  %v7816_v17 = vadd.f32 %v7503_v28, %v970_v12  ;;  %v3760_v29 = vadd.f32 %v3598_v5, %v7649_v37  ;;  %v3108_v56 = vadd.f32 %v2946_v31, %v7660_v9  ;;  %v3276_v37 = vmul.f32 %v7761_v40, %v7387_v60 }
 0x1a0   :  { %v5742_v26 = vpop.f32.mrf.mxu0  ;;  %v2296_v2 = vadd.f32 %v2134_v43, %v1966_v55  ;;  %v1967_v9 = vmul.f32 %v7531_v50, %v7786_v41  ;;  %v2625_v13 = vmul.f32 %v7554_v18, %v7786_v41 }
 0x1a1   :  { %12503 = vst [vmem:[#allocation59_spill] sm:$0xff] %v7816_v17  ;;  %v7826_v16 = vadd.f32 %v3927_v15, %v3760_v29  ;;  %v3599_v12 = vmul.f32 %v7038_v23, %v7816_v17  ;;  %v7830_v53 = vadd.f32 %v3275_v3, %v3108_v56  ;;  %v2947_v31 = vmul.f32 %v7654_v45, %v7816_v17 }
 0x1a2   :  { %v975_v5 = vpop.f32.mrf.mxu0  ;;  %5840 = vmatmul.mubr.bf16.gmra.mxu0 %v6389_v24  ;;  %v7836_v27 = vadd.f32 %v2623_v59, %v2296_v2  ;;  %v2135_v15 = vmul.f32 %v7538_v1, %v7816_v17  ;;  %v2624_v3 = vmul.f32 %v7554_v18, %v7754_v34 }
 0x1a3   :  { %12504 = vst [vmem:[#allocation60_spill] sm:$0xff] %v7826_v16  ;;  %v7843_v55 = vadd.f32 %v7503_v28, %v975_v5  ;;  %5843 = vmatprep.mubr.msk.bf16.mxu0 %vm6479_vm0, %v12471_v39  ;;  %v3761_v43 = vadd.f32 %v3599_v12, %v7683_v30  ;;  %v3109_v59 = vadd.f32 %v2947_v31, %v7694_v44  ;;  %v6390_v30 = vld [vmem:[%s12244_s0 + $0x188] sm:$0xff]  }
 0x1a4   :  { %v5745_v29 = vpop.f32.mrf.mxu0  ;;  %v2297_v56 = vadd.f32 %v2135_v15, %v1967_v9  ;;  %v3929_v44 = vmul.f32 %v7190_v4, %v7081_v51  ;;  %v1968_v12 = vmul.f32 %v7531_v50, %v7816_v17  ;;  %v3930_v51 = vmul.f32 %v7190_v4, %v12492_v6 }
 0x1a5   :  { %v3600_v26 = vmul.f32 %v7038_v23, %v7843_v55  ;;  %v7855_v2 = vadd.f32 %v3928_v33, %v3761_v43  ;;  %v2948_v5 = vmul.f32 %v7654_v45, %v7843_v55  ;;  %v7859_v49 = vadd.f32 %v3276_v37, %v3109_v59 }
 0x1a6   :  { %v978_v24 = vpop.f32.mrf.mxu0  ;;  %v2136_v33 = vmul.f32 %v7538_v1, %v7843_v55  ;;  %v7870_v31 = vadd.f32 %v2624_v3, %v2297_v56  ;;  %v3277_v43 = vmul.f32 %v7761_v40, %v7414_v11 }
 0x1a7   :  { %12505 = vst [vmem:[#allocation61_spill] sm:$0xff] %v7855_v2  ;;  %v7873_v9 = vadd.f32 %v7503_v28, %v978_v24  ;;  %v3762_v37 = vadd.f32 %v3600_v26, %v7711_v61  ;;  %v3110_v15 = vadd.f32 %v2948_v5, %v7717_v25  ;;  %v12508_v26 = vld [vmem:[#allocation46_spill] sm:$0xff] }
 0x1a8   :  { %v5746_v59 = vpop.f32.mrf.mxu0  ;;  %v2298_v29 = vadd.f32 %v2136_v33, %v1968_v12  ;;  %v3278_v5 = vmul.f32 %v7761_v40, %v12508_v26  ;;  %v1969_v12 = vmul.f32 %v7531_v50, %v7843_v55 }
 0x1a9   :  { %12506 = vst [vmem:[#allocation62_spill] sm:$0xff] %v7873_v9  ;;  %v7883_v56 = vadd.f32 %v3929_v44, %v3762_v37  ;;  %v3601_v24 = vmul.f32 %v7038_v23, %v7873_v9  ;;  %v7887_v3 = vadd.f32 %v3277_v43, %v3110_v15  ;;  %v2949_v61 = vmul.f32 %v7654_v45, %v7873_v9  ;;  %v7913_v59 = vld [vmem:[%s12246_s7 + $0x5] ss:$0 sm:$0xff] }
 0x1aa   :  { %v983_v25 = vpop.f32.mrf.mxu0  ;;  %5844 = vmatmul.mubr.bf16.gmra.mxu0 %v6390_v30  ;;  %v7893_v6 = vadd.f32 %v2625_v13, %v2298_v29  ;;  %v2137_v44 = vmul.f32 %v7538_v1, %v7873_v9  ;;  %v2626_v43 = vmul.f32 %v7554_v18, %v7816_v17  ;;  %v3279_v30 = vmul.f32 %v7761_v40, %v7471_v22 }
 0x1ab   :  { %12507 = vst [vmem:[#allocation63_spill] sm:$0xff] %v7883_v56  ;;  %v7900_v23 = vadd.f32 %v7503_v28, %v983_v25  ;;  %5847 = vmatprep.mubr.msk.bf16.mxu0 %vm6479_vm0, %v12471_v39  ;;  %v3763_v33 = vadd.f32 %v3601_v24, %v7740_v10  ;;  %v3111_v13 = vadd.f32 %v2949_v61, %v7751_v20  ;;  %v6391_v61 = vld [vmem:[%s12244_s0 + $0x190] sm:$0xff]  }
 0x1ac   :  { %v5749_v37 = vpop.f32.mrf.mxu0  ;;  %v2299_v15 = vadd.f32 %v2137_v44, %v1969_v12  ;;  %v3931_v12 = vmul.f32 %v7190_v4, %v7132_v46  ;;  %v1970_v44 = vmul.f32 %v7531_v50, %v7873_v9  ;;  %v12510_v46 = vld [vmem:[#allocation35_spill] sm:$0xff]  ;;  %v2627_v17 = vmul.f32 %v7554_v18, %v7843_v55 }
 0x1ad   :  { %v3602_v29 = vmul.f32 %v7913_v59, %v7900_v23  ;;  %v7917_v25 = vadd.f32 %v3930_v51, %v3763_v33  ;;  %v2950_v10 = vmul.f32 %v7654_v45, %v7900_v23  ;;  %v7921_v24 = vadd.f32 %v3278_v5, %v3111_v13 }
 0x1ae   :  { %v986_v20 = vpop.f32.mrf.mxu0  ;;  %v2138_v51 = vmul.f32 %v7538_v1, %v7900_v23  ;;  %v7932_v33 = vadd.f32 %v2626_v43, %v2299_v15  ;;  %v3932_v56 = vmul.f32 %v7190_v4, %v12510_v46 }
 0x1af   :  { %12509 = vst [vmem:[#allocation46_spill] sm:$0xff] %v7917_v25  ;;  %v7935_v37 = vadd.f32 %v7503_v28, %v986_v20  ;;  %v3764_v5 = vadd.f32 %v3602_v29, %v7773_v8  ;;  %v3112_v13 = vadd.f32 %v2950_v10, %v7779_v21  ;;  %v1971_v10 = vmul.f32 %v7531_v50, %v7900_v23 }
 0x1b0   :  { %v5750_v2 = vpop.f32.mrf.mxu0  ;;  %v2300_v16 = vadd.f32 %v2138_v51, %v1970_v44  ;;  %v2629_v25 = vmul.f32 %v7554_v18, %v7900_v23 }
 0x1b1   :  { %v7945_v15 = vadd.f32 %v3931_v12, %v3764_v5  ;;  %v3603_v43 = vmul.f32 %v7913_v59, %v7935_v37  ;;  %v7949_v20 = vadd.f32 %v3279_v30, %v3112_v13  ;;  %v2951_v21 = vmul.f32 %v7654_v45, %v7935_v37 }
 0x1b2   :  { %v991_v8 = vpop.f32.mrf.mxu0  ;;  %5848 = vmatmul.mubr.bf16.gmra.mxu0 %v6391_v61  ;;  %v3280_v2 = vmul.f32 %v7761_v40, %v7506_v52  ;;  %v7955_v29 = vadd.f32 %v2627_v17, %v2300_v16  ;;  %v2139_v12 = vmul.f32 %v7538_v1, %v7935_v37  ;;  %v2628_v5 = vmul.f32 %v7554_v18, %v7873_v9 }
 0x1b3   :  { %12511 = vst [vmem:[#allocation35_spill] sm:$0xff] %v7945_v15  ;;  %v7962_v44 = vadd.f32 %v7503_v28, %v991_v8  ;;  %5851 = vmatprep.mubr.msk.bf16.mxu0 %vm6479_vm0, %v12471_v39  ;;  %v3765_v61 = vadd.f32 %v3603_v43, %v7802_v38  ;;  %v3113_v17 = vadd.f32 %v2951_v21, %v7813_v63  ;;  %v6392_v38 = vld [vmem:[%s12244_s0 + $0x198] sm:$0xff]  }
 0x1b4   :  { %v5753_v16 = vpop.f32.mrf.mxu0  ;;  %v2301_v51 = vadd.f32 %v2139_v12, %v1971_v10  ;;  %v3933_v63 = vmul.f32 %v7190_v4, %v7183_v14  ;;  %v1972_v43 = vmul.f32 %v7531_v50, %v7935_v37  ;;  %v3934_v14 = vmul.f32 %v7190_v4, %v7220_v19 }
 0x1b5   :  { %v3604_v13 = vmul.f32 %v7913_v59, %v7962_v44  ;;  %v7974_v46 = vadd.f32 %v3932_v56, %v3765_v61  ;;  %v2952_v8 = vmul.f32 %v7654_v45, %v7962_v44  ;;  %v7978_v52 = vadd.f32 %v3280_v2, %v3113_v17 }
 0x1b6   :  { %v994_v30 = vpop.f32.mrf.mxu0  ;;  %v2140_v56 = vmul.f32 %v7538_v1, %v7962_v44  ;;  %v7989_v21 = vadd.f32 %v2628_v5, %v2301_v51  ;;  %v3281_v61 = vmul.f32 %v7761_v40, %v7543_v62  ;;  %v1973_v19 = vmul.f32 %v7531_v50, %v7962_v44 }
 0x1b7   :  { %12512 = vst [vmem:[#allocation64_spill] sm:$0xff] %v7974_v46  ;;  %v7992_v10 = vadd.f32 %v7503_v28, %v994_v30  ;;  %v3766_v2 = vadd.f32 %v3604_v13, %v7830_v53  ;;  %v3114_v12 = vadd.f32 %v2952_v8, %v7836_v27  ;;  %v3282_v13 = vmul.f32 %v7761_v40, %v7578_v0 }
 0x1b8   :  { %v5754_v17 = vpop.f32.mrf.mxu0  ;;  %v2302_v16 = vadd.f32 %v2140_v56, %v1972_v43 }
 0x1b9   :  { %v8002_v51 = vadd.f32 %v3933_v63, %v3766_v2  ;;  %v3605_v30 = vmul.f32 %v7913_v59, %v7992_v10  ;;  %v8006_v5 = vadd.f32 %v3281_v61, %v3114_v12  ;;  %v2953_v53 = vmul.f32 %v7654_v45, %v7992_v10 }
 0x1ba   :  { %v999_v27 = vpop.f32.mrf.mxu0  ;;  %5852 = vmatmul.mubr.bf16.gmra.mxu0 %v6392_v38  ;;  %v8012_v4 = vadd.f32 %v2629_v25, %v2302_v16  ;;  %v2141_v8 = vmul.f32 %v7538_v1, %v7992_v10  ;;  %v2630_v12 = vmul.f32 %v7554_v18, %v7935_v37 }
 0x1bb   :  { %12513 = vst [vmem:[#allocation65_spill] sm:$0xff] %v8002_v51  ;;  %v8019_v63 = vadd.f32 %v7503_v28, %v999_v27  ;;  %5855 = vmatprep.mubr.msk.bf16.mxu0 %vm6479_vm0, %v12471_v39  ;;  %v3767_v43 = vadd.f32 %v3605_v30, %v7859_v49  ;;  %v3115_v25 = vadd.f32 %v2953_v53, %v7870_v31  ;;  %v6393_v49 = vld [vmem:[%s12244_s0 + $0x1a0] sm:$0xff]  }
 0x1bc   :  { %v5757_v56 = vpop.f32.mrf.mxu0  ;;  %v2303_v2 = vadd.f32 %v2141_v8, %v1973_v19  ;;  %v8043_v31 = vld [vmem:[%s12246_s7 + $0x6] ss:$0 sm:$0xff]  ;;  %v2631_v51 = vmul.f32 %v7554_v18, %v7962_v44 }
 0x1bd   :  { %v3606_v61 = vmul.f32 %v7913_v59, %v8019_v63  ;;  %v8031_v17 = vadd.f32 %v3934_v14, %v3767_v43  ;;  %v2954_v16 = vmul.f32 %v7654_v45, %v8019_v63  ;;  %v8035_v27 = vadd.f32 %v3282_v13, %v3115_v25 }
 0x1be   :  { %v1002_v38 = vpop.f32.mrf.mxu0  ;;  %v3935_v30 = vmul.f32 %v8043_v31, %v7243_v36  ;;  %v1974_v14 = vmul.f32 %v7531_v50, %v7992_v10  ;;  %v2142_v53 = vmul.f32 %v7538_v1, %v8019_v63  ;;  %v8051_v13 = vadd.f32 %v2630_v12, %v2303_v2 }
 0x1bf   :  { %12514 = vst [vmem:[#allocation66_spill] sm:$0xff] %v8031_v17  ;;  %v8054_v19 = vadd.f32 %v7503_v28, %v1002_v38  ;;  %v3768_v8 = vadd.f32 %v3606_v61, %v7887_v3  ;;  %v3116_v43 = vadd.f32 %v2954_v16, %v7893_v6  ;;  %v3283_v25 = vmul.f32 %v7761_v40, %v7605_v32 }
 0x1c0   :  { %v5758_v56 = vpop.f32.mrf.mxu0  ;;  %v3936_v36 = vmul.f32 %v8043_v31, %v7273_v48  ;;  %v2304_v46 = vadd.f32 %v2142_v53, %v1974_v14  ;;  %v3284_v61 = vmul.f32 %v7761_v40, %v7635_v42  ;;  %v1975_v16 = vmul.f32 %v7531_v50, %v8019_v63 }
 0x1c1   :  { %v8064_v2 = vadd.f32 %v3935_v30, %v3768_v8  ;;  %v3607_v38 = vmul.f32 %v7913_v59, %v8054_v19  ;;  %v8068_v12 = vadd.f32 %v3283_v25, %v3116_v43  ;;  %v2955_v3 = vmul.f32 %v7654_v45, %v8054_v19 }
 0x1c2   :  { %v1007_v6 = vpop.f32.mrf.mxu0  ;;  %5856 = vmatmul.mubr.bf16.gmra.mxu0 %v6393_v49  ;;  %v8074_v48 = vadd.f32 %v2631_v51, %v2304_v46  ;;  %v2143_v30 = vmul.f32 %v7538_v1, %v8054_v19  ;;  %v2632_v43 = vmul.f32 %v7554_v18, %v7992_v10  ;;  %v2633_v17 = vmul.f32 %v7554_v18, %v8019_v63 }
 0x1c3   :  { %12515 = vst [vmem:[#allocation67_spill] sm:$0xff] %v8064_v2  ;;  %v8081_v14 = vadd.f32 %v7503_v28, %v1007_v6  ;;  %5859 = vmatprep.mubr.msk.bf16.mxu0 %vm6479_vm0, %v12471_v39  ;;  %v3769_v53 = vadd.f32 %v3607_v38, %v7921_v24  ;;  %v3117_v46 = vadd.f32 %v2955_v3, %v7932_v33  ;;  %v6394_v24 = vld [vmem:[%s12244_s0 + $0x1a8] sm:$0xff]  }
 0x1c4   :  { %v5761_v51 = vpop.f32.mrf.mxu0  ;;  %v2305_v8 = vadd.f32 %v2143_v30, %v1975_v16  ;;  %v3937_v33 = vmul.f32 %v8043_v31, %v7300_v58  ;;  %v1976_v38 = vmul.f32 %v7531_v50, %v8054_v19  ;;  %v3938_v58 = vmul.f32 %v8043_v31, %v7330_v7 }
 0x1c5   :  { %v3608_v25 = vmul.f32 %v7913_v59, %v8081_v14  ;;  %v8093_v56 = vadd.f32 %v3936_v36, %v3769_v53  ;;  %v2956_v6 = vmul.f32 %v7654_v45, %v8081_v14  ;;  %v8097_v15 = vadd.f32 %v3284_v61, %v3117_v46 }
 0x1c6   :  { %v1010_v49 = vpop.f32.mrf.mxu0  ;;  %v2144_v36 = vmul.f32 %v7538_v1, %v8081_v14  ;;  %v8108_v3 = vadd.f32 %v2632_v43, %v2305_v8  ;;  %v3285_v53 = vmul.f32 %v7761_v40, %v7667_v47 }
 0x1c7   :  { %12516 = vst [vmem:[#allocation68_spill] sm:$0xff] %v8093_v56  ;;  %v8111_v16 = vadd.f32 %v7503_v28, %v1010_v49  ;;  %v3770_v61 = vadd.f32 %v3608_v25, %v7949_v20  ;;  %v3118_v30 = vadd.f32 %v2956_v6, %v7955_v29  ;;  %v3286_v25 = vmul.f32 %v7761_v40, %v7697_v54 }
 0x1c8   :  { %v5762_v46 = vpop.f32.mrf.mxu0  ;;  %v2306_v51 = vadd.f32 %v2144_v36, %v1976_v38  ;;  %v1977_v6 = vmul.f32 %v7531_v50, %v8081_v14  ;;  %v2635_v56 = vmul.f32 %v7554_v18, %v8081_v14 }
 0x1c9   :  { %v8121_v8 = vadd.f32 %v3937_v33, %v3770_v61  ;;  %v3609_v49 = vmul.f32 %v7913_v59, %v8111_v16  ;;  %v8125_v43 = vadd.f32 %v3285_v53, %v3118_v30  ;;  %v2957_v20 = vmul.f32 %v7654_v45, %v8111_v16 }
 0x1ca   :  { %v1015_v29 = vpop.f32.mrf.mxu0  ;;  %5860 = vmatmul.mubr.bf16.gmra.mxu0 %v6394_v24  ;;  %v8131_v7 = vadd.f32 %v2633_v17, %v2306_v51  ;;  %v2145_v33 = vmul.f32 %v7538_v1, %v8111_v16  ;;  %v2634_v53 = vmul.f32 %v7554_v18, %v8054_v19 }
 0x1cb   :  { %12517 = vst [vmem:[#allocation69_spill] sm:$0xff] %v8121_v8  ;;  %v8138_v38 = vadd.f32 %v7503_v28, %v1015_v29  ;;  %5863 = vmatprep.mubr.msk.bf16.mxu0 %vm6479_vm0, %v12471_v39  ;;  %v3771_v36 = vadd.f32 %v3609_v49, %v7978_v52  ;;  %v3119_v17 = vadd.f32 %v2957_v20, %v7989_v21  ;;  %v6395_v52 = vld [vmem:[%s12244_s0 + $0x1b0] sm:$0xff]  }
 0x1cc   :  { %v5765_v61 = vpop.f32.mrf.mxu0  ;;  %v2307_v30 = vadd.f32 %v2145_v33, %v1977_v6  ;;  %v3939_v21 = vmul.f32 %v8043_v31, %v7357_v57  ;;  %v1978_v49 = vmul.f32 %v7531_v50, %v8111_v16  ;;  %v3940_v57 = vmul.f32 %v8043_v31, %v7387_v60 }
 0x1cd   :  { %v3610_v46 = vmul.f32 %v7913_v59, %v8138_v38  ;;  %v8150_v51 = vadd.f32 %v3938_v58, %v3771_v36  ;;  %v2958_v29 = vmul.f32 %v7654_v45, %v8138_v38  ;;  %v8154_v2 = vadd.f32 %v3286_v25, %v3119_v17 }
 0x1ce   :  { %v1018_v24 = vpop.f32.mrf.mxu0  ;;  %v2146_v58 = vmul.f32 %v7538_v1, %v8138_v38  ;;  %v8165_v20 = vadd.f32 %v2634_v53, %v2307_v30  ;;  %v3287_v36 = vmul.f32 %v7761_v40, %v7724_v35 }
 0x1cf   :  { %12518 = vst [vmem:[#allocation70_spill] sm:$0xff] %v8150_v51  ;;  %v8168_v6 = vadd.f32 %v7503_v28, %v1018_v24  ;;  %v3772_v25 = vadd.f32 %v3610_v46, %v8006_v5  ;;  %v3120_v33 = vadd.f32 %v2958_v29, %v8012_v4  ;;  %v3288_v46 = vmul.f32 %v7761_v40, %v7754_v34 }
 0x1d0   :  { %v5766_v17 = vpop.f32.mrf.mxu0  ;;  %v2308_v61 = vadd.f32 %v2146_v58, %v1978_v49  ;;  %v1979_v29 = vmul.f32 %v7531_v50, %v8138_v38  ;;  %v2637_v51 = vmul.f32 %v7554_v18, %v8138_v38 }
 0x1d1   :  { %12519 = vst [vmem:[#allocation71_spill] sm:$0xff] %v8168_v6  ;;  %v8178_v30 = vadd.f32 %v3939_v21, %v3772_v25  ;;  %v3611_v24 = vmul.f32 %v7913_v59, %v8168_v6  ;;  %v8182_v53 = vadd.f32 %v3287_v36, %v3120_v33  ;;  %v2959_v5 = vmul.f32 %v7654_v45, %v8168_v6 }
 0x1d2   :  { %v1023_v4 = vpop.f32.mrf.mxu0  ;;  %5864 = vmatmul.mubr.bf16.gmra.mxu0 %v6395_v52  ;;  %v8188_v60 = vadd.f32 %v2635_v56, %v2308_v61  ;;  %v2147_v21 = vmul.f32 %v7538_v1, %v8168_v6  ;;  %v2636_v36 = vmul.f32 %v7554_v18, %v8111_v16 }
 0x1d3   :  { %12520 = vst [vmem:[#allocation72_spill] sm:$0xff] %v8178_v30  ;;  %v8195_v49 = vadd.f32 %v7503_v28, %v1023_v4  ;;  %5867 = vmatprep.mubr.msk.bf16.mxu0 %vm6479_vm0, %v12471_v39  ;;  %v3773_v58 = vadd.f32 %v3611_v24, %v8035_v27  ;;  %v3121_v56 = vadd.f32 %v2959_v5, %v8051_v13  ;;  %v6396_v27 = vld [vmem:[%s12244_s0 + $0x1b8] sm:$0xff]  }
 0x1d4   :  { %v5769_v25 = vpop.f32.mrf.mxu0  ;;  %v2309_v33 = vadd.f32 %v2147_v21, %v1979_v29  ;;  %v3941_v13 = vmul.f32 %v8043_v31, %v7414_v11  ;;  %v1980_v24 = vmul.f32 %v7531_v50, %v8168_v6  ;;  %v3942_v11 = vmul.f32 %v8043_v31, %v12508_v26 }
 0x1d5   :  { %v3612_v17 = vmul.f32 %v7913_v59, %v8195_v49  ;;  %v8207_v61 = vadd.f32 %v3940_v57, %v3773_v58  ;;  %v2960_v4 = vmul.f32 %v7654_v45, %v8195_v49  ;;  %v8211_v8 = vadd.f32 %v3288_v46, %v3121_v56 }
 0x1d6   :  { %v1026_v52 = vpop.f32.mrf.mxu0  ;;  %v2148_v57 = vmul.f32 %v7538_v1, %v8195_v49  ;;  %v8222_v5 = vadd.f32 %v2636_v36, %v2309_v33  ;;  %v3289_v58 = vmul.f32 %v7761_v40, %v7786_v41 }
 0x1d7   :  { %12521 = vst [vmem:[#allocation73_spill] sm:$0xff] %v8207_v61  ;;  %v8225_v29 = vadd.f32 %v7503_v28, %v1026_v52  ;;  %v3774_v46 = vadd.f32 %v3612_v17, %v8068_v12  ;;  %v3122_v21 = vadd.f32 %v2960_v4, %v8074_v48  ;;  %v12524_v17 = vld [vmem:[#allocation59_spill] sm:$0xff] }
 0x1d8   :  { %v5770_v56 = vpop.f32.mrf.mxu0  ;;  %v2310_v25 = vadd.f32 %v2148_v57, %v1980_v24  ;;  %v3290_v4 = vmul.f32 %v7761_v40, %v12524_v17  ;;  %v1981_v24 = vmul.f32 %v7531_v50, %v8195_v49 }
 0x1d9   :  { %12522 = vst [vmem:[#allocation74_spill] sm:$0xff] %v8225_v29  ;;  %v8235_v33 = vadd.f32 %v3941_v13, %v3774_v46  ;;  %v3613_v52 = vmul.f32 %v7913_v59, %v8225_v29  ;;  %v8239_v36 = vadd.f32 %v3289_v58, %v3122_v21  ;;  %v2961_v12 = vmul.f32 %v7654_v45, %v8225_v29 }
 0x1da   :  { %v1031_v48 = vpop.f32.mrf.mxu0  ;;  %5868 = vmatmul.mubr.bf16.gmra.mxu0 %v6396_v27  ;;  %v8245_v26 = vadd.f32 %v2637_v51, %v2310_v25  ;;  %v2149_v13 = vmul.f32 %v7538_v1, %v8225_v29  ;;  %v2638_v56 = vmul.f32 %v7554_v18, %v8168_v6 }
 0x1db   :  { %12523 = vst [vmem:[#allocation75_spill] sm:$0xff] %v8235_v33  ;;  %v8252_v57 = vadd.f32 %v7503_v28, %v1031_v48  ;;  %5871 = vmatprep.mubr.msk.bf16.mxu0 %vm6479_vm0, %v12471_v39  ;;  %v3775_v46 = vadd.f32 %v3613_v52, %v8097_v15  ;;  %v3123_v51 = vadd.f32 %v2961_v12, %v8108_v3  ;;  %v6397_v15 = vld [vmem:[%s12244_s0 + $0x1c0] sm:$0xff]  }
 0x1dc   :  { %v5773_v21 = vpop.f32.mrf.mxu0  ;;  %v2311_v58 = vadd.f32 %v2149_v13, %v1981_v24  ;;  %v3943_v3 = vmul.f32 %v8043_v31, %v7471_v22  ;;  %v1982_v52 = vmul.f32 %v7531_v50, %v8225_v29  ;;  %v12526_v22 = vld [vmem:[#allocation49_spill] sm:$0xff]  ;;  %v2639_v33 = vmul.f32 %v7554_v18, %v8195_v49 }
 0x1dd   :  { %v3614_v25 = vmul.f32 %v7913_v59, %v8252_v57  ;;  %v8264_v48 = vadd.f32 %v3942_v11, %v3775_v46  ;;  %v2962_v30 = vmul.f32 %v7654_v45, %v8252_v57  ;;  %v8268_v17 = vadd.f32 %v3290_v4, %v3123_v51 }
 0x1de   :  { %v1034_v27 = vpop.f32.mrf.mxu0  ;;  %v2150_v11 = vmul.f32 %v7538_v1, %v8252_v57  ;;  %v8279_v12 = vadd.f32 %v2638_v56, %v2311_v58  ;;  %v3291_v46 = vmul.f32 %v7761_v40, %v7843_v55  ;;  %v3944_v21 = vmul.f32 %v8043_v31, %v12526_v22 }
 0x1df   :  { %12525 = vst [vmem:[#allocation76_spill] sm:$0xff] %v8264_v48  ;;  %v8282_v24 = vadd.f32 %v7503_v28, %v1034_v27  ;;  %v3776_v4 = vadd.f32 %v3614_v25, %v8125_v43  ;;  %v3124_v13 = vadd.f32 %v2962_v30, %v8131_v7  ;;  %v3292_v30 = vmul.f32 %v7761_v40, %v7873_v9 }
 0x1e0   :  { %v5774_v51 = vpop.f32.mrf.mxu0  ;;  %v2312_v61 = vadd.f32 %v2150_v11, %v1982_v52  ;;  %v1983_v52 = vmul.f32 %v7531_v50, %v8252_v57  ;;  %v2641_v48 = vmul.f32 %v7554_v18, %v8252_v57 }
 0x1e1   :  { %v8292_v58 = vadd.f32 %v3943_v3, %v3776_v4  ;;  %v3615_v27 = vmul.f32 %v7913_v59, %v8282_v24  ;;  %v8296_v56 = vadd.f32 %v3291_v46, %v3124_v13  ;;  %v2963_v43 = vmul.f32 %v7654_v45, %v8282_v24 }
 0x1e2   :  { %v1039_v7 = vpop.f32.mrf.mxu0  ;;  %5872 = vmatmul.mubr.bf16.gmra.mxu0 %v6397_v15  ;;  %v8302_v25 = vadd.f32 %v2639_v33, %v2312_v61  ;;  %v2151_v3 = vmul.f32 %v7538_v1, %v8282_v24  ;;  %v2640_v46 = vmul.f32 %v7554_v18, %v8225_v29 }
 0x1e3   :  { %12527 = vst [vmem:[#allocation49_spill] sm:$0xff] %v8292_v58  ;;  %v8309_v11 = vadd.f32 %v7503_v28, %v1039_v7  ;;  %5875 = vmatprep.mubr.msk.bf16.mxu0 %vm6479_vm0, %v12471_v39  ;;  %v3777_v4 = vadd.f32 %v3615_v27, %v8154_v2  ;;  %v3125_v61 = vadd.f32 %v2963_v43, %v8165_v20  ;;  %v6398_v2 = vld [vmem:[%s12244_s0 + $0x1c8] sm:$0xff]  }
 0x1e4   :  { %v5777_v33 = vpop.f32.mrf.mxu0  ;;  %v2313_v13 = vadd.f32 %v2151_v3, %v1983_v52  ;;  %v3945_v20 = vmul.f32 %v8043_v31, %v7543_v62  ;;  %v1984_v27 = vmul.f32 %v7531_v50, %v8282_v24  ;;  %v3946_v62 = vmul.f32 %v8043_v31, %v7578_v0 }
 0x1e5   :  { %v3616_v51 = vmul.f32 %v7913_v59, %v8309_v11  ;;  %v8321_v22 = vadd.f32 %v3944_v21, %v3777_v4  ;;  %v2964_v7 = vmul.f32 %v7654_v45, %v8309_v11  ;;  %v8325_v9 = vadd.f32 %v3292_v30, %v3125_v61 }
 0x1e6   :  { %v1042_v15 = vpop.f32.mrf.mxu0  ;;  %v2152_v21 = vmul.f32 %v7538_v1, %v8309_v11  ;;  %v8336_v43 = vadd.f32 %v2640_v46, %v2313_v13  ;;  %v3293_v4 = vmul.f32 %v7761_v40, %v7900_v23  ;;  %v3294_v46 = vmul.f32 %v7761_v40, %v7935_v37 }
 0x1e7   :  { %12528 = vst [vmem:[#allocation77_spill] sm:$0xff] %v8321_v22  ;;  %v8339_v52 = vadd.f32 %v7503_v28, %v1042_v15  ;;  %v3778_v30 = vadd.f32 %v3616_v51, %v8182_v53  ;;  %v3126_v3 = vadd.f32 %v2964_v7, %v8188_v60  ;;  %v1985_v51 = vmul.f32 %v7531_v50, %v8309_v11 }
 0x1e8   :  { %v5778_v61 = vpop.f32.mrf.mxu0  ;;  %v2314_v33 = vadd.f32 %v2152_v21, %v1984_v27 }
 0x1e9   :  { %v8349_v13 = vadd.f32 %v3945_v20, %v3778_v30  ;;  %v3617_v28 = vmul.f32 %v7913_v59, %v8339_v52  ;;  %v8353_v15 = vadd.f32 %v3293_v4, %v3126_v3  ;;  %v2965_v53 = vmul.f32 %v7654_v45, %v8339_v52  ;;  %v8368_v20 = vld [vmem:[%s12245_s2] ss:$0 sm:$0xff] }
 0x1ea   :  { %v1047_v60 = vpop.f32.mrf.mxu0  ;;  %5876 = vmatmul.mubr.bf16.gmra.mxu0 %v6398_v2  ;;  %v8359_v0 = vadd.f32 %v2641_v48, %v2314_v33  ;;  %v2153_v7 = vmul.f32 %v7538_v1, %v8339_v52  ;;  %v2642_v30 = vmul.f32 %v7554_v18, %v8282_v24  ;;  %v8397_v18 = vld [vmem:[%s12246_s7] ss:$0 sm:$0xff] }
 0x1eb   :  { %12529 = vst [vmem:[#allocation78_spill] sm:$0xff] %v8349_v13  ;;  %v8371_v27 = vadd.f32 %v8368_v20, %v1047_v60  ;;  %5879 = vmatprep.mubr.msk.bf16.mxu0 %vm6479_vm0, %v12471_v39  ;;  %v3779_v2 = vadd.f32 %v3617_v28, %v8211_v8  ;;  %v3127_v50 = vadd.f32 %v2965_v53, %v8222_v5  ;;  %v6399_v8 = vld [vmem:[%s12244_s0 + $0x1d0] sm:$0xff]   ;;  %v8404_v28 = vld [vmem:[%s12246_s7 + $0x1] ss:$0 sm:$0xff] }
 0x1ec   :  { %v5781_v21 = vpop.f32.mrf.mxu0  ;;  %v2315_v1 = vadd.f32 %v2153_v7, %v1985_v51  ;;  %v3947_v5 = vmul.f32 %v8043_v31, %v7605_v32 }
 0x1ed   :  { %v3618_v3 = vmul.f32 %v7913_v59, %v8371_v27  ;;  %v8383_v4 = vadd.f32 %v3946_v62, %v3779_v2  ;;  %v2966_v61 = vmul.f32 %v7654_v45, %v8371_v27  ;;  %v8387_v33 = vadd.f32 %v3294_v46, %v3127_v50 }
 0x1ee   :  { %v1050_v60 = vpop.f32.mrf.mxu0  ;;  %v1986_v62 = vmul.f32 %v8397_v18, %v8339_v52  ;;  %v2154_v53 = vmul.f32 %v8404_v28, %v8371_v27  ;;  %v8408_v46 = vadd.f32 %v2642_v30, %v2315_v1  ;;  %v3295_v2 = vmul.f32 %v7761_v40, %v7962_v44  ;;  %v8422_v1 = vld [vmem:[%s12246_s7 + $0x2] ss:$0 sm:$0xff] }
 0x1ef   :  { %12530 = vst [vmem:[#allocation79_spill] sm:$0xff] %v8383_v4  ;;  %v8411_v32 = vadd.f32 %v8368_v20, %v1050_v60  ;;  %v3780_v51 = vadd.f32 %v3618_v3, %v8239_v36  ;;  %v3128_v7 = vadd.f32 %v2966_v61, %v8245_v26  ;;  %v3948_v21 = vmul.f32 %v8043_v31, %v7635_v42 }
 0x1f0   :  { %v5782_v50 = vpop.f32.mrf.mxu0  ;;  %v2316_v48 = vadd.f32 %v2154_v53, %v1986_v62  ;;  %v2643_v30 = vmul.f32 %v8422_v1, %v8309_v11  ;;  %v3296_v61 = vmul.f32 %v7761_v40, %v7992_v10  ;;  %v1987_v53 = vmul.f32 %v8397_v18, %v8371_v27 }
 0x1f1   :  { %v8426_v60 = vadd.f32 %v3947_v5, %v3780_v51  ;;  %v3619_v36 = vmul.f32 %v7913_v59, %v8411_v32  ;;  %v8430_v26 = vadd.f32 %v3295_v2, %v3128_v7  ;;  %v2967_v3 = vmul.f32 %v7654_v45, %v8411_v32 }
 0x1f2   :  { %v1055_v42 = vpop.f32.mrf.mxu0  ;;  %5880 = vmatmul.mubr.bf16.gmra.mxu0 %v6399_v8  ;;  %v8436_v62 = vadd.f32 %v2643_v30, %v2316_v48  ;;  %v2155_v5 = vmul.f32 %v8404_v28, %v8411_v32  ;;  %v2644_v30 = vmul.f32 %v8422_v1, %v8339_v52  ;;  %v2645_v4 = vmul.f32 %v8422_v1, %v8371_v27 }
 0x1f3   :  { %12531 = vst [vmem:[#allocation80_spill] sm:$0xff] %v8426_v60  ;;  %v8443_v51 = vadd.f32 %v8368_v20, %v1055_v42  ;;  %5883 = vmatprep.mubr.msk.bf16.mxu0 %vm6479_vm0, %v12471_v39  ;;  %v3781_v7 = vadd.f32 %v3619_v36, %v8268_v17  ;;  %v3129_v48 = vadd.f32 %v2967_v3, %v8279_v12  ;;  %v6400_v17 = vld [vmem:[%s12244_s0 + $0x1d8] sm:$0xff]  }
 0x1f4   :  { %v5785_v2 = vpop.f32.mrf.mxu0  ;;  %v2317_v50 = vadd.f32 %v2155_v5, %v1987_v53  ;;  %v3949_v12 = vmul.f32 %v8043_v31, %v7667_v47  ;;  %v1988_v36 = vmul.f32 %v8397_v18, %v8411_v32  ;;  %v3950_v47 = vmul.f32 %v8043_v31, %v7697_v54 }
 0x1f5   :  { %v3620_v22 = vmul.f32 %v7913_v59, %v8443_v51  ;;  %v8455_v42 = vadd.f32 %v3948_v21, %v3781_v7  ;;  %v2968_v13 = vmul.f32 %v7654_v45, %v8443_v51  ;;  %v8459_v58 = vadd.f32 %v3296_v61, %v3129_v48 }
 0x1f6   :  { %v1058_v8 = vpop.f32.mrf.mxu0  ;;  %v2156_v21 = vmul.f32 %v8404_v28, %v8443_v51  ;;  %v8470_v3 = vadd.f32 %v2644_v30, %v2317_v50  ;;  %v3297_v7 = vmul.f32 %v7761_v40, %v8019_v63 }
 0x1f7   :  { %12532 = vst [vmem:[#allocation81_spill] sm:$0xff] %v8455_v42  ;;  %v8473_v53 = vadd.f32 %v8368_v20, %v1058_v8  ;;  %v3782_v61 = vadd.f32 %v3620_v22, %v8296_v56  ;;  %v3130_v5 = vadd.f32 %v2968_v13, %v8302_v25  ;;  %v3298_v22 = vmul.f32 %v7761_v40, %v8054_v19 }
 0x1f8   :  { %v5786_v48 = vpop.f32.mrf.mxu0  ;;  %v2318_v2 = vadd.f32 %v2156_v21, %v1988_v36  ;;  %v1989_v13 = vmul.f32 %v8397_v18, %v8443_v51 }
 0x1f9   :  { %v8483_v50 = vadd.f32 %v3949_v12, %v3782_v61  ;;  %v3621_v8 = vmul.f32 %v7913_v59, %v8473_v53  ;;  %v8487_v30 = vadd.f32 %v3297_v7, %v3130_v5  ;;  %v2969_v56 = vmul.f32 %v7654_v45, %v8473_v53 }
 0x1fa   :  { %v1063_v25 = vpop.f32.mrf.mxu0  ;;  %5884 = vmatmul.mubr.bf16.gmra.mxu0 %v6400_v17  ;;  %v8493_v54 = vadd.f32 %v2645_v4, %v2318_v2  ;;  %v2157_v12 = vmul.f32 %v8404_v28, %v8473_v53  ;;  %v2646_v5 = vmul.f32 %v8422_v1, %v8411_v32  ;;  %v8517_v2 = vld [vmem:[%s12246_s7 + $0x3] ss:$0 sm:$0xff] }
 0x1fb   :  { %12533 = vst [vmem:[#allocation82_spill] sm:$0xff] %v8483_v50  ;;  %v8500_v36 = vadd.f32 %v8368_v20, %v1063_v25  ;;  %5887 = vmatprep.mubr.msk.bf16.mxu0 %vm6479_vm0, %v12471_v39  ;;  %v3783_v17 = vadd.f32 %v3621_v8, %v8325_v9  ;;  %v3131_v4 = vadd.f32 %v2969_v56, %v8336_v43  ;;  %v6401_v56 = vld [vmem:[%s12244_s0 + $0x1e0] sm:$0xff]  }
 0x1fc   :  { %v5789_v21 = vpop.f32.mrf.mxu0  ;;  %v2319_v61 = vadd.f32 %v2157_v12, %v1989_v13  ;;  %v3951_v25 = vmul.f32 %v8043_v31, %v7724_v35  ;;  %v3952_v35 = vmul.f32 %v8043_v31, %v7754_v34  ;;  %v2647_v50 = vmul.f32 %v8422_v1, %v8443_v51 }
 0x1fd   :  { %v3622_v7 = vmul.f32 %v7913_v59, %v8500_v36  ;;  %v8512_v48 = vadd.f32 %v3950_v47, %v3783_v17  ;;  %v2970_v9 = vmul.f32 %v8517_v2, %v8500_v36  ;;  %v8521_v8 = vadd.f32 %v3298_v22, %v3131_v4 }
 0x1fe   :  { %v1066_v43 = vpop.f32.mrf.mxu0  ;;  %v1990_v47 = vmul.f32 %v8397_v18, %v8473_v53  ;;  %v2158_v13 = vmul.f32 %v8404_v28, %v8500_v36  ;;  %v8532_v12 = vadd.f32 %v2646_v5, %v2319_v61  ;;  %v3299_v21 = vmul.f32 %v7761_v40, %v8081_v14 }
 0x1ff   :  { %12534 = vst [vmem:[#allocation83_spill] sm:$0xff] %v8512_v48  ;;  %v8535_v17 = vadd.f32 %v8368_v20, %v1066_v43  ;;  %v3784_v22 = vadd.f32 %v3622_v7, %v8353_v15  ;;  %v3132_v4 = vadd.f32 %v2970_v9, %v8359_v0  ;;  %v1991_v7 = vmul.f32 %v8397_v18, %v8500_v36 }
 0x200   :  { %v5790_v45 = vpop.f32.mrf.mxu0  ;;  %v2320_v42 = vadd.f32 %v2158_v13, %v1990_v47 }
 0x201   :  { %12535 = vst [vmem:[#allocation84_spill] sm:$0xff] %v8535_v17  ;;  %v8545_v61 = vadd.f32 %v3951_v25, %v3784_v22  ;;  %v3623_v5 = vmul.f32 %v7913_v59, %v8535_v17  ;;  %v8549_v43 = vadd.f32 %v3299_v21, %v3132_v4  ;;  %v2971_v15 = vmul.f32 %v8517_v2, %v8535_v17 }
 0x202   :  { %v1071_v0 = vpop.f32.mrf.mxu0  ;;  %5888 = vmatmul.mubr.bf16.gmra.mxu0 %v6401_v56  ;;  %v3300_v45 = vmul.f32 %v7761_v40, %v8111_v16  ;;  %v8555_v34 = vadd.f32 %v2647_v50, %v2320_v42  ;;  %v2159_v9 = vmul.f32 %v8404_v28, %v8535_v17  ;;  %v2648_v22 = vmul.f32 %v8422_v1, %v8473_v53 }
 0x203   :  { %12536 = vst [vmem:[#allocation85_spill] sm:$0xff] %v8545_v61  ;;  %v8562_v25 = vadd.f32 %v8368_v20, %v1071_v0  ;;  %5891 = vmatprep.mubr.msk.bf16.mxu0 %vm6479_vm0, %v12471_v39  ;;  %v3785_v47 = vadd.f32 %v3623_v5, %v8387_v33  ;;  %v3133_v42 = vadd.f32 %v2971_v15, %v8408_v46  ;;  %v6402_v33 = vld [vmem:[%s12244_s0 + $0x1e8] sm:$0xff]  }
 0x204   :  { %v5793_v50 = vpop.f32.mrf.mxu0  ;;  %v2321_v13 = vadd.f32 %v2159_v9, %v1991_v7  ;;  %v3953_v46 = vmul.f32 %v8043_v31, %v7786_v41  ;;  %v1992_v5 = vmul.f32 %v8397_v18, %v8535_v17  ;;  %v12539_v41 = vld [vmem:[#allocation59_spill] sm:$0xff]  ;;  %v2649_v61 = vmul.f32 %v8422_v1, %v8500_v36 }
 0x205   :  { %v3624_v4 = vmul.f32 %v7913_v59, %v8562_v25  ;;  %v8574_v21 = vadd.f32 %v3952_v35, %v3785_v47  ;;  %v2972_v0 = vmul.f32 %v8517_v2, %v8562_v25  ;;  %v8578_v60 = vadd.f32 %v3300_v45, %v3133_v42 }
 0x206   :  { %v1074_v56 = vpop.f32.mrf.mxu0  ;;  %v2160_v35 = vmul.f32 %v8404_v28, %v8562_v25  ;;  %v8589_v15 = vadd.f32 %v2648_v22, %v2321_v13  ;;  %v3301_v47 = vmul.f32 %v7761_v40, %v8138_v38  ;;  %v3954_v50 = vmul.f32 %v8043_v31, %v12539_v41  ;;  %v8613_v40 = vld [vmem:[%s12246_s7 + $0x4] ss:$0 sm:$0xff] }
 0x207   :  { %12537 = vst [vmem:[#allocation86_spill] sm:$0xff] %v8574_v21  ;;  %v8592_v7 = vadd.f32 %v8368_v20, %v1074_v56  ;;  %v3786_v45 = vadd.f32 %v3624_v4, %v8430_v26  ;;  %v3134_v9 = vadd.f32 %v2972_v0, %v8436_v62  ;;  %v3302_v4 = vmul.f32 %v8613_v40, %v8168_v6 }
 0x208   :  { %v5794_v42 = vpop.f32.mrf.mxu0  ;;  %v2322_v48 = vadd.f32 %v2160_v35, %v1992_v5 }
 0x209   :  { %12538 = vst [vmem:[#allocation87_spill] sm:$0xff] %v8592_v7  ;;  %v8602_v13 = vadd.f32 %v3953_v46, %v3786_v45  ;;  %v3625_v56 = vmul.f32 %v7913_v59, %v8592_v7  ;;  %v8606_v22 = vadd.f32 %v3301_v47, %v3134_v9  ;;  %v2973_v26 = vmul.f32 %v8517_v2, %v8592_v7 }
 0x20a   :  { %v1079_v62 = vpop.f32.mrf.mxu0  ;;  %5892 = vmatmul.mubr.bf16.gmra.mxu0 %v6402_v33  ;;  %v8617_v0 = vadd.f32 %v2649_v61, %v2322_v48  ;;  %v1993_v46 = vmul.f32 %v8397_v18, %v8562_v25  ;;  %v2161_v5 = vmul.f32 %v8404_v28, %v8592_v7  ;;  %v2650_v47 = vmul.f32 %v8422_v1, %v8535_v17 }
 0x20b   :  { %12540 = vst [vmem:[#allocation59_spill] sm:$0xff] %v8602_v13  ;;  %v8624_v35 = vadd.f32 %v8368_v20, %v1079_v62  ;;  %5895 = vmatprep.mubr.msk.bf16.mxu0 %vm6479_vm0, %v12471_v39  ;;  %v3787_v45 = vadd.f32 %v3625_v56, %v8459_v58  ;;  %v3135_v48 = vadd.f32 %v2973_v26, %v8470_v3  ;;  %v6403_v58 = vld [vmem:[%s12244_s0 + $0x1f0] sm:$0xff]  }
 0x20c   :  { %v5797_v61 = vpop.f32.mrf.mxu0  ;;  %v2323_v9 = vadd.f32 %v2161_v5, %v1993_v46  ;;  %v3955_v3 = vmul.f32 %v8043_v31, %v7843_v55  ;;  %v1994_v56 = vmul.f32 %v8397_v18, %v8592_v7  ;;  %v12542_v55 = vld [vmem:[#allocation62_spill] sm:$0xff]  ;;  %v2651_v13 = vmul.f32 %v8422_v1, %v8562_v25 }
 0x20d   :  { %v3626_v42 = vmul.f32 %v7913_v59, %v8624_v35  ;;  %v8636_v41 = vadd.f32 %v3954_v50, %v3787_v45  ;;  %v2974_v62 = vmul.f32 %v8517_v2, %v8624_v35  ;;  %v8640_v6 = vadd.f32 %v3302_v4, %v3135_v48 }
 0x20e   :  { %v1082_v33 = vpop.f32.mrf.mxu0  ;;  %v2162_v50 = vmul.f32 %v8404_v28, %v8624_v35  ;;  %v8651_v26 = vadd.f32 %v2650_v47, %v2323_v9  ;;  %v3303_v45 = vmul.f32 %v8613_v40, %v8195_v49  ;;  %v3956_v61 = vmul.f32 %v8043_v31, %v12542_v55 }
 0x20f   :  { %12541 = vst [vmem:[#allocation88_spill] sm:$0xff] %v8636_v41  ;;  %v8654_v46 = vadd.f32 %v8368_v20, %v1082_v33  ;;  %v3788_v4 = vadd.f32 %v3626_v42, %v8487_v30  ;;  %v3136_v5 = vadd.f32 %v2974_v62, %v8493_v54  ;;  %v3304_v42 = vmul.f32 %v8613_v40, %v8225_v29 }
 0x210   :  { %v5798_v48 = vpop.f32.mrf.mxu0  ;;  %v2324_v21 = vadd.f32 %v2162_v50, %v1994_v56  ;;  %v1995_v56 = vmul.f32 %v8397_v18, %v8624_v35  ;;  %v2653_v41 = vmul.f32 %v8422_v1, %v8624_v35 }
 0x211   :  { %v8664_v9 = vadd.f32 %v3955_v3, %v3788_v4  ;;  %v3627_v33 = vmul.f32 %v7913_v59, %v8654_v46  ;;  %v8668_v47 = vadd.f32 %v3303_v45, %v3136_v5  ;;  %v2975_v30 = vmul.f32 %v8517_v2, %v8654_v46 }
 0x212   :  { %v1087_v54 = vpop.f32.mrf.mxu0  ;;  %5896 = vmatmul.mubr.bf16.gmra.mxu0 %v6403_v58  ;;  %v8674_v62 = vadd.f32 %v2651_v13, %v2324_v21  ;;  %v2163_v3 = vmul.f32 %v8404_v28, %v8654_v46  ;;  %v2652_v45 = vmul.f32 %v8422_v1, %v8592_v7 }
 0x213   :  { %12543 = vst [vmem:[#allocation62_spill] sm:$0xff] %v8664_v9  ;;  %v8681_v50 = vadd.f32 %v8368_v20, %v1087_v54  ;;  %5899 = vmatprep.mubr.msk.bf16.mxu0 %vm6479_vm0, %v12471_v39  ;;  %v3789_v4 = vadd.f32 %v3627_v33, %v8521_v8  ;;  %v3137_v21 = vadd.f32 %v2975_v30, %v8532_v12  ;;  %v6404_v8 = vld [vmem:[%s12244_s0 + $0x1f8] sm:$0xff]  }
 0x214   :  { %v5801_v13 = vpop.f32.mrf.mxu0  ;;  %v2325_v5 = vadd.f32 %v2163_v3, %v1995_v56  ;;  %v3957_v12 = vmul.f32 %v8043_v31, %v7900_v23  ;;  %v1996_v33 = vmul.f32 %v8397_v18, %v8654_v46  ;;  %v3958_v23 = vmul.f32 %v8043_v31, %v7935_v37 }
 0x215   :  { %v3628_v48 = vmul.f32 %v7913_v59, %v8681_v50  ;;  %v8693_v55 = vadd.f32 %v3956_v61, %v3789_v4  ;;  %v2976_v54 = vmul.f32 %v8517_v2, %v8681_v50  ;;  %v8697_v29 = vadd.f32 %v3304_v42, %v3137_v21 }
 0x216   :  { %v1090_v58 = vpop.f32.mrf.mxu0  ;;  %v2164_v61 = vmul.f32 %v8404_v28, %v8681_v50  ;;  %v8708_v30 = vadd.f32 %v2652_v45, %v2325_v5  ;;  %v3305_v4 = vmul.f32 %v8613_v40, %v8252_v57 }
 0x217   :  { %12544 = vst [vmem:[#allocation89_spill] sm:$0xff] %v8693_v55  ;;  %v8711_v56 = vadd.f32 %v8368_v20, %v1090_v58  ;;  %v3790_v42 = vadd.f32 %v3628_v48, %v8549_v43  ;;  %v3138_v3 = vadd.f32 %v2976_v54, %v8555_v34  ;;  %v3306_v48 = vmul.f32 %v8613_v40, %v8282_v24 }
 0x218   :  { %v5802_v21 = vpop.f32.mrf.mxu0  ;;  %v2326_v13 = vadd.f32 %v2164_v61, %v1996_v33  ;;  %v1997_v54 = vmul.f32 %v8397_v18, %v8681_v50 }
 0x219   :  { %v8721_v5 = vadd.f32 %v3957_v12, %v3790_v42  ;;  %v3629_v58 = vmul.f32 %v7913_v59, %v8711_v56  ;;  %v8725_v45 = vadd.f32 %v3305_v4, %v3138_v3  ;;  %v2977_v43 = vmul.f32 %v8517_v2, %v8711_v56 }
 0x21a   :  { %v1095_v34 = vpop.f32.mrf.mxu0  ;;  %5900 = vmatmul.mubr.bf16.gmra.mxu0 %v6404_v8  ;;  %v8731_v37 = vadd.f32 %v2653_v41, %v2326_v13  ;;  %v2165_v12 = vmul.f32 %v8404_v28, %v8711_v56  ;;  %v2654_v4 = vmul.f32 %v8422_v1, %v8654_v46 }
 0x21b   :  { %12545 = vst [vmem:[#allocation90_spill] sm:$0xff] %v8721_v5  ;;  %v8738_v33 = vadd.f32 %v8368_v20, %v1095_v34  ;;  %5903 = vmatprep.mubr.msk.bf16.mxu0 %vm6479_vm0, %v12471_v39  ;;  %v3791_v61 = vadd.f32 %v3629_v58, %v8578_v60  ;;  %v3139_v41 = vadd.f32 %v2977_v43, %v8589_v15  ;;  %v6405_v60 = vld [vmem:[%s12244_s0 + $0x200] sm:$0xff]  }
 0x21c   :  { %v5805_v42 = vpop.f32.mrf.mxu0  ;;  %v2327_v3 = vadd.f32 %v2165_v12, %v1997_v54  ;;  %v3959_v15 = vmul.f32 %v8043_v31, %v7962_v44  ;;  %v1998_v58 = vmul.f32 %v8397_v18, %v8711_v56  ;;  %v3307_v12 = vmul.f32 %v8613_v40, %v8309_v11 }
 0x21d   :  { %v3630_v21 = vmul.f32 %v7913_v59, %v8738_v33  ;;  %v8750_v13 = vadd.f32 %v3958_v23, %v3791_v61  ;;  %v2978_v34 = vmul.f32 %v8517_v2, %v8738_v33  ;;  %v8754_v9 = vadd.f32 %v3306_v48, %v3139_v41 }
 0x21e   :  { %v1098_v8 = vpop.f32.mrf.mxu0  ;;  %v2166_v59 = vmul.f32 %v8404_v28, %v8738_v33  ;;  %v8765_v23 = vadd.f32 %v2654_v4, %v2327_v3  ;;  %v3960_v44 = vmul.f32 %v8043_v31, %v7992_v10  ;;  %v2655_v42 = vmul.f32 %v8422_v1, %v8681_v50 }
 0x21f   :  { %12546 = vst [vmem:[#allocation91_spill] sm:$0xff] %v8750_v13  ;;  %v8768_v43 = vadd.f32 %v8368_v20, %v1098_v8  ;;  %v3792_v48 = vadd.f32 %v3630_v21, %v8606_v22  ;;  %v3140_v54 = vadd.f32 %v2978_v34, %v8617_v0  ;;  %v8783_v8 = vld [vmem:[%s12246_s7 + $0x5] ss:$0 sm:$0xff]  ;;  %v3308_v21 = vmul.f32 %v8613_v40, %v8339_v52 }
 0x220   :  { %v5806_v61 = vpop.f32.mrf.mxu0  ;;  %v2328_v41 = vadd.f32 %v2166_v59, %v1998_v58  ;;  %v2657_v13 = vmul.f32 %v8422_v1, %v8738_v33 }
 0x221   :  { %v8778_v3 = vadd.f32 %v3959_v15, %v3792_v48  ;;  %v3631_v22 = vmul.f32 %v8783_v8, %v8768_v43  ;;  %v8787_v0 = vadd.f32 %v3307_v12, %v3140_v54  ;;  %v2979_v4 = vmul.f32 %v8517_v2, %v8768_v43 }
 0x222   :  { %v1103_v10 = vpop.f32.mrf.mxu0  ;;  %5904 = vmatmul.mubr.bf16.gmra.mxu0 %v6405_v60  ;;  %v8793_v34 = vadd.f32 %v2655_v42, %v2328_v41  ;;  %v1999_v15 = vmul.f32 %v8397_v18, %v8738_v33  ;;  %v2167_v58 = vmul.f32 %v8404_v28, %v8768_v43  ;;  %v2656_v41 = vmul.f32 %v8422_v1, %v8711_v56 }
 0x223   :  { %12547 = vst [vmem:[#allocation92_spill] sm:$0xff] %v8778_v3  ;;  %v8800_v59 = vadd.f32 %v8368_v20, %v1103_v10  ;;  %5907 = vmatprep.mubr.msk.bf16.mxu0 %vm6479_vm0, %v12471_v39  ;;  %v3793_v48 = vadd.f32 %v3631_v22, %v8640_v6  ;;  %v3141_v54 = vadd.f32 %v2979_v4, %v8651_v26  ;;  %v6406_v6 = vld [vmem:[%s12244_s0 + $0x208] sm:$0xff]  }
 0x224   :  { %v5809_v12 = vpop.f32.mrf.mxu0  ;;  %v2329_v61 = vadd.f32 %v2167_v58, %v1999_v15  ;;  %v3961_v26 = vmul.f32 %v8043_v31, %v8019_v63  ;;  %v2000_v22 = vmul.f32 %v8397_v18, %v8768_v43  ;;  %v3962_v63 = vmul.f32 %v8043_v31, %v8054_v19 }
 0x225   :  { %v3632_v42 = vmul.f32 %v8783_v8, %v8800_v59  ;;  %v8812_v10 = vadd.f32 %v3960_v44, %v3793_v48  ;;  %v2980_v55 = vmul.f32 %v8517_v2, %v8800_v59  ;;  %v8816_v5 = vadd.f32 %v3308_v21, %v3141_v54 }
 0x226   :  { %v1106_v60 = vpop.f32.mrf.mxu0  ;;  %v2168_v44 = vmul.f32 %v8404_v28, %v8800_v59  ;;  %v8827_v4 = vadd.f32 %v2656_v41, %v2329_v61  ;;  %v3309_v48 = vmul.f32 %v8613_v40, %v8371_v27 }
 0x227   :  { %12548 = vst [vmem:[#allocation93_spill] sm:$0xff] %v8812_v10  ;;  %v8830_v15 = vadd.f32 %v8368_v20, %v1106_v60  ;;  %v3794_v21 = vadd.f32 %v3632_v42, %v8668_v47  ;;  %v3142_v58 = vadd.f32 %v2980_v55, %v8674_v62  ;;  %v3310_v55 = vmul.f32 %v8613_v40, %v8411_v32 }
 0x228   :  { %v5810_v54 = vpop.f32.mrf.mxu0  ;;  %v2330_v12 = vadd.f32 %v2168_v44, %v2000_v22  ;;  %v2001_v42 = vmul.f32 %v8397_v18, %v8800_v59 }
 0x229   :  { %v8840_v61 = vadd.f32 %v3961_v26, %v3794_v21  ;;  %v3633_v60 = vmul.f32 %v8783_v8, %v8830_v15  ;;  %v8844_v41 = vadd.f32 %v3309_v48, %v3142_v58  ;;  %v2981_v47 = vmul.f32 %v8517_v2, %v8830_v15 }
 0x22a   :  { %v1111_v62 = vpop.f32.mrf.mxu0  ;;  %5908 = vmatmul.mubr.bf16.gmra.mxu0 %v6406_v6  ;;  %v8850_v19 = vadd.f32 %v2657_v13, %v2330_v12  ;;  %v2169_v26 = vmul.f32 %v8404_v28, %v8830_v15  ;;  %v2658_v48 = vmul.f32 %v8422_v1, %v8768_v43 }
 0x22b   :  { %12549 = vst [vmem:[#allocation94_spill] sm:$0xff] %v8840_v61  ;;  %v8857_v22 = vadd.f32 %v8368_v20, %v1111_v62  ;;  %5911 = vmatprep.mubr.msk.bf16.mxu0 %vm6479_vm0, %v12471_v39  ;;  %v3795_v44 = vadd.f32 %v3633_v60, %v8697_v29  ;;  %v3143_v13 = vadd.f32 %v2981_v47, %v8708_v30  ;;  %v6407_v29 = vld [vmem:[%s12244_s0 + $0x210] sm:$0xff]  }
 0x22c   :  { %v5813_v21 = vpop.f32.mrf.mxu0  ;;  %v2331_v58 = vadd.f32 %v2169_v26, %v2001_v42  ;;  %v3963_v30 = vmul.f32 %v8043_v31, %v8081_v14  ;;  %v2002_v60 = vmul.f32 %v8397_v18, %v8830_v15  ;;  %v8896_v31 = vld [vmem:[%s12246_s7 + $0x6] ss:$0 sm:$0xff] }
 0x22d   :  { %v3634_v54 = vmul.f32 %v8783_v8, %v8857_v22  ;;  %v8869_v12 = vadd.f32 %v3962_v63, %v3795_v44  ;;  %v2982_v62 = vmul.f32 %v8517_v2, %v8857_v22  ;;  %v8873_v3 = vadd.f32 %v3310_v55, %v3143_v13 }
 0x22e   :  { %v1114_v6 = vpop.f32.mrf.mxu0  ;;  %v2170_v63 = vmul.f32 %v8404_v28, %v8857_v22  ;;  %v8884_v47 = vadd.f32 %v2658_v48, %v2331_v58  ;;  %v3311_v44 = vmul.f32 %v8613_v40, %v8443_v51  ;;  %v3964_v14 = vmul.f32 %v8896_v31, %v8111_v16 }
 0x22f   :  { %12550 = vst [vmem:[#allocation95_spill] sm:$0xff] %v8869_v12  ;;  %v8887_v42 = vadd.f32 %v8368_v20, %v1114_v6  ;;  %v3796_v55 = vadd.f32 %v3634_v54, %v8725_v45  ;;  %v3144_v26 = vadd.f32 %v2982_v62, %v8731_v37  ;;  %v2659_v6 = vmul.f32 %v8422_v1, %v8800_v59 }
 0x230   :  { %v5814_v13 = vpop.f32.mrf.mxu0  ;;  %v2332_v21 = vadd.f32 %v2170_v63, %v2002_v60  ;;  %v3312_v62 = vmul.f32 %v8613_v40, %v8473_v53  ;;  %v2003_v60 = vmul.f32 %v8397_v18, %v8857_v22 }
 0x231   :  { %12551 = vst [vmem:[#allocation96_spill] sm:$0xff] %v8887_v42  ;;  %v8902_v58 = vadd.f32 %v3963_v30, %v3796_v55  ;;  %v3635_v45 = vmul.f32 %v8783_v8, %v8887_v42  ;;  %v8906_v37 = vadd.f32 %v3311_v44, %v3144_v26  ;;  %v2983_v48 = vmul.f32 %v8517_v2, %v8887_v42 }
 0x232   :  { %v1119_v54 = vpop.f32.mrf.mxu0  ;;  %5912 = vmatmul.mubr.bf16.gmra.mxu0 %v6407_v29  ;;  %v8912_v16 = vadd.f32 %v2659_v6, %v2332_v21  ;;  %v2171_v30 = vmul.f32 %v8404_v28, %v8887_v42  ;;  %v2660_v21 = vmul.f32 %v8422_v1, %v8830_v15 }
 0x233   :  { %12552 = vst [vmem:[#allocation97_spill] sm:$0xff] %v8902_v58  ;;  %v8919_v63 = vadd.f32 %v8368_v20, %v1119_v54  ;;  %5915 = vmatprep.mubr.msk.bf16.mxu0 %vm6479_vm0, %v12471_v39  ;;  %v3797_v55 = vadd.f32 %v3635_v45, %v8754_v9  ;;  %v3145_v26 = vadd.f32 %v2983_v48, %v8765_v23  ;;  %v6408_v9 = vld [vmem:[%s12244_s0 + $0x218] sm:$0xff]  }
 0x234   :  { %v5817_v44 = vpop.f32.mrf.mxu0  ;;  %v2333_v13 = vadd.f32 %v2171_v30, %v2003_v60  ;;  %v3965_v23 = vmul.f32 %v8896_v31, %v8138_v38  ;;  %v2004_v45 = vmul.f32 %v8397_v18, %v8887_v42  ;;  %v12555_v38 = vld [vmem:[#allocation71_spill] sm:$0xff]  ;;  %v2661_v58 = vmul.f32 %v8422_v1, %v8857_v22 }
 0x235   :  { %v3636_v6 = vmul.f32 %v8783_v8, %v8919_v63  ;;  %v8931_v54 = vadd.f32 %v3964_v14, %v3797_v55  ;;  %v2984_v10 = vmul.f32 %v8517_v2, %v8919_v63  ;;  %v8935_v61 = vadd.f32 %v3312_v62, %v3145_v26 }
 0x236   :  { %v1122_v29 = vpop.f32.mrf.mxu0  ;;  %v2172_v14 = vmul.f32 %v8404_v28, %v8919_v63  ;;  %v8946_v48 = vadd.f32 %v2660_v21, %v2333_v13  ;;  %v3313_v55 = vmul.f32 %v8613_v40, %v8500_v36  ;;  %v3966_v44 = vmul.f32 %v8896_v31, %v12555_v38 }
 0x237   :  { %12553 = vst [vmem:[#allocation98_spill] sm:$0xff] %v8931_v54  ;;  %v8949_v60 = vadd.f32 %v8368_v20, %v1122_v29  ;;  %v3798_v62 = vadd.f32 %v3636_v6, %v8787_v0  ;;  %v3146_v30 = vadd.f32 %v2984_v10, %v8793_v34  ;;  %v3314_v10 = vmul.f32 %v8613_v40, %v8535_v17 }
 0x238   :  { %v5818_v26 = vpop.f32.mrf.mxu0  ;;  %v2334_v12 = vadd.f32 %v2172_v14, %v2004_v45  ;;  %v2005_v45 = vmul.f32 %v8397_v18, %v8919_v63 }
 0x239   :  { %12554 = vst [vmem:[#allocation99_spill] sm:$0xff] %v8949_v60  ;;  %v8959_v13 = vadd.f32 %v3965_v23, %v3798_v62  ;;  %v3637_v29 = vmul.f32 %v8783_v8, %v8949_v60  ;;  %v8963_v21 = vadd.f32 %v3313_v55, %v3146_v30  ;;  %v2985_v0 = vmul.f32 %v8517_v2, %v8949_v60 }
 0x23a   :  { %v1127_v34 = vpop.f32.mrf.mxu0  ;;  %5916 = vmatmul.mubr.bf16.gmra.mxu0 %v6408_v9  ;;  %v8969_v6 = vadd.f32 %v2661_v58, %v2334_v12  ;;  %v2173_v23 = vmul.f32 %v8404_v28, %v8949_v60  ;;  %v2662_v55 = vmul.f32 %v8422_v1, %v8887_v42 }
 0x23b   :  { %12556 = vst [vmem:[#allocation71_spill] sm:$0xff] %v8959_v13  ;;  %v8976_v14 = vadd.f32 %v8368_v20, %v1127_v34  ;;  %5919 = vmatprep.mubr.msk.bf16.mxu0 %vm6479_vm0, %v12471_v39  ;;  %v3799_v62 = vadd.f32 %v3637_v29, %v8816_v5  ;;  %v3147_v12 = vadd.f32 %v2985_v0, %v8827_v4  ;;  %v6409_v5 = vld [vmem:[%s12244_s0 + $0x220] sm:$0xff]  }
 0x23c   :  { %v5821_v58 = vpop.f32.mrf.mxu0  ;;  %v2335_v30 = vadd.f32 %v2173_v23, %v2005_v45  ;;  %v3967_v4 = vmul.f32 %v8896_v31, %v8195_v49  ;;  %v2006_v29 = vmul.f32 %v8397_v18, %v8949_v60  ;;  %v12558_v49 = vld [vmem:[#allocation74_spill] sm:$0xff]  ;;  %v2663_v13 = vmul.f32 %v8422_v1, %v8919_v63 }
 0x23d   :  { %v3638_v26 = vmul.f32 %v8783_v8, %v8976_v14  ;;  %v8988_v38 = vadd.f32 %v3966_v44, %v3799_v62  ;;  %v2986_v34 = vmul.f32 %v8517_v2, %v8976_v14  ;;  %v8992_v17 = vadd.f32 %v3314_v10, %v3147_v12 }
 0x23e   :  { %v1130_v9 = vpop.f32.mrf.mxu0  ;;  %v2174_v44 = vmul.f32 %v8404_v28, %v8976_v14  ;;  %v9003_v0 = vadd.f32 %v2662_v55, %v2335_v30  ;;  %v3315_v62 = vmul.f32 %v8613_v40, %v8562_v25  ;;  %v3968_v58 = vmul.f32 %v8896_v31, %v12558_v49 }
 0x23f   :  { %12557 = vst [vmem:[#allocation100_spill] sm:$0xff] %v8988_v38  ;;  %v9006_v45 = vadd.f32 %v8368_v20, %v1130_v9  ;;  %v3800_v10 = vadd.f32 %v3638_v26, %v8844_v41  ;;  %v3148_v23 = vadd.f32 %v2986_v34, %v8850_v19  ;;  %v3316_v26 = vmul.f32 %v8613_v40, %v8592_v7 }
 0x240   :  { %v5822_v12 = vpop.f32.mrf.mxu0  ;;  %v2336_v54 = vadd.f32 %v2174_v44, %v2006_v29  ;;  %v2007_v29 = vmul.f32 %v8397_v18, %v8976_v14  ;;  %v2665_v38 = vmul.f32 %v8422_v1, %v8976_v14 }
 0x241   :  { %v9016_v30 = vadd.f32 %v3967_v4, %v3800_v10  ;;  %v3639_v9 = vmul.f32 %v8783_v8, %v9006_v45  ;;  %v9020_v55 = vadd.f32 %v3315_v62, %v3148_v23  ;;  %v2987_v41 = vmul.f32 %v8517_v2, %v9006_v45 }
 0x242   :  { %v1135_v19 = vpop.f32.mrf.mxu0  ;;  %5920 = vmatmul.mubr.bf16.gmra.mxu0 %v6409_v5  ;;  %v9026_v34 = vadd.f32 %v2663_v13, %v2336_v54  ;;  %v2175_v4 = vmul.f32 %v8404_v28, %v9006_v45  ;;  %v2664_v62 = vmul.f32 %v8422_v1, %v8949_v60 }
 0x243   :  { %12559 = vst [vmem:[#allocation74_spill] sm:$0xff] %v9016_v30  ;;  %v9033_v44 = vadd.f32 %v8368_v20, %v1135_v19  ;;  %5923 = vmatprep.mubr.msk.bf16.mxu0 %vm6479_vm0, %v12471_v39  ;;  %v3801_v10 = vadd.f32 %v3639_v9, %v8873_v3  ;;  %v3149_v54 = vadd.f32 %v2987_v41, %v8884_v47  ;;  %v6410_v3 = vld [vmem:[%s12244_s0 + $0x228] sm:$0xff]  }
 0x244   :  { %v5825_v13 = vpop.f32.mrf.mxu0  ;;  %v2337_v23 = vadd.f32 %v2175_v4, %v2007_v29  ;;  %v3969_v47 = vmul.f32 %v8896_v31, %v8252_v57  ;;  %v2008_v9 = vmul.f32 %v8397_v18, %v9006_v45  ;;  %v3970_v57 = vmul.f32 %v8896_v31, %v8282_v24 }
 0x245   :  { %v3640_v12 = vmul.f32 %v8783_v8, %v9033_v44  ;;  %v9045_v49 = vadd.f32 %v3968_v58, %v3801_v10  ;;  %v2988_v19 = vmul.f32 %v8517_v2, %v9033_v44  ;;  %v9049_v7 = vadd.f32 %v3316_v26, %v3149_v54 }
 0x246   :  { %v1138_v5 = vpop.f32.mrf.mxu0  ;;  %v2176_v58 = vmul.f32 %v8404_v28, %v9033_v44  ;;  %v9060_v41 = vadd.f32 %v2664_v62, %v2337_v23  ;;  %v3317_v10 = vmul.f32 %v8613_v40, %v8624_v35 }
 0x247   :  { %12560 = vst [vmem:[#allocation101_spill] sm:$0xff] %v9045_v49  ;;  %v9063_v29 = vadd.f32 %v8368_v20, %v1138_v5  ;;  %v3802_v26 = vadd.f32 %v3640_v12, %v8906_v37  ;;  %v3150_v4 = vadd.f32 %v2988_v19, %v8912_v16  ;;  %v3318_v12 = vmul.f32 %v8613_v40, %v8654_v46 }
 0x248   :  { %v5826_v54 = vpop.f32.mrf.mxu0  ;;  %v2338_v13 = vadd.f32 %v2176_v58, %v2008_v9  ;;  %v2009_v19 = vmul.f32 %v8397_v18, %v9033_v44  ;;  %v2667_v49 = vmul.f32 %v8422_v1, %v9033_v44 }
 0x249   :  { %v9073_v23 = vadd.f32 %v3969_v47, %v3802_v26  ;;  %v3641_v5 = vmul.f32 %v8783_v8, %v9063_v29  ;;  %v9077_v62 = vadd.f32 %v3317_v10, %v3150_v4  ;;  %v2989_v37 = vmul.f32 %v8517_v2, %v9063_v29 }
 0x24a   :  { %v1143_v16 = vpop.f32.mrf.mxu0  ;;  %5924 = vmatmul.mubr.bf16.gmra.mxu0 %v6410_v3  ;;  %v9083_v24 = vadd.f32 %v2665_v38, %v2338_v13  ;;  %v2177_v47 = vmul.f32 %v8404_v28, %v9063_v29  ;;  %v2666_v10 = vmul.f32 %v8422_v1, %v9006_v45 }
 0x24b   :  { %12561 = vst [vmem:[#allocation102_spill] sm:$0xff] %v9073_v23  ;;  %v9090_v9 = vadd.f32 %v8368_v20, %v1143_v16  ;;  %5927 = vmatprep.mubr.msk.bf16.mxu0 %vm6479_vm0, %v12471_v39  ;;  %v3803_v58 = vadd.f32 %v3641_v5, %v8935_v61  ;;  %v3151_v38 = vadd.f32 %v2989_v37, %v8946_v48  ;;  %v6411_v61 = vld [vmem:[%s12244_s0 + $0x230] sm:$0xff]  }
 0x24c   :  { %v5829_v26 = vpop.f32.mrf.mxu0  ;;  %v2339_v4 = vadd.f32 %v2177_v47, %v2009_v19  ;;  %v3971_v48 = vmul.f32 %v8896_v31, %v8309_v11  ;;  %v2010_v5 = vmul.f32 %v8397_v18, %v9063_v29  ;;  %v3972_v11 = vmul.f32 %v8896_v31, %v8339_v52 }
 0x24d   :  { %v3642_v54 = vmul.f32 %v8783_v8, %v9090_v9  ;;  %v9102_v13 = vadd.f32 %v3970_v57, %v3803_v58  ;;  %v2990_v16 = vmul.f32 %v8517_v2, %v9090_v9  ;;  %v9106_v30 = vadd.f32 %v3318_v12, %v3151_v38 }
 0x24e   :  { %v1146_v3 = vpop.f32.mrf.mxu0  ;;  %v2178_v57 = vmul.f32 %v8404_v28, %v9090_v9  ;;  %v9117_v37 = vadd.f32 %v2666_v10, %v2339_v4  ;;  %v3319_v58 = vmul.f32 %v8613_v40, %v8681_v50 }
 0x24f   :  { %12562 = vst [vmem:[#allocation103_spill] sm:$0xff] %v9102_v13  ;;  %v9120_v19 = vadd.f32 %v8368_v20, %v1146_v3  ;;  %v3804_v12 = vadd.f32 %v3642_v54, %v8963_v21  ;;  %v3152_v47 = vadd.f32 %v2990_v16, %v8969_v6  ;;  %v3320_v54 = vmul.f32 %v8613_v40, %v8711_v56 }
 0x250   :  { %v5830_v38 = vpop.f32.mrf.mxu0  ;;  %v2340_v26 = vadd.f32 %v2178_v57, %v2010_v5  ;;  %v2011_v16 = vmul.f32 %v8397_v18, %v9090_v9  ;;  %v2669_v13 = vmul.f32 %v8422_v1, %v9090_v9 }
 0x251   :  { %v9130_v4 = vadd.f32 %v3971_v48, %v3804_v12  ;;  %v3643_v3 = vmul.f32 %v8783_v8, %v9120_v19  ;;  %v9134_v10 = vadd.f32 %v3319_v58, %v3152_v47  ;;  %v2991_v21 = vmul.f32 %v8517_v2, %v9120_v19 }
 0x252   :  { %v1151_v6 = vpop.f32.mrf.mxu0  ;;  %5928 = vmatmul.mubr.bf16.gmra.mxu0 %v6411_v61  ;;  %v9140_v52 = vadd.f32 %v2667_v49, %v2340_v26  ;;  %v2179_v48 = vmul.f32 %v8404_v28, %v9120_v19  ;;  %v2668_v58 = vmul.f32 %v8422_v1, %v9063_v29 }
 0x253   :  { %12563 = vst [vmem:[#allocation104_spill] sm:$0xff] %v9130_v4  ;;  %v9147_v5 = vadd.f32 %v8368_v20, %v1151_v6  ;;  %5931 = vmatprep.mubr.msk.bf16.mxu0 %vm6479_vm0, %v12471_v39  ;;  %v3805_v57 = vadd.f32 %v3643_v3, %v8992_v17  ;;  %v3153_v49 = vadd.f32 %v2991_v21, %v9003_v0  ;;  %v6412_v17 = vld [vmem:[%s12244_s0 + $0x238] sm:$0xff]  }
 0x254   :  { %v5833_v12 = vpop.f32.mrf.mxu0  ;;  %v2341_v47 = vadd.f32 %v2179_v48, %v2011_v16  ;;  %v3973_v0 = vmul.f32 %v8896_v31, %v8371_v27  ;;  %v2012_v3 = vmul.f32 %v8397_v18, %v9120_v19  ;;  %v3974_v27 = vmul.f32 %v8896_v31, %v8411_v32 }
 0x255   :  { %v3644_v38 = vmul.f32 %v8783_v8, %v9147_v5  ;;  %v9159_v26 = vadd.f32 %v3972_v11, %v3805_v57  ;;  %v2992_v6 = vmul.f32 %v8517_v2, %v9147_v5  ;;  %v9163_v23 = vadd.f32 %v3320_v54, %v3153_v49 }
 0x256   :  { %v1154_v61 = vpop.f32.mrf.mxu0  ;;  %v2180_v11 = vmul.f32 %v8404_v28, %v9147_v5  ;;  %v9174_v21 = vadd.f32 %v2668_v58, %v2341_v47  ;;  %v3321_v57 = vmul.f32 %v8613_v40, %v8738_v33 }
 0x257   :  { %12564 = vst [vmem:[#allocation105_spill] sm:$0xff] %v9159_v26  ;;  %v9177_v16 = vadd.f32 %v8368_v20, %v1154_v61  ;;  %v3806_v54 = vadd.f32 %v3644_v38, %v9020_v55  ;;  %v3154_v48 = vadd.f32 %v2992_v6, %v9026_v34  ;;  %v3322_v38 = vmul.f32 %v8613_v40, %v8768_v43 }
 0x258   :  { %v5834_v49 = vpop.f32.mrf.mxu0  ;;  %v2342_v12 = vadd.f32 %v2180_v11, %v2012_v3  ;;  %v2013_v6 = vmul.f32 %v8397_v18, %v9147_v5 }
 0x259   :  { %v9187_v47 = vadd.f32 %v3973_v0, %v3806_v54  ;;  %v3645_v61 = vmul.f32 %v8783_v8, %v9177_v16  ;;  %v9191_v58 = vadd.f32 %v3321_v57, %v3154_v48  ;;  %v2993_v55 = vmul.f32 %v8517_v2, %v9177_v16 }
 0x25a   :  { %v1159_v34 = vpop.f32.mrf.mxu0  ;;  %5932 = vmatmul.mubr.bf16.gmra.mxu0 %v6412_v17  ;;  %v9197_v32 = vadd.f32 %v2669_v13, %v2342_v12  ;;  %v2181_v0 = vmul.f32 %v8404_v28, %v9177_v16  ;;  %v2670_v57 = vmul.f32 %v8422_v1, %v9120_v19 }
 0x25b   :  { %12565 = vst [vmem:[#allocation106_spill] sm:$0xff] %v9187_v47  ;;  %v9204_v3 = vadd.f32 %v8368_v20, %v1159_v34  ;;  %5935 = vmatprep.mubr.msk.bf16.mxu0 %vm6479_vm0, %v12471_v39  ;;  %v3807_v11 = vadd.f32 %v3645_v61, %v9049_v7  ;;  %v3155_v13 = vadd.f32 %v2993_v55, %v9060_v41  ;;  %v6413_v7 = vld [vmem:[%s12244_s0 + $0x240] sm:$0xff]  }
 0x25c   :  { %v5837_v54 = vpop.f32.mrf.mxu0  ;;  %v2343_v48 = vadd.f32 %v2181_v0, %v2013_v6  ;;  %v3975_v41 = vmul.f32 %v8896_v31, %v8443_v51  ;;  %v2014_v61 = vmul.f32 %v8397_v18, %v9177_v16  ;;  %v3323_v18 = vmul.f32 %v8613_v40, %v8800_v59 }
 0x25d   :  { %v3646_v49 = vmul.f32 %v8783_v8, %v9204_v3  ;;  %v9216_v20 = vadd.f32 %v3974_v27, %v3807_v11  ;;  %v2994_v12 = vmul.f32 %v8517_v2, %v9204_v3  ;;  %v9220_v34 = vadd.f32 %v3322_v38, %v3155_v13  ;;  %v9236_v38 = vld [vmem:[%s12245_s2] ss:$0 sm:$0xff] }
 0x25e   :  { %v1162_v17 = vpop.f32.mrf.mxu0  ;;  %v2182_v27 = vmul.f32 %v8404_v28, %v9204_v3  ;;  %v9231_v55 = vadd.f32 %v2670_v57, %v2343_v48  ;;  %v3976_v28 = vmul.f32 %v8896_v31, %v8473_v53  ;;  %v2671_v54 = vmul.f32 %v8422_v1, %v9147_v5  ;;  %v9264_v1 = vld [vmem:[%s12246_s7] ss:$0 sm:$0xff] }
 0x25f   :  { %12566 = vst [vmem:[#allocation107_spill] sm:$0xff] %v9216_v20  ;;  %v9239_v6 = vadd.f32 %v9236_v38, %v1162_v17  ;;  %v3808_v0 = vadd.f32 %v3646_v49, %v9077_v62  ;;  %v3156_v51 = vadd.f32 %v2994_v12, %v9083_v24  ;;  %v3324_v49 = vmul.f32 %v8613_v40, %v8830_v15 }
 0x260   :  { %v5838_v11 = vpop.f32.mrf.mxu0  ;;  %v2344_v13 = vadd.f32 %v2182_v27, %v2014_v61  ;;  %v2015_v12 = vmul.f32 %v9264_v1, %v9204_v3  ;;  %v3325_v27 = vmul.f32 %v8613_v40, %v8857_v22 }
 0x261   :  { %12567 = vst [vmem:[#allocation108_spill] sm:$0xff] %v9239_v6  ;;  %v9249_v48 = vadd.f32 %v3975_v41, %v3808_v0  ;;  %v3647_v17 = vmul.f32 %v8783_v8, %v9239_v6  ;;  %v9253_v57 = vadd.f32 %v3323_v18, %v3156_v51  ;;  %v2995_v62 = vmul.f32 %v8517_v2, %v9239_v6  ;;  %v9271_v41 = vld [vmem:[%s12246_s7 + $0x1] ss:$0 sm:$0xff] }
 0x262   :  { %v1167_v24 = vpop.f32.mrf.mxu0  ;;  %5936 = vmatmul.mubr.bf16.gmra.mxu0 %v6413_v7  ;;  %v9259_v53 = vadd.f32 %v2671_v54, %v2344_v13  ;;  %v2183_v7 = vmul.f32 %v9271_v41, %v9239_v6  ;;  %v9287_v13 = vld [vmem:[%s12246_s7 + $0x2] ss:$0 sm:$0xff] }
 0x263   :  { %12568 = vst [vmem:[#allocation109_spill] sm:$0xff] %v9249_v48  ;;  %v9276_v61 = vadd.f32 %v9236_v38, %v1167_v24  ;;  %5939 = vmatprep.mubr.msk.bf16.mxu0 %vm6479_vm0, %v12471_v39  ;;  %v3809_v0 = vadd.f32 %v3647_v17, %v9106_v30  ;;  %v3157_v51 = vadd.f32 %v2995_v62, %v9117_v37  ;;  %v6414_v62 = vld [vmem:[%s12244_s0 + $0x248] sm:$0xff]  }
 0x264   :  { %v5841_v18 = vpop.f32.mrf.mxu0  ;;  %v2345_v11 = vadd.f32 %v2183_v7, %v2015_v12  ;;  %v2672_v54 = vmul.f32 %v9287_v13, %v9177_v16  ;;  %v3977_v12 = vmul.f32 %v8896_v31, %v8500_v36  ;;  %v2016_v7 = vmul.f32 %v9264_v1, %v9239_v6  ;;  %v12570_v36 = vld [vmem:[#allocation84_spill] sm:$0xff] }
 0x265   :  { %v3648_v24 = vmul.f32 %v8783_v8, %v9276_v61  ;;  %v9293_v26 = vadd.f32 %v3976_v28, %v3809_v0  ;;  %v2996_v30 = vmul.f32 %v8517_v2, %v9276_v61  ;;  %v9297_v17 = vadd.f32 %v3324_v49, %v3157_v51 }
 0x266   :  { %v1170_v37 = vpop.f32.mrf.mxu0  ;;  %v2184_v28 = vmul.f32 %v9271_v41, %v9276_v61  ;;  %v9308_v0 = vadd.f32 %v2672_v54, %v2345_v11  ;;  %v3978_v48 = vmul.f32 %v8896_v31, %v12570_v36  ;;  %v2673_v4 = vmul.f32 %v9287_v13, %v9204_v3 }
 0x267   :  { %12569 = vst [vmem:[#allocation110_spill] sm:$0xff] %v9293_v26  ;;  %v9311_v18 = vadd.f32 %v9236_v38, %v1170_v37  ;;  %v3810_v49 = vadd.f32 %v3648_v24, %v9134_v10  ;;  %v3158_v51 = vadd.f32 %v2996_v30, %v9140_v52  ;;  %v2017_v30 = vmul.f32 %v9264_v1, %v9276_v61 }
 0x268   :  { %v5842_v20 = vpop.f32.mrf.mxu0  ;;  %v2346_v47 = vadd.f32 %v2184_v28, %v2016_v7  ;;  %v2675_v26 = vmul.f32 %v9287_v13, %v9276_v61 }
 0x269   :  { %v9321_v11 = vadd.f32 %v3977_v12, %v3810_v49  ;;  %v3649_v54 = vmul.f32 %v8783_v8, %v9311_v18  ;;  %v9325_v37 = vadd.f32 %v3325_v27, %v3158_v51  ;;  %v2997_v10 = vmul.f32 %v8517_v2, %v9311_v18 }
 0x26a   :  { %v1175_v52 = vpop.f32.mrf.mxu0  ;;  %5940 = vmatmul.mubr.bf16.gmra.mxu0 %v6414_v62  ;;  %v3326_v20 = vmul.f32 %v8613_v40, %v8887_v42  ;;  %v9331_v24 = vadd.f32 %v2673_v4, %v2346_v47  ;;  %v2185_v12 = vmul.f32 %v9271_v41, %v9311_v18  ;;  %v2674_v49 = vmul.f32 %v9287_v13, %v9239_v6 }
 0x26b   :  { %12571 = vst [vmem:[#allocation84_spill] sm:$0xff] %v9321_v11  ;;  %v9338_v7 = vadd.f32 %v9236_v38, %v1175_v52  ;;  %5943 = vmatprep.mubr.msk.bf16.mxu0 %vm6479_vm0, %v12471_v39  ;;  %v3811_v62 = vadd.f32 %v3649_v54, %v9163_v23  ;;  %v3159_v4 = vadd.f32 %v2997_v10, %v9174_v21  ;;  %v6415_v23 = vld [vmem:[%s12244_s0 + $0x250] sm:$0xff]  }
 0x26c   :  { %v5845_v47 = vpop.f32.mrf.mxu0  ;;  %v2347_v28 = vadd.f32 %v2185_v12, %v2017_v30  ;;  %v3979_v21 = vmul.f32 %v8896_v31, %v8562_v25  ;;  %v2018_v54 = vmul.f32 %v9264_v1, %v9311_v18  ;;  %v3327_v12 = vmul.f32 %v8613_v40, %v8919_v63  ;;  %v12573_v25 = vld [vmem:[#allocation87_spill] sm:$0xff] }
 0x26d   :  { %v3650_v51 = vmul.f32 %v8783_v8, %v9338_v7  ;;  %v9350_v36 = vadd.f32 %v3978_v48, %v3811_v62  ;;  %v2998_v52 = vmul.f32 %v8517_v2, %v9338_v7  ;;  %v9354_v42 = vadd.f32 %v3326_v20, %v3159_v4 }
 0x26e   :  { %v1178_v27 = vpop.f32.mrf.mxu0  ;;  %v2186_v48 = vmul.f32 %v9271_v41, %v9338_v7  ;;  %v9365_v10 = vadd.f32 %v2674_v49, %v2347_v28  ;;  %v3980_v4 = vmul.f32 %v8896_v31, %v12573_v25  ;;  %v2676_v25 = vmul.f32 %v9287_v13, %v9311_v18 }
 0x26f   :  { %12572 = vst [vmem:[#allocation111_spill] sm:$0xff] %v9350_v36  ;;  %v9368_v2 = vadd.f32 %v9236_v38, %v1178_v27  ;;  %v3812_v20 = vadd.f32 %v3650_v51, %v9191_v58  ;;  %v3160_v30 = vadd.f32 %v2998_v52, %v9197_v32  ;;  %v9387_v58 = vld [vmem:[%s12246_s7 + $0x3] ss:$0 sm:$0xff]  ;;  %v3328_v52 = vmul.f32 %v8613_v40, %v8949_v60 }
 0x270   :  { %v5846_v62 = vpop.f32.mrf.mxu0  ;;  %v2348_v47 = vadd.f32 %v2186_v48, %v2018_v54  ;;  %v2019_v54 = vmul.f32 %v9264_v1, %v9338_v7  ;;  %v2677_v36 = vmul.f32 %v9287_v13, %v9338_v7 }
 0x271   :  { %v9378_v28 = vadd.f32 %v3979_v21, %v3812_v20  ;;  %v3651_v27 = vmul.f32 %v8783_v8, %v9368_v2  ;;  %v9382_v49 = vadd.f32 %v3327_v12, %v3160_v30  ;;  %v2999_v32 = vmul.f32 %v9387_v58, %v9368_v2 }
 0x272   :  { %v1183_v51 = vpop.f32.mrf.mxu0  ;;  %5944 = vmatmul.mubr.bf16.gmra.mxu0 %v6415_v23  ;;  %v9393_v21 = vadd.f32 %v2675_v26, %v2348_v47  ;;  %v2187_v48 = vmul.f32 %v9271_v41, %v9368_v2 }
 0x273   :  { %12574 = vst [vmem:[#allocation87_spill] sm:$0xff] %v9378_v28  ;;  %v9400_v20 = vadd.f32 %v9236_v38, %v1183_v51  ;;  %5947 = vmatprep.mubr.msk.bf16.mxu0 %vm6479_vm0, %v12471_v39  ;;  %v3813_v30 = vadd.f32 %v3651_v27, %v9220_v34  ;;  %v3161_v26 = vadd.f32 %v2999_v32, %v9231_v55  ;;  %v6416_v34 = vld [vmem:[%s12244_s0 + $0x258] sm:$0xff]  }
 0x274   :  { %v5849_v12 = vpop.f32.mrf.mxu0  ;;  %v2349_v62 = vadd.f32 %v2187_v48, %v2019_v54  ;;  %v3981_v55 = vmul.f32 %v8896_v31, %v8624_v35  ;;  %v2020_v27 = vmul.f32 %v9264_v1, %v9368_v2  ;;  %v3982_v35 = vmul.f32 %v8896_v31, %v8654_v46 }
 0x275   :  { %v3652_v47 = vmul.f32 %v8783_v8, %v9400_v20  ;;  %v9412_v51 = vadd.f32 %v3980_v4, %v3813_v30  ;;  %v3000_v11 = vmul.f32 %v9387_v58, %v9400_v20  ;;  %v9416_v60 = vadd.f32 %v3328_v52, %v3161_v26 }
 0x276   :  { %v1186_v23 = vpop.f32.mrf.mxu0  ;;  %v2188_v4 = vmul.f32 %v9271_v41, %v9400_v20  ;;  %v9427_v32 = vadd.f32 %v2676_v25, %v2349_v62  ;;  %v3329_v30 = vmul.f32 %v8613_v40, %v8976_v14 }
 0x277   :  { %12575 = vst [vmem:[#allocation112_spill] sm:$0xff] %v9412_v51  ;;  %v9430_v54 = vadd.f32 %v9236_v38, %v1186_v23  ;;  %v3814_v52 = vadd.f32 %v3652_v47, %v9253_v57  ;;  %v3162_v48 = vadd.f32 %v3000_v11, %v9259_v53  ;;  %v3330_v11 = vmul.f32 %v8613_v40, %v9006_v45 }
 0x278   :  { %v5850_v26 = vpop.f32.mrf.mxu0  ;;  %v2350_v12 = vadd.f32 %v2188_v4, %v2020_v27  ;;  %v2021_v47 = vmul.f32 %v9264_v1, %v9400_v20 }
 0x279   :  { %v9440_v62 = vadd.f32 %v3981_v55, %v3814_v52  ;;  %v3653_v23 = vmul.f32 %v8783_v8, %v9430_v54  ;;  %v9444_v25 = vadd.f32 %v3329_v30, %v3162_v48  ;;  %v3001_v57 = vmul.f32 %v9387_v58, %v9430_v54 }
 0x27a   :  { %v1191_v53 = vpop.f32.mrf.mxu0  ;;  %5948 = vmatmul.mubr.bf16.gmra.mxu0 %v6416_v34  ;;  %v9450_v46 = vadd.f32 %v2677_v36, %v2350_v12  ;;  %v2189_v55 = vmul.f32 %v9271_v41, %v9430_v54  ;;  %v2678_v48 = vmul.f32 %v9287_v13, %v9368_v2 }
 0x27b   :  { %12576 = vst [vmem:[#allocation113_spill] sm:$0xff] %v9440_v62  ;;  %v9457_v27 = vadd.f32 %v9236_v38, %v1191_v53  ;;  %5951 = vmatprep.mubr.msk.bf16.mxu0 %vm6479_vm0, %v12471_v39  ;;  %v3815_v4 = vadd.f32 %v3653_v23, %v9297_v17  ;;  %v3163_v40 = vadd.f32 %v3001_v57, %v9308_v0  ;;  %v6417_v17 = vld [vmem:[%s12244_s0 + $0x260] sm:$0xff]  }
 0x27c   :  { %v5853_v36 = vpop.f32.mrf.mxu0  ;;  %v2351_v52 = vadd.f32 %v2189_v55, %v2021_v47  ;;  %v3983_v0 = vmul.f32 %v8896_v31, %v8681_v50  ;;  %v2022_v23 = vmul.f32 %v9264_v1, %v9430_v54 }
 0x27d   :  { %v3654_v30 = vmul.f32 %v8783_v8, %v9457_v27  ;;  %v9469_v26 = vadd.f32 %v3982_v35, %v3815_v4  ;;  %v3002_v12 = vmul.f32 %v9387_v58, %v9457_v27  ;;  %v9473_v53 = vadd.f32 %v3330_v11, %v3163_v40  ;;  %v9494_v4 = vld [vmem:[%s12246_s7 + $0x4] ss:$0 sm:$0xff] }
 0x27e   :  { %v1194_v34 = vpop.f32.mrf.mxu0  ;;  %v2190_v35 = vmul.f32 %v9271_v41, %v9457_v27  ;;  %v9484_v57 = vadd.f32 %v2678_v48, %v2351_v52  ;;  %v3331_v50 = vmul.f32 %v9494_v4, %v9033_v44  ;;  %v3984_v36 = vmul.f32 %v8896_v31, %v8711_v56 }
 0x27f   :  { %12577 = vst [vmem:[#allocation114_spill] sm:$0xff] %v9469_v26  ;;  %v9487_v47 = vadd.f32 %v9236_v38, %v1194_v34  ;;  %v3816_v11 = vadd.f32 %v3654_v30, %v9325_v37  ;;  %v3164_v55 = vadd.f32 %v3002_v12, %v9331_v24  ;;  %v2679_v34 = vmul.f32 %v9287_v13, %v9400_v20 }
 0x280   :  { %v5854_v40 = vpop.f32.mrf.mxu0  ;;  %v2352_v52 = vadd.f32 %v2190_v35, %v2022_v23  ;;  %v2023_v23 = vmul.f32 %v9264_v1, %v9457_v27  ;;  %v2681_v26 = vmul.f32 %v9287_v13, %v9457_v27 }
 0x281   :  { %v9502_v48 = vadd.f32 %v3983_v0, %v3816_v11  ;;  %v3655_v37 = vmul.f32 %v8783_v8, %v9487_v47  ;;  %v9506_v24 = vadd.f32 %v3331_v50, %v3164_v55  ;;  %v3003_v30 = vmul.f32 %v9387_v58, %v9487_v47 }
 0x282   :  { %v1199_v12 = vpop.f32.mrf.mxu0  ;;  %5952 = vmatmul.mubr.bf16.gmra.mxu0 %v6417_v17  ;;  %v3332_v40 = vmul.f32 %v9494_v4, %v9063_v29  ;;  %v9512_v56 = vadd.f32 %v2679_v34, %v2352_v52  ;;  %v2191_v0 = vmul.f32 %v9271_v41, %v9487_v47  ;;  %v2680_v34 = vmul.f32 %v9287_v13, %v9430_v54 }
 0x283   :  { %12578 = vst [vmem:[#allocation115_spill] sm:$0xff] %v9502_v48  ;;  %v9519_v35 = vadd.f32 %v9236_v38, %v1199_v12  ;;  %5955 = vmatprep.mubr.msk.bf16.mxu0 %vm6479_vm0, %v12471_v39  ;;  %v3817_v11 = vadd.f32 %v3655_v37, %v9354_v42  ;;  %v3165_v55 = vadd.f32 %v3003_v30, %v9365_v10  ;;  %v6418_v42 = vld [vmem:[%s12244_s0 + $0x268] sm:$0xff]  }
 0x284   :  { %v5857_v50 = vpop.f32.mrf.mxu0  ;;  %v2353_v52 = vadd.f32 %v2191_v0, %v2023_v23  ;;  %v3985_v10 = vmul.f32 %v8896_v31, %v8738_v33  ;;  %v2024_v37 = vmul.f32 %v9264_v1, %v9487_v47  ;;  %v3986_v33 = vmul.f32 %v8896_v31, %v8768_v43 }
 0x285   :  { %v3656_v51 = vmul.f32 %v8783_v8, %v9519_v35  ;;  %v9531_v12 = vadd.f32 %v3984_v36, %v3817_v11  ;;  %v3004_v62 = vmul.f32 %v9387_v58, %v9519_v35  ;;  %v9535_v28 = vadd.f32 %v3332_v40, %v3165_v55 }
 0x286   :  { %v1202_v17 = vpop.f32.mrf.mxu0  ;;  %v2192_v36 = vmul.f32 %v9271_v41, %v9519_v35  ;;  %v9546_v30 = vadd.f32 %v2680_v34, %v2353_v52  ;;  %v3333_v11 = vmul.f32 %v9494_v4, %v9090_v9 }
 0x287   :  { %12579 = vst [vmem:[#allocation116_spill] sm:$0xff] %v9531_v12  ;;  %v9549_v23 = vadd.f32 %v9236_v38, %v1202_v17  ;;  %v3818_v40 = vadd.f32 %v3656_v51, %v9382_v49  ;;  %v3166_v0 = vadd.f32 %v3004_v62, %v9393_v21  ;;  %v3334_v51 = vmul.f32 %v9494_v4, %v9120_v19 }
 0x288   :  { %v5858_v55 = vpop.f32.mrf.mxu0  ;;  %v2354_v50 = vadd.f32 %v2192_v36, %v2024_v37  ;;  %v2025_v62 = vmul.f32 %v9264_v1, %v9519_v35  ;;  %v2683_v12 = vmul.f32 %v9287_v13, %v9519_v35 }
 0x289   :  { %v9559_v52 = vadd.f32 %v3985_v10, %v3818_v40  ;;  %v3657_v17 = vmul.f32 %v8783_v8, %v9549_v23  ;;  %v9563_v34 = vadd.f32 %v3333_v11, %v3166_v0  ;;  %v3005_v49 = vmul.f32 %v9387_v58, %v9549_v23 }
 0x28a   :  { %v1207_v21 = vpop.f32.mrf.mxu0  ;;  %5956 = vmatmul.mubr.bf16.gmra.mxu0 %v6418_v42  ;;  %v9569_v43 = vadd.f32 %v2681_v26, %v2354_v50  ;;  %v2193_v10 = vmul.f32 %v9271_v41, %v9549_v23  ;;  %v2682_v11 = vmul.f32 %v9287_v13, %v9487_v47 }
 0x28b   :  { %12580 = vst [vmem:[#allocation117_spill] sm:$0xff] %v9559_v52  ;;  %v9576_v37 = vadd.f32 %v9236_v38, %v1207_v21  ;;  %5959 = vmatprep.mubr.msk.bf16.mxu0 %vm6479_vm0, %v12471_v39  ;;  %v3819_v36 = vadd.f32 %v3657_v17, %v9416_v60  ;;  %v3167_v26 = vadd.f32 %v3005_v49, %v9427_v32  ;;  %v6419_v60 = vld [vmem:[%s12244_s0 + $0x270] sm:$0xff]  }
 0x28c   :  { %v5861_v40 = vpop.f32.mrf.mxu0  ;;  %v2355_v0 = vadd.f32 %v2193_v10, %v2025_v62  ;;  %v3987_v32 = vmul.f32 %v8896_v31, %v8800_v59  ;;  %v2026_v17 = vmul.f32 %v9264_v1, %v9549_v23  ;;  %v3988_v59 = vmul.f32 %v8896_v31, %v8830_v15 }
 0x28d   :  { %v3658_v55 = vmul.f32 %v8783_v8, %v9576_v37  ;;  %v9588_v50 = vadd.f32 %v3986_v33, %v3819_v36  ;;  %v3006_v21 = vmul.f32 %v9387_v58, %v9576_v37  ;;  %v9592_v48 = vadd.f32 %v3334_v51, %v3167_v26 }
 0x28e   :  { %v1210_v42 = vpop.f32.mrf.mxu0  ;;  %v2194_v33 = vmul.f32 %v9271_v41, %v9576_v37  ;;  %v9603_v49 = vadd.f32 %v2682_v11, %v2355_v0  ;;  %v3335_v36 = vmul.f32 %v9494_v4, %v9147_v5  ;;  %v2685_v52 = vmul.f32 %v9287_v13, %v9576_v37 }
 0x28f   :  { %12581 = vst [vmem:[#allocation118_spill] sm:$0xff] %v9588_v50  ;;  %v9606_v62 = vadd.f32 %v9236_v38, %v1210_v42  ;;  %v3820_v51 = vadd.f32 %v3658_v55, %v9444_v25  ;;  %v3168_v10 = vadd.f32 %v3006_v21, %v9450_v46  ;;  %v3336_v55 = vmul.f32 %v9494_v4, %v9177_v16 }
 0x290   :  { %v5862_v26 = vpop.f32.mrf.mxu0  ;;  %v2356_v40 = vadd.f32 %v2194_v33, %v2026_v17  ;;  %v2027_v21 = vmul.f32 %v9264_v1, %v9576_v37 }
 0x291   :  { %12582 = vst [vmem:[#allocation119_spill] sm:$0xff] %v9606_v62  ;;  %v9616_v0 = vadd.f32 %v3987_v32, %v3820_v51  ;;  %v3659_v42 = vmul.f32 %v8783_v8, %v9606_v62  ;;  %v9620_v11 = vadd.f32 %v3335_v36, %v3168_v10  ;;  %v3007_v25 = vmul.f32 %v9387_v58, %v9606_v62  ;;  %v9646_v36 = vld [vmem:[%s12246_s7 + $0x5] ss:$0 sm:$0xff] }
 0x292   :  { %v1215_v46 = vpop.f32.mrf.mxu0  ;;  %5960 = vmatmul.mubr.bf16.gmra.mxu0 %v6419_v60  ;;  %v9626_v15 = vadd.f32 %v2683_v12, %v2356_v40  ;;  %v2195_v32 = vmul.f32 %v9271_v41, %v9606_v62  ;;  %v2684_v10 = vmul.f32 %v9287_v13, %v9549_v23 }
 0x293   :  { %12583 = vst [vmem:[#allocation120_spill] sm:$0xff] %v9616_v0  ;;  %v9633_v8 = vadd.f32 %v9236_v38, %v1215_v46  ;;  %5963 = vmatprep.mubr.msk.bf16.mxu0 %vm6479_vm0, %v12471_v39  ;;  %v3821_v17 = vadd.f32 %v3659_v42, %v9473_v53  ;;  %v3169_v12 = vadd.f32 %v3007_v25, %v9484_v57  ;;  %v6420_v25 = vld [vmem:[%s12244_s0 + $0x278] sm:$0xff]  }
 0x294   :  { %v5865_v33 = vpop.f32.mrf.mxu0  ;;  %v2357_v51 = vadd.f32 %v2195_v32, %v2027_v21  ;;  %v3989_v46 = vmul.f32 %v8896_v31, %v8857_v22  ;;  %v2028_v21 = vmul.f32 %v9264_v1, %v9606_v62  ;;  %v12585_v22 = vld [vmem:[#allocation96_spill] sm:$0xff] }
 0x295   :  { %v3660_v26 = vmul.f32 %v9646_v36, %v9633_v8  ;;  %v9650_v40 = vadd.f32 %v3988_v59, %v3821_v17  ;;  %v3008_v53 = vmul.f32 %v9387_v58, %v9633_v8  ;;  %v9654_v42 = vadd.f32 %v3336_v55, %v3169_v12 }
 0x296   :  { %v1218_v57 = vpop.f32.mrf.mxu0  ;;  %v2196_v59 = vmul.f32 %v9271_v41, %v9633_v8  ;;  %v9665_v32 = vadd.f32 %v2684_v10, %v2357_v51  ;;  %v3337_v33 = vmul.f32 %v9494_v4, %v9204_v3  ;;  %v3990_v50 = vmul.f32 %v8896_v31, %v12585_v22 }
 0x297   :  { %12584 = vst [vmem:[#allocation121_spill] sm:$0xff] %v9650_v40  ;;  %v9668_v17 = vadd.f32 %v9236_v38, %v1218_v57  ;;  %v3822_v55 = vadd.f32 %v3660_v26, %v9506_v24  ;;  %v3170_v12 = vadd.f32 %v3008_v53, %v9512_v56  ;;  %v2029_v53 = vmul.f32 %v9264_v1, %v9633_v8 }
 0x298   :  { %v5866_v60 = vpop.f32.mrf.mxu0  ;;  %v2358_v0 = vadd.f32 %v2196_v59, %v2028_v21 }
 0x299   :  { %v9678_v51 = vadd.f32 %v3989_v46, %v3822_v55  ;;  %v3661_v10 = vmul.f32 %v9646_v36, %v9668_v17  ;;  %v9682_v57 = vadd.f32 %v3337_v33, %v3170_v12  ;;  %v3009_v24 = vmul.f32 %v9387_v58, %v9668_v17 }
 0x29a   :  { %v1223_v56 = vpop.f32.mrf.mxu0  ;;  %5964 = vmatmul.mubr.bf16.gmra.mxu0 %v6420_v25  ;;  %v3338_v60 = vmul.f32 %v9494_v4, %v9239_v6  ;;  %v9688_v26 = vadd.f32 %v2685_v52, %v2358_v0  ;;  %v2197_v46 = vmul.f32 %v9271_v41, %v9668_v17  ;;  %v2686_v12 = vmul.f32 %v9287_v13, %v9606_v62 }
 0x29b   :  { %12586 = vst [vmem:[#allocation96_spill] sm:$0xff] %v9678_v51  ;;  %v9695_v21 = vadd.f32 %v9236_v38, %v1223_v56  ;;  %5967 = vmatprep.mubr.msk.bf16.mxu0 %vm6479_vm0, %v12471_v39  ;;  %v3823_v59 = vadd.f32 %v3661_v10, %v9535_v28  ;;  %v3171_v52 = vadd.f32 %v3009_v24, %v9546_v30  ;;  %v6421_v28 = vld [vmem:[%s12244_s0 + $0x280] sm:$0xff]  }
 0x29c   :  { %v5869_v0 = vpop.f32.mrf.mxu0  ;;  %v2359_v55 = vadd.f32 %v2197_v46, %v2029_v53  ;;  %v3991_v30 = vmul.f32 %v8896_v31, %v8919_v63  ;;  %v2030_v10 = vmul.f32 %v9264_v1, %v9668_v17  ;;  %v12588_v63 = vld [vmem:[#allocation99_spill] sm:$0xff]  ;;  %v2687_v51 = vmul.f32 %v9287_v13, %v9633_v8 }
 0x29d   :  { %v3662_v33 = vmul.f32 %v9646_v36, %v9695_v21  ;;  %v9707_v22 = vadd.f32 %v3990_v50, %v3823_v59  ;;  %v3010_v56 = vmul.f32 %v9387_v58, %v9695_v21  ;;  %v9711_v6 = vadd.f32 %v3338_v60, %v3171_v52 }
 0x29e   :  { %v1226_v25 = vpop.f32.mrf.mxu0  ;;  %v2198_v50 = vmul.f32 %v9271_v41, %v9695_v21  ;;  %v9722_v24 = vadd.f32 %v2686_v12, %v2359_v55  ;;  %v3339_v59 = vmul.f32 %v9494_v4, %v9276_v61  ;;  %v3992_v0 = vmul.f32 %v8896_v31, %v12588_v63 }
 0x29f   :  { %12587 = vst [vmem:[#allocation122_spill] sm:$0xff] %v9707_v22  ;;  %v9725_v53 = vadd.f32 %v9236_v38, %v1226_v25  ;;  %v3824_v60 = vadd.f32 %v3662_v33, %v9563_v34  ;;  %v3172_v46 = vadd.f32 %v3010_v56, %v9569_v43  ;;  %v3340_v33 = vmul.f32 %v9494_v4, %v9311_v18 }
 0x2a0   :  { %v5870_v52 = vpop.f32.mrf.mxu0  ;;  %v2360_v40 = vadd.f32 %v2198_v50, %v2030_v10  ;;  %v2031_v56 = vmul.f32 %v9264_v1, %v9695_v21  ;;  %v2689_v22 = vmul.f32 %v9287_v13, %v9695_v21 }
 0x2a1   :  { %v9735_v55 = vadd.f32 %v3991_v30, %v3824_v60  ;;  %v3663_v25 = vmul.f32 %v9646_v36, %v9725_v53  ;;  %v9739_v12 = vadd.f32 %v3339_v59, %v3172_v46  ;;  %v3011_v34 = vmul.f32 %v9387_v58, %v9725_v53 }
 0x2a2   :  { %v1231_v43 = vpop.f32.mrf.mxu0  ;;  %5968 = vmatmul.mubr.bf16.gmra.mxu0 %v6421_v28  ;;  %v9745_v31 = vadd.f32 %v2687_v51, %v2360_v40  ;;  %v2199_v30 = vmul.f32 %v9271_v41, %v9725_v53  ;;  %v2688_v46 = vmul.f32 %v9287_v13, %v9668_v17 }
 0x2a3   :  { %12589 = vst [vmem:[#allocation99_spill] sm:$0xff] %v9735_v55  ;;  %v9752_v10 = vadd.f32 %v9236_v38, %v1231_v43  ;;  %v3825_v60 = vadd.f32 %v3663_v25, %v9592_v48  ;;  %v3173_v28 = vadd.f32 %v3011_v34, %v9603_v49  ;;  %6327 = vmatprep.mubr.msk.bf16.mxu0 %vm6479_vm0, %v12471_v39  ;;  %v9773_v49 = vld [vmem:[%s12246_s7 + $0x6] ss:$0 sm:$0xff] }
 0x2a4   :  { %v5873_v40 = vpop.f32.mrf.mxu0  ;;  %v2361_v51 = vadd.f32 %v2199_v30, %v2031_v56  ;;  %v3993_v25 = vmul.f32 %v9773_v49, %v8976_v14  ;;  %v2032_v34 = vmul.f32 %v9264_v1, %v9725_v53  ;;  %v3994_v14 = vmul.f32 %v9773_v49, %v9006_v45 }
 0x2a5   :  { %v3664_v59 = vmul.f32 %v9646_v36, %v9752_v10  ;;  %v9764_v52 = vadd.f32 %v3992_v0, %v3825_v60  ;;  %v3012_v63 = vmul.f32 %v9387_v58, %v9752_v10  ;;  %v9768_v43 = vadd.f32 %v3340_v33, %v3173_v28 }
 0x2a6   :  { %v1234_v48 = vpop.f32.mrf.mxu0  ;;  %v2200_v0 = vmul.f32 %v9271_v41, %v9752_v10  ;;  %v9781_v56 = vadd.f32 %v2688_v46, %v2361_v51  ;;  %v3341_v28 = vmul.f32 %v9494_v4, %v9338_v7  ;;  %v2033_v45 = vmul.f32 %v9264_v1, %v9752_v10 }
 0x2a7   :  { %12590 = vst [vmem:[#allocation123_spill] sm:$0xff] %v9764_v52  ;;  %v9784_v33 = vadd.f32 %v9236_v38, %v1234_v48  ;;  %v3826_v30 = vadd.f32 %v3664_v59, %v9620_v11  ;;  %v3174_v60 = vadd.f32 %v3012_v63, %v9626_v15  ;;  %v3342_v59 = vmul.f32 %v9494_v4, %v9368_v2 }
 0x2a8   :  { %v5874_v40 = vpop.f32.mrf.mxu0  ;;  %v2362_v50 = vadd.f32 %v2200_v0, %v2032_v34 }
 0x2a9   :  { %v9794_v51 = vadd.f32 %v3993_v25, %v3826_v30  ;;  %v3665_v46 = vmul.f32 %v9646_v36, %v9784_v33  ;;  %v9798_v48 = vadd.f32 %v3341_v28, %v3174_v60  ;;  %v3013_v11 = vmul.f32 %v9387_v58, %v9784_v33 }
 0x2aa   :  { %v1239_v15 = vpop.f32.mrf.mxu0  ;;  %v9804_v63 = vadd.f32 %v2689_v22, %v2362_v50  ;;  %v2201_v25 = vmul.f32 %v9271_v41, %v9784_v33  ;;  %v2690_v22 = vmul.f32 %v9287_v13, %v9725_v53 }
 0x2ab   :  { %12591 = vst [vmem:[#allocation124_spill] sm:$0xff] %v9794_v51  ;;  %v9811_v34 = vadd.f32 %v9236_v38, %v1239_v15  ;;  %v3827_v30 = vadd.f32 %v3665_v46, %v9654_v42  ;;  %v3175_v60 = vadd.f32 %v3013_v11, %v9665_v32  ;;  %v3995_v42 = vmul.f32 %v9773_v49, %v9033_v44 }
 0x2ac   :  { %v5877_v28 = vpop.f32.mrf.mxu0  ;;  %v2363_v40 = vadd.f32 %v2201_v25, %v2033_v45  ;;  %v2034_v32 = vmul.f32 %v9264_v1, %v9784_v33  ;;  %v3343_v25 = vmul.f32 %v9494_v4, %v9400_v20  ;;  %v3996_v44 = vmul.f32 %v9773_v49, %v9063_v29 }
 0x2ad   :  { %v3666_v50 = vmul.f32 %v9646_v36, %v9811_v34  ;;  %v9821_v55 = vadd.f32 %v3994_v14, %v3827_v30  ;;  %v3014_v15 = vmul.f32 %v9387_v58, %v9811_v34  ;;  %v9825_v39 = vadd.f32 %v3342_v59, %v3175_v60 }
 0x2ae   :  { %v1242_v0 = vpop.f32.mrf.mxu0  ;;  %v2202_v46 = vmul.f32 %v9271_v41, %v9811_v34  ;;  %v9833_v11 = vadd.f32 %v2690_v22, %v2363_v40  ;;  %v2691_v28 = vmul.f32 %v9287_v13, %v9752_v10  ;;  %v2035_v29 = vmul.f32 %v9264_v1, %v9811_v34 }
 0x2af   :  { %12592 = vst [vmem:[#allocation125_spill] sm:$0xff] %v9821_v55  ;;  %v9836_v14 = vadd.f32 %v9236_v38, %v1242_v0  ;;  %v3828_v45 = vadd.f32 %v3666_v50, %v9682_v57  ;;  %v3176_v59 = vadd.f32 %v3014_v15, %v9688_v26  ;;  %v3344_v50 = vmul.f32 %v9494_v4, %v9430_v54 }
 0x2b0   :  { %v5878_v30 = vpop.f32.mrf.mxu0  ;;  %v2364_v60 = vadd.f32 %v2202_v46, %v2034_v32 }
 0x2b1   :  { %v9846_v40 = vadd.f32 %v3995_v42, %v3828_v45  ;;  %v3667_v0 = vmul.f32 %v9646_v36, %v9836_v14  ;;  %v9850_v22 = vadd.f32 %v3343_v25, %v3176_v59  ;;  %v3015_v57 = vmul.f32 %v9387_v58, %v9836_v14 }
 0x2b2   :  { %v1247_v26 = vpop.f32.mrf.mxu0  ;;  %v9856_v15 = vadd.f32 %v2691_v28, %v2364_v60  ;;  %v2203_v42 = vmul.f32 %v9271_v41, %v9836_v14  ;;  %v2692_v60 = vmul.f32 %v9287_v13, %v9784_v33  ;;  %v12594_v28 = vld [vmem:[#allocation3_spill] sm:$0xff] }
 0x2b3   :  { %12593 = vst [vmem:[#allocation126_spill] sm:$0xff] %v9846_v40  ;;  %v9863_v32 = vadd.f32 %v9236_v38, %v1247_v26  ;;  %v3829_v45 = vadd.f32 %v3667_v0, %v9711_v6  ;;  %v3177_v59 = vadd.f32 %v3015_v57, %v9722_v24  ;;  %v9873_v52 = vmul.f32 %v9646_v36, %v12594_v28 }
 0x2b4   :  { %v5881_v25 = vpop.f32.mrf.mxu0  ;;  %v2365_v30 = vadd.f32 %v2203_v42, %v2035_v29  ;;  %v3997_v0 = vmul.f32 %v9773_v49, %v9090_v9  ;;  %v2036_v57 = vmul.f32 %v9264_v1, %v9836_v14  ;;  %v3998_v9 = vmul.f32 %v9773_v49, %v9120_v19 }
 0x2b5   :  { %12595 = vst [vmem:[#allocation3_spill] sm:$0xff] %v9873_v52  ;;  %v3668_v26 = vmul.f32 %v9646_v36, %v9863_v32  ;;  %v9877_v51 = vadd.f32 %v3996_v44, %v3829_v45  ;;  %v3016_v46 = vmul.f32 %v9387_v58, %v9863_v32  ;;  %v9881_v6 = vadd.f32 %v3344_v50, %v3177_v59 }
 0x2b6   :  { %v1250_v24 = vpop.f32.mrf.mxu0  ;;  %v2204_v29 = vmul.f32 %v9271_v41, %v9863_v32  ;;  %v9889_v42 = vadd.f32 %v2692_v60, %v2365_v30  ;;  %v3345_v59 = vmul.f32 %v9494_v4, %v9457_v27  ;;  %v2693_v40 = vmul.f32 %v9287_v13, %v9811_v34 }
 0x2b7   :  { %12596 = vst [vmem:[#allocation127_spill] sm:$0xff] %v9877_v51  ;;  %v9892_v44 = vadd.f32 %v9236_v38, %v1250_v24  ;;  %v3830_v45 = vadd.f32 %v3668_v26, %v9739_v12  ;;  %v3178_v50 = vadd.f32 %v3016_v46, %v9745_v31  ;;  %v9904_v30 = vmul.f32 %v9387_v58, %v12594_v28 }
 0x2b8   :  { %v5882_v25 = vpop.f32.mrf.mxu0  ;;  %v2366_v55 = vadd.f32 %v2204_v29, %v2036_v57  ;;  %v3346_v19 = vmul.f32 %v9494_v4, %v9487_v47  ;;  %v2037_v57 = vmul.f32 %v9264_v1, %v9863_v32 }
 0x2b9   :  { %12597 = vst [vmem:[#allocation128_spill] sm:$0xff] %v9904_v30  ;;  %v9906_v60 = vadd.f32 %v3997_v0, %v3830_v45  ;;  %v3669_v12 = vmul.f32 %v9646_v36, %v9892_v44  ;;  %v9910_v31 = vadd.f32 %v3345_v59, %v3178_v50  ;;  %v3017_v46 = vmul.f32 %v9387_v58, %v9892_v44 }
 0x2ba   :  { %v1255_v26 = vpop.f32.mrf.mxu0  ;;  %v9916_v24 = vadd.f32 %v2693_v40, %v2366_v55  ;;  %v2205_v0 = vmul.f32 %v9271_v41, %v9892_v44  ;;  %v2694_v55 = vmul.f32 %v9287_v13, %v9836_v14  ;;  %v12599_v40 = vld [vmem:[#allocation4_spill] sm:$0xff] }
 0x2bb   :  { %12598 = vst [vmem:[#allocation129_spill] sm:$0xff] %v9906_v60  ;;  %v9923_v29 = vadd.f32 %v9236_v38, %v1255_v26  ;;  %v3831_v50 = vadd.f32 %v3669_v12, %v9768_v43  ;;  %v3179_v59 = vadd.f32 %v3017_v46, %v9781_v56  ;;  %v9933_v52 = vmul.f32 %v9646_v36, %v12599_v40 }
 0x2bc   :  { %v5885_v25 = vpop.f32.mrf.mxu0  ;;  %v2367_v30 = vadd.f32 %v2205_v0, %v2037_v57  ;;  %v9937_v26 = vmul.f32 %v9271_v41, %v12594_v28  ;;  %v3999_v46 = vmul.f32 %v9773_v49, %v9147_v5  ;;  %v2038_v57 = vmul.f32 %v9264_v1, %v9892_v44 }
 0x2bd   :  { %12600 = vst [vmem:[#allocation4_spill] sm:$0xff] %v9933_v52  ;;  %v3670_v45 = vmul.f32 %v9646_v36, %v9923_v29  ;;  %v9941_v51 = vadd.f32 %v3998_v9, %v3831_v50  ;;  %v3018_v43 = vmul.f32 %v9387_v58, %v9923_v29  ;;  %v9945_v56 = vadd.f32 %v3346_v19, %v3179_v59 }
 0x2be   :  { %12601 = vst [vmem:[#allocation130_spill] sm:$0xff] %v9937_v26  ;;  %v1258_v12 = vpop.f32.mrf.mxu0  ;;  %v2206_v28 = vmul.f32 %v9271_v41, %v9923_v29  ;;  %v9953_v0 = vadd.f32 %v2694_v55, %v2367_v30  ;;  %v3347_v59 = vmul.f32 %v9494_v4, %v9519_v35  ;;  %v4000_v5 = vmul.f32 %v9773_v49, %v9177_v16 }
 0x2bf   :  { %12602 = vst [vmem:[#allocation131_spill] sm:$0xff] %v9941_v51  ;;  %v9956_v9 = vadd.f32 %v9236_v38, %v1258_v12  ;;  %v3832_v50 = vadd.f32 %v3670_v45, %v9798_v48  ;;  %v3180_v19 = vadd.f32 %v3018_v43, %v9804_v63  ;;  %v2695_v26 = vmul.f32 %v9287_v13, %v9863_v32 }
 0x2c0   :  { %v5886_v25 = vpop.f32.mrf.mxu0  ;;  %v2368_v60 = vadd.f32 %v2206_v28, %v2038_v57  ;;  %v9968_v30 = vmul.f32 %v9387_v58, %v12599_v40  ;;  %v3348_v16 = vmul.f32 %v9494_v4, %v9549_v23  ;;  %v2039_v40 = vmul.f32 %v9264_v1, %v9923_v29 }
 0x2c1   :  { %v9970_v55 = vadd.f32 %v3999_v46, %v3832_v50  ;;  %v3671_v48 = vmul.f32 %v9646_v36, %v9956_v9  ;;  %v9974_v63 = vadd.f32 %v3347_v59, %v3180_v19  ;;  %v3019_v45 = vmul.f32 %v9387_v58, %v9956_v9 }
 0x2c2   :  { %12603 = vst [vmem:[#allocation132_spill] sm:$0xff] %v9968_v30  ;;  %v1263_v43 = vpop.f32.mrf.mxu0  ;;  %v9980_v12 = vadd.f32 %v2695_v26, %v2368_v60  ;;  %v2207_v46 = vmul.f32 %v9271_v41, %v9956_v9  ;;  %v2696_v60 = vmul.f32 %v9287_v13, %v9892_v44  ;;  %v12605_v26 = vld [vmem:[#allocation5_spill] sm:$0xff] }
 0x2c3   :  { %12604 = vst [vmem:[#allocation133_spill] sm:$0xff] %v9970_v55  ;;  %v9987_v57 = vadd.f32 %v9236_v38, %v1263_v43  ;;  %v3833_v50 = vadd.f32 %v3671_v48, %v9825_v39  ;;  %v3181_v19 = vadd.f32 %v3019_v45, %v9833_v11  ;;  %v9997_v30 = vmul.f32 %v9646_v36, %v12605_v26 }
 0x2c4   :  { %v5889_v59 = vpop.f32.mrf.mxu0  ;;  %v2369_v25 = vadd.f32 %v2207_v46, %v2039_v40  ;;  %v10001_v43 = vmul.f32 %v9387_v58, %v12605_v26  ;;  %v4001_v45 = vmul.f32 %v9773_v49, %v9204_v3  ;;  %v2040_v40 = vmul.f32 %v9264_v1, %v9956_v9  ;;  %v12610_v3 = vld [vmem:[#allocation108_spill] sm:$0xff] }
 0x2c5   :  { %12606 = vst [vmem:[#allocation5_spill] sm:$0xff] %v9997_v30  ;;  %v3672_v28 = vmul.f32 %v9646_v36, %v9987_v57  ;;  %v10005_v51 = vadd.f32 %v4000_v5, %v3833_v50  ;;  %v3020_v39 = vmul.f32 %v9387_v58, %v9987_v57  ;;  %v10009_v11 = vadd.f32 %v3348_v16, %v3181_v19 }
 0x2c6   :  { %12607 = vst [vmem:[#allocation134_spill] sm:$0xff] %v10001_v43  ;;  %v1266_v48 = vpop.f32.mrf.mxu0  ;;  %v2208_v46 = vmul.f32 %v9271_v41, %v9987_v57  ;;  %v10017_v59 = vadd.f32 %v2696_v60, %v2369_v25  ;;  %v3349_v19 = vmul.f32 %v9494_v4, %v9576_v37  ;;  %v4002_v55 = vmul.f32 %v9773_v49, %v12610_v3  ;;  %v12611_v25 = vld [vmem:[#allocation7_spill] sm:$0xff] }
 0x2c7   :  { %12608 = vst [vmem:[#allocation135_spill] sm:$0xff] %v10005_v51  ;;  %v10020_v5 = vadd.f32 %v9236_v38, %v1266_v48  ;;  %v3834_v50 = vadd.f32 %v3672_v28, %v9850_v22  ;;  %v3182_v16 = vadd.f32 %v3020_v39, %v9856_v15  ;;  %v2697_v30 = vmul.f32 %v9287_v13, %v9923_v29 }
 0x2c8   :  { %v5890_v26 = vpop.f32.mrf.mxu0  ;;  %v2370_v43 = vadd.f32 %v2208_v46, %v2040_v40  ;;  %v10032_v60 = vmul.f32 %v9646_v36, %v12611_v25  ;;  %v3350_v40 = vmul.f32 %v9494_v4, %v9606_v62 }
 0x2c9   :  { %12609 = vst [vmem:[#allocation136_spill] sm:$0xff] %v10020_v5  ;;  %v10034_v48 = vadd.f32 %v4001_v45, %v3834_v50  ;;  %v3673_v22 = vmul.f32 %v9646_v36, %v10020_v5  ;;  %v10038_v15 = vadd.f32 %v3349_v19, %v3182_v16  ;;  %v3021_v28 = vmul.f32 %v9387_v58, %v10020_v5 }
 0x2ca   :  { %12612 = vst [vmem:[#allocation108_spill] sm:$0xff] %v10032_v60  ;;  %v1271_v39 = vpop.f32.mrf.mxu0  ;;  %v10044_v46 = vadd.f32 %v2697_v30, %v2370_v43  ;;  %v2041_v26 = vmul.f32 %v9264_v1, %v9987_v57  ;;  %v2209_v45 = vmul.f32 %v9271_v41, %v10020_v5  ;;  %v2698_v30 = vmul.f32 %v9287_v13, %v9956_v9  ;;  %v12615_v43 = vld [vmem:[#allocation8_spill] sm:$0xff] }
 0x2cb   :  { %12613 = vst [vmem:[#allocation7_spill] sm:$0xff] %v10034_v48  ;;  %v10051_v50 = vadd.f32 %v9236_v38, %v1271_v39  ;;  %v3835_v19 = vadd.f32 %v3673_v22, %v9881_v6  ;;  %v3183_v3 = vadd.f32 %v3021_v28, %v9889_v42  ;;  %v10061_v62 = vmul.f32 %v9646_v36, %v12615_v43 }
 0x2cc   :  { %v5893_v60 = vpop.f32.mrf.mxu0  ;;  %v2371_v52 = vadd.f32 %v2209_v45, %v2041_v26  ;;  %v10065_v39 = vmul.f32 %v9387_v58, %v12611_v25  ;;  %v4003_v22 = vmul.f32 %v9773_v49, %v9276_v61  ;;  %v2042_v28 = vmul.f32 %v9264_v1, %v10020_v5 }
 0x2cd   :  { %12614 = vst [vmem:[#allocation137_spill] sm:$0xff] %v10051_v50  ;;  %12616 = vst [vmem:[#allocation8_spill] sm:$0xff] %v10061_v62  ;;  %v3674_v16 = vmul.f32 %v9646_v36, %v10051_v50  ;;  %v10069_v51 = vadd.f32 %v4002_v55, %v3835_v19  ;;  %v3022_v6 = vmul.f32 %v9387_v58, %v10051_v50 }
 0x2ce   :  { %12617 = vst [vmem:[#allocation138_spill] sm:$0xff] %v10065_v39  ;;  %v10073_v42 = vadd.f32 %v3350_v40, %v3183_v3  ;;  %v1274_v60 = vpop.f32.mrf.mxu0  ;;  %v2210_v25 = vmul.f32 %v9271_v41, %v10051_v50  ;;  %v10081_v26 = vadd.f32 %v2698_v30, %v2371_v52  ;;  %v3351_v19 = vmul.f32 %v9494_v4, %v9633_v8 }
 0x2cf   :  { %12618 = vst [vmem:[#allocation139_spill] sm:$0xff] %v10069_v51  ;;  %v10084_v55 = vadd.f32 %v9236_v38, %v1274_v60  ;;  %v3836_v45 = vadd.f32 %v3674_v16, %v9910_v31  ;;  %v3184_v40 = vadd.f32 %v3022_v6, %v9916_v24  ;;  %v4004_v61 = vmul.f32 %v9773_v49, %v9311_v18 }
 0x2d0   :  { %v5894_v3 = vpop.f32.mrf.mxu0  ;;  %v2372_v48 = vadd.f32 %v2210_v25, %v2042_v28  ;;  %v2699_v39 = vmul.f32 %v9287_v13, %v9987_v57  ;;  %v10096_v52 = vmul.f32 %v9387_v58, %v12615_v43  ;;  %v3352_v18 = vmul.f32 %v9494_v4, %v9668_v17 }
 0x2d1   :  { %v10098_v38 = vadd.f32 %v4003_v22, %v3836_v45  ;;  %v3675_v31 = vmul.f32 %v9646_v36, %v10084_v55  ;;  %v10102_v24 = vadd.f32 %v3351_v19, %v3184_v40  ;;  %v3023_v16 = vmul.f32 %v9387_v58, %v10084_v55  ;;  %v10117_v22 = vld [vmem:[%s12245_s2] ss:$0 sm:$0xff]  ;;  %v12621_v40 = vld [vmem:[#allocation9_spill] sm:$0xff] }
 0x2d2   :  { %12619 = vst [vmem:[#allocation140_spill] sm:$0xff] %v10096_v52  ;;  %v1279_v30 = vpop.f32.mrf.mxu0  ;;  %v10108_v6 = vadd.f32 %v2699_v39, %v2372_v48  ;;  %v2043_v43 = vmul.f32 %v9264_v1, %v10051_v50  ;;  %v2211_v60 = vmul.f32 %v9271_v41, %v10084_v55  ;;  %v2700_v41 = vmul.f32 %v9287_v13, %v10020_v5  ;;  %v6422_v13 = vld [vmem:[%s12247_s3 + $0x38] sm:$0xff]  }
 0x2d3   :  { %12620 = vst [vmem:[#allocation141_spill] sm:$0xff] %v10098_v38  ;;  %v10120_v28 = vadd.f32 %v10117_v22, %v1279_v30  ;;  %v3837_v48 = vadd.f32 %v3675_v31, %v9945_v56  ;;  %v3185_v39 = vadd.f32 %v3023_v16, %v9953_v0  ;;  %v10130_v19 = vmul.f32 %v9646_v36, %v12621_v40 }
 0x2d4   :  { %v5897_v45 = vpop.f32.mrf.mxu0  ;;  %v2373_v1 = vadd.f32 %v2211_v60, %v2043_v43  ;;  %v10134_v3 = vmul.f32 %v9387_v58, %v12621_v40  ;;  %v4005_v16 = vmul.f32 %v9773_v49, %v9338_v7  ;;  %v10152_v43 = vld [vmem:[%s12246_s7] ss:$0 sm:$0xff]  ;;  %v3353_v40 = vmul.f32 %v9494_v4, %v9695_v21  ;;  %5972 = vmatpush3.bf16.msra.mxu1 %v6422_v13 }
 0x2d5   :  { %12622 = vst [vmem:[#allocation9_spill] sm:$0xff] %v10130_v19  ;;  %v3676_v30 = vmul.f32 %v9646_v36, %v10120_v28  ;;  %v10138_v25 = vadd.f32 %v4004_v61, %v3837_v48  ;;  %v3024_v56 = vmul.f32 %v9387_v58, %v10120_v28  ;;  %v10142_v0 = vadd.f32 %v3352_v18, %v3185_v39  ;;  %v10159_v18 = vld [vmem:[%s12246_s7 + $0x1] ss:$0 sm:$0xff] }
 0x2d6   :  { %12623 = vst [vmem:[#allocation142_spill] sm:$0xff] %v10134_v3  ;;  %v1282_v31 = vpop.f32.mrf.mxu0  ;;  %v2044_v61 = vmul.f32 %v10152_v43, %v10084_v55  ;;  %v2212_v60 = vmul.f32 %v10159_v18, %v10120_v28  ;;  %v10163_v48 = vadd.f32 %v2700_v41, %v2373_v1  ;;  %v4006_v38 = vmul.f32 %v9773_v49, %v9368_v2  ;;  %v10177_v1 = vld [vmem:[%s12246_s7 + $0x2] ss:$0 sm:$0xff] }
 0x2d7   :  { %12624 = vst [vmem:[#allocation143_spill] sm:$0xff] %v10138_v25  ;;  %v10166_v7 = vadd.f32 %v10117_v22, %v1282_v31  ;;  %v3838_v39 = vadd.f32 %v3676_v30, %v9974_v63  ;;  %v3186_v45 = vadd.f32 %v3024_v56, %v9980_v12  ;;  %v2701_v41 = vmul.f32 %v10177_v1, %v10051_v50  ;;  %v12625_v63 = vld [vmem:[#allocation10_spill] sm:$0xff] }
 0x2d8   :  { %v5898_v51 = vpop.f32.mrf.mxu0  ;;  %v2374_v3 = vadd.f32 %v2212_v60, %v2044_v61  ;;  %v10183_v12 = vmul.f32 %v9646_v36, %v12625_v63  ;;  %v12627_v30 = vmov 0.0   ;;  %v6423_v61 = vld [vmem:[%s12247_s3 + $0x30] sm:$0xff]   ;;  %v3354_v60 = vmul.f32 %v9494_v4, %v9725_v53 }
 0x2d9   :  { %5973 = vmatprep.subr.bf16.mxu1 %v12627_v30  ;;  %v10186_v51 = vadd.f32 %v4005_v16, %v3838_v39  ;;  %v3677_v2 = vmul.f32 %v9646_v36, %v10166_v7  ;;  %v10190_v56 = vadd.f32 %v3353_v40, %v3186_v45  ;;  %v3025_v31 = vmul.f32 %v9387_v58, %v10166_v7 }
 0x2da   :  { %12626 = vst [vmem:[#allocation10_spill] sm:$0xff] %v10183_v12  ;;  %v1287_v13 = vpop.f32.mrf.mxu0  ;;  %v10199_v52 = vadd.f32 %v2701_v41, %v2374_v3  ;;  %v2045_v16 = vmul.f32 %v10152_v43, %v10120_v28  ;;  %v2213_v39 = vmul.f32 %v10159_v18, %v10166_v7  ;;  %5974 = vmatpush3.bf16.msra.mxu1 %v6423_v61  ;;  %v12629_v3 = vld [vmem:[#allocation11_spill] sm:$0xff]  ;;  %v6424_v61 = vld [vmem:[%s12247_s3 + $0x28] sm:$0xff]  }
 0x2db   :  { %12628 = vst [vmem:[#allocation144_spill] sm:$0xff] %v10186_v51  ;;  %v10206_v45 = vadd.f32 %v10117_v22, %v1287_v13  ;;  %v3839_v19 = vadd.f32 %v3677_v2, %v10009_v11  ;;  %v3187_v12 = vadd.f32 %v3025_v31, %v10017_v59  ;;  %v10214_v41 = vmul.f32 %v9387_v58, %v12629_v3 }
 0x2dc   :  { %v5901_v62 = vpop.f32.mrf.mxu0  ;;  %v2375_v50 = vadd.f32 %v2213_v39, %v2045_v16  ;;  %v2702_v5 = vmul.f32 %v10177_v1, %v10084_v55  ;;  %v10220_v13 = vmul.f32 %v9387_v58, %v12625_v63  ;;  %5975 = vmatprep.subr.bf16.mxu1 %v12627_v30  ;;  %v4007_v63 = vmul.f32 %v9773_v49, %v9400_v20 }
 0x2dd   :  { %12630 = vst [vmem:[#allocation11_spill] sm:$0xff] %v10214_v41  ;;  %v3678_v11 = vmul.f32 %v9646_v36, %v10206_v45  ;;  %v10225_v59 = vadd.f32 %v4006_v38, %v3839_v19  ;;  %v3026_v62 = vmul.f32 %v9387_v58, %v10206_v45  ;;  %v10229_v2 = vadd.f32 %v3354_v60, %v3187_v12  ;;  %v12637_v41 = vld [vmem:[#allocation13_spill] sm:$0xff] }
 0x2de   :  { %12631 = vst [vmem:[#allocation145_spill] sm:$0xff] %v10220_v13  ;;  %v1290_v31 = vpop.f32.mrf.mxu0  ;;  %v2046_v16 = vmul.f32 %v10152_v43, %v10166_v7  ;;  %v2214_v38 = vmul.f32 %v10159_v18, %v10206_v45  ;;  %v10240_v19 = vadd.f32 %v2702_v5, %v2375_v50  ;;  %v3355_v39 = vmul.f32 %v9494_v4, %v9752_v10  ;;  %v12635_v13 = vld [vmem:[#allocation12_spill] sm:$0xff] }
 0x2df   :  { %12632 = vst [vmem:[#allocation146_spill] sm:$0xff] %v10225_v59  ;;  %v10243_v58 = vadd.f32 %v10117_v22, %v1290_v31  ;;  %v3840_v12 = vadd.f32 %v3678_v11, %v10038_v15  ;;  %v3188_v60 = vadd.f32 %v3026_v62, %v10044_v46  ;;  %5976 = vmatpush3.bf16.msra.mxu1 %v6424_v61  ;;  %v12640_v59 = vld [vmem:[#allocation15_spill] sm:$0xff] }
 0x2e0   :  { %v5902_v40 = vpop.f32.mrf.mxu0  ;;  %v4008_v20 = vmul.f32 %v9773_v49, %v9430_v54  ;;  %v2376_v25 = vadd.f32 %v2214_v38, %v2046_v16  ;;  %v2703_v5 = vmul.f32 %v10177_v1, %v10120_v28  ;;  %v10255_v50 = vmul.f32 %v9646_v36, %v12629_v3  ;;  %5977 = vmatprep.subr.bf16.mxu1 %v12627_v30  ;;  %v10267_v54 = vld [vmem:[%s12246_s7 + $0x3] ss:$0 sm:$0xff] }
 0x2e1   :  { %v10258_v15 = vadd.f32 %v4007_v63, %v3840_v12  ;;  %v3679_v46 = vmul.f32 %v9646_v36, %v10243_v58  ;;  %v10262_v40 = vadd.f32 %v3355_v39, %v3188_v60  ;;  %v3027_v11 = vmul.f32 %v10267_v54, %v10243_v58  ;;  %v6425_v3 = vld [vmem:[%s12247_s3 + $0x20] sm:$0xff]  }
 0x2e2   :  { %12633 = vst [vmem:[#allocation147_spill] sm:$0xff] %v10255_v50  ;;  %v1295_v62 = vpop.f32.mrf.mxu0  ;;  %v3356_v31 = vmul.f32 %v9494_v4, %v9784_v33  ;;  %v10276_v61 = vadd.f32 %v2703_v5, %v2376_v25  ;;  %v2047_v63 = vmul.f32 %v10152_v43, %v10206_v45  ;;  %v2215_v16 = vmul.f32 %v10159_v18, %v10243_v58 }
 0x2e3   :  { %12634 = vst [vmem:[#allocation148_spill] sm:$0xff] %v10258_v15  ;;  %v10283_v38 = vadd.f32 %v10117_v22, %v1295_v62  ;;  %v3841_v60 = vadd.f32 %v3679_v46, %v10073_v42  ;;  %v3189_v39 = vadd.f32 %v3027_v11, %v10081_v26  ;;  %5978 = vmatpush3.bf16.msra.mxu1 %v6425_v3 }
 0x2e4   :  { %v5905_v51 = vpop.f32.mrf.mxu0  ;;  %v2377_v25 = vadd.f32 %v2215_v16, %v2047_v63  ;;  %v2704_v5 = vmul.f32 %v10177_v1, %v10166_v7  ;;  %v10293_v50 = vmul.f32 %v9646_v36, %v12635_v13  ;;  %v10297_v62 = vmul.f32 %v9646_v36, %v12637_v41  ;;  %5979 = vmatprep.subr.bf16.mxu1 %v12627_v30  ;;  %v6426_v13 = vld [vmem:[%s12247_s3 + $0x18] sm:$0xff]  }
 0x2e5   :  { %v3680_v42 = vmul.f32 %v9646_v36, %v10283_v38  ;;  %v10302_v26 = vadd.f32 %v4008_v20, %v3841_v60  ;;  %v3028_v51 = vmul.f32 %v10267_v54, %v10283_v38  ;;  %v10306_v46 = vadd.f32 %v3356_v31, %v3189_v39 }
 0x2e6   :  { %12636 = vst [vmem:[#allocation12_spill] sm:$0xff] %v10293_v50  ;;  %12638 = vst [vmem:[#allocation13_spill] sm:$0xff] %v10297_v62  ;;  %v1298_v11 = vpop.f32.mrf.mxu0  ;;  %v4009_v41 = vmul.f32 %v9773_v49, %v9457_v27  ;;  %v2048_v3 = vmul.f32 %v10152_v43, %v10243_v58  ;;  %v2216_v20 = vmul.f32 %v10159_v18, %v10283_v38  ;;  %v6427_v27 = vld [vmem:[%s12247_s3 + $0x10] sm:$0xff]  }
 0x2e7   :  { %12639 = vst [vmem:[#allocation149_spill] sm:$0xff] %v10302_v26  ;;  %v10317_v63 = vadd.f32 %v2704_v5, %v2377_v25  ;;  %v10320_v16 = vadd.f32 %v10117_v22, %v1298_v11  ;;  %v3842_v31 = vadd.f32 %v3680_v42, %v10102_v24  ;;  %v3190_v60 = vadd.f32 %v3028_v51, %v10108_v6 }
 0x2e8   :  { %v3357_v39 = vmul.f32 %v9494_v4, %v9811_v34  ;;  %v5906_v12 = vpop.f32.mrf.mxu0  ;;  %5980 = vmatpush3.bf16.msra.mxu1 %v6426_v13  ;;  %v4010_v25 = vmul.f32 %v9773_v49, %v9487_v47  ;;  %v2378_v5 = vadd.f32 %v2216_v20, %v2048_v3  ;;  %v2705_v11 = vmul.f32 %v10177_v1, %v10206_v45 }
 0x2e9   :  { %v10335_v24 = vmul.f32 %v9646_v36, %v12640_v59  ;;  %5981 = vmatprep.subr.bf16.mxu1 %v12627_v30  ;;  %v10338_v6 = vadd.f32 %v4009_v41, %v3842_v31  ;;  %v3681_v12 = vmul.f32 %v9646_v36, %v10320_v16  ;;  %v3029_v47 = vmul.f32 %v10267_v54, %v10320_v16 }
 0x2ea   :  { %v10342_v42 = vadd.f32 %v3357_v39, %v3190_v60  ;;  %v1303_v51 = vpop.f32.mrf.mxu0  ;;  %v3358_v13 = vmul.f32 %v9494_v4, %v9836_v14  ;;  %v10348_v3 = vadd.f32 %v2705_v11, %v2378_v5  ;;  %v2049_v59 = vmul.f32 %v10152_v43, %v10283_v38  ;;  %v6428_v4 = vld [vmem:[%s12247_s3 + $0x8] sm:$0xff]   ;;  %v12643_v5 = vld [vmem:[#allocation21_spill] sm:$0xff] }
 0x2eb   :  { %12641 = vst [vmem:[#allocation15_spill] sm:$0xff] %v10335_v24  ;;  %12642 = vst [vmem:[#allocation150_spill] sm:$0xff] %v10338_v6  ;;  %v2217_v41 = vmul.f32 %v10159_v18, %v10320_v16  ;;  %v10355_v20 = vadd.f32 %v10117_v22, %v1303_v51  ;;  %v3843_v60 = vadd.f32 %v3681_v12, %v10142_v0  ;;  %v12645_v24 = vld [vmem:[#allocation23_spill] sm:$0xff] }
 0x2ec   :  { %v3191_v39 = vadd.f32 %v3029_v47, %v10163_v48  ;;  %v5909_v15 = vpop.f32.mrf.mxu0  ;;  %5982 = vmatpush3.bf16.msra.mxu1 %v6427_v27  ;;  %v10366_v11 = vmul.f32 %v9646_v36, %v12643_v5  ;;  %v10370_v51 = vmul.f32 %v9646_v36, %v12645_v24  ;;  %v2706_v0 = vmul.f32 %v10177_v1, %v10243_v58 }
 0x2ed   :  { %v2379_v62 = vadd.f32 %v2217_v41, %v2049_v59  ;;  %5983 = vmatprep.subr.bf16.mxu1 %v12627_v30  ;;  %v3682_v48 = vmul.f32 %v9646_v36, %v10355_v20  ;;  %v10377_v15 = vadd.f32 %v4010_v25, %v3843_v60  ;;  %v3030_v27 = vmul.f32 %v10267_v54, %v10355_v20 }
 0x2ee   :  { %12644 = vst [vmem:[#allocation21_spill] sm:$0xff] %v10366_v11  ;;  %12646 = vst [vmem:[#allocation23_spill] sm:$0xff] %v10370_v51  ;;  %v10381_v12 = vadd.f32 %v3358_v13, %v3191_v39  ;;  %v1306_v47 = vpop.f32.mrf.mxu0  ;;  %v4011_v24 = vmul.f32 %v9773_v49, %v9519_v35  ;;  %v2050_v59 = vmul.f32 %v10152_v43, %v10320_v16  ;;  %v10399_v39 = vld [vmem:[%s12246_s7 + $0x4] ss:$0 sm:$0xff] }
 0x2ef   :  { %12647 = vst [vmem:[#allocation151_spill] sm:$0xff] %v10377_v15  ;;  %v2218_v41 = vmul.f32 %v10159_v18, %v10355_v20  ;;  %v10389_v5 = vadd.f32 %v2706_v0, %v2379_v62  ;;  %v10392_v25 = vadd.f32 %v10117_v22, %v1306_v47  ;;  %v3844_v60 = vadd.f32 %v3682_v48, %v10190_v56  ;;  %v6429_v62 = vld [vmem:[%s12247_s3] sm:$0xff]   ;;  %v12648_v0 = vld [vmem:[#allocation25_spill] sm:$0xff] }
 0x2f0   :  { %v3192_v13 = vadd.f32 %v3030_v27, %v10199_v52  ;;  %v3359_v35 = vmul.f32 %v10399_v39, %v9863_v32  ;;  %v5910_v31 = vpop.f32.mrf.mxu0  ;;  %5984 = vmatpush3.bf16.msra.mxu1 %v6428_v4  ;;  %v10408_v47 = vmul.f32 %v9646_v36, %v12648_v0  ;;  %v4012_v52 = vmul.f32 %v9773_v49, %v9549_v23  ;;  %v12658_v15 = vld [vmem:[#allocation119_spill] sm:$0xff] }
 0x2f1   :  { %v2380_v56 = vadd.f32 %v2218_v41, %v2050_v59  ;;  %v2707_v48 = vmul.f32 %v10177_v1, %v10283_v38  ;;  %5985 = vmatprep.subr.bf16.mxu1 %v12627_v30  ;;  %v10415_v27 = vadd.f32 %v4011_v24, %v3844_v60  ;;  %v3683_v31 = vmul.f32 %v9646_v36, %v10392_v25  ;;  %v12653_v30 = vld [vmem:[#allocation27_spill] sm:$0xff] }
 0x2f2   :  { %12649 = vst [vmem:[#allocation25_spill] sm:$0xff] %v10408_v47  ;;  %v10419_v4 = vadd.f32 %v3359_v35, %v3192_v13  ;;  %v3031_v0 = vmul.f32 %v10267_v54, %v10392_v25  ;;  %v1311_v26 = vpop.f32.mrf.mxu0  ;;  %v3360_v23 = vmul.f32 %v10399_v39, %v9892_v44  ;;  %v2051_v41 = vmul.f32 %v10152_v43, %v10355_v20 }
 0x2f3   :  { %12650 = vst [vmem:[#allocation152_spill] sm:$0xff] %v10415_v27  ;;  %v10425_v59 = vadd.f32 %v2707_v48, %v2380_v56  ;;  %v2219_v24 = vmul.f32 %v10159_v18, %v10392_v25  ;;  %v10432_v60 = vadd.f32 %v10117_v22, %v1311_v26  ;;  %v3845_v35 = vadd.f32 %v3683_v31, %v10229_v2  ;;  %v12651_v56 = vld [vmem:[#allocation26_spill] sm:$0xff] }
 0x2f4   :  { %v3193_v6 = vadd.f32 %v3031_v0, %v10240_v19  ;;  %v5913_v50 = vpop.f32.mrf.mxu0  ;;  %5986 = vmatpush3.bf16.msra.mxu1 %v6429_v62  ;;  %v10440_v48 = vmul.f32 %v9646_v36, %v12651_v56  ;;  %v10444_v11 = vmul.f32 %v9646_v36, %v12653_v30  ;;  %v2708_v26 = vmul.f32 %v10177_v1, %v10320_v16 }
 0x2f5   :  { %v2381_v47 = vadd.f32 %v2219_v24, %v2051_v41  ;;  %v3684_v13 = vmul.f32 %v9646_v36, %v10432_v60  ;;  %v10450_v2 = vadd.f32 %v4012_v52, %v3845_v35  ;;  %v3032_v19 = vmul.f32 %v10267_v54, %v10432_v60 }
 0x2f6   :  { %12652 = vst [vmem:[#allocation26_spill] sm:$0xff] %v10440_v48  ;;  %12654 = vst [vmem:[#allocation27_spill] sm:$0xff] %v10444_v11  ;;  %v10454_v50 = vadd.f32 %v3360_v23, %v3193_v6  ;;  %v1314_v62 = vpop.f32.mrf.mxu0  ;;  %v4013_v31 = vmul.f32 %v9773_v49, %v9576_v37  ;;  %v2052_v30 = vmul.f32 %v10152_v43, %v10392_v25  ;;  %v12656_v37 = vld [vmem:[#allocation28_spill] sm:$0xff] }
 0x2f7   :  { %12655 = vst [vmem:[#allocation153_spill] sm:$0xff] %v10450_v2  ;;  %v2220_v0 = vmul.f32 %v10159_v18, %v10432_v60  ;;  %v10462_v41 = vadd.f32 %v2708_v26, %v2381_v47  ;;  %v10465_v52 = vadd.f32 %v10117_v22, %v1314_v62  ;;  %v3846_v24 = vadd.f32 %v3684_v13, %v10262_v40 }
 0x2f8   :  { %v3194_v6 = vadd.f32 %v3032_v19, %v10276_v61  ;;  %v3361_v23 = vmul.f32 %v10399_v39, %v9923_v29  ;;  %v5914_v35 = vpop.f32.mrf.mxu0  ;;  %v10473_v56 = vmul.f32 %v9646_v36, %v12656_v37  ;;  %v4014_v27 = vmul.f32 %v9773_v49, %v12658_v15 }
 0x2f9   :  { %v2382_v47 = vadd.f32 %v2220_v0, %v2052_v30  ;;  %v2709_v26 = vmul.f32 %v10177_v1, %v10355_v20  ;;  %v10479_v62 = vadd.f32 %v4013_v31, %v3846_v24  ;;  %v3685_v40 = vmul.f32 %v9646_v36, %v10465_v52 }
 0x2fa   :  { %12657 = vst [vmem:[#allocation28_spill] sm:$0xff] %v10473_v56  ;;  %v10483_v61 = vadd.f32 %v3361_v23, %v3194_v6  ;;  %v3033_v13 = vmul.f32 %v10267_v54, %v10465_v52  ;;  %v1319_v19 = vpop.f32.mrf.mxu0  ;;  %v3362_v35 = vmul.f32 %v10399_v39, %v9956_v9  ;;  %v2053_v15 = vmul.f32 %v10152_v43, %v10432_v60  ;;  %v12660_v56 = vld [vmem:[#allocation29_spill] sm:$0xff] }
 0x2fb   :  { %12659 = vst [vmem:[#allocation119_spill] sm:$0xff] %v10479_v62  ;;  %v10489_v37 = vadd.f32 %v2709_v26, %v2382_v47  ;;  %v2221_v31 = vmul.f32 %v10159_v18, %v10465_v52  ;;  %v10496_v30 = vadd.f32 %v10117_v22, %v1319_v19  ;;  %v3847_v24 = vadd.f32 %v3685_v40, %v10306_v46 }
 0x2fc   :  { %v3195_v6 = vadd.f32 %v3033_v13, %v10317_v63  ;;  %v5917_v23 = vpop.f32.mrf.mxu0  ;;  %v10504_v47 = vmul.f32 %v9646_v36, %v12660_v56  ;;  %v4015_v26 = vmul.f32 %v9773_v49, %v9633_v8  ;;  %v2710_v19 = vmul.f32 %v10177_v1, %v10392_v25 }
 0x2fd   :  { %v2383_v11 = vadd.f32 %v2221_v31, %v2053_v15  ;;  %v3686_v48 = vmul.f32 %v9646_v36, %v10496_v30  ;;  %v10512_v0 = vadd.f32 %v4014_v27, %v3847_v24  ;;  %v3034_v46 = vmul.f32 %v10267_v54, %v10496_v30 }
 0x2fe   :  { %12661 = vst [vmem:[#allocation29_spill] sm:$0xff] %v10504_v47  ;;  %v10516_v63 = vadd.f32 %v3362_v35, %v3195_v6  ;;  %v1322_v40 = vpop.f32.mrf.mxu0  ;;  %v4016_v56 = vmul.f32 %v9773_v49, %v9668_v17  ;;  %v2054_v8 = vmul.f32 %v10152_v43, %v10465_v52  ;;  %v2222_v13 = vmul.f32 %v10159_v18, %v10496_v30 }
 0x2ff   :  { %12662 = vst [vmem:[#allocation154_spill] sm:$0xff] %v10512_v0  ;;  %v10524_v15 = vadd.f32 %v2710_v19, %v2383_v11  ;;  %v10527_v36 = vadd.f32 %v10117_v22, %v1322_v40  ;;  %v3848_v27 = vadd.f32 %v3686_v48, %v10342_v42  ;;  %v3196_v35 = vadd.f32 %v3034_v46, %v10348_v3  ;;  %v10544_v42 = vld [vmem:[%s12246_s7 + $0x5] ss:$0 sm:$0xff]  ;;  %v12664_v46 = vld [vmem:[#allocation136_spill] sm:$0xff] }
 0x300   :  { %v3363_v31 = vmul.f32 %v10399_v39, %v9987_v57  ;;  %v5918_v24 = vpop.f32.mrf.mxu0  ;;  %v4017_v17 = vmul.f32 %v9773_v49, %v9695_v21  ;;  %v4018_v6 = vmul.f32 %v9773_v49, %v9725_v53  ;;  %v2384_v23 = vadd.f32 %v2222_v13, %v2054_v8 }
 0x301   :  { %v2711_v11 = vmul.f32 %v10177_v1, %v10432_v60  ;;  %v10539_v19 = vadd.f32 %v4015_v26, %v3848_v27  ;;  %v3687_v3 = vmul.f32 %v10544_v42, %v10527_v36  ;;  %v3035_v21 = vmul.f32 %v10267_v54, %v10527_v36 }
 0x302   :  { %v10548_v48 = vadd.f32 %v3363_v31, %v3196_v35  ;;  %v1327_v53 = vpop.f32.mrf.mxu0  ;;  %v3364_v40 = vmul.f32 %v10399_v39, %v12664_v46  ;;  %v2055_v26 = vmul.f32 %v10152_v43, %v10496_v30  ;;  %v2223_v13 = vmul.f32 %v10159_v18, %v10527_v36 }
 0x303   :  { %12663 = vst [vmem:[#allocation155_spill] sm:$0xff] %v10539_v19  ;;  %v10554_v8 = vadd.f32 %v2711_v11, %v2384_v23  ;;  %v10561_v27 = vadd.f32 %v10117_v22, %v1327_v53  ;;  %v3849_v31 = vadd.f32 %v3687_v3, %v10381_v12  ;;  %v3197_v24 = vadd.f32 %v3035_v21, %v10389_v5 }
 0x304   :  { %v5921_v2 = vpop.f32.mrf.mxu0  ;;  %v4019_v23 = vmul.f32 %v9773_v49, %v9752_v10  ;;  %v10571_v11 = vmul.f32 %v9773_v49, %v9784_v33  ;;  %v2385_v62 = vadd.f32 %v2223_v13, %v2055_v26  ;;  %v2712_v53 = vmul.f32 %v10177_v1, %v10465_v52  ;;  %v12666_v13 = vld [vmem:[#allocation137_spill] sm:$0xff] }
 0x305   :  { %v3688_v47 = vmul.f32 %v10544_v42, %v10561_v27  ;;  %v10577_v35 = vadd.f32 %v4016_v56, %v3849_v31  ;;  %v3036_v12 = vmul.f32 %v10267_v54, %v10561_v27  ;;  %v10581_v5 = vadd.f32 %v3364_v40, %v3197_v24 }
 0x306   :  { %v1330_v2 = vpop.f32.mrf.mxu0  ;;  %v10585_v10 = vmul.f32 %v9773_v49, %v9811_v34  ;;  %v2056_v33 = vmul.f32 %v10152_v43, %v10527_v36  ;;  %v2224_v3 = vmul.f32 %v10159_v18, %v10561_v27  ;;  %v10591_v21 = vadd.f32 %v2712_v53, %v2385_v62 }
 0x307   :  { %12665 = vst [vmem:[#allocation136_spill] sm:$0xff] %v10577_v35  ;;  %v10594_v56 = vadd.f32 %v10117_v22, %v1330_v2  ;;  %v3850_v26 = vadd.f32 %v3688_v47, %v10419_v4  ;;  %v3198_v40 = vadd.f32 %v3036_v12, %v10425_v59  ;;  %v3365_v31 = vmul.f32 %v10399_v39, %v12666_v13 }
 0x308   :  { %v5922_v34 = vpop.f32.mrf.mxu0  ;;  %v10602_v24 = vmul.f32 %v9773_v49, %v9836_v14  ;;  %v10606_v0 = vmul.f32 %v9773_v49, %v9863_v32  ;;  %v2386_v62 = vadd.f32 %v2224_v3, %v2056_v33  ;;  %v2713_v53 = vmul.f32 %v10177_v1, %v10496_v30 }
 0x309   :  { %v10610_v2 = vadd.f32 %v4017_v17, %v3850_v26  ;;  %v3689_v4 = vmul.f32 %v10544_v42, %v10594_v56  ;;  %v10614_v59 = vadd.f32 %v3365_v31, %v3198_v40  ;;  %v3037_v47 = vmul.f32 %v10267_v54, %v10594_v56 }
 0x30a   :  { %v1335_v14 = vpop.f32.mrf.mxu0  ;;  %v3366_v12 = vmul.f32 %v10399_v39, %v10084_v55  ;;  %v10620_v32 = vadd.f32 %v2713_v53, %v2386_v62  ;;  %v2057_v33 = vmul.f32 %v10152_v43, %v10561_v27  ;;  %v2225_v17 = vmul.f32 %v10159_v18, %v10594_v56 }
 0x30b   :  { %12667 = vst [vmem:[#allocation137_spill] sm:$0xff] %v10610_v2  ;;  %v10627_v3 = vadd.f32 %v10117_v22, %v1335_v14  ;;  %v3851_v40 = vadd.f32 %v3689_v4, %v10454_v50  ;;  %v3199_v31 = vadd.f32 %v3037_v47, %v10462_v41  ;;  %v10635_v62 = vmul.f32 %v9773_v49, %v9892_v44 }
 0x30c   :  { %v5925_v34 = vpop.f32.mrf.mxu0  ;;  %v10639_v53 = vmul.f32 %v9773_v49, %v9923_v29  ;;  %v2387_v19 = vadd.f32 %v2225_v17, %v2057_v33  ;;  %v2714_v14 = vmul.f32 %v10177_v1, %v10527_v36  ;;  %v10653_v4 = vmul.f32 %v9773_v49, %v9956_v9  ;;  %v10671_v9 = vld [vmem:[%s12246_s7 + $0x6] ss:$0 sm:$0xff] }
 0x30d   :  { %v3690_v26 = vmul.f32 %v10544_v42, %v10627_v3  ;;  %v10645_v35 = vadd.f32 %v4018_v6, %v3851_v40  ;;  %v3038_v50 = vmul.f32 %v10267_v54, %v10627_v3  ;;  %v10649_v41 = vadd.f32 %v3366_v12, %v3199_v31 }
 0x30e   :  { %v1338_v44 = vpop.f32.mrf.mxu0  ;;  %v2058_v29 = vmul.f32 %v10152_v43, %v10594_v56  ;;  %v2226_v47 = vmul.f32 %v10159_v18, %v10627_v3  ;;  %v10659_v33 = vadd.f32 %v2714_v14, %v2387_v19  ;;  %v3367_v40 = vmul.f32 %v10399_v39, %v10120_v28 }
 0x30f   :  { %12668 = vst [vmem:[#allocation156_spill] sm:$0xff] %v10645_v35  ;;  %v10662_v6 = vadd.f32 %v10117_v22, %v1338_v44  ;;  %v3852_v17 = vadd.f32 %v3690_v26, %v10483_v61  ;;  %v3200_v12 = vadd.f32 %v3038_v50, %v10489_v37  ;;  %v10675_v19 = vmul.f32 %v10671_v9, %v9987_v57 }
 0x310   :  { %v5926_v49 = vpop.f32.mrf.mxu0  ;;  %v10679_v31 = vmul.f32 %v10671_v9, %v12664_v46  ;;  %v2388_v61 = vadd.f32 %v2226_v47, %v2058_v29  ;;  %v2715_v37 = vmul.f32 %v10177_v1, %v10561_v27  ;;  %v3368_v44 = vmul.f32 %v10399_v39, %v10166_v7 }
 0x311   :  { %v10683_v26 = vadd.f32 %v4019_v23, %v3852_v17  ;;  %v3691_v34 = vmul.f32 %v10544_v42, %v10662_v6  ;;  %v10687_v14 = vadd.f32 %v3367_v40, %v3200_v12  ;;  %v3039_v50 = vmul.f32 %v10267_v54, %v10662_v6 }
 0x312   :  { %v1343_v57 = vpop.f32.mrf.mxu0  ;;  %v10693_v46 = vadd.f32 %v2715_v37, %v2388_v61  ;;  %v2059_v29 = vmul.f32 %v10152_v43, %v10627_v3  ;;  %v2227_v23 = vmul.f32 %v10159_v18, %v10662_v6  ;;  %v10708_v61 = vmul.f32 %v10671_v9, %v12666_v13 }
 0x313   :  { %12669 = vst [vmem:[#allocation157_spill] sm:$0xff] %v10683_v26  ;;  %v10700_v47 = vadd.f32 %v10117_v22, %v1343_v57  ;;  %v3853_v12 = vadd.f32 %v3691_v34, %v10516_v63  ;;  %v3201_v40 = vadd.f32 %v3039_v50, %v10524_v15  ;;  %v10712_v37 = vmul.f32 %v10671_v9, %v10084_v55 }
 0x314   :  { %v5929_v49 = vpop.f32.mrf.mxu0  ;;  %v2389_v2 = vadd.f32 %v2227_v23, %v2059_v29  ;;  %v2716_v57 = vmul.f32 %v10177_v1, %v10594_v56  ;;  %v10727_v55 = vmul.f32 %v10671_v9, %v10120_v28  ;;  %v2060_v50 = vmul.f32 %v10152_v43, %v10662_v6 }
 0x315   :  { %v3692_v17 = vmul.f32 %v10544_v42, %v10700_v47  ;;  %v10719_v63 = vadd.f32 %v10571_v11, %v3853_v12  ;;  %v3040_v15 = vmul.f32 %v10267_v54, %v10700_v47  ;;  %v10723_v34 = vadd.f32 %v3368_v44, %v3201_v40 }
 0x316   :  { %v1346_v13 = vpop.f32.mrf.mxu0  ;;  %v2228_v29 = vmul.f32 %v10159_v18, %v10700_v47  ;;  %v10733_v23 = vadd.f32 %v2716_v57, %v2389_v2  ;;  %v3369_v40 = vmul.f32 %v10399_v39, %v10206_v45  ;;  %v2717_v35 = vmul.f32 %v10177_v1, %v10627_v3 }
 0x317   :  { %12670 = vst [vmem:[#allocation158_spill] sm:$0xff] %v10719_v63  ;;  %v10736_v11 = vadd.f32 %v10117_v22, %v1346_v13  ;;  %v3854_v12 = vadd.f32 %v3692_v17, %v10548_v48  ;;  %v3202_v44 = vadd.f32 %v3040_v15, %v10554_v8  ;;  %v10746_v26 = vmul.f32 %v10671_v9, %v10166_v7 }
 0x318   :  { %v5930_v28 = vpop.f32.mrf.mxu0  ;;  %v2390_v49 = vadd.f32 %v2228_v29, %v2060_v50  ;;  %v10750_v2 = vmul.f32 %v10671_v9, %v10206_v45  ;;  %v3370_v7 = vmul.f32 %v10399_v39, %v10243_v58  ;;  %v2061_v45 = vmul.f32 %v10152_v43, %v10700_v47 }
 0x319   :  { %v10753_v48 = vadd.f32 %v10585_v10, %v3854_v12  ;;  %v3693_v8 = vmul.f32 %v10544_v42, %v10736_v11  ;;  %v10757_v17 = vadd.f32 %v3369_v40, %v3202_v44  ;;  %v3041_v57 = vmul.f32 %v10267_v54, %v10736_v11 }
 0x31a   :  { %v1351_v15 = vpop.f32.mrf.mxu0  ;;  %v10763_v13 = vadd.f32 %v2717_v35, %v2390_v49  ;;  %v2229_v10 = vmul.f32 %v10159_v18, %v10736_v11  ;;  %v3371_v35 = vmul.f32 %v10399_v39, %v10283_v38  ;;  %v2718_v49 = vmul.f32 %v10177_v1, %v10662_v6 }
 0x31b   :  { %12671 = vst [vmem:[#allocation159_spill] sm:$0xff] %v10753_v48  ;;  %v10770_v50 = vadd.f32 %v10117_v22, %v1351_v15  ;;  %v3855_v12 = vadd.f32 %v3693_v8, %v10581_v5  ;;  %v3203_v44 = vadd.f32 %v3041_v57, %v10591_v21  ;;  %v10782_v51 = vmul.f32 %v10671_v9, %v10243_v58 }
 0x31c   :  { %v5933_v40 = vpop.f32.mrf.mxu0  ;;  %v2391_v28 = vadd.f32 %v2229_v10, %v2061_v45  ;;  %v2062_v57 = vmul.f32 %v10152_v43, %v10736_v11  ;;  %v10801_v10 = vmul.f32 %v10671_v9, %v10283_v38  ;;  %v3373_v63 = vmul.f32 %v10399_v39, %v10355_v20 }
 0x31d   :  { %v3694_v15 = vmul.f32 %v10544_v42, %v10770_v50  ;;  %v10787_v29 = vadd.f32 %v10602_v24, %v3855_v12  ;;  %v3042_v5 = vmul.f32 %v10267_v54, %v10770_v50  ;;  %v10791_v21 = vadd.f32 %v3370_v7, %v3203_v44 }
 0x31e   :  { %v1354_v8 = vpop.f32.mrf.mxu0  ;;  %v2230_v45 = vmul.f32 %v10159_v18, %v10770_v50  ;;  %v10797_v58 = vadd.f32 %v2718_v49, %v2391_v28  ;;  %v3372_v44 = vmul.f32 %v10399_v39, %v10320_v16  ;;  %v2719_v49 = vmul.f32 %v10177_v1, %v10700_v47 }
 0x31f   :  { %12672 = vst [vmem:[#allocation160_spill] sm:$0xff] %v10787_v29  ;;  %v10804_v24 = vadd.f32 %v10117_v22, %v1354_v8  ;;  %v3856_v12 = vadd.f32 %v3694_v15, %v10614_v59  ;;  %v3204_v7 = vadd.f32 %v3042_v5, %v10620_v32  ;;  %v10816_v38 = vmul.f32 %v10671_v9, %v10320_v16 }
 0x320   :  { %v5934_v40 = vpop.f32.mrf.mxu0  ;;  %v2392_v28 = vadd.f32 %v2230_v45, %v2062_v57  ;;  %v2063_v45 = vmul.f32 %v10152_v43, %v10770_v50  ;;  %v3376_v29 = vmul.f32 %v10399_v39, %v10465_v52 }
 0x321   :  { %12673 = vst [vmem:[#allocation161_spill] sm:$0xff] %v10816_v38  ;;  %v10819_v8 = vadd.f32 %v10606_v0, %v3856_v12  ;;  %v3695_v59 = vmul.f32 %v10544_v42, %v10804_v24  ;;  %v10823_v32 = vadd.f32 %v3371_v35, %v3204_v7  ;;  %v3043_v15 = vmul.f32 %v10267_v54, %v10804_v24 }
 0x322   :  { %v1359_v5 = vpop.f32.mrf.mxu0  ;;  %v10827_v57 = vadd.f32 %v2719_v49, %v2392_v28  ;;  %v2231_v16 = vmul.f32 %v10159_v18, %v10804_v24  ;;  %v10835_v0 = vmul.f32 %v10671_v9, %v10355_v20  ;;  %v3374_v49 = vmul.f32 %v10399_v39, %v10392_v25 }
 0x323   :  { %12674 = vst [vmem:[#allocation162_spill] sm:$0xff] %v10819_v8  ;;  %v10838_v12 = vadd.f32 %v10117_v22, %v1359_v5  ;;  %v3857_v7 = vadd.f32 %v3695_v59, %v10649_v41  ;;  %v3205_v40 = vadd.f32 %v3043_v15, %v10659_v33  ;;  %v2720_v38 = vmul.f32 %v10177_v1, %v10736_v11 }
 0x324   :  { %v5937_v28 = vpop.f32.mrf.mxu0  ;;  %v2393_v48 = vadd.f32 %v2231_v16, %v2063_v45  ;;  %v10850_v20 = vmul.f32 %v10671_v9, %v10392_v25  ;;  %v3375_v15 = vmul.f32 %v10399_v39, %v10432_v60  ;;  %v2064_v45 = vmul.f32 %v10152_v43, %v10804_v24 }
 0x325   :  { %12675 = vst [vmem:[#allocation163_spill] sm:$0xff] %v10838_v12  ;;  %v3696_v5 = vmul.f32 %v10544_v42, %v10838_v12  ;;  %v10855_v35 = vadd.f32 %v10635_v62, %v3857_v7  ;;  %v3044_v41 = vmul.f32 %v10267_v54, %v10838_v12  ;;  %v10859_v33 = vadd.f32 %v3372_v44, %v3205_v40 }
 0x326   :  { %v1362_v59 = vpop.f32.mrf.mxu0  ;;  %v2232_v25 = vmul.f32 %v10159_v18, %v10838_v12  ;;  %v10867_v16 = vadd.f32 %v2720_v38, %v2393_v48  ;;  %v10876_v40 = vmul.f32 %v10671_v9, %v10432_v60  ;;  %v2721_v48 = vmul.f32 %v10177_v1, %v10770_v50 }
 0x327   :  { %12676 = vst [vmem:[#allocation164_spill] sm:$0xff] %v10855_v35  ;;  %v10870_v62 = vadd.f32 %v10117_v22, %v1362_v59  ;;  %v3858_v7 = vadd.f32 %v3696_v5, %v10687_v14  ;;  %v3206_v44 = vadd.f32 %v3044_v41, %v10693_v46  ;;  %v10884_v38 = vmul.f32 %v10671_v9, %v10465_v52 }
 0x328   :  { %v5938_v28 = vpop.f32.mrf.mxu0  ;;  %v2394_v8 = vadd.f32 %v2232_v25, %v2064_v45  ;;  %v10897_v59 = vmul.f32 %v10399_v39, %v10496_v30  ;;  %v2065_v52 = vmul.f32 %v10152_v43, %v10838_v12 }
 0x329   :  { %12677 = vst [vmem:[#allocation165_spill] sm:$0xff] %v10870_v62  ;;  %12678 = vst [vmem:[#allocation166_spill] sm:$0xff] %v10884_v38  ;;  %v10887_v14 = vadd.f32 %v10639_v53, %v3858_v7  ;;  %v3697_v46 = vmul.f32 %v10544_v42, %v10870_v62  ;;  %v10891_v60 = vadd.f32 %v3373_v63, %v3206_v44 }
 0x32a   :  { %v3045_v5 = vmul.f32 %v10267_v54, %v10870_v62  ;;  %v1367_v41 = vpop.f32.mrf.mxu0  ;;  %v10899_v45 = vadd.f32 %v2721_v48, %v2394_v8  ;;  %v2233_v53 = vmul.f32 %v10159_v18, %v10870_v62  ;;  %v10914_v8 = vmul.f32 %v10399_v39, %v10527_v36 }
 0x32b   :  { %12679 = vst [vmem:[#allocation167_spill] sm:$0xff] %v10887_v14  ;;  %v10906_v25 = vadd.f32 %v10117_v22, %v1367_v41  ;;  %v3859_v7 = vadd.f32 %v3697_v46, %v10723_v34  ;;  %v2722_v38 = vmul.f32 %v10177_v1, %v10804_v24  ;;  %v10920_v41 = vmul.f32 %v10671_v9, %v10496_v30 }
 0x32c   :  { %v3207_v44 = vadd.f32 %v3045_v5, %v10733_v23  ;;  %v5941_v28 = vpop.f32.mrf.mxu0  ;;  %v2395_v48 = vadd.f32 %v2233_v53, %v2065_v52  ;;  %v2066_v52 = vmul.f32 %v10152_v43, %v10870_v62 }
 0x32d   :  { %12680 = vst [vmem:[#allocation168_spill] sm:$0xff] %v10906_v25  ;;  %v3698_v63 = vmul.f32 %v10544_v42, %v10906_v25  ;;  %v10925_v34 = vadd.f32 %v10653_v4, %v3859_v7  ;;  %v3046_v23 = vmul.f32 %v10267_v54, %v10906_v25  ;;  %v2234_v53 = vmul.f32 %v10159_v18, %v10906_v25 }
 0x32e   :  { %v10929_v46 = vadd.f32 %v3374_v49, %v3207_v44  ;;  %v1370_v5 = vpop.f32.mrf.mxu0  ;;  %v10935_v30 = vadd.f32 %v2722_v38, %v2395_v48  ;;  %v10939_v28 = vmul.f32 %v10671_v9, %v10527_v36  ;;  %v10948_v44 = vmul.f32 %v10399_v39, %v10561_v27 }
 0x32f   :  { %12681 = vst [vmem:[#allocation169_spill] sm:$0xff] %v10925_v34  ;;  %v10942_v4 = vadd.f32 %v10117_v22, %v1370_v5  ;;  %v3860_v7 = vadd.f32 %v3698_v63, %v10757_v17  ;;  %v3208_v49 = vadd.f32 %v3046_v23, %v10763_v13  ;;  %v2396_v14 = vadd.f32 %v2234_v53, %v2066_v52 }
 0x330   :  { %12682 = vst [vmem:[#allocation170_spill] sm:$0xff] %v10939_v28  ;;  %v5942_v35 = vpop.f32.mrf.mxu0  ;;  %v2723_v38 = vmul.f32 %v10177_v1, %v10838_v12  ;;  %v10954_v36 = vmul.f32 %v10399_v39, %v10594_v56  ;;  %v10958_v48 = vmul.f32 %v10671_v9, %v10561_v27  ;;  %v2067_v52 = vmul.f32 %v10152_v43, %v10906_v25 }
 0x331   :  { %12683 = vst [vmem:[#allocation171_spill] sm:$0xff] %v10942_v4  ;;  %v10961_v17 = vadd.f32 %v10675_v19, %v3860_v7  ;;  %v3699_v13 = vmul.f32 %v10544_v42, %v10942_v4  ;;  %v10965_v63 = vadd.f32 %v3375_v15, %v3208_v49  ;;  %v3047_v35 = vmul.f32 %v10267_v54, %v10942_v4 }
 0x332   :  { %v1375_v23 = vpop.f32.mrf.mxu0  ;;  %v10969_v5 = vadd.f32 %v2723_v38, %v2396_v14  ;;  %v2235_v27 = vmul.f32 %v10159_v18, %v10942_v4  ;;  %v10977_v19 = vmul.f32 %v10671_v9, %v10594_v56  ;;  %v10988_v38 = vmul.f32 %v10399_v39, %v10627_v3 }
 0x333   :  { %12684 = vst [vmem:[#allocation172_spill] sm:$0xff] %v10961_v17  ;;  %v10980_v53 = vadd.f32 %v10117_v22, %v1375_v23  ;;  %v3861_v7 = vadd.f32 %v3699_v13, %v10791_v21  ;;  %v3209_v14 = vadd.f32 %v3047_v35, %v10797_v58  ;;  %v2724_v56 = vmul.f32 %v10177_v1, %v10870_v62 }
 0x334   :  { %v5945_v49 = vpop.f32.mrf.mxu0  ;;  %v2397_v28 = vadd.f32 %v2235_v27, %v2067_v52  ;;  %v10994_v23 = vmul.f32 %v10671_v9, %v10627_v3  ;;  %v2068_v52 = vmul.f32 %v10152_v43, %v10942_v4 }
 0x335   :  { %12685 = vst [vmem:[#allocation173_spill] sm:$0xff] %v10980_v53  ;;  %v3700_v15 = vmul.f32 %v10544_v42, %v10980_v53  ;;  %v10999_v21 = vadd.f32 %v10679_v31, %v3861_v7  ;;  %v3048_v58 = vmul.f32 %v10267_v54, %v10980_v53  ;;  %v11003_v13 = vadd.f32 %v3376_v29, %v3209_v14 }
 0x336   :  { %v1378_v35 = vpop.f32.mrf.mxu0  ;;  %v2236_v27 = vmul.f32 %v10159_v18, %v10980_v53  ;;  %v11009_v3 = vadd.f32 %v2724_v56, %v2397_v28  ;;  %v11013_v49 = vmul.f32 %v10399_v39, %v10662_v6  ;;  %v11022_v14 = vmul.f32 %v10671_v9, %v10662_v6 }
 0x337   :  { %12686 = vst [vmem:[#allocation174_spill] sm:$0xff] %v10999_v21  ;;  %v11016_v31 = vadd.f32 %v10117_v22, %v1378_v35  ;;  %v3862_v7 = vadd.f32 %v3700_v15, %v10823_v32  ;;  %v3210_v29 = vadd.f32 %v3048_v58, %v10827_v57  ;;  %v2725_v28 = vmul.f32 %v10177_v1, %v10906_v25 }
 0x338   :  { %12687 = vst [vmem:[#allocation175_spill] sm:$0xff] %v11022_v14  ;;  %v5946_v34 = vpop.f32.mrf.mxu0  ;;  %v2398_v17 = vadd.f32 %v2236_v27, %v2068_v52  ;;  %v11028_v56 = vmul.f32 %v10399_v39, %v10700_v47  ;;  %v11032_v35 = vmul.f32 %v10671_v9, %v10700_v47  ;;  %v2069_v47 = vmul.f32 %v10152_v43, %v10980_v53 }
 0x339   :  { %v11035_v32 = vadd.f32 %v10708_v61, %v3862_v7  ;;  %v3701_v6 = vmul.f32 %v10544_v42, %v11016_v31  ;;  %v11040_v57 = vadd.f32 %v10897_v59, %v3210_v29  ;;  %v11044_v34 = vmul.f32 %v10399_v39, %v10736_v11 }
 0x33a   :  { %12688 = vst [vmem:[#allocation176_spill] sm:$0xff] %v11032_v35  ;;  %v1383_v15 = vpop.f32.mrf.mxu0  ;;  %v3049_v58 = vmul.f32 %v10267_v54, %v11016_v31  ;;  %v11048_v52 = vadd.f32 %v2725_v28, %v2398_v17  ;;  %v2237_v61 = vmul.f32 %v10159_v18, %v11016_v31  ;;  %v11062_v29 = vmul.f32 %v10671_v9, %v10736_v11 }
 0x33b   :  { %12689 = vst [vmem:[#allocation177_spill] sm:$0xff] %v11035_v32  ;;  %v11055_v27 = vadd.f32 %v10117_v22, %v1383_v15  ;;  %v3863_v7 = vadd.f32 %v3701_v6, %v10859_v33  ;;  %v2726_v14 = vmul.f32 %v10177_v1, %v10942_v4  ;;  %v11069_v22 = vmul.f32 %v10399_v39, %v10770_v50 }
 0x33c   :  { %12690 = vst [vmem:[#allocation178_spill] sm:$0xff] %v11062_v29  ;;  %v5949_v17 = vpop.f32.mrf.mxu0  ;;  %v3211_v28 = vadd.f32 %v3049_v58, %v10867_v16  ;;  %v2399_v35 = vadd.f32 %v2237_v61, %v2069_v47  ;;  %v11080_v16 = vmul.f32 %v10671_v9, %v10770_v50  ;;  %v2070_v47 = vmul.f32 %v10152_v43, %v11016_v31 }
 0x33d   :  { %v3702_v15 = vmul.f32 %v10544_v42, %v11055_v27  ;;  %v11074_v33 = vadd.f32 %v10712_v37, %v3863_v7  ;;  %v3050_v11 = vmul.f32 %v10267_v54, %v11055_v27  ;;  %v2238_v61 = vmul.f32 %v10159_v18, %v11055_v27  ;;  %v11094_v37 = vld [vmem:[%s12245_s2] ss:$0 sm:$0xff] }
 0x33e   :  { %12692 = vst [vmem:[#allocation180_spill] sm:$0xff] %v11080_v16  ;;  %v1386_v6 = vpop.f32.mrf.mxu0  ;;  %v11083_v58 = vadd.f32 %v10914_v8, %v3211_v28  ;;  %v11089_v17 = vadd.f32 %v2726_v14, %v2399_v35  ;;  %v11103_v43 = vmul.f32 %v10399_v39, %v10804_v24  ;;  %v2727_v14 = vmul.f32 %v10177_v1, %v10980_v53 }
 0x33f   :  { %12691 = vst [vmem:[#allocation179_spill] sm:$0xff] %v11074_v33  ;;  %v11097_v50 = vadd.f32 %v11094_v37, %v1386_v6  ;;  %v3864_v7 = vadd.f32 %v3702_v15, %v10891_v60  ;;  %v3212_v8 = vadd.f32 %v3050_v11, %v10899_v45  ;;  %v2400_v18 = vadd.f32 %v2238_v61, %v2070_v47 }
 0x340   :  { %v5950_v28 = vpop.f32.mrf.mxu0  ;;  %v11109_v35 = vmul.f32 %v10399_v39, %v10838_v12  ;;  %v11113_v6 = vmul.f32 %v10671_v9, %v10804_v24  ;;  %v11125_v1 = vmul.f32 %v10399_v39, %v10870_v62  ;;  %v11159_v62 = vld [vmem:[%s12246_s7 + $0x2] ss:$0 sm:$0xff] }
 0x341   :  { %v11116_v60 = vadd.f32 %v10727_v55, %v3864_v7  ;;  %v3703_v45 = vmul.f32 %v10544_v42, %v11097_v50  ;;  %v11121_v15 = vadd.f32 %v10948_v44, %v3212_v8  ;;  %v3051_v47 = vmul.f32 %v10267_v54, %v11097_v50  ;;  %v11134_v55 = vld [vmem:[%s12246_s7] ss:$0 sm:$0xff]  ;;  %v11141_v44 = vld [vmem:[%s12246_s7 + $0x1] ss:$0 sm:$0xff] }
 0x342   :  { %12693 = vst [vmem:[#allocation181_spill] sm:$0xff] %v11113_v6  ;;  %v1391_v11 = vpop.f32.mrf.mxu0  ;;  %v11129_v61 = vadd.f32 %v2727_v14, %v2400_v18  ;;  %v2071_v24 = vmul.f32 %v11134_v55, %v11055_v27  ;;  %v2239_v7 = vmul.f32 %v11141_v44, %v11097_v50  ;;  %v11153_v14 = vmul.f32 %v10399_v39, %v10906_v25 }
 0x343   :  { %12694 = vst [vmem:[#allocation182_spill] sm:$0xff] %v11116_v60  ;;  %v11146_v8 = vadd.f32 %v11094_v37, %v1391_v11  ;;  %v3865_v18 = vadd.f32 %v3703_v45, %v10929_v46  ;;  %v3213_v21 = vadd.f32 %v3051_v47, %v10935_v30  ;;  %v2728_v11 = vmul.f32 %v11159_v62, %v11016_v31 }
 0x344   :  { %v5953_v59 = vpop.f32.mrf.mxu0  ;;  %v2401_v32 = vadd.f32 %v2239_v7, %v2071_v24  ;;  %v11165_v28 = vmul.f32 %v10399_v39, %v10942_v4  ;;  %v11176_v45 = vmul.f32 %v10399_v39, %v10980_v53  ;;  %v2072_v7 = vmul.f32 %v11134_v55, %v11097_v50 }
 0x345   :  { %12695 = vst [vmem:[#allocation183_spill] sm:$0xff] %v11146_v8  ;;  %v3704_v46 = vmul.f32 %v10544_v42, %v11146_v8  ;;  %v11170_v59 = vadd.f32 %v10746_v26, %v3865_v18  ;;  %v3052_v30 = vmul.f32 %v10267_v54, %v11146_v8  ;;  %v11179_v24 = vadd.f32 %v10954_v36, %v3213_v21 }
 0x346   :  { %12696 = vst [vmem:[#allocation184_spill] sm:$0xff] %v11165_v28  ;;  %v1394_v47 = vpop.f32.mrf.mxu0  ;;  %v2240_v33 = vmul.f32 %v11141_v44, %v11146_v8  ;;  %v11185_v60 = vadd.f32 %v2728_v11, %v2401_v32  ;;  %v11192_v18 = vmul.f32 %v10671_v9, %v11016_v31  ;;  %v11198_v4 = vmul.f32 %v10671_v9, %v11055_v27 }
 0x347   :  { %12697 = vst [vmem:[#allocation185_spill] sm:$0xff] %v11170_v59  ;;  %v11188_v26 = vadd.f32 %v11094_v37, %v1394_v47  ;;  %v3866_v53 = vadd.f32 %v3704_v46, %v10965_v63  ;;  %v3214_v36 = vadd.f32 %v3052_v30, %v10969_v5  ;;  %v2729_v32 = vmul.f32 %v11159_v62, %v11055_v27 }
 0x348   :  { %12699 = vst [vmem:[#allocation187_spill] sm:$0xff] %v11192_v18  ;;  %v5954_v21 = vpop.f32.mrf.mxu0  ;;  %v2402_v25 = vadd.f32 %v2240_v33, %v2072_v7  ;;  %v11204_v11 = vmul.f32 %v10399_v39, %v11016_v31  ;;  %v11216_v46 = vmul.f32 %v10399_v39, %v11055_v27  ;;  %v2730_v6 = vmul.f32 %v11159_v62, %v11097_v50 }
 0x349   :  { %12698 = vst [vmem:[#allocation186_spill] sm:$0xff] %v11188_v26  ;;  %v11207_v47 = vadd.f32 %v10750_v2, %v3866_v53  ;;  %v3705_v63 = vmul.f32 %v10544_v42, %v11188_v26  ;;  %v11212_v5 = vadd.f32 %v10988_v38, %v3214_v36  ;;  %v3053_v30 = vmul.f32 %v10267_v54, %v11188_v26 }
 0x34a   :  { %12700 = vst [vmem:[#allocation188_spill] sm:$0xff] %v11204_v11  ;;  %12702 = vst [vmem:[#allocation190_spill] sm:$0xff] %v11216_v46  ;;  %v1399_v33 = vpop.f32.mrf.mxu0  ;;  %v11220_v7 = vadd.f32 %v2729_v32, %v2402_v25  ;;  %v2073_v2 = vmul.f32 %v11134_v55, %v11146_v8  ;;  %v2241_v53 = vmul.f32 %v11141_v44, %v11188_v26  ;;  %v12709_v11 = vld [vmem:[#allocation14_spill] sm:$0xff] }
 0x34b   :  { %12701 = vst [vmem:[#allocation189_spill] sm:$0xff] %v11207_v47  ;;  %v11227_v31 = vadd.f32 %v11094_v37, %v1399_v33  ;;  %v11231_v38 = vmul.f32 %v10671_v9, %v11097_v50  ;;  %v3867_v36 = vadd.f32 %v3705_v63, %v11003_v13  ;;  %v3215_v21 = vadd.f32 %v3053_v30, %v11009_v3 }
 0x34c   :  { %v5957_v25 = vpop.f32.mrf.mxu0  ;;  %v2403_v32 = vadd.f32 %v2241_v53, %v2073_v2  ;;  %v11241_v33 = vmul.f32 %v10399_v39, %v11097_v50  ;;  %v11245_v12 = vmul.f32 %v10671_v9, %v11146_v8  ;;  %v2074_v50 = vmul.f32 %v11134_v55, %v11188_v26 }
 0x34d   :  { %12703 = vst [vmem:[#allocation191_spill] sm:$0xff] %v11227_v31  ;;  %v3706_v27 = vmul.f32 %v10544_v42, %v11227_v31  ;;  %v11250_v13 = vadd.f32 %v10782_v51, %v3867_v36  ;;  %v3054_v3 = vmul.f32 %v10267_v54, %v11227_v31  ;;  %v11255_v30 = vadd.f32 %v11013_v49, %v3215_v21 }
 0x34e   :  { %12704 = vst [vmem:[#allocation192_spill] sm:$0xff] %v11241_v33  ;;  %v1402_v63 = vpop.f32.mrf.mxu0  ;;  %v2242_v2 = vmul.f32 %v11141_v44, %v11227_v31  ;;  %v11261_v53 = vadd.f32 %v2730_v6, %v2403_v32  ;;  %v2731_v54 = vmul.f32 %v11159_v62, %v11146_v8  ;;  %v11270_v49 = vmul.f32 %v10671_v9, %v11188_v26 }
 0x34f   :  { %12705 = vst [vmem:[#allocation193_spill] sm:$0xff] %v11250_v13  ;;  %v1403_v25 = vadd.f32 %v11094_v37, %v1402_v63  ;;  %v3868_v51 = vadd.f32 %v3706_v27, %v11040_v57  ;;  %v3216_v36 = vadd.f32 %v3054_v3, %v11048_v52  ;;  %v11274_v21 = vmul.f32 %v10671_v9, %v11227_v31 }
 0x350   :  { %v5958_v59 = vpop.f32.mrf.mxu0  ;;  %v2404_v6 = vadd.f32 %v2242_v2, %v2074_v50  ;;  %v2732_v32 = vmul.f32 %v11159_v62, %v11188_v26  ;;  %v2733_v27 = vmul.f32 %v11159_v62, %v11227_v31 }
 0x351   :  { %v11279_v57 = vadd.f32 %v10801_v10, %v3868_v51  ;;  %v3707_v52 = vmul.f32 %v10544_v42, %v1403_v25  ;;  %v2075_v59 = vmul.f32 %v11134_v55, %v11227_v31  ;;  %v11287_v63 = vmul.f32 %v10399_v39, %v1403_v25  ;;  %v11295_v10 = vld [vmem:[%s12246_s7 + $0x3] ss:$0 sm:$0xff] }
 0x352   :  { %v1407_v3 = vpop.f32.mrf.mxu0  ;;  %v11290_v50 = vadd.f32 %v11028_v56, %v3216_v36  ;;  %v3055_v2 = vmul.f32 %v11295_v10, %v1403_v25  ;;  %v11298_v51 = vadd.f32 %v2731_v54, %v2404_v6  ;;  %v2243_v56 = vmul.f32 %v11141_v44, %v1403_v25 }
 0x353   :  { %12706 = vst [vmem:[#allocation194_spill] sm:$0xff] %v11279_v57  ;;  %v11301_v47 = vadd.f32 %v11094_v37, %v1407_v3  ;;  %v3869_v26 = vadd.f32 %v3707_v52, %v11083_v58  ;;  %v11308_v33 = vmul.f32 %v10671_v9, %v1403_v25  ;;  %v2076_v46 = vmul.f32 %v11134_v55, %v1403_v25  ;;  %v12708_v52 = vld [vmem:[#allocation161_spill] sm:$0xff] }
 0x354   :  { %v5961_v36 = vpop.f32.mrf.mxu0  ;;  %v3217_v8 = vadd.f32 %v3055_v2, %v11089_v17  ;;  %v11313_v54 = vmul.f32 %v11159_v62, %v1403_v25  ;;  %v2405_v13 = vadd.f32 %v2243_v56, %v2075_v59  ;;  %v12711_v59 = vld [vmem:[#allocation23_spill] sm:$0xff] }
 0x355   :  { %v3237_v6 = vmul.f32 %v10399_v39, %v11301_v47  ;;  %v3901_v3 = vmul.f32 %v10671_v9, %v11301_v47  ;;  %v3708_v58 = vmul.f32 %v10544_v42, %v11301_v47  ;;  %v11322_v36 = vadd.f32 %v12708_v52, %v3869_v26 }
 0x356   :  { %12707 = vst [vmem:[#allocation195_spill] sm:$0xff] %v11313_v54  ;;  %v1410_v31 = vpop.f32.mrf.mxu0  ;;  %v3056_v17 = vmul.f32 %v11295_v10, %v11301_v47  ;;  %v11327_v2 = vadd.f32 %v11044_v34, %v3217_v8  ;;  %v2244_v25 = vmul.f32 %v11141_v44, %v11301_v47  ;;  %v12710_v54 = vld [vmem:[#allocation30_spill] sm:$0xff]  ;;  %v11340_v34 = vadd.f32 %v2732_v32, %v2405_v13 }
 0x357   :  { %v11332_v57 = vadd.f32 %v11094_v37, %v1410_v31  ;;  %v3399_v29 = vadd.f32 %v3237_v6, %v12709_v11  ;;  %v11336_v16 = vadd.f32 %v3901_v3, %v12710_v54  ;;  %v3870_v26 = vadd.f32 %v3708_v58, %v11121_v15  ;;  %v12712_v3 = vld [vmem:[#allocation16_spill] sm:$0xff] }
 0x358   :  { %v5962_v52 = vpop.f32.mrf.mxu0  ;;  %v3218_v18 = vadd.f32 %v3056_v17, %v11129_v61  ;;  %v2406_v28 = vadd.f32 %v2244_v25, %v2076_v46  ;;  %v11344_v8 = vmul.f32 %v11134_v55, %v11301_v47 }
 0x359   :  { %v3728_v31 = vadd.f32 %v12711_v59, %v3399_v29  ;;  %v3238_v11 = vmul.f32 %v10399_v39, %v11332_v57  ;;  %v3902_v56 = vmul.f32 %v10671_v9, %v11332_v57  ;;  %v11352_v15 = vadd.f32 %v10835_v0, %v3870_v26  ;;  %v12713_v0 = vld [vmem:[#allocation31_spill] sm:$0xff] }
 0x35a   :  { %v1415_v54 = vpop.f32.mrf.mxu0  ;;  %v3709_v61 = vmul.f32 %v10544_v42, %v11332_v57  ;;  %v3547_v46 = vadd.f32 %v11069_v22, %v3218_v18  ;;  %v3057_v13 = vmul.f32 %v11295_v10, %v11332_v57  ;;  %v2895_v32 = vadd.f32 %v2733_v27, %v2406_v28  ;;  %v12714_v18 = vld [vmem:[#allocation3_spill] sm:$0xff] }
 0x35b   :  { %v11360_v29 = vadd.f32 %v11094_v37, %v1415_v54  ;;  %v11363_v6 = vadd.f32 %v11198_v4, %v3728_v31  ;;  %v3400_v58 = vadd.f32 %v3238_v11, %v12712_v3  ;;  %v11367_v17 = vadd.f32 %v3902_v56, %v12713_v0  ;;  %v12715_v4 = vld [vmem:[#allocation25_spill] sm:$0xff] }
 0x35c   :  { %v5965_v25 = vpop.f32.mrf.mxu0  ;;  %v3871_v22 = vadd.f32 %v3709_v61, %v11179_v24  ;;  %v3876_v52 = vadd.f32 %v12714_v18, %v3547_v46  ;;  %v3219_v28 = vadd.f32 %v3057_v13, %v11185_v60  ;;  %v12716_v46 = vld [vmem:[#allocation18_spill] sm:$0xff] }
 0x35d   :  { %v3239_v27 = vmul.f32 %v10399_v39, %v11360_v29  ;;  %v3729_v59 = vadd.f32 %v12715_v4, %v3400_v58  ;;  %v3903_v31 = vmul.f32 %v10671_v9, %v11360_v29  ;;  %v3710_v11 = vmul.f32 %v10544_v42, %v11360_v29  ;;  %v12717_v58 = vld [vmem:[#allocation33_spill] sm:$0xff] }
 0x35e   :  { %v1418_v56 = vpop.f32.mrf.mxu0  ;;  %v11382_v54 = vadd.f32 %v10850_v20, %v3871_v22  ;;  %v11385_v24 = vadd.f32 %v10958_v48, %v3876_v52  ;;  %v3058_v60 = vmul.f32 %v11295_v10, %v11360_v29  ;;  %v3548_v39 = vadd.f32 %v11103_v43, %v3219_v28  ;;  %v12718_v22 = vld [vmem:[#allocation4_spill] sm:$0xff]  ;;  %v12720_v28 = vld [vmem:[#allocation26_spill] sm:$0xff] }
 0x35f   :  { %v11391_v61 = vadd.f32 %v11094_v37, %v1418_v56  ;;  %v3401_v13 = vadd.f32 %v3239_v27, %v12716_v46  ;;  %v11395_v3 = vadd.f32 %v11231_v38, %v3729_v59  ;;  %v11398_v0 = vadd.f32 %v3903_v31, %v12717_v58  ;;  %v12719_v52 = vld [vmem:[#allocation128_spill] sm:$0xff]  ;;  %v11410_v38 = vld [vmem:[%s12246_s7 + $0x4] ss:$0 sm:$0xff]  ;;  %v12722_v58 = vld [vmem:[#allocation34_spill] sm:$0xff] }
 0x360   :  { %v5966_v20 = vpop.f32.mrf.mxu0  ;;  %v3872_v48 = vadd.f32 %v3710_v11, %v11212_v5  ;;  %v3220_v25 = vadd.f32 %v3058_v60, %v11220_v7  ;;  %v3877_v18 = vadd.f32 %v12718_v22, %v3548_v39  ;;  %v11404_v43 = vadd.f32 %v12719_v52, %v2895_v32  ;;  %v12721_v46 = vld [vmem:[#allocation20_spill] sm:$0xff]  ;;  %v12724_v52 = vld [vmem:[#allocation27_spill] sm:$0xff] }
 0x361   :  { %v3730_v4 = vadd.f32 %v12720_v28, %v3401_v13  ;;  %v3240_v27 = vmul.f32 %v11410_v38, %v11391_v61  ;;  %v4222_v5 = vpack.c.bf16 %v11398_v0, %v11367_v17  ;;  %v3904_v7 = vmul.f32 %v10671_v9, %v11391_v61  ;;  %v12777_v0 = vld [vmem:[#allocation42_spill] sm:$0xff] }
 0x362   :  { %v1423_v59 = vpop.f32.mrf.mxu0  ;;  %v11419_v32 = vadd.f32 %v10876_v40, %v3872_v48  ;;  %v3711_v31 = vmul.f32 %v10544_v42, %v11391_v61  ;;  %v3549_v11 = vadd.f32 %v11109_v35, %v3220_v25  ;;  %v11425_v56 = vadd.f32 %v10977_v19, %v3877_v18  ;;  %v12723_v25 = vld [vmem:[#allocation5_spill] sm:$0xff] }
 0x363   :  { %v11428_v60 = vadd.f32 %v11094_v37, %v1423_v59  ;;  %v11431_v39 = vadd.f32 %v11245_v12, %v3730_v4  ;;  %v3402_v13 = vadd.f32 %v3240_v27, %v12721_v46  ;;  %v11435_v20 = vadd.f32 %v3904_v7, %v12722_v58  ;;  %v12725_v7 = vld [vmem:[#allocation166_spill] sm:$0xff] }
 0x364   :  { %v5969_v40 = vpop.f32.mrf.mxu0  ;;  %v3873_v35 = vadd.f32 %v3711_v31, %v11255_v30  ;;  %v3878_v19 = vadd.f32 %v12723_v25, %v3549_v11  ;;  %v3059_v22 = vmul.f32 %v11295_v10, %v11391_v61  ;;  %v12727_v25 = vld [vmem:[#allocation36_spill] sm:$0xff] }
 0x365   :  { %v4219_v12 = vpack.c.bf16 %v11431_v39, %v11395_v3  ;;  %v3241_v18 = vmul.f32 %v11410_v38, %v11428_v60  ;;  %v3731_v28 = vadd.f32 %v12724_v52, %v3402_v13  ;;  %v3905_v4 = vmul.f32 %v10671_v9, %v11428_v60  ;;  %v12726_v13 = vld [vmem:[#allocation22_spill] sm:$0xff] }
 0x366   :  { %v1426_v27 = vpop.f32.mrf.mxu0  ;;  %v3712_v30 = vmul.f32 %v10544_v42, %v11428_v60  ;;  %v11453_v59 = vadd.f32 %v12725_v7, %v3873_v35  ;;  %v11456_v31 = vadd.f32 %v10994_v23, %v3878_v19  ;;  %v3060_v11 = vmul.f32 %v11295_v10, %v11428_v60 }
 0x367   :  { %v11461_v46 = vadd.f32 %v11094_v37, %v1426_v27  ;;  %v3403_v58 = vadd.f32 %v3241_v18, %v12726_v13  ;;  %v11465_v40 = vadd.f32 %v11270_v49, %v3731_v28  ;;  %v11468_v52 = vadd.f32 %v3905_v4, %v12727_v25  ;;  %v12728_v18 = vld [vmem:[#allocation28_spill] sm:$0xff]  ;;  %v12731_v25 = vld [vmem:[#allocation37_spill] sm:$0xff] }
 0x368   :  { %v5970_v48 = vpop.f32.mrf.mxu0  ;;  %v3874_v35 = vadd.f32 %v3712_v30, %v11290_v50  ;;  %v3221_v19 = vadd.f32 %v3059_v22, %v11261_v53  ;;  %v3222_v7 = vadd.f32 %v3060_v11, %v11298_v51  ;;  %v12729_v22 = vld [vmem:[#allocation6_spill] sm:$0xff]  ;;  %v12730_v11 = vld [vmem:[#allocation24_spill] sm:$0xff] }
 0x369   :  { %v2578_v37 = vmul.f32 %v11159_v62, %v11461_v46  ;;  %v3732_v27 = vadd.f32 %v12728_v18, %v3403_v58  ;;  %v3242_v49 = vmul.f32 %v11410_v38, %v11461_v46  ;;  %v4223_v48 = vpack.c.bf16 %v11468_v52, %v11435_v20  ;;  %v12780_v52 = vld [vmem:[#allocation44_spill] sm:$0xff] }
 0x36a   :  { %v3906_v50 = vmul.f32 %v10671_v9, %v11461_v46  ;;  %v11485_v28 = vadd.f32 %v10920_v41, %v3874_v35  ;;  %v3713_v53 = vmul.f32 %v10544_v42, %v11461_v46  ;;  %v3550_v51 = vadd.f32 %v11125_v1, %v3221_v19  ;;  %v12732_v42 = vld [vmem:[#allocation108_spill] sm:$0xff]  ;;  %v12733_v1 = vld [vmem:[#allocation11_spill] sm:$0xff] }
 0x36b   :  { %v2740_v4 = vadd.f32 %v2578_v37, %v12729_v22  ;;  %v11492_v30 = vadd.f32 %v11274_v21, %v3732_v27  ;;  %v3404_v13 = vadd.f32 %v3242_v49, %v12730_v11  ;;  %v3551_v58 = vadd.f32 %v11153_v14, %v3222_v7  ;;  %v12734_v37 = vld [vmem:[#allocation29_spill] sm:$0xff]  ;;  %v12735_v49 = vld [vmem:[#allocation8_spill] sm:$0xff]  ;;  %v12736_v14 = vld [vmem:[#allocation38_spill] sm:$0xff] }
 0x36c   :  { %v11497_v18 = vadd.f32 %v3906_v50, %v12731_v25  ;;  %v3875_v35 = vadd.f32 %v3713_v53, %v11327_v2  ;;  %v3879_v23 = vadd.f32 %v12732_v42, %v3550_v51  ;;  %v12737_v50 = vld [vmem:[#allocation170_spill] sm:$0xff]  ;;  %v12738_v25 = vld [vmem:[#allocation175_spill] sm:$0xff]  ;;  %v3061_v2 = vmul.f32 %v11295_v10, %v11461_v46  ;;  %v12740_v10 = vld [vmem:[#allocation21_spill] sm:$0xff] }
 0x36d   :  { %v3069_v19 = vadd.f32 %v12733_v1, %v2740_v4  ;;  %v4220_v21 = vpack.c.bf16 %v11492_v30, %v11465_v40  ;;  %v3733_v27 = vadd.f32 %v12734_v37, %v3404_v13  ;;  %v3880_v22 = vadd.f32 %v12735_v49, %v3551_v58  ;;  %v12739_v4 = vld [vmem:[#allocation176_spill] sm:$0xff]  ;;  %v6430_v40 = vld [vmem:[%s12248_s5 + $0x38] sm:$0xff]  }
 0x36e   :  { %v4224_v7 = vpack.c.bf16 %v12736_v14, %v11497_v18  ;;  %v11511_v11 = vadd.f32 %v12737_v50, %v3875_v35  ;;  %v11514_v41 = vadd.f32 %v12738_v25, %v3879_v23  ;;  %v3553_v58 = vadd.f32 %v11176_v45, %v11404_v43  ;;  %v12741_v45 = vld [vmem:[#allocation10_spill] sm:$0xff]  ;;  %v12742_v37 = vld [vmem:[#allocation184_spill] sm:$0xff]  ;;  %v12743_v50 = vld [vmem:[#allocation187_spill] sm:$0xff]  ;;  %6312 = vmatpush3.bf16.msra.mxu0 %v6430_v40 }
 0x36f   :  { %v3398_v53 = vadd.f32 %v11287_v63, %v3069_v19  ;;  %v11520_v51 = vadd.f32 %v11308_v33, %v3733_v27  ;;  %v11523_v13 = vadd.f32 %v12739_v4, %v3880_v22  ;;  %v3223_v23 = vadd.f32 %v3061_v2, %v11340_v34  ;;  %v12744_v2 = vld [vmem:[#allocation180_spill] sm:$0xff]  ;;  %v12755_v35 = vld [vmem:[#allocation138_spill] sm:$0xff]  ;;  %v12783_v18 = vld [vmem:[#allocation47_spill] sm:$0xff] }
 0x370   :  { %v2078_v42 = vmul.f32 %v11134_v55, %v11332_v57  ;;  %v2245_v63 = vmul.f32 %v11141_v44, %v11332_v57  ;;  %v3882_v43 = vadd.f32 %v12741_v45, %v3553_v58  ;;  %v2246_v34 = vmul.f32 %v11141_v44, %v11360_v29 }
 0x371   :  { %v3727_v33 = vadd.f32 %v12740_v10, %v3398_v53  ;;  %v4221_v1 = vpack.c.bf16 %v11336_v16, %v11520_v51  ;;  %v3552_v27 = vadd.f32 %v12742_v37, %v3223_v23  ;;  %v2735_v22 = vmul.f32 %v11159_v62, %v11301_v47  ;;  %v12745_v23 = vld [vmem:[#allocation9_spill] sm:$0xff]  ;;  %v12746_v37 = vld [vmem:[#allocation195_spill] sm:$0xff]  ;;  %v12787_v51 = vld [vmem:[#allocation48_spill] sm:$0xff] }
 0x372   :  { %v2407_v49 = vadd.f32 %v2245_v63, %v11344_v8  ;;  %v11548_v53 = vadd.f32 %v12744_v2, %v3882_v43  ;;  %v2079_v4 = vmul.f32 %v11134_v55, %v11360_v29  ;;  %v2080_v58 = vmul.f32 %v11134_v55, %v11391_v61  ;;  %v12775_v16 = vld [vmem:[#allocation39_spill] sm:$0xff] }
 0x373   :  { %v4056_v25 = vadd.f32 %v12743_v50, %v3727_v33  ;;  %v3881_v10 = vadd.f32 %v12745_v23, %v3552_v27  ;;  %v2408_v45 = vadd.f32 %v2246_v34, %v2078_v42  ;;  %v2247_v8 = vmul.f32 %v11141_v44, %v11391_v61  ;;  %v12747_v50 = vld [vmem:[#allocation178_spill] sm:$0xff]  ;;  %v12748_v27 = vld [vmem:[#allocation132_spill] sm:$0xff] }
 0x374   :  { %v2896_v19 = vadd.f32 %v12746_v37, %v2407_v49  ;;  %v2248_v63 = vmul.f32 %v11141_v44, %v11428_v60  ;;  %v2736_v33 = vmul.f32 %v11159_v62, %v11332_v57  ;;  %v2737_v43 = vmul.f32 %v11159_v62, %v11360_v29 }
 0x375   :  { %v4218_v47 = vpack.c.bf16 %v11363_v6, %v4056_v25  ;;  %v11566_v2 = vadd.f32 %v12747_v50, %v3881_v10  ;;  %v2897_v42 = vadd.f32 %v2735_v22, %v2408_v45  ;;  %v2409_v49 = vadd.f32 %v2247_v8, %v2079_v4  ;;  %v12750_v22 = vld [vmem:[#allocation134_spill] sm:$0xff]  ;;  %v12751_v4 = vld [vmem:[#allocation188_spill] sm:$0xff] }
 0x376   :  { %v3225_v34 = vadd.f32 %v12748_v27, %v2896_v19  ;;  %v2410_v23 = vadd.f32 %v2248_v63, %v2080_v58  ;;  %v2081_v6 = vmul.f32 %v11134_v55, %v11428_v60  ;;  %v2082_v25 = vmul.f32 %v11134_v55, %v11461_v46  ;;  %v12753_v50 = vld [vmem:[#allocation190_spill] sm:$0xff] }
 0x377   :  { %5988 = vmatmul.mubr.bf16.vlgmr.msra.gmra.mxu1 %v4218_v47  ;;  %v2249_v57 = vmul.f32 %v11141_v44, %v11461_v46  ;;  %v12749_v37 = vmov 0.0   ;;  %v3226_v19 = vadd.f32 %v12750_v22, %v2897_v42  ;;  %v2898_v58 = vadd.f32 %v2736_v33, %v2409_v49  ;;  %v12752_v47 = vld [vmem:[#allocation130_spill] sm:$0xff]  ;;  %v12754_v46 = vld [vmem:[#allocation147_spill] sm:$0xff]  ;;  %v12757_v33 = vld [vmem:[#allocation140_spill] sm:$0xff] }
 0x378   :  { %5991 = vmatprep.mubr.msk.bf16.mxu1 %vm6479_vm0, %v12749_v37  ;;  %v3554_v10 = vadd.f32 %v12751_v4, %v3225_v34  ;;  %v2899_v45 = vadd.f32 %v2737_v43, %v2410_v23  ;;  %v2412_v63 = vadd.f32 %v12752_v47, %v2082_v25  ;;  %v2738_v55 = vmul.f32 %v11159_v62, %v11391_v61  ;;  %v12756_v42 = vld [vmem:[#allocation163_spill] sm:$0xff]  ;;  %v12759_v25 = vld [vmem:[#allocation12_spill] sm:$0xff] }
 0x379   :  { %v2411_v8 = vadd.f32 %v2249_v57, %v2081_v6  ;;  %v3555_v44 = vadd.f32 %v12753_v50, %v3226_v19  ;;  %v3227_v26 = vadd.f32 %v12755_v35, %v2898_v58  ;;  %v2739_v29 = vmul.f32 %v11159_v62, %v11428_v60  ;;  %v12758_v49 = vld [vmem:[#allocation183_spill] sm:$0xff]  ;;  %v12760_v57 = vld [vmem:[#allocation181_spill] sm:$0xff]  ;;  %v12761_v19 = vld [vmem:[#allocation192_spill] sm:$0xff]  ;;  %6313 = vmatprep.subr.bf16.mxu0 %v12749_v37 }
 0x37a   :  { %v3883_v27 = vadd.f32 %v12754_v46, %v3554_v10  ;;  %v4051_v34 = vmul.f32 %v10671_v9, %v12756_v42  ;;  %v3228_v43 = vadd.f32 %v12757_v33, %v2899_v45  ;;  %v3395_v23 = vmul.f32 %v11410_v38, %v12758_v49  ;;  %v12762_v58 = vld [vmem:[#allocation165_spill] sm:$0xff]  ;;  %v12763_v60 = vld [vmem:[#allocation142_spill] sm:$0xff] }
 0x37b   :  { %v2900_v6 = vadd.f32 %v2738_v55, %v2411_v8  ;;  %v3884_v61 = vadd.f32 %v12759_v25, %v3555_v44  ;;  %v3556_v4 = vadd.f32 %v12761_v19, %v3227_v26  ;;  %v2901_v35 = vadd.f32 %v2739_v29, %v2412_v63  ;;  %v12764_v50 = vld [vmem:[#allocation186_spill] sm:$0xff]  ;;  %v12765_v8 = vld [vmem:[#allocation13_spill] sm:$0xff]  ;;  %v12768_v26 = vld [vmem:[#allocation15_spill] sm:$0xff] }
 0x37c   :  { %v11596_v22 = vadd.f32 %v12760_v57, %v3883_v27  ;;  %v3557_v10 = vadd.f32 %v3395_v23, %v3228_v43  ;;  %v4052_v62 = vmul.f32 %v10671_v9, %v12762_v58  ;;  %v3396_v45 = vmul.f32 %v11410_v38, %v12764_v50  ;;  %v12766_v44 = vld [vmem:[#allocation145_spill] sm:$0xff]  ;;  %v12767_v27 = vld [vmem:[#allocation191_spill] sm:$0xff]  ;;  %v12769_v63 = vld [vmem:[#allocation168_spill] sm:$0xff] }
 0x37d   :  { %v3229_v47 = vadd.f32 %v12763_v60, %v2900_v6  ;;  %v11604_v46 = vadd.f32 %v4051_v34, %v3884_v61  ;;  %v3885_v55 = vadd.f32 %v12765_v8, %v3556_v4  ;;  %v3230_v42 = vadd.f32 %v12766_v44, %v2901_v35  ;;  %v6476_v34 = vld [vmem:[%s12246_s7 + $0x5] ss:$0 sm:$0xff]  ;;  %v12770_v23 = vld [vmem:[#allocation17_spill] sm:$0xff]  ;;  %v12790_v8 = vld [vmem:[#allocation32_spill] sm:$0xff] }
 0x37e   :  { %v3397_v33 = vmul.f32 %v11410_v38, %v12767_v27  ;;  %v3886_v29 = vadd.f32 %v12768_v26, %v3557_v10  ;;  %v4053_v43 = vmul.f32 %v10671_v9, %v12769_v63  ;;  %v3725_v6 = vmul.f32 %v6476_v34, %v12770_v23  ;;  %v12772_v19 = vld [vmem:[#allocation171_spill] sm:$0xff]  ;;  %v12773_v10 = vld [vmem:[#allocation173_spill] sm:$0xff]  ;;  %v12796_v26 = vld [vmem:[#allocation54_spill] sm:$0xff] }
 0x37f   :  { %5992 = vmatmul.mubr.bf16.gmra.mxu1 %v4219_v12  ;;  %v3558_v49 = vadd.f32 %v3396_v45, %v3229_v47  ;;  %v4296_v38 = vpack.c.bf16 %v11604_v46, %v11596_v22  ;;  %v11624_v3 = vadd.f32 %v4052_v62, %v3885_v55  ;;  %v12771_v12 = vld [vmem:[#allocation19_spill] sm:$0xff]  ;;  %v4054_v4 = vmul.f32 %v10671_v9, %v12772_v19  ;;  %v12792_v44 = vld [vmem:[#allocation53_spill] sm:$0xff]  ;;  %v12802_v23 = vld [vmem:[#allocation58_spill] sm:$0xff] }
 0x380   :  { %5995 = vmatprep.mubr.msk.bf16.mxu1 %vm6479_vm0, %v12749_v37  ;;  %v3559_v39 = vadd.f32 %v3397_v33, %v3230_v42  ;;  %v3726_v25 = vmul.f32 %v6476_v34, %v12771_v12  ;;  %v11627_v61 = vadd.f32 %v4053_v43, %v3886_v29  ;;  %v4055_v58 = vmul.f32 %v10671_v9, %v12773_v10  ;;  %v12774_v9 = vld [vmem:[#allocation40_spill] sm:$0xff]  ;;  %v12789_v45 = vld [vmem:[#allocation51_spill] sm:$0xff]  ;;  %v12798_v63 = vld [vmem:[#allocation57_spill] sm:$0xff] }
 0x381   :  { %v3887_v57 = vadd.f32 %v3725_v6, %v3558_v49  ;;  %v12776_v17 = vpack.c.bf16 %v12774_v9, %v12775_v16  ;;  %v12791_v55 = vpack.c.bf16 %v12789_v45, %v12790_v8  ;;  %v12793_v42 = vld [vmem:[#allocation52_spill] sm:$0xff]  ;;  %v12795_v33 = vld [vmem:[#allocation55_spill] sm:$0xff]  ;;  %v12805_v12 = vld [vmem:[#allocation61_spill] sm:$0xff] }
 0x382   :  { %v3888_v35 = vadd.f32 %v3726_v25, %v3559_v39  ;;  %v4297_v60 = vpack.c.bf16 %v11627_v61, %v11624_v3  ;;  %v12794_v27 = vpack.c.bf16 %v12792_v44, %v12793_v42  ;;  %v12797_v29 = vpack.c.bf16 %v12795_v33, %v12796_v26  ;;  %v12799_v43 = vld [vmem:[#allocation56_spill] sm:$0xff]  ;;  %v12804_v39 = vld [vmem:[#allocation63_spill] sm:$0xff]  ;;  %v12808_v19 = vld [vmem:[#allocation46_spill] sm:$0xff] }
 0x383   :  { %v11635_v47 = vadd.f32 %v4054_v4, %v3887_v57  ;;  %v12800_v49 = vpack.c.bf16 %v12798_v63, %v12799_v43  ;;  %v12801_v34 = vld [vmem:[#allocation60_spill] sm:$0xff]  ;;  %v12806_v25 = vpack.c.bf16 %v12804_v39, %v12805_v12  ;;  %v12807_v57 = vld [vmem:[#allocation35_spill] sm:$0xff]  ;;  %v12810_v10 = vld [vmem:[#allocation65_spill] sm:$0xff] }
 0x384   :  { %v11637_v62 = vadd.f32 %v4055_v58, %v3888_v35  ;;  %v12803_v6 = vpack.c.bf16 %v12801_v34, %v12802_v23  ;;  %v12809_v4 = vpack.c.bf16 %v12807_v57, %v12808_v19  ;;  %v6431_v35 = vld [vmem:[%s12248_s5 + $0x30] sm:$0xff]   ;;  %v12811_v58 = vld [vmem:[#allocation64_spill] sm:$0xff]  ;;  %v12813_v16 = vld [vmem:[#allocation67_spill] sm:$0xff] }
 0x385   :  { %v12812_v9 = vpack.c.bf16 %v12810_v10, %v12811_v58  ;;  %6314 = vmatpush3.bf16.msra.mxu0 %v6431_v35  ;;  %v11767_v8 = vld [vmem:[%s12249_s4] ss:$0 sm:$0xff]  ;;  %v12828_v63 = vld [vmem:[#allocation78_spill] sm:$0xff]  ;;  %v12829_v43 = vld [vmem:[#allocation77_spill] sm:$0xff] }
 0x386   :  { %v4298_v50 = vpack.c.bf16 %v11637_v62, %v11635_v47  ;;  %6315 = vmatprep.subr.bf16.mxu0 %v12749_v37  ;;  %v12832_v35 = vld [vmem:[#allocation79_spill] sm:$0xff] }
 0x387   :  { %5996 = vmatmul.mubr.bf16.gmra.mxu1 %v4220_v21  ;;  %v12784_v21 = vld [vmem:[#allocation45_spill] sm:$0xff] }
 0x388   :  { %5999 = vmatprep.mubr.msk.bf16.mxu1 %vm6479_vm0, %v12749_v37  ;;  %v12785_v14 = vpack.c.bf16 %v12783_v18, %v12784_v21  ;;  %v12822_v18 = vld [vmem:[#allocation75_spill] sm:$0xff]  ;;  %v12823_v21 = vld [vmem:[#allocation73_spill] sm:$0xff] }
 0x38f   :  { %6000 = vmatmul.mubr.bf16.gmra.mxu1 %v4221_v1 }
 0x390   :  { %6003 = vmatprep.mubr.msk.bf16.mxu1 %vm6479_vm0, %v12749_v37 }
 0x397   :  { %6004 = vmatmul.mubr.bf16.gmra.mxu1 %v4222_v5  ;;  %v12778_v5 = vld [vmem:[#allocation41_spill] sm:$0xff] }
 0x398   :  { %6007 = vmatprep.mubr.msk.bf16.mxu1 %vm6479_vm0, %v12749_v37  ;;  %v12779_v20 = vpack.c.bf16 %v12777_v0, %v12778_v5  ;;  %v12816_v5 = vld [vmem:[#allocation69_spill] sm:$0xff] }
 0x39f   :  { %6008 = vmatmul.mubr.bf16.gmra.mxu1 %v4223_v48  ;;  %v12781_v48 = vld [vmem:[#allocation43_spill] sm:$0xff] }
 0x3a0   :  { %6011 = vmatprep.mubr.msk.bf16.mxu1 %vm6479_vm0, %v12749_v37  ;;  %v12782_v30 = vpack.c.bf16 %v12780_v52, %v12781_v48  ;;  %v12819_v52 = vld [vmem:[#allocation72_spill] sm:$0xff]  ;;  %v12820_v48 = vld [vmem:[#allocation70_spill] sm:$0xff] }
 0x3a7   :  { %6012 = vmatmul.mubr.bf16.gmra.mxu1 %v4224_v7  ;;  %v12786_v7 = vld [vmem:[#allocation50_spill] sm:$0xff] }
 0x3a8   :  { %6015 = vmatprep.mubr.msk.bf16.mxu1 %vm6479_vm0, %v12749_v37  ;;  %v12788_v1 = vpack.c.bf16 %v12786_v7, %v12787_v51  ;;  %v12825_v51 = vld [vmem:[#allocation49_spill] sm:$0xff] }
 0x3af   :  { %6016 = vmatmul.mubr.bf16.gmra.mxu1 %v12776_v17  ;;  %v12814_v17 = vld [vmem:[#allocation66_spill] sm:$0xff] }
 0x3b0   :  { %6019 = vmatprep.mubr.msk.bf16.mxu1 %vm6479_vm0, %v12749_v37  ;;  %v12815_v0 = vpack.c.bf16 %v12813_v16, %v12814_v17 }
 0x3b7   :  { %6020 = vmatmul.mubr.bf16.gmra.mxu1 %v12779_v20  ;;  %v12817_v20 = vld [vmem:[#allocation68_spill] sm:$0xff] }
 0x3b8   :  { %6023 = vmatprep.mubr.msk.bf16.mxu1 %vm6479_vm0, %v12749_v37  ;;  %v12818_v40 = vpack.c.bf16 %v12816_v5, %v12817_v20 }
 0x3bf   :  { %6024 = vmatmul.mubr.bf16.gmra.mxu1 %v12782_v30  ;;  %v12821_v30 = vpack.c.bf16 %v12819_v52, %v12820_v48  ;;  %v12834_v52 = vld [vmem:[#allocation82_spill] sm:$0xff]  ;;  %v12835_v48 = vld [vmem:[#allocation81_spill] sm:$0xff] }
 0x3c0   :  { %6027 = vmatprep.mubr.msk.bf16.mxu1 %vm6479_vm0, %v12749_v37 }
 0x3c7   :  { %6028 = vmatmul.mubr.bf16.gmra.mxu1 %v12785_v14  ;;  %v12824_v14 = vpack.c.bf16 %v12822_v18, %v12823_v21 }
 0x3c8   :  { %6031 = vmatprep.mubr.msk.bf16.mxu1 %vm6479_vm0, %v12749_v37 }
 0x3cf   :  { %6032 = vmatmul.mubr.bf16.gmra.mxu1 %v12788_v1  ;;  %v12826_v1 = vld [vmem:[#allocation76_spill] sm:$0xff] }
 0x3d0   :  { %6035 = vmatprep.mubr.msk.bf16.mxu1 %vm6479_vm0, %v12749_v37  ;;  %v12827_v45 = vpack.c.bf16 %v12825_v51, %v12826_v1 }
 0x3d7   :  { %6036 = vmatmul.mubr.bf16.gmra.mxu1 %v12791_v55 }
 0x3d8   :  { %6039 = vmatprep.mubr.msk.bf16.mxu1 %vm6479_vm0, %v12749_v37 }
 0x3df   :  { %6040 = vmatmul.mubr.bf16.gmra.mxu1 %v12794_v27 }
 0x3e0   :  { %6043 = vmatprep.mubr.msk.bf16.mxu1 %vm6479_vm0, %v12749_v37 }
 0x3e7   :  { %6044 = vmatmul.mubr.bf16.gmra.mxu1 %v12797_v29 }
 0x3e8   :  { %6047 = vmatprep.mubr.msk.bf16.mxu1 %vm6479_vm0, %v12749_v37 }
 0x3ef   :  { %6048 = vmatmul.mubr.bf16.gmra.mxu1 %v12800_v49  ;;  %v12830_v49 = vpack.c.bf16 %v12828_v63, %v12829_v43 }
 0x3f0   :  { %6051 = vmatprep.mubr.msk.bf16.mxu1 %vm6479_vm0, %v12749_v37 }
 0x3f7   :  { %6052 = vmatmul.mubr.bf16.gmra.mxu1 %v12803_v6 }
 0x3f8   :  { %6055 = vmatprep.mubr.msk.bf16.mxu1 %vm6479_vm0, %v12749_v37 }
 0x3ff   :  { %6056 = vmatmul.mubr.bf16.gmra.mxu1 %v12806_v25 }
 0x400   :  { %6059 = vmatprep.mubr.msk.bf16.mxu1 %vm6479_vm0, %v12749_v37 }
 0x407   :  { %6060 = vmatmul.mubr.bf16.gmra.mxu1 %v12809_v4  ;;  %v12831_v4 = vld [vmem:[#allocation80_spill] sm:$0xff] }
 0x408   :  { %6063 = vmatprep.mubr.msk.bf16.mxu1 %vm6479_vm0, %v12749_v37  ;;  %v12833_v10 = vpack.c.bf16 %v12831_v4, %v12832_v35 }
 0x40f   :  { %6064 = vmatmul.mubr.bf16.gmra.mxu1 %v12812_v9 }
 0x410   :  { %6067 = vmatprep.mubr.msk.bf16.mxu1 %vm6479_vm0, %v12749_v37 }
 0x417   :  { %6068 = vmatmul.mubr.bf16.gmra.mxu1 %v12815_v0 }
 0x418   :  { %6071 = vmatprep.mubr.msk.bf16.mxu1 %vm6479_vm0, %v12749_v37 }
 0x41f   :  { %6072 = vmatmul.mubr.bf16.gmra.mxu1 %v12818_v40 }
 0x420   :  { %6075 = vmatprep.mubr.msk.bf16.mxu1 %vm6479_vm0, %v12749_v37 }
 0x427   :  { %6076 = vmatmul.mubr.bf16.gmra.mxu1 %v12821_v30  ;;  %v12836_v30 = vpack.c.bf16 %v12834_v52, %v12835_v48 }
 0x428   :  { %6079 = vmatprep.mubr.msk.bf16.mxu1 %vm6479_vm0, %v12749_v37 }
 0x42f   :  { %6080 = vmatmul.mubr.bf16.gmra.mxu1 %v12824_v14 }
 0x430   :  { %6083 = vmatprep.mubr.msk.bf16.mxu1 %vm6479_vm0, %v12749_v37 }
 0x437   :  { %v4404_v7 = vpop.f32.mrf.mxu1  ;;  %6084 = vmatmul.mubr.bf16.gmra.mxu1 %v12827_v45 }
 0x438   :  { %6087 = vmatprep.mubr.msk.bf16.mxu1 %vm6479_vm0, %v12749_v37  ;;  %v4405_v42 = vadd.f32 %v11767_v8, %v4404_v7 }
 0x439   :  { %v5989_v55 = vpop.f32.mrf.mxu1 }
 0x43b   :  { %v4407_v44 = vpop.f32.mrf.mxu1 }
 0x43c   :  { %v4408_v27 = vadd.f32 %v11767_v8, %v4407_v44  ;;  %v12837_v44 = vld [vmem:[#allocation85_spill] sm:$0xff] }
 0x43d   :  { %v5990_v33 = vpop.f32.mrf.mxu1 }
 0x43e   :  { %v5051_v26 = vadd.f32 %v4408_v27, %v4405_v42  ;;  %v12838_v42 = vld [vmem:[#allocation83_spill] sm:$0xff] }
 0x43f   :  { %v4412_v29 = vpop.f32.mrf.mxu1  ;;  %6088 = vmatmul.mubr.bf16.gmra.mxu1 %v12830_v49  ;;  %v12839_v27 = vpack.c.bf16 %v12837_v44, %v12838_v42 }
 0x440   :  { %v4413_v34 = vadd.f32 %v11767_v8, %v4412_v29  ;;  %6091 = vmatprep.mubr.msk.bf16.mxu1 %vm6479_vm0, %v12749_v37 }
 0x441   :  { %v5993_v23 = vpop.f32.mrf.mxu1 }
 0x442   :  { %v5052_v6 = vadd.f32 %v5051_v26, %v4413_v34  ;;  %v6432_v23 = vld [vmem:[%s12248_s5 + $0x28] sm:$0xff]  }
 0x443   :  { %v4415_v39 = vpop.f32.mrf.mxu1  ;;  %6316 = vmatpush3.bf16.msra.mxu0 %v6432_v23 }
 0x444   :  { %v4416_v12 = vadd.f32 %v11767_v8, %v4415_v39  ;;  %v12840_v39 = vld [vmem:[#allocation59_spill] sm:$0xff]  ;;  %6317 = vmatprep.subr.bf16.mxu0 %v12749_v37 }
 0x445   :  { %v5994_v25 = vpop.f32.mrf.mxu1 }
 0x446   :  { %v5053_v57 = vadd.f32 %v5052_v6, %v4416_v12  ;;  %v12841_v12 = vld [vmem:[#allocation86_spill] sm:$0xff] }
 0x447   :  { %v4420_v19 = vpop.f32.mrf.mxu1  ;;  %6092 = vmatmul.mubr.bf16.gmra.mxu1 %v12833_v10  ;;  %v12842_v25 = vpack.c.bf16 %v12840_v39, %v12841_v12 }
 0x448   :  { %v4421_v58 = vadd.f32 %v11767_v8, %v4420_v19  ;;  %6095 = vmatprep.mubr.msk.bf16.mxu1 %vm6479_vm0, %v12749_v37 }
 0x449   :  { %v5997_v9 = vpop.f32.mrf.mxu1 }
 0x44a   :  { %v5054_v16 = vadd.f32 %v5053_v57, %v4421_v58 }
 0x44b   :  { %v4423_v17 = vpop.f32.mrf.mxu1 }
 0x44c   :  { %v4424_v0 = vadd.f32 %v11767_v8, %v4423_v17  ;;  %v12843_v17 = vld [vmem:[#allocation62_spill] sm:$0xff] }
 0x44d   :  { %v5998_v5 = vpop.f32.mrf.mxu1 }
 0x44e   :  { %v5055_v20 = vadd.f32 %v5054_v16, %v4424_v0  ;;  %v12844_v0 = vld [vmem:[#allocation88_spill] sm:$0xff] }
 0x44f   :  { %v4428_v40 = vpop.f32.mrf.mxu1  ;;  %6096 = vmatmul.mubr.bf16.gmra.mxu1 %v12836_v30  ;;  %v12845_v5 = vpack.c.bf16 %v12843_v17, %v12844_v0 }
 0x450   :  { %v4429_v18 = vadd.f32 %v11767_v8, %v4428_v40  ;;  %6099 = vmatprep.mubr.msk.bf16.mxu1 %vm6479_vm0, %v12749_v37 }
 0x451   :  { %v6001_v21 = vpop.f32.mrf.mxu1 }
 0x452   :  { %v5056_v14 = vadd.f32 %v5055_v20, %v4429_v18 }
 0x453   :  { %v4431_v7 = vpop.f32.mrf.mxu1 }
 0x454   :  { %v4432_v51 = vadd.f32 %v11767_v8, %v4431_v7  ;;  %v12846_v7 = vld [vmem:[#allocation90_spill] sm:$0xff] }
 0x455   :  { %v6002_v1 = vpop.f32.mrf.mxu1 }
 0x456   :  { %v5057_v45 = vadd.f32 %v5056_v14, %v4432_v51  ;;  %v12847_v51 = vld [vmem:[#allocation89_spill] sm:$0xff] }
 0x457   :  { %v4436_v55 = vpop.f32.mrf.mxu1  ;;  %6100 = vmatmul.mubr.bf16.gmra.mxu1 %v12839_v27  ;;  %v12848_v1 = vpack.c.bf16 %v12846_v7, %v12847_v51 }
 0x458   :  { %v4437_v33 = vadd.f32 %v11767_v8, %v4436_v55  ;;  %6103 = vmatprep.mubr.msk.bf16.mxu1 %vm6479_vm0, %v12749_v37 }
 0x459   :  { %v6005_v26 = vpop.f32.mrf.mxu1 }
 0x45a   :  { %v5058_v29 = vadd.f32 %v5057_v45, %v4437_v33 }
 0x45b   :  { %v4439_v63 = vpop.f32.mrf.mxu1 }
 0x45c   :  { %v4440_v43 = vadd.f32 %v11767_v8, %v4439_v63  ;;  %v12849_v63 = vld [vmem:[#allocation92_spill] sm:$0xff] }
 0x45d   :  { %v6006_v49 = vpop.f32.mrf.mxu1 }
 0x45e   :  { %v5059_v34 = vadd.f32 %v5058_v29, %v4440_v43  ;;  %v12850_v43 = vld [vmem:[#allocation91_spill] sm:$0xff] }
 0x45f   :  { %v4444_v6 = vpop.f32.mrf.mxu1  ;;  %6104 = vmatmul.mubr.bf16.gmra.mxu1 %v12842_v25  ;;  %v12851_v49 = vpack.c.bf16 %v12849_v63, %v12850_v43 }
 0x460   :  { %v4445_v57 = vadd.f32 %v11767_v8, %v4444_v6  ;;  %6107 = vmatprep.mubr.msk.bf16.mxu1 %vm6479_vm0, %v12749_v37 }
 0x461   :  { %v6009_v19 = vpop.f32.mrf.mxu1 }
 0x462   :  { %v5060_v4 = vadd.f32 %v5059_v34, %v4445_v57 }
 0x463   :  { %v4447_v35 = vpop.f32.mrf.mxu1 }
 0x464   :  { %v4448_v10 = vadd.f32 %v11767_v8, %v4447_v35  ;;  %v12853_v35 = vld [vmem:[#allocation93_spill] sm:$0xff] }
 0x465   :  { %v6010_v58 = vpop.f32.mrf.mxu1 }
 0x466   :  { %v5061_v9 = vadd.f32 %v5060_v4, %v4448_v10  ;;  %v12852_v4 = vld [vmem:[#allocation94_spill] sm:$0xff] }
 0x467   :  { %v4452_v16 = vpop.f32.mrf.mxu1  ;;  %6108 = vmatmul.mubr.bf16.gmra.mxu1 %v12845_v5  ;;  %v12854_v10 = vpack.c.bf16 %v12852_v4, %v12853_v35 }
 0x468   :  { %v4453_v20 = vadd.f32 %v11767_v8, %v4452_v16  ;;  %6111 = vmatprep.mubr.msk.bf16.mxu1 %vm6479_vm0, %v12749_v37 }
 0x469   :  { %v6013_v40 = vpop.f32.mrf.mxu1 }
 0x46a   :  { %v5062_v52 = vadd.f32 %v5061_v9, %v4453_v20 }
 0x46b   :  { %v4455_v48 = vpop.f32.mrf.mxu1 }
 0x46c   :  { %v4456_v30 = vadd.f32 %v11767_v8, %v4455_v48  ;;  %v12856_v48 = vld [vmem:[#allocation95_spill] sm:$0xff] }
 0x46d   :  { %v6014_v18 = vpop.f32.mrf.mxu1 }
 0x46e   :  { %v5063_v21 = vadd.f32 %v5062_v52, %v4456_v30  ;;  %v12855_v52 = vld [vmem:[#allocation97_spill] sm:$0xff] }
 0x46f   :  { %v4460_v14 = vpop.f32.mrf.mxu1  ;;  %6112 = vmatmul.mubr.bf16.gmra.mxu1 %v12848_v1  ;;  %v12857_v30 = vpack.c.bf16 %v12855_v52, %v12856_v48 }
 0x470   :  { %v4461_v45 = vadd.f32 %v11767_v8, %v4460_v14  ;;  %6115 = vmatprep.mubr.msk.bf16.mxu1 %vm6479_vm0, %v12749_v37 }
 0x471   :  { %v6017_v55 = vpop.f32.mrf.mxu1 }
 0x472   :  { %v5064_v44 = vadd.f32 %v5063_v21, %v4461_v45 }
 0x473   :  { %v4463_v42 = vpop.f32.mrf.mxu1 }
 0x474   :  { %v4464_v27 = vadd.f32 %v11767_v8, %v4463_v42  ;;  %v12859_v42 = vld [vmem:[#allocation98_spill] sm:$0xff] }
 0x475   :  { %v6018_v33 = vpop.f32.mrf.mxu1 }
 0x476   :  { %v5065_v26 = vadd.f32 %v5064_v44, %v4464_v27  ;;  %v12858_v44 = vld [vmem:[#allocation71_spill] sm:$0xff] }
 0x477   :  { %v4468_v29 = vpop.f32.mrf.mxu1  ;;  %6116 = vmatmul.mubr.bf16.gmra.mxu1 %v12851_v49  ;;  %v12860_v27 = vpack.c.bf16 %v12858_v44, %v12859_v42 }
 0x478   :  { %v4469_v34 = vadd.f32 %v11767_v8, %v4468_v29  ;;  %6119 = vmatprep.mubr.msk.bf16.mxu1 %vm6479_vm0, %v12749_v37 }
 0x479   :  { %v6021_v23 = vpop.f32.mrf.mxu1 }
 0x47a   :  { %v5066_v6 = vadd.f32 %v5065_v26, %v4469_v34 }
 0x47b   :  { %v4471_v39 = vpop.f32.mrf.mxu1 }
 0x47c   :  { %v4472_v12 = vadd.f32 %v11767_v8, %v4471_v39  ;;  %v12862_v39 = vld [vmem:[#allocation100_spill] sm:$0xff] }
 0x47d   :  { %v6022_v25 = vpop.f32.mrf.mxu1 }
 0x47e   :  { %v5067_v57 = vadd.f32 %v5066_v6, %v4472_v12  ;;  %v12861_v6 = vld [vmem:[#allocation74_spill] sm:$0xff] }
 0x47f   :  { %v4476_v19 = vpop.f32.mrf.mxu1  ;;  %6120 = vmatmul.mubr.bf16.gmra.mxu1 %v12854_v10  ;;  %v12863_v12 = vpack.c.bf16 %v12861_v6, %v12862_v39 }
 0x480   :  { %v4477_v58 = vadd.f32 %v11767_v8, %v4476_v19  ;;  %6123 = vmatprep.mubr.msk.bf16.mxu1 %vm6479_vm0, %v12749_v37 }
 0x481   :  { %v6025_v9 = vpop.f32.mrf.mxu1 }
 0x482   :  { %v5068_v16 = vadd.f32 %v5067_v57, %v4477_v58 }
 0x483   :  { %v4479_v17 = vpop.f32.mrf.mxu1 }
 0x484   :  { %v4480_v0 = vadd.f32 %v11767_v8, %v4479_v17  ;;  %v12865_v17 = vld [vmem:[#allocation101_spill] sm:$0xff] }
 0x485   :  { %v6026_v5 = vpop.f32.mrf.mxu1 }
 0x486   :  { %v5069_v20 = vadd.f32 %v5068_v16, %v4480_v0  ;;  %v12864_v16 = vld [vmem:[#allocation102_spill] sm:$0xff] }
 0x487   :  { %v4484_v40 = vpop.f32.mrf.mxu1  ;;  %6124 = vmatmul.mubr.bf16.gmra.mxu1 %v12857_v30  ;;  %v12866_v0 = vpack.c.bf16 %v12864_v16, %v12865_v17 }
 0x488   :  { %v4485_v18 = vadd.f32 %v11767_v8, %v4484_v40  ;;  %6127 = vmatprep.mubr.msk.bf16.mxu1 %vm6479_vm0, %v12749_v37 }
 0x489   :  { %v6029_v21 = vpop.f32.mrf.mxu1 }
 0x48a   :  { %v5070_v14 = vadd.f32 %v5069_v20, %v4485_v18 }
 0x48b   :  { %v4487_v7 = vpop.f32.mrf.mxu1 }
 0x48c   :  { %v4488_v51 = vadd.f32 %v11767_v8, %v4487_v7  ;;  %v12868_v7 = vld [vmem:[#allocation103_spill] sm:$0xff] }
 0x48d   :  { %v6030_v1 = vpop.f32.mrf.mxu1 }
 0x48e   :  { %v5071_v45 = vadd.f32 %v5070_v14, %v4488_v51  ;;  %v12867_v14 = vld [vmem:[#allocation104_spill] sm:$0xff] }
 0x48f   :  { %v4492_v55 = vpop.f32.mrf.mxu1  ;;  %6128 = vmatmul.mubr.bf16.gmra.mxu1 %v12860_v27  ;;  %v12869_v51 = vpack.c.bf16 %v12867_v14, %v12868_v7 }
 0x490   :  { %v4493_v33 = vadd.f32 %v11767_v8, %v4492_v55  ;;  %6131 = vmatprep.mubr.msk.bf16.mxu1 %vm6479_vm0, %v12749_v37 }
 0x491   :  { %v6033_v26 = vpop.f32.mrf.mxu1 }
 0x492   :  { %v5072_v29 = vadd.f32 %v5071_v45, %v4493_v33  ;;  %v6433_v26 = vld [vmem:[%s12248_s5 + $0x20] sm:$0xff]  }
 0x493   :  { %v4495_v63 = vpop.f32.mrf.mxu1  ;;  %6318 = vmatpush3.bf16.msra.mxu0 %v6433_v26 }
 0x494   :  { %v4496_v43 = vadd.f32 %v11767_v8, %v4495_v63  ;;  %v12870_v63 = vld [vmem:[#allocation106_spill] sm:$0xff]  ;;  %6319 = vmatprep.subr.bf16.mxu0 %v12749_v37 }
 0x495   :  { %v6034_v49 = vpop.f32.mrf.mxu1 }
 0x496   :  { %v5073_v34 = vadd.f32 %v5072_v29, %v4496_v43  ;;  %v12871_v43 = vld [vmem:[#allocation105_spill] sm:$0xff] }
 0x497   :  { %v4500_v23 = vpop.f32.mrf.mxu1  ;;  %6132 = vmatmul.mubr.bf16.gmra.mxu1 %v12863_v12  ;;  %v12872_v49 = vpack.c.bf16 %v12870_v63, %v12871_v43 }
 0x498   :  { %v4501_v25 = vadd.f32 %v11767_v8, %v4500_v23  ;;  %6135 = vmatprep.mubr.msk.bf16.mxu1 %vm6479_vm0, %v12749_v37 }
 0x499   :  { %v6037_v57 = vpop.f32.mrf.mxu1 }
 0x49a   :  { %v5074_v19 = vadd.f32 %v5073_v34, %v4501_v25 }
 0x49b   :  { %v4503_v4 = vpop.f32.mrf.mxu1 }
 0x49c   :  { %v4504_v35 = vadd.f32 %v11767_v8, %v4503_v4  ;;  %v12873_v4 = vld [vmem:[#allocation109_spill] sm:$0xff] }
 0x49d   :  { %v6038_v10 = vpop.f32.mrf.mxu1 }
 0x49e   :  { %v5075_v58 = vadd.f32 %v5074_v19, %v4504_v35  ;;  %v12874_v35 = vld [vmem:[#allocation107_spill] sm:$0xff] }
 0x49f   :  { %v4508_v9 = vpop.f32.mrf.mxu1  ;;  %6136 = vmatmul.mubr.bf16.gmra.mxu1 %v12866_v0  ;;  %v12875_v10 = vpack.c.bf16 %v12873_v4, %v12874_v35 }
 0x4a0   :  { %v4509_v5 = vadd.f32 %v11767_v8, %v4508_v9  ;;  %6139 = vmatprep.mubr.msk.bf16.mxu1 %vm6479_vm0, %v12749_v37 }
 0x4a1   :  { %v6041_v20 = vpop.f32.mrf.mxu1 }
 0x4a2   :  { %v5076_v40 = vadd.f32 %v5075_v58, %v4509_v5 }
 0x4a3   :  { %v4511_v52 = vpop.f32.mrf.mxu1 }
 0x4a4   :  { %v4512_v48 = vadd.f32 %v11767_v8, %v4511_v52  ;;  %v12876_v52 = vld [vmem:[#allocation84_spill] sm:$0xff] }
 0x4a5   :  { %v6042_v30 = vpop.f32.mrf.mxu1 }
 0x4a6   :  { %v5077_v18 = vadd.f32 %v5076_v40, %v4512_v48  ;;  %v12877_v48 = vld [vmem:[#allocation110_spill] sm:$0xff] }
 0x4a7   :  { %v4516_v21 = vpop.f32.mrf.mxu1  ;;  %6140 = vmatmul.mubr.bf16.gmra.mxu1 %v12869_v51  ;;  %v12878_v30 = vpack.c.bf16 %v12876_v52, %v12877_v48 }
 0x4a8   :  { %v4517_v1 = vadd.f32 %v11767_v8, %v4516_v21  ;;  %6143 = vmatprep.mubr.msk.bf16.mxu1 %vm6479_vm0, %v12749_v37 }
 0x4a9   :  { %v6045_v45 = vpop.f32.mrf.mxu1 }
 0x4aa   :  { %v5078_v55 = vadd.f32 %v5077_v18, %v4517_v1 }
 0x4ab   :  { %v4519_v44 = vpop.f32.mrf.mxu1 }
 0x4ac   :  { %v4520_v42 = vadd.f32 %v11767_v8, %v4519_v44  ;;  %v12879_v44 = vld [vmem:[#allocation87_spill] sm:$0xff] }
 0x4ad   :  { %v6046_v27 = vpop.f32.mrf.mxu1 }
 0x4ae   :  { %v5079_v33 = vadd.f32 %v5078_v55, %v4520_v42  ;;  %v12880_v42 = vld [vmem:[#allocation111_spill] sm:$0xff] }
 0x4af   :  { %v4524_v29 = vpop.f32.mrf.mxu1  ;;  %6144 = vmatmul.mubr.bf16.gmra.mxu1 %v12872_v49  ;;  %v12881_v27 = vpack.c.bf16 %v12879_v44, %v12880_v42 }
 0x4b0   :  { %v4525_v34 = vadd.f32 %v11767_v8, %v4524_v29  ;;  %6147 = vmatprep.mubr.msk.bf16.mxu1 %vm6479_vm0, %v12749_v37 }
 0x4b1   :  { %v6049_v23 = vpop.f32.mrf.mxu1 }
 0x4b2   :  { %v5080_v6 = vadd.f32 %v5079_v33, %v4525_v34 }
 0x4b3   :  { %v4527_v39 = vpop.f32.mrf.mxu1 }
 0x4b4   :  { %v4528_v12 = vadd.f32 %v11767_v8, %v4527_v39  ;;  %v12883_v39 = vld [vmem:[#allocation112_spill] sm:$0xff] }
 0x4b5   :  { %v6050_v25 = vpop.f32.mrf.mxu1 }
 0x4b6   :  { %v5081_v57 = vadd.f32 %v5080_v6, %v4528_v12  ;;  %v12882_v6 = vld [vmem:[#allocation113_spill] sm:$0xff] }
 0x4b7   :  { %v4532_v19 = vpop.f32.mrf.mxu1  ;;  %6148 = vmatmul.mubr.bf16.gmra.mxu1 %v12875_v10  ;;  %v12884_v12 = vpack.c.bf16 %v12882_v6, %v12883_v39 }
 0x4b8   :  { %v4533_v58 = vadd.f32 %v11767_v8, %v4532_v19  ;;  %6151 = vmatprep.mubr.msk.bf16.mxu1 %vm6479_vm0, %v12749_v37 }
 0x4b9   :  { %v6053_v9 = vpop.f32.mrf.mxu1 }
 0x4ba   :  { %v5082_v16 = vadd.f32 %v5081_v57, %v4533_v58 }
 0x4bb   :  { %v4535_v17 = vpop.f32.mrf.mxu1 }
 0x4bc   :  { %v4536_v0 = vadd.f32 %v11767_v8, %v4535_v17  ;;  %v12886_v17 = vld [vmem:[#allocation114_spill] sm:$0xff] }
 0x4bd   :  { %v6054_v5 = vpop.f32.mrf.mxu1 }
 0x4be   :  { %v5083_v20 = vadd.f32 %v5082_v16, %v4536_v0  ;;  %v12885_v16 = vld [vmem:[#allocation115_spill] sm:$0xff] }
 0x4bf   :  { %v4540_v40 = vpop.f32.mrf.mxu1  ;;  %6152 = vmatmul.mubr.bf16.gmra.mxu1 %v12878_v30  ;;  %v12887_v0 = vpack.c.bf16 %v12885_v16, %v12886_v17 }
 0x4c0   :  { %v4541_v18 = vadd.f32 %v11767_v8, %v4540_v40  ;;  %6155 = vmatprep.mubr.msk.bf16.mxu1 %vm6479_vm0, %v12749_v37 }
 0x4c1   :  { %v6057_v21 = vpop.f32.mrf.mxu1 }
 0x4c2   :  { %v5084_v14 = vadd.f32 %v5083_v20, %v4541_v18 }
 0x4c3   :  { %v4543_v7 = vpop.f32.mrf.mxu1 }
 0x4c4   :  { %v4544_v51 = vadd.f32 %v11767_v8, %v4543_v7  ;;  %v12889_v7 = vld [vmem:[#allocation116_spill] sm:$0xff] }
 0x4c5   :  { %v6058_v1 = vpop.f32.mrf.mxu1 }
 0x4c6   :  { %v5085_v45 = vadd.f32 %v5084_v14, %v4544_v51  ;;  %v12888_v14 = vld [vmem:[#allocation117_spill] sm:$0xff] }
 0x4c7   :  { %v4548_v55 = vpop.f32.mrf.mxu1  ;;  %6156 = vmatmul.mubr.bf16.gmra.mxu1 %v12881_v27  ;;  %v12890_v51 = vpack.c.bf16 %v12888_v14, %v12889_v7 }
 0x4c8   :  { %v4549_v33 = vadd.f32 %v11767_v8, %v4548_v55  ;;  %6159 = vmatprep.mubr.msk.bf16.mxu1 %vm6479_vm0, %v12749_v37 }
 0x4c9   :  { %v6061_v26 = vpop.f32.mrf.mxu1 }
 0x4ca   :  { %v5086_v29 = vadd.f32 %v5085_v45, %v4549_v33 }
 0x4cb   :  { %v4551_v63 = vpop.f32.mrf.mxu1 }
 0x4cc   :  { %v4552_v43 = vadd.f32 %v11767_v8, %v4551_v63  ;;  %v12892_v63 = vld [vmem:[#allocation118_spill] sm:$0xff] }
 0x4cd   :  { %v6062_v49 = vpop.f32.mrf.mxu1 }
 0x4ce   :  { %v5087_v34 = vadd.f32 %v5086_v29, %v4552_v43  ;;  %v12891_v29 = vld [vmem:[#allocation120_spill] sm:$0xff] }
 0x4cf   :  { %v4556_v23 = vpop.f32.mrf.mxu1  ;;  %6160 = vmatmul.mubr.bf16.gmra.mxu1 %v12884_v12  ;;  %v12893_v43 = vpack.c.bf16 %v12891_v29, %v12892_v63 }
 0x4d0   :  { %v4557_v25 = vadd.f32 %v11767_v8, %v4556_v23  ;;  %6163 = vmatprep.mubr.msk.bf16.mxu1 %vm6479_vm0, %v12749_v37 }
 0x4d1   :  { %v6065_v57 = vpop.f32.mrf.mxu1 }
 0x4d2   :  { %v5088_v19 = vadd.f32 %v5087_v34, %v4557_v25 }
 0x4d3   :  { %v4559_v4 = vpop.f32.mrf.mxu1 }
 0x4d4   :  { %v4560_v35 = vadd.f32 %v11767_v8, %v4559_v4  ;;  %v12895_v4 = vld [vmem:[#allocation121_spill] sm:$0xff] }
 0x4d5   :  { %v6066_v10 = vpop.f32.mrf.mxu1 }
 0x4d6   :  { %v5089_v58 = vadd.f32 %v5088_v19, %v4560_v35  ;;  %v12894_v19 = vld [vmem:[#allocation96_spill] sm:$0xff] }
 0x4d7   :  { %v4564_v9 = vpop.f32.mrf.mxu1  ;;  %6164 = vmatmul.mubr.bf16.gmra.mxu1 %v12887_v0  ;;  %v12896_v35 = vpack.c.bf16 %v12894_v19, %v12895_v4 }
 0x4d8   :  { %v4565_v5 = vadd.f32 %v11767_v8, %v4564_v9  ;;  %6167 = vmatprep.mubr.msk.bf16.mxu1 %vm6479_vm0, %v12749_v37 }
 0x4d9   :  { %v6069_v20 = vpop.f32.mrf.mxu1 }
 0x4da   :  { %v5090_v40 = vadd.f32 %v5089_v58, %v4565_v5 }
 0x4db   :  { %v4567_v52 = vpop.f32.mrf.mxu1 }
 0x4dc   :  { %v4568_v48 = vadd.f32 %v11767_v8, %v4567_v52  ;;  %v12898_v52 = vld [vmem:[#allocation122_spill] sm:$0xff] }
 0x4dd   :  { %v6070_v30 = vpop.f32.mrf.mxu1 }
 0x4de   :  { %v5091_v18 = vadd.f32 %v5090_v40, %v4568_v48  ;;  %v12897_v40 = vld [vmem:[#allocation99_spill] sm:$0xff] }
 0x4df   :  { %v4572_v21 = vpop.f32.mrf.mxu1  ;;  %6168 = vmatmul.mubr.bf16.gmra.mxu1 %v12890_v51  ;;  %v12899_v48 = vpack.c.bf16 %v12897_v40, %v12898_v52 }
 0x4e0   :  { %v4573_v1 = vadd.f32 %v11767_v8, %v4572_v21  ;;  %6171 = vmatprep.mubr.msk.bf16.mxu1 %vm6479_vm0, %v12749_v37 }
 0x4e1   :  { %v6073_v45 = vpop.f32.mrf.mxu1 }
 0x4e2   :  { %v5092_v55 = vadd.f32 %v5091_v18, %v4573_v1  ;;  %v6434_v45 = vld [vmem:[%s12248_s5 + $0x18] sm:$0xff]  }
 0x4e3   :  { %v4575_v44 = vpop.f32.mrf.mxu1  ;;  %6320 = vmatpush3.bf16.msra.mxu0 %v6434_v45 }
 0x4e4   :  { %v4576_v42 = vadd.f32 %v11767_v8, %v4575_v44  ;;  %v12900_v44 = vld [vmem:[#allocation124_spill] sm:$0xff]  ;;  %6321 = vmatprep.subr.bf16.mxu0 %v12749_v37 }
 0x4e5   :  { %v6074_v27 = vpop.f32.mrf.mxu1 }
 0x4e6   :  { %v5093_v33 = vadd.f32 %v5092_v55, %v4576_v42  ;;  %v12901_v42 = vld [vmem:[#allocation123_spill] sm:$0xff] }
 0x4e7   :  { %v4580_v26 = vpop.f32.mrf.mxu1  ;;  %6172 = vmatmul.mubr.bf16.gmra.mxu1 %v12893_v43  ;;  %v12902_v27 = vpack.c.bf16 %v12900_v44, %v12901_v42 }
 0x4e8   :  { %v4581_v49 = vadd.f32 %v11767_v8, %v4580_v26  ;;  %6175 = vmatprep.mubr.msk.bf16.mxu1 %vm6479_vm0, %v12749_v37 }
 0x4e9   :  { %v6077_v34 = vpop.f32.mrf.mxu1 }
 0x4ea   :  { %v5094_v23 = vadd.f32 %v5093_v33, %v4581_v49 }
 0x4eb   :  { %v4583_v6 = vpop.f32.mrf.mxu1 }
 0x4ec   :  { %v4584_v39 = vadd.f32 %v11767_v8, %v4583_v6  ;;  %v12903_v6 = vld [vmem:[#allocation126_spill] sm:$0xff] }
 0x4ed   :  { %v6078_v12 = vpop.f32.mrf.mxu1 }
 0x4ee   :  { %v5095_v25 = vadd.f32 %v5094_v23, %v4584_v39  ;;  %v12904_v39 = vld [vmem:[#allocation125_spill] sm:$0xff] }
 0x4ef   :  { %v4588_v57 = vpop.f32.mrf.mxu1  ;;  %6176 = vmatmul.mubr.bf16.gmra.mxu1 %v12896_v35  ;;  %v12905_v12 = vpack.c.bf16 %v12903_v6, %v12904_v39 }
 0x4f0   :  { %v4589_v10 = vadd.f32 %v11767_v8, %v4588_v57  ;;  %6179 = vmatprep.mubr.msk.bf16.mxu1 %vm6479_vm0, %v12749_v37 }
 0x4f1   :  { %v6081_v58 = vpop.f32.mrf.mxu1 }
 0x4f2   :  { %v5096_v9 = vadd.f32 %v5095_v25, %v4589_v10 }
 0x4f3   :  { %v4591_v16 = vpop.f32.mrf.mxu1 }
 0x4f4   :  { %v4592_v17 = vadd.f32 %v11767_v8, %v4591_v16  ;;  %v12906_v16 = vld [vmem:[#allocation129_spill] sm:$0xff] }
 0x4f5   :  { %v6082_v0 = vpop.f32.mrf.mxu1 }
 0x4f6   :  { %v5097_v5 = vadd.f32 %v5096_v9, %v4592_v17  ;;  %v12907_v17 = vld [vmem:[#allocation127_spill] sm:$0xff] }
 0x4f7   :  { %v4596_v20 = vpop.f32.mrf.mxu1  ;;  %6180 = vmatmul.mubr.bf16.gmra.mxu1 %v12899_v48  ;;  %v12908_v0 = vpack.c.bf16 %v12906_v16, %v12907_v17 }
 0x4f8   :  { %v4597_v30 = vadd.f32 %v11767_v8, %v4596_v20  ;;  %6183 = vmatprep.mubr.msk.bf16.mxu1 %vm6479_vm0, %v12749_v37 }
 0x4f9   :  { %v6085_v18 = vpop.f32.mrf.mxu1 }
 0x4fa   :  { %v5098_v21 = vadd.f32 %v5097_v5, %v4597_v30 }
 0x4fb   :  { %v4599_v14 = vpop.f32.mrf.mxu1 }
 0x4fc   :  { %v4600_v7 = vadd.f32 %v11767_v8, %v4599_v14  ;;  %v12909_v14 = vld [vmem:[#allocation133_spill] sm:$0xff] }
 0x4fd   :  { %v6086_v51 = vpop.f32.mrf.mxu1 }
 0x4fe   :  { %v5099_v1 = vadd.f32 %v5098_v21, %v4600_v7  ;;  %v12910_v7 = vld [vmem:[#allocation131_spill] sm:$0xff] }
 0x4ff   :  { %v4604_v55 = vpop.f32.mrf.mxu1  ;;  %6184 = vmatmul.mubr.bf16.gmra.mxu1 %v12902_v27  ;;  %v12911_v51 = vpack.c.bf16 %v12909_v14, %v12910_v7 }
 0x500   :  { %v4605_v33 = vadd.f32 %v11767_v8, %v4604_v55  ;;  %6187 = vmatprep.mubr.msk.bf16.mxu1 %vm6479_vm0, %v12749_v37 }
 0x501   :  { %v6089_v26 = vpop.f32.mrf.mxu1 }
 0x502   :  { %v5100_v29 = vadd.f32 %v5099_v1, %v4605_v33 }
 0x503   :  { %v4607_v63 = vpop.f32.mrf.mxu1 }
 0x504   :  { %v4608_v43 = vadd.f32 %v11767_v8, %v4607_v63  ;;  %v12913_v63 = vld [vmem:[#allocation135_spill] sm:$0xff] }
 0x505   :  { %v6090_v49 = vpop.f32.mrf.mxu1 }
 0x506   :  { %v5101_v34 = vadd.f32 %v5100_v29, %v4608_v43  ;;  %v12912_v29 = vld [vmem:[#allocation7_spill] sm:$0xff] }
 0x507   :  { %v4612_v23 = vpop.f32.mrf.mxu1  ;;  %6188 = vmatmul.mubr.bf16.gmra.mxu1 %v12905_v12  ;;  %v12914_v43 = vpack.c.bf16 %v12912_v29, %v12913_v63 }
 0x508   :  { %v4613_v25 = vadd.f32 %v11767_v8, %v4612_v23  ;;  %6191 = vmatprep.mubr.msk.bf16.mxu1 %vm6479_vm0, %v12749_v37 }
 0x509   :  { %v6093_v57 = vpop.f32.mrf.mxu1 }
 0x50a   :  { %v5102_v19 = vadd.f32 %v5101_v34, %v4613_v25 }
 0x50b   :  { %v4615_v4 = vpop.f32.mrf.mxu1 }
 0x50c   :  { %v4616_v35 = vadd.f32 %v11767_v8, %v4615_v4  ;;  %v12916_v4 = vld [vmem:[#allocation139_spill] sm:$0xff] }
 0x50d   :  { %v6094_v10 = vpop.f32.mrf.mxu1 }
 0x50e   :  { %v5103_v58 = vadd.f32 %v5102_v19, %v4616_v35  ;;  %v12915_v19 = vld [vmem:[#allocation141_spill] sm:$0xff] }
 0x50f   :  { %v4620_v9 = vpop.f32.mrf.mxu1  ;;  %6192 = vmatmul.mubr.bf16.gmra.mxu1 %v12908_v0  ;;  %v12917_v35 = vpack.c.bf16 %v12915_v19, %v12916_v4 }
 0x510   :  { %v4621_v5 = vadd.f32 %v11767_v8, %v4620_v9  ;;  %6195 = vmatprep.mubr.msk.bf16.mxu1 %vm6479_vm0, %v12749_v37 }
 0x511   :  { %v6097_v20 = vpop.f32.mrf.mxu1 }
 0x512   :  { %v5104_v40 = vadd.f32 %v5103_v58, %v4621_v5 }
 0x513   :  { %v4623_v52 = vpop.f32.mrf.mxu1 }
 0x514   :  { %v4624_v48 = vadd.f32 %v11767_v8, %v4623_v52  ;;  %v12919_v52 = vld [vmem:[#allocation143_spill] sm:$0xff] }
 0x515   :  { %v6098_v30 = vpop.f32.mrf.mxu1 }
 0x516   :  { %v5105_v18 = vadd.f32 %v5104_v40, %v4624_v48  ;;  %v12918_v40 = vld [vmem:[#allocation144_spill] sm:$0xff] }
 0x517   :  { %v4628_v21 = vpop.f32.mrf.mxu1  ;;  %6196 = vmatmul.mubr.bf16.gmra.mxu1 %v12911_v51  ;;  %v12920_v48 = vpack.c.bf16 %v12918_v40, %v12919_v52 }
 0x518   :  { %v4629_v1 = vadd.f32 %v11767_v8, %v4628_v21  ;;  %6199 = vmatprep.mubr.msk.bf16.mxu1 %vm6479_vm0, %v12749_v37 }
 0x519   :  { %v6101_v45 = vpop.f32.mrf.mxu1 }
 0x51a   :  { %v5106_v55 = vadd.f32 %v5105_v18, %v4629_v1 }
 0x51b   :  { %v4631_v44 = vpop.f32.mrf.mxu1 }
 0x51c   :  { %v4632_v42 = vadd.f32 %v11767_v8, %v4631_v44  ;;  %v12922_v44 = vld [vmem:[#allocation146_spill] sm:$0xff] }
 0x51d   :  { %v6102_v27 = vpop.f32.mrf.mxu1 }
 0x51e   :  { %v5107_v33 = vadd.f32 %v5106_v55, %v4632_v42  ;;  %v12921_v55 = vld [vmem:[#allocation148_spill] sm:$0xff] }
 0x51f   :  { %v4636_v26 = vpop.f32.mrf.mxu1  ;;  %6200 = vmatmul.mubr.bf16.gmra.mxu1 %v12914_v43  ;;  %v12923_v42 = vpack.c.bf16 %v12921_v55, %v12922_v44  ;;  %v6435_v55 = vld [vmem:[%s12248_s5 + $0x10] sm:$0xff]  }
 0x520   :  { %v4637_v49 = vadd.f32 %v11767_v8, %v4636_v26  ;;  %6203 = vmatprep.mubr.msk.bf16.mxu1 %vm6479_vm0, %v12749_v37  ;;  %6322 = vmatpush3.bf16.msra.mxu0 %v6435_v55  ;;  %v12942_v55 = vld [vmem:[#allocation159_spill] sm:$0xff] }
 0x521   :  { %v6105_v34 = vpop.f32.mrf.mxu1  ;;  %6323 = vmatprep.subr.bf16.mxu0 %v12749_v37 }
 0x522   :  { %v5108_v23 = vadd.f32 %v5107_v33, %v4637_v49 }
 0x523   :  { %v4639_v6 = vpop.f32.mrf.mxu1 }
 0x524   :  { %v4640_v39 = vadd.f32 %v11767_v8, %v4639_v6  ;;  %v12925_v6 = vld [vmem:[#allocation149_spill] sm:$0xff] }
 0x525   :  { %v6106_v12 = vpop.f32.mrf.mxu1 }
 0x526   :  { %v5109_v25 = vadd.f32 %v5108_v23, %v4640_v39  ;;  %v12924_v23 = vld [vmem:[#allocation150_spill] sm:$0xff] }
 0x527   :  { %v4644_v57 = vpop.f32.mrf.mxu1  ;;  %6204 = vmatmul.mubr.bf16.gmra.mxu1 %v12917_v35  ;;  %v12926_v39 = vpack.c.bf16 %v12924_v23, %v12925_v6 }
 0x528   :  { %v4645_v10 = vadd.f32 %v11767_v8, %v4644_v57  ;;  %6207 = vmatprep.mubr.msk.bf16.mxu1 %vm6479_vm0, %v12749_v37 }
 0x529   :  { %v6109_v58 = vpop.f32.mrf.mxu1 }
 0x52a   :  { %v5110_v9 = vadd.f32 %v5109_v25, %v4645_v10 }
 0x52b   :  { %v4647_v16 = vpop.f32.mrf.mxu1 }
 0x52c   :  { %v4648_v17 = vadd.f32 %v11767_v8, %v4647_v16  ;;  %v12928_v16 = vld [vmem:[#allocation151_spill] sm:$0xff] }
 0x52d   :  { %v6110_v0 = vpop.f32.mrf.mxu1 }
 0x52e   :  { %v5111_v5 = vadd.f32 %v5110_v9, %v4648_v17  ;;  %v12927_v9 = vld [vmem:[#allocation152_spill] sm:$0xff] }
 0x52f   :  { %v4652_v20 = vpop.f32.mrf.mxu1  ;;  %6208 = vmatmul.mubr.bf16.gmra.mxu1 %v12920_v48  ;;  %v12929_v17 = vpack.c.bf16 %v12927_v9, %v12928_v16 }
 0x530   :  { %v4653_v30 = vadd.f32 %v11767_v8, %v4652_v20  ;;  %6211 = vmatprep.mubr.msk.bf16.mxu1 %vm6479_vm0, %v12749_v37 }
 0x531   :  { %v6113_v18 = vpop.f32.mrf.mxu1 }
 0x532   :  { %v5112_v21 = vadd.f32 %v5111_v5, %v4653_v30 }
 0x533   :  { %v4655_v14 = vpop.f32.mrf.mxu1 }
 0x534   :  { %v4656_v7 = vadd.f32 %v11767_v8, %v4655_v14  ;;  %v12931_v14 = vld [vmem:[#allocation153_spill] sm:$0xff] }
 0x535   :  { %v6114_v51 = vpop.f32.mrf.mxu1 }
 0x536   :  { %v5113_v1 = vadd.f32 %v5112_v21, %v4656_v7  ;;  %v12930_v21 = vld [vmem:[#allocation119_spill] sm:$0xff] }
 0x537   :  { %v4660_v45 = vpop.f32.mrf.mxu1  ;;  %6212 = vmatmul.mubr.bf16.gmra.mxu1 %v12923_v42  ;;  %v12932_v7 = vpack.c.bf16 %v12930_v21, %v12931_v14 }
 0x538   :  { %v4661_v27 = vadd.f32 %v11767_v8, %v4660_v45  ;;  %6215 = vmatprep.mubr.msk.bf16.mxu1 %vm6479_vm0, %v12749_v37 }
 0x539   :  { %v6117_v33 = vpop.f32.mrf.mxu1 }
 0x53a   :  { %v5114_v26 = vadd.f32 %v5113_v1, %v4661_v27 }
 0x53b   :  { %v4663_v29 = vpop.f32.mrf.mxu1 }
 0x53c   :  { %v4664_v63 = vadd.f32 %v11767_v8, %v4663_v29  ;;  %v12933_v29 = vld [vmem:[#allocation155_spill] sm:$0xff] }
 0x53d   :  { %v6118_v43 = vpop.f32.mrf.mxu1 }
 0x53e   :  { %v5115_v49 = vadd.f32 %v5114_v26, %v4664_v63  ;;  %v12934_v63 = vld [vmem:[#allocation154_spill] sm:$0xff] }
 0x53f   :  { %v4668_v34 = vpop.f32.mrf.mxu1  ;;  %6216 = vmatmul.mubr.bf16.gmra.mxu1 %v12926_v39  ;;  %v12935_v43 = vpack.c.bf16 %v12933_v29, %v12934_v63 }
 0x540   :  { %v4669_v12 = vadd.f32 %v11767_v8, %v4668_v34  ;;  %6219 = vmatprep.mubr.msk.bf16.mxu1 %vm6479_vm0, %v12749_v37 }
 0x541   :  { %v6121_v25 = vpop.f32.mrf.mxu1 }
 0x542   :  { %v5116_v57 = vadd.f32 %v5115_v49, %v4669_v12 }
 0x543   :  { %v4671_v19 = vpop.f32.mrf.mxu1 }
 0x544   :  { %v4672_v4 = vadd.f32 %v11767_v8, %v4671_v19  ;;  %v12936_v19 = vld [vmem:[#allocation137_spill] sm:$0xff] }
 0x545   :  { %v6122_v35 = vpop.f32.mrf.mxu1 }
 0x546   :  { %v5117_v10 = vadd.f32 %v5116_v57, %v4672_v4  ;;  %v12937_v4 = vld [vmem:[#allocation136_spill] sm:$0xff] }
 0x547   :  { %v4676_v58 = vpop.f32.mrf.mxu1  ;;  %6220 = vmatmul.mubr.bf16.gmra.mxu1 %v12929_v17  ;;  %v12938_v35 = vpack.c.bf16 %v12936_v19, %v12937_v4 }
 0x548   :  { %v4677_v0 = vadd.f32 %v11767_v8, %v4676_v58  ;;  %6223 = vmatprep.mubr.msk.bf16.mxu1 %vm6479_vm0, %v12749_v37 }
 0x549   :  { %v6125_v5 = vpop.f32.mrf.mxu1 }
 0x54a   :  { %v5118_v20 = vadd.f32 %v5117_v10, %v4677_v0 }
 0x54b   :  { %v4679_v40 = vpop.f32.mrf.mxu1 }
 0x54c   :  { %v4680_v52 = vadd.f32 %v11767_v8, %v4679_v40  ;;  %v12939_v40 = vld [vmem:[#allocation157_spill] sm:$0xff] }
 0x54d   :  { %v6126_v48 = vpop.f32.mrf.mxu1 }
 0x54e   :  { %v5119_v30 = vadd.f32 %v5118_v20, %v4680_v52  ;;  %v12940_v52 = vld [vmem:[#allocation156_spill] sm:$0xff] }
 0x54f   :  { %v4684_v18 = vpop.f32.mrf.mxu1  ;;  %6224 = vmatmul.mubr.bf16.gmra.mxu1 %v12932_v7  ;;  %v12941_v48 = vpack.c.bf16 %v12939_v40, %v12940_v52 }
 0x550   :  { %v4685_v51 = vadd.f32 %v11767_v8, %v4684_v18  ;;  %6227 = vmatprep.mubr.msk.bf16.mxu1 %vm6479_vm0, %v12749_v37 }
 0x551   :  { %v6129_v1 = vpop.f32.mrf.mxu1 }
 0x552   :  { %v5120_v45 = vadd.f32 %v5119_v30, %v4685_v51 }
 0x553   :  { %v4687_v44 = vpop.f32.mrf.mxu1 }
 0x554   :  { %v4688_v42 = vadd.f32 %v11767_v8, %v4687_v44  ;;  %v12943_v44 = vld [vmem:[#allocation158_spill] sm:$0xff] }
 0x555   :  { %v6130_v27 = vpop.f32.mrf.mxu1 }
 0x556   :  { %v5121_v33 = vadd.f32 %v5120_v45, %v4688_v42  ;;  %v12944_v42 = vpack.c.bf16 %v12942_v55, %v12943_v44 }
 0x557   :  { %v4692_v26 = vpop.f32.mrf.mxu1  ;;  %6228 = vmatmul.mubr.bf16.gmra.mxu1 %v12935_v43 }
 0x558   :  { %v4693_v49 = vadd.f32 %v11767_v8, %v4692_v26  ;;  %6231 = vmatprep.mubr.msk.bf16.mxu1 %vm6479_vm0, %v12749_v37 }
 0x559   :  { %v6133_v34 = vpop.f32.mrf.mxu1 }
 0x55a   :  { %v5122_v23 = vadd.f32 %v5121_v33, %v4693_v49 }
 0x55b   :  { %v4695_v6 = vpop.f32.mrf.mxu1 }
 0x55c   :  { %v4696_v39 = vadd.f32 %v11767_v8, %v4695_v6  ;;  %v12946_v6 = vld [vmem:[#allocation160_spill] sm:$0xff] }
 0x55d   :  { %v6134_v12 = vpop.f32.mrf.mxu1 }
 0x55e   :  { %v5123_v25 = vadd.f32 %v5122_v23, %v4696_v39  ;;  %v12945_v23 = vld [vmem:[#allocation162_spill] sm:$0xff] }
 0x55f   :  { %v4700_v57 = vpop.f32.mrf.mxu1  ;;  %6232 = vmatmul.mubr.bf16.gmra.mxu1 %v12938_v35  ;;  %v12947_v39 = vpack.c.bf16 %v12945_v23, %v12946_v6 }
 0x560   :  { %v4701_v10 = vadd.f32 %v11767_v8, %v4700_v57  ;;  %6235 = vmatprep.mubr.msk.bf16.mxu1 %vm6479_vm0, %v12749_v37 }
 0x561   :  { %v6137_v58 = vpop.f32.mrf.mxu1 }
 0x562   :  { %v5124_v9 = vadd.f32 %v5123_v25, %v4701_v10 }
 0x563   :  { %v4703_v16 = vpop.f32.mrf.mxu1 }
 0x564   :  { %v4704_v17 = vadd.f32 %v11767_v8, %v4703_v16  ;;  %v12949_v16 = vld [vmem:[#allocation164_spill] sm:$0xff] }
 0x565   :  { %v6138_v0 = vpop.f32.mrf.mxu1 }
 0x566   :  { %v5125_v5 = vadd.f32 %v5124_v9, %v4704_v17  ;;  %v12948_v9 = vld [vmem:[#allocation167_spill] sm:$0xff] }
 0x567   :  { %v4708_v20 = vpop.f32.mrf.mxu1  ;;  %6236 = vmatmul.mubr.bf16.gmra.mxu1 %v12941_v48  ;;  %v12950_v17 = vpack.c.bf16 %v12948_v9, %v12949_v16 }
 0x568   :  { %v4709_v30 = vadd.f32 %v11767_v8, %v4708_v20  ;;  %6239 = vmatprep.mubr.msk.bf16.mxu1 %vm6479_vm0, %v12749_v37 }
 0x569   :  { %v6141_v18 = vpop.f32.mrf.mxu1 }
 0x56a   :  { %v5126_v21 = vadd.f32 %v5125_v5, %v4709_v30 }
 0x56b   :  { %v4711_v14 = vpop.f32.mrf.mxu1 }
 0x56c   :  { %v4712_v7 = vadd.f32 %v11767_v8, %v4711_v14  ;;  %v12952_v14 = vld [vmem:[#allocation169_spill] sm:$0xff] }
 0x56d   :  { %v6142_v51 = vpop.f32.mrf.mxu1 }
 0x56e   :  { %v5127_v1 = vadd.f32 %v5126_v21, %v4712_v7  ;;  %v12951_v21 = vld [vmem:[#allocation172_spill] sm:$0xff] }
 0x56f   :  { %v4716_v45 = vpop.f32.mrf.mxu1  ;;  %6240 = vmatmul.mubr.bf16.gmra.mxu1 %v12944_v42  ;;  %v12953_v7 = vpack.c.bf16 %v12951_v21, %v12952_v14  ;;  %v6436_v21 = vld [vmem:[%s12248_s5 + $0x8] sm:$0xff]  }
 0x570   :  { %v4717_v27 = vadd.f32 %v11767_v8, %v4716_v45  ;;  %6243 = vmatprep.mubr.msk.bf16.mxu1 %vm6479_vm0, %v12749_v37  ;;  %6324 = vmatpush3.bf16.msra.mxu0 %v6436_v21 }
 0x571   :  { %v6145_v33 = vpop.f32.mrf.mxu1  ;;  %6325 = vmatprep.subr.bf16.mxu0 %v12749_v37 }
 0x572   :  { %v5128_v26 = vadd.f32 %v5127_v1, %v4717_v27 }
 0x573   :  { %v4719_v29 = vpop.f32.mrf.mxu1 }
 0x574   :  { %v4720_v63 = vadd.f32 %v11767_v8, %v4719_v29  ;;  %v12955_v29 = vld [vmem:[#allocation174_spill] sm:$0xff] }
 0x575   :  { %v6146_v43 = vpop.f32.mrf.mxu1 }
 0x576   :  { %v5129_v49 = vadd.f32 %v5128_v26, %v4720_v63  ;;  %v12954_v26 = vld [vmem:[#allocation177_spill] sm:$0xff] }
 0x577   :  { %v4724_v34 = vpop.f32.mrf.mxu1  ;;  %6244 = vmatmul.mubr.bf16.gmra.mxu1 %v12947_v39  ;;  %v12956_v63 = vpack.c.bf16 %v12954_v26, %v12955_v29 }
 0x578   :  { %v4725_v12 = vadd.f32 %v11767_v8, %v4724_v34  ;;  %6247 = vmatprep.mubr.msk.bf16.mxu1 %vm6479_vm0, %v12749_v37 }
 0x579   :  { %v6149_v25 = vpop.f32.mrf.mxu1 }
 0x57a   :  { %v5130_v57 = vadd.f32 %v5129_v49, %v4725_v12 }
 0x57b   :  { %v4727_v19 = vpop.f32.mrf.mxu1 }
 0x57c   :  { %v4728_v4 = vadd.f32 %v11767_v8, %v4727_v19  ;;  %v12958_v19 = vld [vmem:[#allocation179_spill] sm:$0xff] }
 0x57d   :  { %v6150_v35 = vpop.f32.mrf.mxu1 }
 0x57e   :  { %v5131_v10 = vadd.f32 %v5130_v57, %v4728_v4  ;;  %v12957_v57 = vld [vmem:[#allocation182_spill] sm:$0xff] }
 0x57f   :  { %v4732_v58 = vpop.f32.mrf.mxu1  ;;  %6248 = vmatmul.mubr.bf16.gmra.mxu1 %v12950_v17  ;;  %v12959_v4 = vpack.c.bf16 %v12957_v57, %v12958_v19 }
 0x580   :  { %v4733_v0 = vadd.f32 %v11767_v8, %v4732_v58  ;;  %6251 = vmatprep.mubr.msk.bf16.mxu1 %vm6479_vm0, %v12749_v37 }
 0x581   :  { %v6153_v5 = vpop.f32.mrf.mxu1 }
 0x582   :  { %v5132_v20 = vadd.f32 %v5131_v10, %v4733_v0 }
 0x583   :  { %v4735_v40 = vpop.f32.mrf.mxu1 }
 0x584   :  { %v4736_v52 = vadd.f32 %v11767_v8, %v4735_v40  ;;  %v12961_v40 = vld [vmem:[#allocation185_spill] sm:$0xff] }
 0x585   :  { %v6154_v48 = vpop.f32.mrf.mxu1 }
 0x586   :  { %v5133_v30 = vadd.f32 %v5132_v20, %v4736_v52  ;;  %v12960_v20 = vld [vmem:[#allocation189_spill] sm:$0xff] }
 0x587   :  { %v4740_v18 = vpop.f32.mrf.mxu1  ;;  %6252 = vmatmul.mubr.bf16.gmra.mxu1 %v12953_v7  ;;  %v12962_v52 = vpack.c.bf16 %v12960_v20, %v12961_v40  ;;  %v12968_v20 = vpack.c.bf16 %v11485_v28, %v11453_v59  ;;  %v12140_v59 = vld [vmem:[%s12249_s4] ss:$0 sm:$0xff] }
 0x588   :  { %v4741_v51 = vadd.f32 %v11767_v8, %v4740_v18  ;;  %6255 = vmatprep.mubr.msk.bf16.mxu1 %vm6479_vm0, %v12749_v37 }
 0x589   :  { %v6157_v1 = vpop.f32.mrf.mxu1 }
 0x58a   :  { %v5134_v45 = vadd.f32 %v5133_v30, %v4741_v51 }
 0x58b   :  { %v4743_v55 = vpop.f32.mrf.mxu1 }
 0x58c   :  { %v4744_v44 = vadd.f32 %v11767_v8, %v4743_v55  ;;  %v12963_v55 = vld [vmem:[#allocation194_spill] sm:$0xff] }
 0x58d   :  { %v6158_v42 = vpop.f32.mrf.mxu1 }
 0x58e   :  { %v5135_v27 = vadd.f32 %v5134_v45, %v4744_v44  ;;  %v12964_v44 = vld [vmem:[#allocation193_spill] sm:$0xff] }
 0x58f   :  { %v4748_v33 = vpop.f32.mrf.mxu1  ;;  %6256 = vmatmul.mubr.bf16.gmra.mxu1 %v12956_v63  ;;  %v12965_v42 = vpack.c.bf16 %v12963_v55, %v12964_v44 }
 0x590   :  { %v4749_v43 = vadd.f32 %v11767_v8, %v4748_v33  ;;  %6259 = vmatprep.mubr.msk.bf16.mxu1 %vm6479_vm0, %v12749_v37 }
 0x591   :  { %v6161_v49 = vpop.f32.mrf.mxu1 }
 0x592   :  { %v5136_v34 = vadd.f32 %v5135_v27, %v4749_v43 }
 0x593   :  { %v4751_v23 = vpop.f32.mrf.mxu1 }
 0x594   :  { %v4752_v6 = vadd.f32 %v11767_v8, %v4751_v23  ;;  %v12966_v23 = vpack.c.bf16 %v11352_v15, %v11322_v36 }
 0x595   :  { %v6162_v39 = vpop.f32.mrf.mxu1 }
 0x596   :  { %v5137_v12 = vadd.f32 %v5136_v34, %v4752_v6 }
 0x597   :  { %v4756_v25 = vpop.f32.mrf.mxu1  ;;  %6260 = vmatmul.mubr.bf16.gmra.mxu1 %v12959_v4 }
 0x598   :  { %v4757_v35 = vadd.f32 %v11767_v8, %v4756_v25  ;;  %6263 = vmatprep.mubr.msk.bf16.mxu1 %vm6479_vm0, %v12749_v37 }
 0x599   :  { %v6165_v10 = vpop.f32.mrf.mxu1 }
 0x59a   :  { %v5138_v58 = vadd.f32 %v5137_v12, %v4757_v35  ;;  %v12967_v10 = vpack.c.bf16 %v11419_v32, %v11382_v54 }
 0x59b   :  { %v4759_v9 = vpop.f32.mrf.mxu1 }
 0x59c   :  { %v4760_v16 = vadd.f32 %v11767_v8, %v4759_v9 }
 0x59d   :  { %v6166_v17 = vpop.f32.mrf.mxu1 }
 0x59e   :  { %v5139_v0 = vadd.f32 %v5138_v58, %v4760_v16 }
 0x59f   :  { %v4764_v5 = vpop.f32.mrf.mxu1  ;;  %6264 = vmatmul.mubr.bf16.gmra.mxu1 %v12962_v52 }
 0x5a0   :  { %v4765_v48 = vadd.f32 %v11767_v8, %v4764_v5  ;;  %6267 = vmatprep.mubr.msk.bf16.mxu1 %vm6479_vm0, %v12749_v37 }
 0x5a1   :  { %v6169_v30 = vpop.f32.mrf.mxu1 }
 0x5a2   :  { %v5140_v18 = vadd.f32 %v5139_v0, %v4765_v48 }
 0x5a3   :  { %v4767_v14 = vpop.f32.mrf.mxu1 }
 0x5a4   :  { %v4768_v7 = vadd.f32 %v11767_v8, %v4767_v14  ;;  %v12969_v14 = vpack.c.bf16 %v11385_v24, %v11511_v11  ;;  %v12970_v24 = vpack.c.bf16 %v11456_v31, %v11425_v56 }
 0x5a5   :  { %v6170_v51 = vpop.f32.mrf.mxu1 }
 0x5a6   :  { %v5141_v1 = vadd.f32 %v5140_v18, %v4768_v7 }
 0x5a7   :  { %v4772_v45 = vpop.f32.mrf.mxu1  ;;  %6268 = vmatmul.mubr.bf16.gmra.mxu1 %v12965_v42 }
 0x5a8   :  { %v4773_v27 = vadd.f32 %v11767_v8, %v4772_v45  ;;  %6271 = vmatprep.mubr.msk.bf16.mxu1 %vm6479_vm0, %v12749_v37 }
 0x5a9   :  { %v6173_v33 = vpop.f32.mrf.mxu1 }
 0x5aa   :  { %v5142_v26 = vadd.f32 %v5141_v1, %v4773_v27 }
 0x5ab   :  { %v4775_v29 = vpop.f32.mrf.mxu1 }
 0x5ac   :  { %v4776_v63 = vadd.f32 %v11767_v8, %v4775_v29 }
 0x5ad   :  { %v6174_v43 = vpop.f32.mrf.mxu1 }
 0x5ae   :  { %v5143_v49 = vadd.f32 %v5142_v26, %v4776_v63 }
 0x5af   :  { %v4780_v34 = vpop.f32.mrf.mxu1  ;;  %6272 = vmatmul.mubr.bf16.gmra.mxu1 %v12966_v23 }
 0x5b0   :  { %v4781_v6 = vadd.f32 %v11767_v8, %v4780_v34  ;;  %6275 = vmatprep.mubr.msk.bf16.mxu1 %vm6479_vm0, %v12749_v37 }
 0x5b1   :  { %v6177_v39 = vpop.f32.mrf.mxu1 }
 0x5b2   :  { %v5144_v12 = vadd.f32 %v5143_v49, %v4781_v6  ;;  %v12971_v49 = vpack.c.bf16 %v11523_v13, %v11514_v41 }
 0x5b3   :  { %v4783_v25 = vpop.f32.mrf.mxu1 }
 0x5b4   :  { %v4784_v57 = vadd.f32 %v11767_v8, %v4783_v25 }
 0x5b5   :  { %v6178_v19 = vpop.f32.mrf.mxu1 }
 0x5b6   :  { %v5145_v4 = vadd.f32 %v5144_v12, %v4784_v57  ;;  %v12972_v57 = vpack.c.bf16 %v11548_v53, %v11566_v2 }
 0x5b7   :  { %v4788_v35 = vpop.f32.mrf.mxu1  ;;  %6276 = vmatmul.mubr.bf16.gmra.mxu1 %v12967_v10 }
 0x5b8   :  { %v4789_v36 = vadd.f32 %v11767_v8, %v4788_v35  ;;  %6279 = vmatprep.mubr.msk.bf16.mxu1 %vm6479_vm0, %v12749_v37 }
 0x5b9   :  { %v6181_v15 = vpop.f32.mrf.mxu1 }
 0x5ba   :  { %v5146_v58 = vadd.f32 %v5145_v4, %v4789_v36 }
 0x5bb   :  { %v4791_v9 = vpop.f32.mrf.mxu1 }
 0x5bc   :  { %v4792_v16 = vadd.f32 %v11767_v8, %v4791_v9 }
 0x5bd   :  { %v6182_v17 = vpop.f32.mrf.mxu1 }
 0x5be   :  { %v5147_v0 = vadd.f32 %v5146_v58, %v4792_v16 }
 0x5bf   :  { %v4796_v5 = vpop.f32.mrf.mxu1  ;;  %6280 = vmatmul.mubr.bf16.gmra.mxu1 %v12968_v20  ;;  %v6437_v20 = vld [vmem:[%s12248_s5] sm:$0xff]  }
 0x5c0   :  { %v4797_v54 = vadd.f32 %v11767_v8, %v4796_v5  ;;  %6283 = vmatprep.mubr.msk.bf16.mxu1 %vm6479_vm0, %v12749_v37  ;;  %6326 = vmatpush3.bf16.msra.mxu0 %v6437_v20 }
 0x5c1   :  { %v6185_v32 = vpop.f32.mrf.mxu1 }
 0x5c2   :  { %v5148_v40 = vadd.f32 %v5147_v0, %v4797_v54 }
 0x5c3   :  { %v4799_v52 = vpop.f32.mrf.mxu1 }
 0x5c4   :  { %v4800_v48 = vadd.f32 %v11767_v8, %v4799_v52 }
 0x5c5   :  { %v6186_v30 = vpop.f32.mrf.mxu1 }
 0x5c6   :  { %v5149_v18 = vadd.f32 %v5148_v40, %v4800_v48 }
 0x5c7   :  { %v4804_v21 = vpop.f32.mrf.mxu1  ;;  %6284 = vmatmul.mubr.bf16.gmra.mxu1 %v12969_v14 }
 0x5c8   :  { %v4805_v28 = vadd.f32 %v12140_v59, %v4804_v21  ;;  %6287 = vmatprep.mubr.msk.bf16.mxu1 %vm6479_vm0, %v12749_v37 }
 0x5c9   :  { %v6189_v7 = vpop.f32.mrf.mxu1 }
 0x5ca   :  { %v5150_v51 = vadd.f32 %v5149_v18, %v4805_v28 }
 0x5cb   :  { %v4807_v8 = vpop.f32.mrf.mxu1 }
 0x5cc   :  { %v4808_v1 = vadd.f32 %v12140_v59, %v4807_v8 }
 0x5cd   :  { %v6190_v45 = vpop.f32.mrf.mxu1 }
 0x5ce   :  { %v5151_v55 = vadd.f32 %v5150_v51, %v4808_v1 }
 0x5cf   :  { %v4812_v44 = vpop.f32.mrf.mxu1  ;;  %6288 = vmatmul.mubr.bf16.gmra.mxu1 %v12970_v24 }
 0x5d0   :  { %v4813_v11 = vadd.f32 %v12140_v59, %v4812_v44  ;;  %6291 = vmatprep.mubr.msk.bf16.mxu1 %vm6479_vm0, %v12749_v37 }
 0x5d1   :  { %v6193_v42 = vpop.f32.mrf.mxu1 }
 0x5d2   :  { %v5152_v27 = vadd.f32 %v5151_v55, %v4813_v11 }
 0x5d3   :  { %v4815_v33 = vpop.f32.mrf.mxu1 }
 0x5d4   :  { %v4816_v26 = vadd.f32 %v12140_v59, %v4815_v33 }
 0x5d5   :  { %v6194_v29 = vpop.f32.mrf.mxu1 }
 0x5d6   :  { %v5153_v63 = vadd.f32 %v5152_v27, %v4816_v26 }
 0x5d7   :  { %v4820_v43 = vpop.f32.mrf.mxu1  ;;  %6292 = vmatmul.mubr.bf16.gmra.mxu1 %v12971_v49 }
 0x5d8   :  { %v4821_v56 = vadd.f32 %v12140_v59, %v4820_v43  ;;  %6295 = vmatprep.mubr.msk.bf16.mxu1 %vm6479_vm0, %v12749_v37 }
 0x5d9   :  { %v6197_v31 = vpop.f32.mrf.mxu1 }
 0x5da   :  { %v5154_v34 = vadd.f32 %v5153_v63, %v4821_v56 }
 0x5db   :  { %v4823_v23 = vpop.f32.mrf.mxu1 }
 0x5dc   :  { %v4824_v6 = vadd.f32 %v12140_v59, %v4823_v23 }
 0x5dd   :  { %v6198_v39 = vpop.f32.mrf.mxu1 }
 0x5de   :  { %v5155_v12 = vadd.f32 %v5154_v34, %v4824_v6 }
 0x5df   :  { %v4828_v25 = vpop.f32.mrf.mxu1  ;;  %6296 = vmatmul.mubr.bf16.gmra.mxu1 %v12972_v57 }
 0x5e0   :  { %v4829_v41 = vadd.f32 %v12140_v59, %v4828_v25  ;;  %6299 = vmatprep.mubr.msk.bf16.mxu1 %vm6479_vm0, %v12749_v37 }
 0x5e1   :  { %v6201_v13 = vpop.f32.mrf.mxu1 }
 0x5e2   :  { %v5156_v19 = vadd.f32 %v5155_v12, %v4829_v41 }
 0x5e3   :  { %v4831_v4 = vpop.f32.mrf.mxu1 }
 0x5e4   :  { %v4832_v35 = vadd.f32 %v12140_v59, %v4831_v4 }
 0x5e5   :  { %v6202_v10 = vpop.f32.mrf.mxu1 }
 0x5e6   :  { %v5157_v36 = vadd.f32 %v5156_v19, %v4832_v35 }
 0x5e7   :  { %v4836_v15 = vpop.f32.mrf.mxu1  ;;  %6300 = vmatmul.mubr.bf16.gmra.mxu1 %v4296_v38 }
 0x5e8   :  { %v4837_v53 = vadd.f32 %v12140_v59, %v4836_v15  ;;  %6303 = vmatprep.mubr.msk.bf16.mxu1 %vm6479_vm0, %v12749_v37 }
 0x5e9   :  { %v6205_v2 = vpop.f32.mrf.mxu1 }
 0x5ea   :  { %v5158_v58 = vadd.f32 %v5157_v36, %v4837_v53 }
 0x5eb   :  { %v4839_v9 = vpop.f32.mrf.mxu1 }
 0x5ec   :  { %v4840_v16 = vadd.f32 %v12140_v59, %v4839_v9 }
 0x5ed   :  { %v6206_v17 = vpop.f32.mrf.mxu1 }
 0x5ee   :  { %v5159_v0 = vadd.f32 %v5158_v58, %v4840_v16 }
 0x5ef   :  { %v4844_v5 = vpop.f32.mrf.mxu1  ;;  %6304 = vmatmul.mubr.bf16.gmra.mxu1 %v4297_v60 }
 0x5f0   :  { %v4845_v22 = vadd.f32 %v12140_v59, %v4844_v5  ;;  %6307 = vmatprep.mubr.msk.bf16.mxu1 %vm6479_vm0, %v12749_v37 }
 0x5f1   :  { %v6209_v46 = vpop.f32.mrf.mxu1 }
 0x5f2   :  { %v5160_v38 = vadd.f32 %v5159_v0, %v4845_v22 }
 0x5f3   :  { %v4847_v54 = vpop.f32.mrf.mxu1 }
 0x5f4   :  { %v4848_v32 = vadd.f32 %v12140_v59, %v4847_v54 }
 0x5f5   :  { %v6210_v40 = vpop.f32.mrf.mxu1 }
 0x5f6   :  { %v5161_v52 = vadd.f32 %v5160_v38, %v4848_v32 }
 0x5f7   :  { %v4852_v48 = vpop.f32.mrf.mxu1  ;;  %6308 = vmatmul.mubr.bf16.gmra.mxu1 %v4298_v50 }
 0x5f8   :  { %v4853_v3 = vadd.f32 %v12140_v59, %v4852_v48 }
 0x5f9   :  { %v6213_v37 = vpop.f32.mrf.mxu1 }
 0x5fa   :  { %v5162_v61 = vadd.f32 %v5161_v52, %v4853_v3 }
 0x5fb   :  { %v4855_v60 = vpop.f32.mrf.mxu1 }
 0x5fc   :  { %v4856_v30 = vadd.f32 %v12140_v59, %v4855_v60 }
 0x5fd   :  { %v6214_v18 = vpop.f32.mrf.mxu1 }
 0x5fe   :  { %v5163_v21 = vadd.f32 %v5162_v61, %v4856_v30 }
 0x5ff   :  { %v4860_v14 = vpop.f32.mrf.mxu1 }
 0x600   :  { %v4861_v28 = vadd.f32 %v12140_v59, %v4860_v14 }
 0x601   :  { %v6217_v7 = vpop.f32.mrf.mxu1 }
 0x602   :  { %v5164_v51 = vadd.f32 %v5163_v21, %v4861_v28 }
 0x603   :  { %v4863_v8 = vpop.f32.mrf.mxu1 }
 0x604   :  { %v4864_v1 = vadd.f32 %v12140_v59, %v4863_v8 }
 0x605   :  { %v6218_v45 = vpop.f32.mrf.mxu1 }
 0x606   :  { %v5165_v47 = vadd.f32 %v5164_v51, %v4864_v1 }
 0x607   :  { %v4868_v62 = vpop.f32.mrf.mxu1 }
 0x608   :  { %v4869_v50 = vadd.f32 %v12140_v59, %v4868_v62 }
 0x609   :  { %v6221_v55 = vpop.f32.mrf.mxu1 }
 0x60a   :  { %v5166_v44 = vadd.f32 %v5165_v47, %v4869_v50 }
 0x60b   :  { %v4871_v24 = vpop.f32.mrf.mxu1 }
 0x60c   :  { %v4872_v11 = vadd.f32 %v12140_v59, %v4871_v24 }
 0x60d   :  { %v6222_v42 = vpop.f32.mrf.mxu1 }
 0x60e   :  { %v5167_v27 = vadd.f32 %v5166_v44, %v4872_v11 }
 0x60f   :  { %v4876_v33 = vpop.f32.mrf.mxu1 }
 0x610   :  { %v4877_v26 = vadd.f32 %v12140_v59, %v4876_v33 }
 0x611   :  { %v6225_v29 = vpop.f32.mrf.mxu1 }
 0x612   :  { %v5168_v63 = vadd.f32 %v5167_v27, %v4877_v26 }
 0x613   :  { %v4879_v43 = vpop.f32.mrf.mxu1 }
 0x614   :  { %v4880_v49 = vadd.f32 %v12140_v59, %v4879_v43 }
 0x615   :  { %v6226_v56 = vpop.f32.mrf.mxu1 }
 0x616   :  { %v5169_v31 = vadd.f32 %v5168_v63, %v4880_v49 }
 0x617   :  { %v4884_v34 = vpop.f32.mrf.mxu1 }
 0x618   :  { %v4885_v23 = vadd.f32 %v12140_v59, %v4884_v34 }
 0x619   :  { %v6229_v6 = vpop.f32.mrf.mxu1 }
 0x61a   :  { %v5170_v39 = vadd.f32 %v5169_v31, %v4885_v23 }
 0x61b   :  { %v4887_v12 = vpop.f32.mrf.mxu1 }
 0x61c   :  { %v4888_v25 = vadd.f32 %v12140_v59, %v4887_v12 }
 0x61d   :  { %v6230_v57 = vpop.f32.mrf.mxu1 }
 0x61e   :  { %v5171_v41 = vadd.f32 %v5170_v39, %v4888_v25 }
 0x61f   :  { %v4892_v13 = vpop.f32.mrf.mxu1 }
 0x620   :  { %v4893_v19 = vadd.f32 %v12140_v59, %v4892_v13 }
 0x621   :  { %v6233_v4 = vpop.f32.mrf.mxu1 }
 0x622   :  { %v5172_v35 = vadd.f32 %v5171_v41, %v4893_v19 }
 0x623   :  { %v4895_v10 = vpop.f32.mrf.mxu1 }
 0x624   :  { %v4896_v36 = vadd.f32 %v12140_v59, %v4895_v10 }
 0x625   :  { %v6234_v15 = vpop.f32.mrf.mxu1 }
 0x626   :  { %v5173_v53 = vadd.f32 %v5172_v35, %v4896_v36 }
 0x627   :  { %v4900_v2 = vpop.f32.mrf.mxu1 }
 0x628   :  { %v4901_v58 = vadd.f32 %v12140_v59, %v4900_v2 }
 0x629   :  { %v6237_v9 = vpop.f32.mrf.mxu1 }
 0x62a   :  { %v5174_v16 = vadd.f32 %v5173_v53, %v4901_v58 }
 0x62b   :  { %v4903_v17 = vpop.f32.mrf.mxu1 }
 0x62c   :  { %v4904_v0 = vadd.f32 %v12140_v59, %v4903_v17 }
 0x62d   :  { %v6238_v5 = vpop.f32.mrf.mxu1 }
 0x62e   :  { %v5175_v22 = vadd.f32 %v5174_v16, %v4904_v0 }
 0x62f   :  { %v4908_v46 = vpop.f32.mrf.mxu1 }
 0x630   :  { %v4909_v38 = vadd.f32 %v12140_v59, %v4908_v46 }
 0x631   :  { %v6241_v20 = vpop.f32.mrf.mxu1 }
 0x632   :  { %v5176_v54 = vadd.f32 %v5175_v22, %v4909_v38 }
 0x633   :  { %v4911_v32 = vpop.f32.mrf.mxu1 }
 0x634   :  { %v4912_v40 = vadd.f32 %v12140_v59, %v4911_v32 }
 0x635   :  { %v6242_v52 = vpop.f32.mrf.mxu1 }
 0x636   :  { %v5177_v48 = vadd.f32 %v5176_v54, %v4912_v40 }
 0x637   :  { %v4916_v3 = vpop.f32.mrf.mxu1 }
 0x638   :  { %v4917_v37 = vadd.f32 %v12140_v59, %v4916_v3 }
 0x639   :  { %v6245_v61 = vpop.f32.mrf.mxu1 }
 0x63a   :  { %v5178_v60 = vadd.f32 %v5177_v48, %v4917_v37 }
 0x63b   :  { %v4919_v30 = vpop.f32.mrf.mxu1 }
 0x63c   :  { %v4920_v18 = vadd.f32 %v12140_v59, %v4919_v30 }
 0x63d   :  { %v6246_v21 = vpop.f32.mrf.mxu1 }
 0x63e   :  { %v5179_v14 = vadd.f32 %v5178_v60, %v4920_v18 }
 0x63f   :  { %v4924_v28 = vpop.f32.mrf.mxu1 }
 0x640   :  { %v4925_v13 = vadd.f32 %v12140_v59, %v4924_v28 }
 0x641   :  { %v6249_v7 = vpop.f32.mrf.mxu1 }
 0x642   :  { %v5180_v10 = vadd.f32 %v5179_v14, %v4925_v13 }
 0x643   :  { %v4927_v51 = vpop.f32.mrf.mxu1 }
 0x644   :  { %v4928_v4 = vadd.f32 %v12140_v59, %v4927_v51 }
 0x645   :  { %v6250_v8 = vpop.f32.mrf.mxu1 }
 0x646   :  { %v5181_v53 = vadd.f32 %v5180_v10, %v4928_v4 }
 0x647   :  { %v4932_v1 = vpop.f32.mrf.mxu1 }
 0x648   :  { %v4933_v36 = vadd.f32 %v12140_v59, %v4932_v1 }
 0x649   :  { %v6253_v45 = vpop.f32.mrf.mxu1 }
 0x64a   :  { %v5182_v9 = vadd.f32 %v5181_v53, %v4933_v36 }
 0x64b   :  { %v4935_v47 = vpop.f32.mrf.mxu1 }
 0x64c   :  { %v4936_v2 = vadd.f32 %v12140_v59, %v4935_v47 }
 0x64d   :  { %v6254_v62 = vpop.f32.mrf.mxu1 }
 0x64e   :  { %v5183_v0 = vadd.f32 %v5182_v9, %v4936_v2 }
 0x64f   :  { %v4940_v50 = vpop.f32.mrf.mxu1 }
 0x650   :  { %v4941_v16 = vadd.f32 %v12140_v59, %v4940_v50 }
 0x651   :  { %v6257_v55 = vpop.f32.mrf.mxu1 }
 0x652   :  { %v5184_v46 = vadd.f32 %v5183_v0, %v4941_v16 }
 0x653   :  { %v4943_v44 = vpop.f32.mrf.mxu1 }
 0x654   :  { %v4944_v5 = vadd.f32 %v12140_v59, %v4943_v44 }
 0x655   :  { %v6258_v24 = vpop.f32.mrf.mxu1 }
 0x656   :  { %v5185_v54 = vadd.f32 %v5184_v46, %v4944_v5 }
 0x657   :  { %v4948_v11 = vpop.f32.mrf.mxu1 }
 0x658   :  { %v4949_v38 = vadd.f32 %v12140_v59, %v4948_v11 }
 0x659   :  { %v6261_v42 = vpop.f32.mrf.mxu1 }
 0x65a   :  { %v5186_v52 = vadd.f32 %v5185_v54, %v4949_v38 }
 0x65b   :  { %v4951_v27 = vpop.f32.mrf.mxu1 }
 0x65c   :  { %v4952_v32 = vadd.f32 %v12140_v59, %v4951_v27 }
 0x65d   :  { %v6262_v33 = vpop.f32.mrf.mxu1 }
 0x65e   :  { %v5187_v37 = vadd.f32 %v5186_v52, %v4952_v32 }
 0x65f   :  { %v4956_v26 = vpop.f32.mrf.mxu1 }
 0x660   :  { %v4957_v48 = vadd.f32 %v12140_v59, %v4956_v26 }
 0x661   :  { %v6265_v29 = vpop.f32.mrf.mxu1 }
 0x662   :  { %v5188_v30 = vadd.f32 %v5187_v37, %v4957_v48 }
 0x663   :  { %v4959_v63 = vpop.f32.mrf.mxu1 }
 0x664   :  { %v4960_v61 = vadd.f32 %v12140_v59, %v4959_v63 }
 0x665   :  { %v6266_v43 = vpop.f32.mrf.mxu1 }
 0x666   :  { %v5189_v14 = vadd.f32 %v5188_v30, %v4960_v61 }
 0x667   :  { %v4964_v49 = vpop.f32.mrf.mxu1 }
 0x668   :  { %v4965_v18 = vadd.f32 %v12140_v59, %v4964_v49 }
 0x669   :  { %v6269_v56 = vpop.f32.mrf.mxu1 }
 0x66a   :  { %v5190_v51 = vadd.f32 %v5189_v14, %v4965_v18 }
 0x66b   :  { %v4967_v31 = vpop.f32.mrf.mxu1 }
 0x66c   :  { %v4968_v28 = vadd.f32 %v12140_v59, %v4967_v31 }
 0x66d   :  { %v6270_v34 = vpop.f32.mrf.mxu1 }
 0x66e   :  { %v5191_v45 = vadd.f32 %v5190_v51, %v4968_v28 }
 0x66f   :  { %v4972_v23 = vpop.f32.mrf.mxu1 }
 0x670   :  { %v4973_v8 = vadd.f32 %v12140_v59, %v4972_v23 }
 0x671   :  { %v6273_v6 = vpop.f32.mrf.mxu1 }
 0x672   :  { %v5192_v50 = vadd.f32 %v5191_v45, %v4973_v8  ;;  %v5435_v8 = vld [vmem:[%s12250_s6] ss:$0 sm:$0xff] }
 0x673   :  { %v4975_v39 = vpop.f32.mrf.mxu1 }
 0x674   :  { %v4976_v47 = vadd.f32 %v12140_v59, %v4975_v39 }
 0x675   :  { %v6274_v12 = vpop.f32.mrf.mxu1 }
 0x676   :  { %v5193_v24 = vadd.f32 %v5192_v50, %v4976_v47 }
 0x677   :  { %v4980_v25 = vpop.f32.mrf.mxu1 }
 0x678   :  { %v4981_v55 = vadd.f32 %v12140_v59, %v4980_v25 }
 0x679   :  { %v6277_v57 = vpop.f32.mrf.mxu1 }
 0x67a   :  { %v5194_v27 = vadd.f32 %v5193_v24, %v4981_v55 }
 0x67b   :  { %v4983_v41 = vpop.f32.mrf.mxu1 }
 0x67c   :  { %v4984_v11 = vadd.f32 %v12140_v59, %v4983_v41 }
 0x67d   :  { %v6278_v19 = vpop.f32.mrf.mxu1 }
 0x67e   :  { %v5195_v29 = vadd.f32 %v5194_v27, %v4984_v11 }
 0x67f   :  { %v4988_v35 = vpop.f32.mrf.mxu1 }
 0x680   :  { %v4989_v33 = vadd.f32 %v12140_v59, %v4988_v35 }
 0x681   :  { %v6281_v15 = vpop.f32.mrf.mxu1 }
 0x682   :  { %v5196_v49 = vadd.f32 %v5195_v29, %v4989_v33 }
 0x683   :  { %v4991_v58 = vpop.f32.mrf.mxu1 }
 0x684   :  { %v4992_v63 = vadd.f32 %v12140_v59, %v4991_v58 }
 0x685   :  { %v6282_v17 = vpop.f32.mrf.mxu1 }
 0x686   :  { %v5197_v34 = vadd.f32 %v5196_v49, %v4992_v63 }
 0x687   :  { %v4996_v22 = vpop.f32.mrf.mxu1 }
 0x688   :  { %v4997_v56 = vadd.f32 %v12140_v59, %v4996_v22 }
 0x689   :  { %v6285_v20 = vpop.f32.mrf.mxu1 }
 0x68a   :  { %v5198_v39 = vadd.f32 %v5197_v34, %v4997_v56 }
 0x68b   :  { %v4999_v40 = vpop.f32.mrf.mxu1 }
 0x68c   :  { %v5000_v23 = vadd.f32 %v12140_v59, %v4999_v40 }
 0x68d   :  { %v6286_v3 = vpop.f32.mrf.mxu1 }
 0x68e   :  { %v5199_v57 = vadd.f32 %v5198_v39, %v5000_v23 }
 0x68f   :  { %v5004_v60 = vpop.f32.mrf.mxu1 }
 0x690   :  { %v5005_v12 = vadd.f32 %v12140_v59, %v5004_v60 }
 0x691   :  { %v6289_v21 = vpop.f32.mrf.mxu1 }
 0x692   :  { %v5200_v19 = vadd.f32 %v5199_v57, %v5005_v12 }
 0x693   :  { %v5007_v7 = vpop.f32.mrf.mxu1 }
 0x694   :  { %v5008_v41 = vadd.f32 %v12140_v59, %v5007_v7 }
 0x695   :  { %v6290_v1 = vpop.f32.mrf.mxu1 }
 0x696   :  { %v5201_v10 = vadd.f32 %v5200_v19, %v5008_v41 }
 0x697   :  { %v5012_v62 = vpop.f32.mrf.mxu1 }
 0x698   :  { %v5013_v4 = vadd.f32 %v12140_v59, %v5012_v62 }
 0x699   :  { %v6293_v44 = vpop.f32.mrf.mxu1 }
 0x69a   :  { %v5202_v53 = vadd.f32 %v5201_v10, %v5013_v4 }
 0x69b   :  { %v5015_v42 = vpop.f32.mrf.mxu1 }
 0x69c   :  { %v5016_v36 = vadd.f32 %v12140_v59, %v5015_v42 }
 0x69d   :  { %v6294_v26 = vpop.f32.mrf.mxu1 }
 0x69e   :  { %v5203_v9 = vadd.f32 %v5202_v53, %v5016_v36 }
 0x69f   :  { %v5020_v43 = vpop.f32.mrf.mxu1 }
 0x6a0   :  { %v5021_v2 = vadd.f32 %v12140_v59, %v5020_v43 }
 0x6a1   :  { %v6297_v31 = vpop.f32.mrf.mxu1 }
 0x6a2   :  { %v5204_v0 = vadd.f32 %v5203_v9, %v5021_v2 }
 0x6a3   :  { %v5023_v6 = vpop.f32.mrf.mxu1 }
 0x6a4   :  { %v5024_v16 = vadd.f32 %v12140_v59, %v5023_v6 }
 0x6a5   :  { %v6298_v25 = vpop.f32.mrf.mxu1 }
 0x6a6   :  { %v5205_v46 = vadd.f32 %v5204_v0, %v5024_v16 }
 0x6a7   :  { %v5028_v13 = vpop.f32.mrf.mxu1 }
 0x6a8   :  { %v5029_v5 = vadd.f32 %v12140_v59, %v5028_v13 }
 0x6a9   :  { %v6301_v35 = vpop.f32.mrf.mxu1 }
 0x6aa   :  { %v5206_v54 = vadd.f32 %v5205_v46, %v5029_v5 }
 0x6ab   :  { %v5031_v15 = vpop.f32.mrf.mxu1 }
 0x6ac   :  { %v5032_v38 = vadd.f32 %v12140_v59, %v5031_v15 }
 0x6ad   :  { %v6302_v58 = vpop.f32.mrf.mxu1 }
 0x6ae   :  { %v5207_v52 = vadd.f32 %v5206_v54, %v5032_v38 }
 0x6af   :  { %v5036_v17 = vpop.f32.mrf.mxu1 }
 0x6b0   :  { %v5037_v32 = vadd.f32 %v12140_v59, %v5036_v17 }
 0x6b1   :  { %v6305_v22 = vpop.f32.mrf.mxu1 }
 0x6b2   :  { %v5208_v37 = vadd.f32 %v5207_v52, %v5037_v32 }
 0x6b3   :  { %v5039_v20 = vpop.f32.mrf.mxu1 }
 0x6b4   :  { %v5040_v48 = vadd.f32 %v12140_v59, %v5039_v20 }
 0x6b5   :  { %v6306_v40 = vpop.f32.mrf.mxu1 }
 0x6b6   :  { %v5209_v30 = vadd.f32 %v5208_v37, %v5040_v48 }
 0x6b7   :  { %v5044_v3 = vpop.f32.mrf.mxu1 }
 0x6b8   :  { %v5045_v61 = vadd.f32 %v12140_v59, %v5044_v3 }
 0x6b9   :  { %v6309_v60 = vpop.f32.mrf.mxu1 }
 0x6ba   :  { %v5210_v21 = vadd.f32 %v5209_v30, %v5045_v61 }
 0x6bb   :  { %v5047_v18 = vpop.f32.mrf.mxu1 }
 0x6bc   :  { %v5048_v14 = vadd.f32 %v12140_v59, %v5047_v18 }
 0x6bd   :  { %v6310_v28 = vpop.f32.mrf.mxu1 }
 0x6be   :  { %v5211_v7 = vadd.f32 %v5210_v21, %v5048_v14 }
 0x6c0   :  { %v5212_v51 = vpack.c.bf16 %v5211_v7, %v5211_v7 }
 0x6c2   :  { %6328 = vmatmul.mubr.bf16.vlgmr.msra.gmra.mxu0 %v5212_v51 }
 0x782   :  { %v5318_v1 = vpop.f32.mrf.mxu0 }
 0x783   :  { %v5319_v45 = vadd.f32 %v5435_v8, %v5318_v1 }
 0x784   :  { %v6329_v47 = vpop.f32.mrf.mxu0 }
 0x785   :  { %5324 = vst [vmem:[%s12251_s8] sm:$0xff] %v5319_v45 }
 0x786   :  { %v5321_v62 = vpop.f32.mrf.mxu0 }
 0x788   :  { %v6330_v50 = vpop.f32.mrf.mxu0 }

</bundles_post_ra>
